<compile_context>
chip_gen: v7x
topology: tpu7x:2x2x1
jax: 0.10.0
libtpu: 0.0.40
codegen_flags: <defaults>
</compile_context>

<pallas_src>
import jax
import jax.numpy as jnp
from jax.experimental import pallas as pl
from jax.experimental.pallas import tpu as pltpu


def _round_up(x, m):
    return ((x + m - 1) // m) * m


def _double_conv_kernel(x_ref, w1_ref, b1_ref, w2_ref, b2_ref, o_ref,
                        xpad_ref, col1_ref, hpad_ref, col2_ref):
    """One batch element, fully fused DoubleConv.

    x_ref   : (1, H, W, Cp_in)   bf16
    w1_ref  : (9*Cp_in, Cp_out)  bf16   (tap-major flattened 3x3 weights)
    b1_ref  : (1, Cp_out)        f32
    w2_ref  : (9*Cp_out, Cp_out) bf16
    b2_ref  : (1, Cp_out)        f32
    o_ref   : (1, H, W, Cp_out)  f32
    scratch : xpad (H+2,W+2,Cp_in) bf16, col1 (H,W,9*Cp_in) bf16,
              hpad (H+2,W+2,Cp_out) bf16, col2 (H,W,9*Cp_out) bf16
    """
    H = o_ref.shape[1]
    W = o_ref.shape[2]
    cp_in = x_ref.shape[3]
    cp_out = o_ref.shape[3]

    # ------------------ stage 1: conv3x3(x) + bias + ReLU -----------------
    # In-kernel 'same' padding: zero-filled halo buffer in VMEM.
    xpad_ref[...] = jnp.zeros_like(xpad_ref)
    xpad_ref[1:H + 1, 1:W + 1, :] = x_ref[0]

    # im2col slab: one lane-aligned 128-multiple column block per tap.
    for dh in range(3):
        for dw in range(3):
            t = dh * 3 + dw
            col1_ref[:, :, t * cp_in:(t + 1) * cp_in] = (
                xpad_ref[dh:dh + H, dw:dw + W, :])

    y1 = jnp.dot(col1_ref[...].reshape(H * W, 9 * cp_in), w1_ref[...],
                 preferred_element_type=jnp.float32)
    y1 = jnp.maximum(y1 + b1_ref[...], 0.0)          # f32 epilogue

    # --------------- stage 2: conv3x3(relu1) + bias + ReLU ----------------
    # Intermediate activation stays in VMEM (bf16); never touches HBM.
    hpad_ref[...] = jnp.zeros_like(hpad_ref)
    hpad_ref[1:H + 1, 1:W + 1, :] = (
        y1.reshape(H, W, cp_out).astype(hpad_ref.dtype))

    for dh in range(3):
        for dw in range(3):
            t = dh * 3 + dw
            col2_ref[:, :, t * cp_out:(t + 1) * cp_out] = (
                hpad_ref[dh:dh + H, dw:dw + W, :])

    y2 = jnp.dot(col2_ref[...].reshape(H * W, 9 * cp_out), w2_ref[...],
                 preferred_element_type=jnp.float32)
    y2 = jnp.maximum(y2 + b2_ref[...], 0.0)
    o_ref[0] = y2.reshape(H, W, cp_out).astype(o_ref.dtype)


def double_conv_nhwc(x_nhwc, params):
    """Fused DoubleConv. x_nhwc: (B, H, W, Cin) f32 -> (B, H, W, Cout) f32."""
    w1, b1, w2, b2 = params            # w: (3, 3, Cin, Cout) f32, b: (Cout,) f32
    B, H, W, cin = x_nhwc.shape
    cout = w1.shape[-1]
    cp_in = _round_up(cin, 128)        # lane-dense channels
    cp_out = _round_up(cout, 128)

    # Channel padding + bf16 cast at the boundary (cheap: only channel dim).
    xp = jnp.pad(x_nhwc.astype(jnp.bfloat16),
                 ((0, 0), (0, 0), (0, 0), (0, cp_in - cin)))
    w1p = jnp.pad(w1.astype(jnp.bfloat16),
                  ((0, 0), (0, 0), (0, cp_in - cin), (0, cp_out - cout)))
    w2p = jnp.pad(w2.astype(jnp.bfloat16),
                  ((0, 0), (0, 0), (0, cp_out - cout), (0, cp_out - cout)))
    w1f = w1p.reshape(9 * cp_in, cp_out)      # tap-major, matches im2col layout
    w2f = w2p.reshape(9 * cp_out, cp_out)
    b1p = jnp.pad(b1, (0, cp_out - cout)).astype(jnp.float32).reshape(1, cp_out)
    b2p = jnp.pad(b2, (0, cp_out - cout)).astype(jnp.float32).reshape(1, cp_out)

    out = pl.pallas_call(
        _double_conv_kernel,
        out_shape=jax.ShapeDtypeStruct((B, H, W, cp_out), jnp.float32),
        grid_spec=pltpu.PrefetchScalarGridSpec(
            num_scalar_prefetch=0,
            grid=(B,),
            in_specs=[
                pl.BlockSpec((1, H, W, cp_in), lambda b: (b, 0, 0, 0)),
                pl.BlockSpec((9 * cp_in, cp_out), lambda b: (0, 0)),
                pl.BlockSpec((1, cp_out), lambda b: (0, 0)),
                pl.BlockSpec((9 * cp_out, cp_out), lambda b: (0, 0)),
                pl.BlockSpec((1, cp_out), lambda b: (0, 0)),
            ],
            out_specs=pl.BlockSpec((1, H, W, cp_out), lambda b: (b, 0, 0, 0)),
            scratch_shapes=[
                pltpu.VMEM((H + 2, W + 2, cp_in), jnp.bfloat16),     # xpad
                pltpu.VMEM((H, W, 9 * cp_in), jnp.bfloat16),         # col1
                pltpu.VMEM((H + 2, W + 2, cp_out), jnp.bfloat16),    # hpad
                pltpu.VMEM((H, W, 9 * cp_out), jnp.bfloat16),        # col2
            ],
        ),
        compiler_params=pltpu.CompilerParams(
            dimension_semantics=("parallel",),
        ),
    )(xp, w1f, b1p, w2f, b2p)
    return out[..., :cout]


def double_conv(x_nchw, params):
    """PyTorch-semantics DoubleConv forward. Input/output layout: NCHW.

    Note: in a full network keep activations NHWC (call double_conv_nhwc
    directly) and transpose only once at the model boundary.
    """
    x = jnp.transpose(x_nchw, (0, 2, 3, 1))       # NCHW -> NHWC
    y = double_conv_nhwc(x, params)
    return jnp.transpose(y, (0, 3, 1, 2))         # NHWC -> NCHW


def init_double_conv_params(key, in_channels, out_channels):
    """Deterministic synthetic init (shapes match nn.Conv2d(k=3, pad=1))."""
    k1, k2, k3, k4 = jax.random.split(key, 4)
    # Weights stored as (KH, KW, Cin, Cout) for the NHWC kernel.
    w1 = jax.random.normal(k1, (3, 3, in_channels, out_channels), jnp.float32) * 0.1
    b1 = jax.random.normal(k2, (out_channels,), jnp.float32) * 0.1
    w2 = jax.random.normal(k3, (3, 3, out_channels, out_channels), jnp.float32) * 0.1
    b2 = jax.random.normal(k4, (out_channels,), jnp.float32) * 0.1
    return (w1, b1, w2, b2)


def _reference_double_conv(x_nchw, params):
    """Pure-JAX reference, quantized at the same points as the kernel
    (bf16 inputs/weights/intermediate, f32 accumulation)."""
    w1, b1, w2, b2 = params

    def conv_relu(x, w, b):
        xq = x.astype(jnp.bfloat16).astype(jnp.float32)
        wq = w.astype(jnp.bfloat16).astype(jnp.float32)
        dn = jax.lax.conv_dimension_numbers(xq.shape, wq.shape,
                                            ("NCHW", "HWIO", "NCHW"))
        y = jax.lax.conv_general_dilated(
            xq, wq, window_strides=(1, 1), padding="SAME",
            dimension_numbers=dn, precision=jax.lax.Precision.HIGHEST)
        return jax.nn.relu(y + b.reshape(1, -1, 1, 1))

    h = conv_relu(x_nchw, w1, b1).astype(jnp.bfloat16).astype(jnp.float32)
    return conv_relu(h, w2, b2)


if __name__ == "__main__":
    key = jax.random.PRNGKey(0)
    kx, kp = jax.random.split(key)

    B, Cin, Cout, H, W = 2, 4, 8, 16, 16
    x = jax.random.normal(kx, (B, Cin, H, W), jnp.float32)
    params = init_double_conv_params(kp, Cin, Cout)

    out = double_conv(x, params)
    out = jax.block_until_ready(out)

    ref = _reference_double_conv(x, params)
    assert out.shape == (B, Cout, H, W)
    assert jnp.allclose(out, ref, atol=1e-2, rtol=1e-2), "mismatch vs JAX reference"

    print("KERNEL_OK")
</pallas_src>

<mosaic_0001>
module attributes {stable_mosaic.version = 11 : i64} {
  func.func @_double_conv_kernel(%arg0: i32, %arg1: memref<1x16x16x128xbf16, #tpu.memory_space<vmem>>, %arg2: memref<1152x128xbf16, #tpu.memory_space<vmem>>, %arg3: memref<1x128xf32, #tpu.memory_space<vmem>>, %arg4: memref<1152x128xbf16, #tpu.memory_space<vmem>>, %arg5: memref<1x128xf32, #tpu.memory_space<vmem>>, %arg6: memref<1x16x16x128xf32, #tpu.memory_space<vmem>>, %arg7: memref<18x18x128xbf16, #tpu.memory_space<vmem>>, %arg8: memref<16x16x1152xbf16, #tpu.memory_space<vmem>>, %arg9: memref<18x18x128xbf16, #tpu.memory_space<vmem>>, %arg10: memref<16x16x1152xbf16, #tpu.memory_space<vmem>>) attributes {dimension_semantics = [#tpu.dimension_semantics<parallel>], iteration_bounds = array<i64: 2>, scalar_prefetch = 0 : i64, scratch_operands = 4 : i64, tpu.core_type = #tpu.core_type<tc>, window_params = [{transform_indices = @transform_0, window_bounds = array<i64: 1, 16, 16, 128>}, {pipeline_mode = #tpu.pipeline_mode<synchronous>, transform_indices = @transform_1, window_bounds = array<i64: 1152, 128>}, {pipeline_mode = #tpu.pipeline_mode<synchronous>, transform_indices = @transform_2, window_bounds = array<i64: 1, 128>}, {pipeline_mode = #tpu.pipeline_mode<synchronous>, transform_indices = @transform_3, window_bounds = array<i64: 1152, 128>}, {pipeline_mode = #tpu.pipeline_mode<synchronous>, transform_indices = @transform_4, window_bounds = array<i64: 1, 128>}, {transform_indices = @transform_5, window_bounds = array<i64: 1, 16, 16, 128>}]} {
    %cst = arith.constant 0.000000e+00 : bf16
    %0 = vector.broadcast %cst : bf16 to vector<18x18x128xbf16>
    %c0 = arith.constant 0 : index
    %c0_0 = arith.constant 0 : index
    %c0_1 = arith.constant 0 : index
    %1 = vector.load %arg7[%c0, %c0_0, %c0_1] : memref<18x18x128xbf16, #tpu.memory_space<vmem>>, vector<18x18x128xbf16>
    tpu.vector_store %arg7[%c0, %c0_0, %c0_1], %0 {strides = array<i32>} : memref<18x18x128xbf16, #tpu.memory_space<vmem>>, vector<18x18x128xbf16>,
    %c0_2 = arith.constant 0 : index
    %c0_3 = arith.constant 0 : index
    %c0_4 = arith.constant 0 : index
    %c0_5 = arith.constant 0 : index
    %2 = vector.load %arg1[%c0_2, %c0_3, %c0_4, %c0_5] : memref<1x16x16x128xbf16, #tpu.memory_space<vmem>>, vector<1x16x16x128xbf16>
    %3 = vector.shape_cast %2 : vector<1x16x16x128xbf16> to vector<16x16x128xbf16>
    %c1 = arith.constant 1 : index
    %c1_6 = arith.constant 1 : index
    %c0_7 = arith.constant 0 : index
    %4 = vector.load %arg7[%c1, %c1_6, %c0_7] : memref<18x18x128xbf16, #tpu.memory_space<vmem>>, vector<16x16x128xbf16>
    tpu.vector_store %arg7[%c1, %c1_6, %c0_7], %3 {strides = array<i32>} : memref<18x18x128xbf16, #tpu.memory_space<vmem>>, vector<16x16x128xbf16>,
    %c0_8 = arith.constant 0 : index
    %c0_9 = arith.constant 0 : index
    %c0_10 = arith.constant 0 : index
    %5 = vector.load %arg7[%c0_8, %c0_9, %c0_10] : memref<18x18x128xbf16, #tpu.memory_space<vmem>>, vector<16x16x128xbf16>
    %c0_11 = arith.constant 0 : index
    %c0_12 = arith.constant 0 : index
    %c0_13 = arith.constant 0 : index
    %6 = vector.load %arg8[%c0_11, %c0_12, %c0_13] : memref<16x16x1152xbf16, #tpu.memory_space<vmem>>, vector<16x16x128xbf16>
    tpu.vector_store %arg8[%c0_11, %c0_12, %c0_13], %5 {strides = array<i32>} : memref<16x16x1152xbf16, #tpu.memory_space<vmem>>, vector<16x16x128xbf16>,
    %c0_14 = arith.constant 0 : index
    %c1_15 = arith.constant 1 : index
    %c0_16 = arith.constant 0 : index
    %7 = vector.load %arg7[%c0_14, %c1_15, %c0_16] : memref<18x18x128xbf16, #tpu.memory_space<vmem>>, vector<16x16x128xbf16>
    %c0_17 = arith.constant 0 : index
    %c0_18 = arith.constant 0 : index
    %c128 = arith.constant 128 : index
    %8 = vector.load %arg8[%c0_17, %c0_18, %c128] : memref<16x16x1152xbf16, #tpu.memory_space<vmem>>, vector<16x16x128xbf16>
    tpu.vector_store %arg8[%c0_17, %c0_18, %c128], %7 {strides = array<i32>} : memref<16x16x1152xbf16, #tpu.memory_space<vmem>>, vector<16x16x128xbf16>,
    %c0_19 = arith.constant 0 : index
    %c2 = arith.constant 2 : index
    %c0_20 = arith.constant 0 : index
    %9 = vector.load %arg7[%c0_19, %c2, %c0_20] : memref<18x18x128xbf16, #tpu.memory_space<vmem>>, vector<16x16x128xbf16>
    %c0_21 = arith.constant 0 : index
    %c0_22 = arith.constant 0 : index
    %c256 = arith.constant 256 : index
    %10 = vector.load %arg8[%c0_21, %c0_22, %c256] : memref<16x16x1152xbf16, #tpu.memory_space<vmem>>, vector<16x16x128xbf16>
    tpu.vector_store %arg8[%c0_21, %c0_22, %c256], %9 {strides = array<i32>} : memref<16x16x1152xbf16, #tpu.memory_space<vmem>>, vector<16x16x128xbf16>,
    %c1_23 = arith.constant 1 : index
    %c0_24 = arith.constant 0 : index
    %c0_25 = arith.constant 0 : index
    %11 = vector.load %arg7[%c1_23, %c0_24, %c0_25] : memref<18x18x128xbf16, #tpu.memory_space<vmem>>, vector<16x16x128xbf16>
    %c0_26 = arith.constant 0 : index
    %c0_27 = arith.constant 0 : index
    %c384 = arith.constant 384 : index
    %12 = vector.load %arg8[%c0_26, %c0_27, %c384] : memref<16x16x1152xbf16, #tpu.memory_space<vmem>>, vector<16x16x128xbf16>
    tpu.vector_store %arg8[%c0_26, %c0_27, %c384], %11 {strides = array<i32>} : memref<16x16x1152xbf16, #tpu.memory_space<vmem>>, vector<16x16x128xbf16>,
    %c1_28 = arith.constant 1 : index
    %c1_29 = arith.constant 1 : index
    %c0_30 = arith.constant 0 : index
    %13 = vector.load %arg7[%c1_28, %c1_29, %c0_30] : memref<18x18x128xbf16, #tpu.memory_space<vmem>>, vector<16x16x128xbf16>
    %c0_31 = arith.constant 0 : index
    %c0_32 = arith.constant 0 : index
    %c512 = arith.constant 512 : index
    %14 = vector.load %arg8[%c0_31, %c0_32, %c512] : memref<16x16x1152xbf16, #tpu.memory_space<vmem>>, vector<16x16x128xbf16>
    tpu.vector_store %arg8[%c0_31, %c0_32, %c512], %13 {strides = array<i32>} : memref<16x16x1152xbf16, #tpu.memory_space<vmem>>, vector<16x16x128xbf16>,
    %c1_33 = arith.constant 1 : index
    %c2_34 = arith.constant 2 : index
    %c0_35 = arith.constant 0 : index
    %15 = vector.load %arg7[%c1_33, %c2_34, %c0_35] : memref<18x18x128xbf16, #tpu.memory_space<vmem>>, vector<16x16x128xbf16>
    %c0_36 = arith.constant 0 : index
    %c0_37 = arith.constant 0 : index
    %c640 = arith.constant 640 : index
    %16 = vector.load %arg8[%c0_36, %c0_37, %c640] : memref<16x16x1152xbf16, #tpu.memory_space<vmem>>, vector<16x16x128xbf16>
    tpu.vector_store %arg8[%c0_36, %c0_37, %c640], %15 {strides = array<i32>} : memref<16x16x1152xbf16, #tpu.memory_space<vmem>>, vector<16x16x128xbf16>,
    %c2_38 = arith.constant 2 : index
    %c0_39 = arith.constant 0 : index
    %c0_40 = arith.constant 0 : index
    %17 = vector.load %arg7[%c2_38, %c0_39, %c0_40] : memref<18x18x128xbf16, #tpu.memory_space<vmem>>, vector<16x16x128xbf16>
    %c0_41 = arith.constant 0 : index
    %c0_42 = arith.constant 0 : index
    %c768 = arith.constant 768 : index
    %18 = vector.load %arg8[%c0_41, %c0_42, %c768] : memref<16x16x1152xbf16, #tpu.memory_space<vmem>>, vector<16x16x128xbf16>
    tpu.vector_store %arg8[%c0_41, %c0_42, %c768], %17 {strides = array<i32>} : memref<16x16x1152xbf16, #tpu.memory_space<vmem>>, vector<16x16x128xbf16>,
    %c2_43 = arith.constant 2 : index
    %c1_44 = arith.constant 1 : index
    %c0_45 = arith.constant 0 : index
    %19 = vector.load %arg7[%c2_43, %c1_44, %c0_45] : memref<18x18x128xbf16, #tpu.memory_space<vmem>>, vector<16x16x128xbf16>
    %c0_46 = arith.constant 0 : index
    %c0_47 = arith.constant 0 : index
    %c896 = arith.constant 896 : index
    %20 = vector.load %arg8[%c0_46, %c0_47, %c896] : memref<16x16x1152xbf16, #tpu.memory_space<vmem>>, vector<16x16x128xbf16>
    tpu.vector_store %arg8[%c0_46, %c0_47, %c896], %19 {strides = array<i32>} : memref<16x16x1152xbf16, #tpu.memory_space<vmem>>, vector<16x16x128xbf16>,
    %c2_48 = arith.constant 2 : index
    %c2_49 = arith.constant 2 : index
    %c0_50 = arith.constant 0 : index
    %21 = vector.load %arg7[%c2_48, %c2_49, %c0_50] : memref<18x18x128xbf16, #tpu.memory_space<vmem>>, vector<16x16x128xbf16>
    %c0_51 = arith.constant 0 : index
    %c0_52 = arith.constant 0 : index
    %c1024 = arith.constant 1024 : index
    %22 = vector.load %arg8[%c0_51, %c0_52, %c1024] : memref<16x16x1152xbf16, #tpu.memory_space<vmem>>, vector<16x16x128xbf16>
    tpu.vector_store %arg8[%c0_51, %c0_52, %c1024], %21 {strides = array<i32>} : memref<16x16x1152xbf16, #tpu.memory_space<vmem>>, vector<16x16x128xbf16>,
    %c0_53 = arith.constant 0 : index
    %c0_54 = arith.constant 0 : index
    %c0_55 = arith.constant 0 : index
    %23 = vector.load %arg8[%c0_53, %c0_54, %c0_55] : memref<16x16x1152xbf16, #tpu.memory_space<vmem>>, vector<16x16x1152xbf16>
    %24 = vector.shape_cast %23 : vector<16x16x1152xbf16> to vector<256x1152xbf16>
    %c0_56 = arith.constant 0 : index
    %c0_57 = arith.constant 0 : index
    %25 = vector.load %arg2[%c0_56, %c0_57] : memref<1152x128xbf16, #tpu.memory_space<vmem>>, vector<1152x128xbf16>
    %cst_58 = arith.constant dense<0.000000e+00> : vector<256x128xf32>
    %26 = tpu.matmul %24, %25, %cst_58 {dimension_numbers = #tpu.dot_dimension_numbers<[1], [0], [0], [1], [0, 0, 1, 1], [], []>} : vector<256x1152xbf16>, vector<1152x128xbf16>, vector<256x128xf32> -> vector<256x128xf32>
    %c0_59 = arith.constant 0 : index
    %c0_60 = arith.constant 0 : index
    %27 = vector.load %arg3[%c0_59, %c0_60] : memref<1x128xf32, #tpu.memory_space<vmem>>, vector<1x128xf32>
    %28 = vector.broadcast %27 : vector<1x128xf32> to vector<256x128xf32>
    %29 = arith.addf %26, %28 : vector<256x128xf32>
    %cst_61 = arith.constant 0.000000e+00 : f32
    %30 = vector.broadcast %cst_61 : f32 to vector<256x128xf32>
    %31 = arith.maximumf %29, %30 : vector<256x128xf32>
    %cst_62 = arith.constant 0.000000e+00 : bf16
    %32 = vector.broadcast %cst_62 : bf16 to vector<18x18x128xbf16>
    %c0_63 = arith.constant 0 : index
    %c0_64 = arith.constant 0 : index
    %c0_65 = arith.constant 0 : index
    %33 = vector.load %arg9[%c0_63, %c0_64, %c0_65] : memref<18x18x128xbf16, #tpu.memory_space<vmem>>, vector<18x18x128xbf16>
    tpu.vector_store %arg9[%c0_63, %c0_64, %c0_65], %32 {strides = array<i32>} : memref<18x18x128xbf16, #tpu.memory_space<vmem>>, vector<18x18x128xbf16>,
    %34 = vector.shape_cast %31 : vector<256x128xf32> to vector<16x16x128xf32>
    %35 = arith.truncf %34 : vector<16x16x128xf32> to vector<16x16x128xbf16>
    %c1_66 = arith.constant 1 : index
    %c1_67 = arith.constant 1 : index
    %c0_68 = arith.constant 0 : index
    %36 = vector.load %arg9[%c1_66, %c1_67, %c0_68] : memref<18x18x128xbf16, #tpu.memory_space<vmem>>, vector<16x16x128xbf16>
    tpu.vector_store %arg9[%c1_66, %c1_67, %c0_68], %35 {strides = array<i32>} : memref<18x18x128xbf16, #tpu.memory_space<vmem>>, vector<16x16x128xbf16>,
    %c0_69 = arith.constant 0 : index
    %c0_70 = arith.constant 0 : index
    %c0_71 = arith.constant 0 : index
    %37 = vector.load %arg9[%c0_69, %c0_70, %c0_71] : memref<18x18x128xbf16, #tpu.memory_space<vmem>>, vector<16x16x128xbf16>
    %c0_72 = arith.constant 0 : index
    %c0_73 = arith.constant 0 : index
    %c0_74 = arith.constant 0 : index
    %38 = vector.load %arg10[%c0_72, %c0_73, %c0_74] : memref<16x16x1152xbf16, #tpu.memory_space<vmem>>, vector<16x16x128xbf16>
    tpu.vector_store %arg10[%c0_72, %c0_73, %c0_74], %37 {strides = array<i32>} : memref<16x16x1152xbf16, #tpu.memory_space<vmem>>, vector<16x16x128xbf16>,
    %c0_75 = arith.constant 0 : index
    %c1_76 = arith.constant 1 : index
    %c0_77 = arith.constant 0 : index
    %39 = vector.load %arg9[%c0_75, %c1_76, %c0_77] : memref<18x18x128xbf16, #tpu.memory_space<vmem>>, vector<16x16x128xbf16>
    %c0_78 = arith.constant 0 : index
    %c0_79 = arith.constant 0 : index
    %c128_80 = arith.constant 128 : index
    %40 = vector.load %arg10[%c0_78, %c0_79, %c128_80] : memref<16x16x1152xbf16, #tpu.memory_space<vmem>>, vector<16x16x128xbf16>
    tpu.vector_store %arg10[%c0_78, %c0_79, %c128_80], %39 {strides = array<i32>} : memref<16x16x1152xbf16, #tpu.memory_space<vmem>>, vector<16x16x128xbf16>,
    %c0_81 = arith.constant 0 : index
    %c2_82 = arith.constant 2 : index
    %c0_83 = arith.constant 0 : index
    %41 = vector.load %arg9[%c0_81, %c2_82, %c0_83] : memref<18x18x128xbf16, #tpu.memory_space<vmem>>, vector<16x16x128xbf16>
    %c0_84 = arith.constant 0 : index
    %c0_85 = arith.constant 0 : index
    %c256_86 = arith.constant 256 : index
    %42 = vector.load %arg10[%c0_84, %c0_85, %c256_86] : memref<16x16x1152xbf16, #tpu.memory_space<vmem>>, vector<16x16x128xbf16>
    tpu.vector_store %arg10[%c0_84, %c0_85, %c256_86], %41 {strides = array<i32>} : memref<16x16x1152xbf16, #tpu.memory_space<vmem>>, vector<16x16x128xbf16>,
    %c1_87 = arith.constant 1 : index
    %c0_88 = arith.constant 0 : index
    %c0_89 = arith.constant 0 : index
    %43 = vector.load %arg9[%c1_87, %c0_88, %c0_89] : memref<18x18x128xbf16, #tpu.memory_space<vmem>>, vector<16x16x128xbf16>
    %c0_90 = arith.constant 0 : index
    %c0_91 = arith.constant 0 : index
    %c384_92 = arith.constant 384 : index
    %44 = vector.load %arg10[%c0_90, %c0_91, %c384_92] : memref<16x16x1152xbf16, #tpu.memory_space<vmem>>, vector<16x16x128xbf16>
    tpu.vector_store %arg10[%c0_90, %c0_91, %c384_92], %43 {strides = array<i32>} : memref<16x16x1152xbf16, #tpu.memory_space<vmem>>, vector<16x16x128xbf16>,
    %c1_93 = arith.constant 1 : index
    %c1_94 = arith.constant 1 : index
    %c0_95 = arith.constant 0 : index
    %45 = vector.load %arg9[%c1_93, %c1_94, %c0_95] : memref<18x18x128xbf16, #tpu.memory_space<vmem>>, vector<16x16x128xbf16>
    %c0_96 = arith.constant 0 : index
    %c0_97 = arith.constant 0 : index
    %c512_98 = arith.constant 512 : index
    %46 = vector.load %arg10[%c0_96, %c0_97, %c512_98] : memref<16x16x1152xbf16, #tpu.memory_space<vmem>>, vector<16x16x128xbf16>
    tpu.vector_store %arg10[%c0_96, %c0_97, %c512_98], %45 {strides = array<i32>} : memref<16x16x1152xbf16, #tpu.memory_space<vmem>>, vector<16x16x128xbf16>,
    %c1_99 = arith.constant 1 : index
    %c2_100 = arith.constant 2 : index
    %c0_101 = arith.constant 0 : index
    %47 = vector.load %arg9[%c1_99, %c2_100, %c0_101] : memref<18x18x128xbf16, #tpu.memory_space<vmem>>, vector<16x16x128xbf16>
    %c0_102 = arith.constant 0 : index
    %c0_103 = arith.constant 0 : index
    %c640_104 = arith.constant 640 : index
    %48 = vector.load %arg10[%c0_102, %c0_103, %c640_104] : memref<16x16x1152xbf16, #tpu.memory_space<vmem>>, vector<16x16x128xbf16>
    tpu.vector_store %arg10[%c0_102, %c0_103, %c640_104], %47 {strides = array<i32>} : memref<16x16x1152xbf16, #tpu.memory_space<vmem>>, vector<16x16x128xbf16>,
    %c2_105 = arith.constant 2 : index
    %c0_106 = arith.constant 0 : index
    %c0_107 = arith.constant 0 : index
    %49 = vector.load %arg9[%c2_105, %c0_106, %c0_107] : memref<18x18x128xbf16, #tpu.memory_space<vmem>>, vector<16x16x128xbf16>
    %c0_108 = arith.constant 0 : index
    %c0_109 = arith.constant 0 : index
    %c768_110 = arith.constant 768 : index
    %50 = vector.load %arg10[%c0_108, %c0_109, %c768_110] : memref<16x16x1152xbf16, #tpu.memory_space<vmem>>, vector<16x16x128xbf16>
    tpu.vector_store %arg10[%c0_108, %c0_109, %c768_110], %49 {strides = array<i32>} : memref<16x16x1152xbf16, #tpu.memory_space<vmem>>, vector<16x16x128xbf16>,
    %c2_111 = arith.constant 2 : index
    %c1_112 = arith.constant 1 : index
    %c0_113 = arith.constant 0 : index
    %51 = vector.load %arg9[%c2_111, %c1_112, %c0_113] : memref<18x18x128xbf16, #tpu.memory_space<vmem>>, vector<16x16x128xbf16>
    %c0_114 = arith.constant 0 : index
    %c0_115 = arith.constant 0 : index
    %c896_116 = arith.constant 896 : index
    %52 = vector.load %arg10[%c0_114, %c0_115, %c896_116] : memref<16x16x1152xbf16, #tpu.memory_space<vmem>>, vector<16x16x128xbf16>
    tpu.vector_store %arg10[%c0_114, %c0_115, %c896_116], %51 {strides = array<i32>} : memref<16x16x1152xbf16, #tpu.memory_space<vmem>>, vector<16x16x128xbf16>,
    %c2_117 = arith.constant 2 : index
    %c2_118 = arith.constant 2 : index
    %c0_119 = arith.constant 0 : index
    %53 = vector.load %arg9[%c2_117, %c2_118, %c0_119] : memref<18x18x128xbf16, #tpu.memory_space<vmem>>, vector<16x16x128xbf16>
    %c0_120 = arith.constant 0 : index
    %c0_121 = arith.constant 0 : index
    %c1024_122 = arith.constant 1024 : index
    %54 = vector.load %arg10[%c0_120, %c0_121, %c1024_122] : memref<16x16x1152xbf16, #tpu.memory_space<vmem>>, vector<16x16x128xbf16>
    tpu.vector_store %arg10[%c0_120, %c0_121, %c1024_122], %53 {strides = array<i32>} : memref<16x16x1152xbf16, #tpu.memory_space<vmem>>, vector<16x16x128xbf16>,
    %c0_123 = arith.constant 0 : index
    %c0_124 = arith.constant 0 : index
    %c0_125 = arith.constant 0 : index
    %55 = vector.load %arg10[%c0_123, %c0_124, %c0_125] : memref<16x16x1152xbf16, #tpu.memory_space<vmem>>, vector<16x16x1152xbf16>
    %56 = vector.shape_cast %55 : vector<16x16x1152xbf16> to vector<256x1152xbf16>
    %c0_126 = arith.constant 0 : index
    %c0_127 = arith.constant 0 : index
    %57 = vector.load %arg4[%c0_126, %c0_127] : memref<1152x128xbf16, #tpu.memory_space<vmem>>, vector<1152x128xbf16>
    %cst_128 = arith.constant dense<0.000000e+00> : vector<256x128xf32>
    %58 = tpu.matmul %56, %57, %cst_128 {dimension_numbers = #tpu.dot_dimension_numbers<[1], [0], [0], [1], [0, 0, 1, 1], [], []>} : vector<256x1152xbf16>, vector<1152x128xbf16>, vector<256x128xf32> -> vector<256x128xf32>
    %c0_129 = arith.constant 0 : index
    %c0_130 = arith.constant 0 : index
    %59 = vector.load %arg5[%c0_129, %c0_130] : memref<1x128xf32, #tpu.memory_space<vmem>>, vector<1x128xf32>
    %60 = vector.broadcast %59 : vector<1x128xf32> to vector<256x128xf32>
    %61 = arith.addf %58, %60 : vector<256x128xf32>
    %cst_131 = arith.constant 0.000000e+00 : f32
    %62 = vector.broadcast %cst_131 : f32 to vector<256x128xf32>
    %63 = arith.maximumf %61, %62 : vector<256x128xf32>
    %64 = vector.shape_cast %63 : vector<256x128xf32> to vector<16x16x128xf32>
    %c0_132 = arith.constant 0 : index
    %c0_133 = arith.constant 0 : index
    %c0_134 = arith.constant 0 : index
    %c0_135 = arith.constant 0 : index
    %65 = vector.load %arg6[%c0_132, %c0_133, %c0_134, %c0_135] : memref<1x16x16x128xf32, #tpu.memory_space<vmem>>, vector<1x16x16x128xf32>
    %66 = vector.shape_cast %65 : vector<1x16x16x128xf32> to vector<16x16x128xf32>
    %67 = vector.shape_cast %64 : vector<16x16x128xf32> to vector<1x16x16x128xf32>
    tpu.vector_store %arg6[%c0_132, %c0_133, %c0_134, %c0_135], %67 {strides = array<i32>} : memref<1x16x16x128xf32, #tpu.memory_space<vmem>>, vector<1x16x16x128xf32>,
    return
  }
  func.func @transform_0(%arg0: i32) -> (i32, i32, i32, i32) {
    %c0_i32 = arith.constant 0 : i32
    %c0_i32_0 = arith.constant 0 : i32
    %c0_i32_1 = arith.constant 0 : i32
    %c0_i32_2 = arith.constant 0 : i32
    return %arg0, %c0_i32, %c0_i32_0, %c0_i32_1 : i32, i32, i32, i32
  }
  func.func @transform_1(%arg0: i32) -> (i32, i32) {
    %c0_i32 = arith.constant 0 : i32
    %c0_i32_0 = arith.constant 0 : i32
    %c0_i32_1 = arith.constant 0 : i32
    return %c0_i32, %c0_i32_0 : i32, i32
  }
  func.func @transform_2(%arg0: i32) -> (i32, i32) {
    %c0_i32 = arith.constant 0 : i32
    %c0_i32_0 = arith.constant 0 : i32
    %c0_i32_1 = arith.constant 0 : i32
    return %c0_i32, %c0_i32_0 : i32, i32
  }
  func.func @transform_3(%arg0: i32) -> (i32, i32) {
    %c0_i32 = arith.constant 0 : i32
    %c0_i32_0 = arith.constant 0 : i32
    %c0_i32_1 = arith.constant 0 : i32
    return %c0_i32, %c0_i32_0 : i32, i32
  }
  func.func @transform_4(%arg0: i32) -> (i32, i32) {
    %c0_i32 = arith.constant 0 : i32
    %c0_i32_0 = arith.constant 0 : i32
    %c0_i32_1 = arith.constant 0 : i32
    return %c0_i32, %c0_i32_0 : i32, i32
  }
  func.func @transform_5(%arg0: i32) -> (i32, i32, i32, i32) {
    %c0_i32 = arith.constant 0 : i32
    %c0_i32_0 = arith.constant 0 : i32
    %c0_i32_1 = arith.constant 0 : i32
    %c0_i32_2 = arith.constant 0 : i32
    return %arg0, %c0_i32, %c0_i32_0, %c0_i32_1 : i32, i32, i32, i32
  }
}

</mosaic_0001>

<bundles_post_ra>
// kernel: tpu_custom_call.1
= control target key start
LH: loop header
LB: loop body
LE: loop exit
PB: predicated region body
PF: predicated region fallthrough
CT: control target
= control target key end

     0   :  { %10 = vsyncpa [#allocation7], 0  ;;  %s13531_s0 = inlined_call_operand.hbm [shape: bf16[2,16,16,128], index: 0, kind: input, shape index: {}]   ;;  %s13532_s1 = inlined_call_operand.hbm [shape: bf16[1152,128], index: 1, kind: input, shape index: {}]   ;;  %s13533_s2 = inlined_call_operand.vmem [shape: f32[1,128], index: 2, kind: input, shape index: {}]   ;;  %s13534_s3 = inlined_call_operand.hbm [shape: bf16[1152,128], index: 3, kind: input, shape index: {}]   ;;  %s13535_s4 = inlined_call_operand.vmem [shape: f32[1,128], index: 4, kind: input, shape index: {}]   ;;  %s13536_s5 = inlined_call_operand.hbm [shape: f32[2,16,16,128], index: 5, kind: output, shape index: {}]  }
   0x1   :  { %12 = vsyncpa [#allocation7 + $0x1], 0 }
   0x2   :  { %13 = vsyncpa [#allocation10], 0 }
   0x3   :  { %14 = vsyncpa [#allocation8], 0 }
   0x4   :  { %16 = vsyncpa [#allocation8 + $0x1], 0  ;;  %s12098_s18 = smov 0   ;;  %s12100_s19 = smov 0  }
   0x5   :  { %s12102_s20 = smov 0   ;;  %s12104_s21 = smov 0  }
   0x6 LB: > { %s12119_s22 = sadd.s32 4294967295, %s12057_s21   ;;  %s9453_s23 = sadd.s32 4294967294, %s12057_s21   ;;  %s12057_s21 = sphi %s12104_s21, %s13562_s21   ;;  %s12053_s20 = sphi %s12102_s20, %s13561_s20   ;;  %s12049_s19 = sphi %s12100_s19, %s13560_s19   ;;  %s12045_s18 = sphi %s12098_s18, %s13559_s18  }
   0x7   : > { %p42_p0 = scmp.ne.s32.totalorder %s12049_s19, %s12045_s18  ;;  %p13537_p1 = scmp.eq.s32.totalorder %s12119_s22, 0 }
   0x8   : > { %p156_p3 = scmp.eq.s32.totalorder %s9453_s23, 1  ;;  %p9454_p5 = scmp.ge.s32.totalorder %s12057_s21, 1 }
   0x9   : > { %p12128_p4 = por %p13537_p1, %p42_p0  ;;  %p163_p7 = scmp.lt.s32.totalorder %s12057_s21, 3 }
   0xa   : > { %p12133_p6 = por %p156_p3, %p42_p0  ;;  %s12059_s27 = smov [#allocation9]  }
   0xb   : > { %s13540_s24 = scalar_select %p12128_p4, 1, 0 }
   0xc   : > { %s13541_s25 = scalar_select %p12133_p6, 1, 0 }
   0xd   : > { %p12138_p8 = pnand %p9454_p5, %p163_p7  ;;  %s175_s28 = sshll.u32 %s12059_s27, 4  ;;  %s12142_s28 = int_to_ptr.vmem [resolvable:$true] %s175_s28 }
   0xe   : > { %s12060_s30 = smov [#allocation11]   ;;  %s11901_s9 = scalar_lea.hbm %s13532_s1, 9216 }
   0xf   : > { %p11215_p9 = pneg %p12138_p8  ;;  %s191_s6 = sshll.u32 %s12060_s30, 4  ;;  %s12153_s6 = int_to_ptr.vmem [resolvable:$true] %s191_s6 }
  0x10   : > { %p11902_p12 = scmp.ne.s32.totalorder %s13532_s1, %s11901_s9  ;;  %p11908_p5 = scmp.lt.u32.totalorder %s11901_s9, %s13532_s1 }
  0x11   : > { %p12149_p11 = pnand %p11215_p9, %p13537_p1 }
  0x13   : > { %p11903_p13 = pneg %p12149_p11 }
  0x15   : > { %p11904_p0 = pnand %p11903_p13, %p11902_p12 }
  0x17   : > { %p11905_p3 = pneg %p11904_p0 }
  0x19   : > { %p11910_p7 = pnand %p11908_p5, %p11905_p3 }
  0x1b   : > { %11913 = shalt.err (!%p11910_p7)
}
  0x1c   : > { %s11914_s14 = scalar_lea.vmem %s12142_s28, 9216  ;;  %p11922_p2 = scmp.lt.s32.totalorder %s12142_s28, %s12142_s28 }
  0x1d   : > { %p11915_p9 = scmp.ne.s32.totalorder %s12142_s28, %s11914_s14  ;;  %p11923_p12 = scmp.lt.s32.totalorder %s11914_s14, %s11914_s14 }
  0x1f   : > { %p11917_p10 = pnand %p11915_p9, %p11903_p13  ;;  %p11924_p0 = por %p11923_p12, %p11922_p2 }
  0x21   : > { %p11918_p1 = pneg %p11917_p10 }
  0x23   : > { %p11925_p6 = pnand %p11924_p0, %p11918_p1 }
  0x25   : > { %11928 = shalt.err (!%p11925_p6)
}
  0x26   : > { %s12061_s15 = smov 64   ;;  %s12062_s16 = smov 4  }
  0x27   : > { %11218 = dma.hbm_to_vmem [thread:$0]  (!%p12149_p11), %s13532_s1, 9216, %s12142_s28, [#allocation10], %s12061_s15, %s12061_s15, %s12062_s16  }
  0x28   : > { %s11929_s7 = scalar_lea.hbm %s13534_s3, 9216 }
  0x29   : > { %p11930_p1 = scmp.ne.s32.totalorder %s13534_s3, %s11929_s7  ;;  %p11936_p10 = scmp.lt.u32.totalorder %s11929_s7, %s13534_s3 }
  0x2b   : > { %p11932_p2 = pnand %p11930_p1, %p11903_p13 }
  0x2d   : > { %p11933_p6 = pneg %p11932_p2 }
  0x2f   : > { %p11938_p3 = pnand %p11936_p10, %p11933_p6 }
  0x31   : > { %11941 = shalt.err (!%p11938_p3)
}
  0x32   : > { %s11942_s28 = scalar_lea.vmem %s12153_s6, 9216  ;;  %p11950_p12 = scmp.lt.s32.totalorder %s12153_s6, %s12153_s6 }
  0x33   : > { %p11943_p5 = scmp.ne.s32.totalorder %s12153_s6, %s11942_s28  ;;  %p11951_p0 = scmp.lt.s32.totalorder %s11942_s28, %s11942_s28 }
  0x35   : > { %p11945_p7 = pnand %p11943_p5, %p11903_p13  ;;  %p11952_p1 = por %p11951_p0, %p11950_p12 }
  0x37   : > { %p11946_p9 = pneg %p11945_p7 }
  0x39   : > { %p11953_p2 = pnand %p11952_p1, %p11946_p9 }
  0x3b   : > { %11956 = shalt.err (!%p11953_p2)
}
  0x3c   : > { %11221 = dma.hbm_to_vmem [thread:$0]  (!%p12149_p11), %s13534_s3, 9216, %s12153_s6, [#allocation10], %s12061_s15, %s12061_s15, %s12062_s16  }
  0x3d   : > { %s12214_s29 = sadd.s32 1, %s12057_s21   ;;  %s29_s14 = sadd.s32 1, %s12053_s20 }
  0x3e   : > { %s26_s17 = ssub.s32 %s12057_s21, %s12214_s29  ;;  %p36_p13 = scmp.ne.s32.totalorder %s12053_s20, %s12049_s19 }
  0x3f   : > { %p27_p6 = scmp.eq.s32.totalorder %s26_s17, 0  ;;  %p37_p10 = scmp.eq.s32.totalorder %s12057_s21, 0 }
  0x40   : > { %p13544_p3 = scmp.eq.s32.totalorder %s12119_s22, 1  ;;  %p11232_p7 = scmp.lt.s32.totalorder %s12057_s21, 2 }
  0x41   : > { %s12230_s27 = scalar_select %p27_p6, %s12053_s20, %s29_s14  }
  0x42   : > { %p12224_p5 = por %p13544_p3, %p36_p13  ;;  %p38_p9 = por %p37_p10, %p36_p13 }
  0x43   : > { %s208_s30 = sand.u32 1, %s12053_s20   ;;  %s10129_s6 = sshll.u32 %s12057_s21, 11 }
  0x44   : > { %s13545_s23 = scalar_select %p12224_p5, 1, 0 }
  0x45   : > { %s9458_s7 = sshll.u32 %s208_s30, 7  ;;  %s12237_s10 = scalar_lea.hbm %s13531_s0, %s10129_s6 }
  0x46   : > { %s212_s11 = scalar_lea.vmem [#allocation6], %s9458_s7  ;;  %p12241_p11 = pnand %p11232_p7, %p38_p9 }
  0x47   : > { %s219_s28 = sshll.u32 %s212_s11, 4  ;;  %s12245_s13 = scalar_lea.sflag [#allocation7], %s208_s30  ;;  %s12239_s28 = int_to_ptr.vmem [resolvable:$true] %s219_s28 }
  0x48   : > { %s11957_s14 = scalar_lea.hbm %s12237_s10, 2048  ;;  %p11959_p0 = pneg %p12241_p11 }
  0x49   : > { %p11958_p12 = scmp.ne.s32.totalorder %s12237_s10, %s11957_s14  ;;  %s11962_s6 = scalar_lea.hbm %s13531_s0, 4096 }
  0x4a   : > { %p11963_p13 = scmp.lt.u32.totalorder %s12237_s10, %s13531_s0  ;;  %p11964_p6 = scmp.lt.u32.totalorder %s11962_s6, %s11957_s14 }
  0x4b   : > { %p11960_p1 = pnand %p11959_p0, %p11958_p12  ;;  %p11966_p3 = scmp.lt.u32.totalorder %s11957_s14, %s12237_s10 }
  0x4c   : > { %p11965_p10 = por %p11964_p6, %p11963_p13 }
  0x4d   : > { %p11961_p2 = pneg %p11960_p1 }
  0x4e   : > { %p11967_p7 = por %p11966_p3, %p11965_p10 }
  0x50   : > { %p11968_p9 = pnand %p11967_p7, %p11961_p2 }
  0x52   : > { %11971 = shalt.err (!%p11968_p9)
}
  0x53   : > { %s11972_s30 = scalar_lea.vmem %s12239_s28, 2048  ;;  %s12063_s11 = smov [#allocation6]  }
  0x54   : > { %p11973_p12 = scmp.ne.s32.totalorder %s12239_s28, %s11972_s30  ;;  %s11977_s17 = sshll.u32 %s12063_s11, 4  ;;  %s11978_s17 = int_to_ptr.vmem [resolvable:$false] %s11977_s17 }
  0x55   : > { %s11979_s7 = scalar_lea.vmem %s11978_s17, 4096  ;;  %p11980_p4 = scmp.lt.s32.totalorder %s12239_s28, %s11978_s17 }
  0x56   : > { %p11975_p1 = pnand %p11973_p12, %p11959_p0  ;;  %p11981_p13 = scmp.lt.s32.totalorder %s11979_s7, %s11972_s30 }
  0x58   : > { %p11976_p5 = pneg %p11975_p1  ;;  %p11982_p6 = por %p11981_p13, %p11980_p4 }
  0x5a   : > { %p11983_p10 = pnand %p11982_p6, %p11976_p5 }
  0x5c   : > { %11986 = shalt.err (!%p11983_p10)
}
  0x5d   : > { %11225 = dma.hbm_to_vmem [thread:$0]  (!%p12241_p11), %s12237_s10, 2048, %s12239_s28, %s12245_s13, %s12061_s15, %s12061_s15, %s12062_s16  }
  0x5e   : > { %231 = sbr.rel (%p12138_p8) target bundleno = 1242 (0x4da), region = 40  ;;  %s12279_s14 = sand.u32 (!%p12138_p8), 1, %s12049_s19  }
  0x5f   : > { %s9462_s6 = sshll.u32 (!%p12138_p8), %s12279_s14, 7  ;;  %s234_s8 = scalar_lea.sflag (!%p12138_p8), [#allocation7], %s12279_s14 }
  0x60   : > { %s12283_s9 = scalar_lea.vmem (!%p12138_p8), [#allocation6], %s9462_s6  ;;  %p13547_p4 = scmp.ne.s32.totalorder (!%p12138_p8), %s13540_s24, 0 }
  0x65   : > { %12032 = dma.done.wait (%p13547_p4), %s234_s8, 2048  }
  0x66   : > { %12034 = vsyncadd (%p13547_p4), %s234_s8, 4294965248  ;;  %p13548_p5 = scmp.eq.s32.totalorder %s12119_s22, 0 }
  0x68   : > { %12036 = dma.done.wait (%p13548_p5), [#allocation10], 18432   ;;  %p13549_p8 = pmov %p13548_p5 }
  0x69   : > { %v12064_v0 = vmov 0   ;;  %v11275_v1 = vld [vmem:[#allocation9 + $0x40] sm:$0xff]   ;;  %v11279_v5 = vld [vmem:[#allocation9 + $0x48] sm:$0xff]   ;;  %v11283_v9 = vld [vmem:[#allocation9 + $0x50] sm:$0xff]   ;;  %vm359_vm0 = vsmask.f32 256 }
  0x6a   : > { %12038 = vsyncadd (%p13549_p8), [#allocation10], 4294948864  ;;  %273 = vst [vmem:[#allocation2] sm:$0xf] %v12064_v0  ;;  %v11276_v2 = vld [vmem:[#allocation9] sm:$0xff]   ;;  %10163 = vmatprep.subr.bf16.mxu0 %v11275_v1  ;;  %v11280_v6 = vld [vmem:[#allocation9 + $0x8] sm:$0xff]  }
  0x6b   : > { %274 = vst [vmem:[#allocation2 + $0x4] sm:$0xf] %v12064_v0  ;;  %275 = vst [vmem:[#allocation2 + $0x8] sm:$0x1] %v12064_v0  ;;  %v11277_v3 = vld [vmem:[#allocation9 + $0xc0] sm:$0xff]   ;;  %10164 = vmatpush3.bf16.msra.mxu0 %v11276_v2  ;;  %v11281_v7 = vld [vmem:[#allocation9 + $0xc8] sm:$0xff]  }
  0x6c   : > { %276 = vst [vmem:[#allocation2 + $0xc] sm:$0xf] %v12064_v0  ;;  %277 = vst [vmem:[#allocation2 + $0x10] sm:$0xf] %v12064_v0  ;;  %v11278_v4 = vld [vmem:[#allocation9 + $0x80] sm:$0xff]   ;;  %10275 = vmatprep.subr.bf16.mxu1 %v11277_v3  ;;  %10165 = vmatprep.subr.bf16.mxu0 %v11279_v5  ;;  %v11282_v8 = vld [vmem:[#allocation9 + $0x88] sm:$0xff]  }
  0x6d   : > { %278 = vst [vmem:[#allocation2 + $0x14] sm:$0x1] %v12064_v0  ;;  %279 = vst [vmem:[#allocation2 + $0x18] sm:$0xf] %v12064_v0  ;;  %10276 = vmatpush3.bf16.msra.mxu1 %v11278_v4  ;;  %v11284_v10 = vld [vmem:[#allocation9 + $0x10] sm:$0xff]   ;;  %v11287_v13 = vld [vmem:[#allocation9 + $0x58] sm:$0xff]  }
  0x6e   : > { %280 = vst [vmem:[#allocation2 + $0x1c] sm:$0xf] %v12064_v0  ;;  %281 = vst [vmem:[#allocation2 + $0x20] sm:$0x1] %v12064_v0  ;;  %10277 = vmatprep.subr.bf16.mxu1 %v11281_v7  ;;  %v11285_v11 = vld [vmem:[#allocation9 + $0xd0] sm:$0xff]   ;;  %v11288_v14 = vld [vmem:[#allocation9 + $0x18] sm:$0xff]  }
  0x6f   : > { %282 = vst [vmem:[#allocation2 + $0x24] sm:$0xf] %v12064_v0  ;;  %283 = vst [vmem:[#allocation2 + $0x28] sm:$0xf] %v12064_v0  ;;  %10166 = vmatpush3.bf16.msra.mxu0 %v11280_v6  ;;  %v11286_v12 = vld [vmem:[#allocation9 + $0x90] sm:$0xff]   ;;  %v11289_v15 = vld [vmem:[#allocation9 + $0xd8] sm:$0xff]  }
  0x70   : > { %284 = vst [vmem:[#allocation2 + $0x2c] sm:$0x1] %v12064_v0  ;;  %285 = vst [vmem:[#allocation2 + $0x30] sm:$0xf] %v12064_v0  ;;  %10167 = vmatprep.subr.bf16.mxu0 %v11283_v9  ;;  %v11290_v16 = vld [vmem:[#allocation9 + $0x98] sm:$0xff]   ;;  %v11291_v17 = vld [vmem:[#allocation9 + $0x60] sm:$0xff]  }
  0x71   : > { %286 = vst [vmem:[#allocation2 + $0x34] sm:$0xf] %v12064_v0  ;;  %287 = vst [vmem:[#allocation2 + $0x38] sm:$0x1] %v12064_v0  ;;  %10278 = vmatpush3.bf16.msra.mxu1 %v11282_v8  ;;  %v11292_v18 = vld [vmem:[#allocation9 + $0x20] sm:$0xff]   ;;  %v11295_v21 = vld [vmem:[#allocation9 + $0x68] sm:$0xff]  }
  0x72   : > { %288 = vst [vmem:[#allocation2 + $0x3c] sm:$0xf] %v12064_v0  ;;  %289 = vst [vmem:[#allocation2 + $0x40] sm:$0xf] %v12064_v0  ;;  %10279 = vmatprep.subr.bf16.mxu1 %v11285_v11  ;;  %v11293_v19 = vld [vmem:[#allocation9 + $0xe0] sm:$0xff]   ;;  %v11296_v22 = vld [vmem:[#allocation9 + $0x28] sm:$0xff]  }
  0x73   : > { %290 = vst [vmem:[#allocation2 + $0x44] sm:$0x1] %v12064_v0  ;;  %291 = vst [vmem:[#allocation2 + $0x48] sm:$0xf] %v12064_v0  ;;  %10168 = vmatpush3.bf16.msra.mxu0 %v11284_v10  ;;  %v11294_v20 = vld [vmem:[#allocation9 + $0xa0] sm:$0xff]   ;;  %v11297_v23 = vld [vmem:[#allocation9 + $0xe8] sm:$0xff]  }
  0x74   : > { %292 = vst [vmem:[#allocation2 + $0x4c] sm:$0xf] %v12064_v0  ;;  %293 = vst [vmem:[#allocation2 + $0x50] sm:$0x1] %v12064_v0  ;;  %10169 = vmatprep.subr.bf16.mxu0 %v11287_v13  ;;  %v11298_v24 = vld [vmem:[#allocation9 + $0xa8] sm:$0xff]   ;;  %v11299_v25 = vld [vmem:[#allocation9 + $0x70] sm:$0xff]  }
  0x75   : > { %294 = vst [vmem:[#allocation2 + $0x54] sm:$0xf] %v12064_v0  ;;  %295 = vst [vmem:[#allocation2 + $0x58] sm:$0xf] %v12064_v0  ;;  %10280 = vmatpush3.bf16.msra.mxu1 %v11286_v12  ;;  %v11300_v26 = vld [vmem:[#allocation9 + $0x30] sm:$0xff]   ;;  %v11303_v29 = vld [vmem:[#allocation9 + $0x78] sm:$0xff]  }
  0x76   : > { %296 = vst [vmem:[#allocation2 + $0x5c] sm:$0x1] %v12064_v0  ;;  %297 = vst [vmem:[#allocation2 + $0x60] sm:$0xf] %v12064_v0  ;;  %10281 = vmatprep.subr.bf16.mxu1 %v11289_v15  ;;  %vm360_vm1 = vsmask.f32 4368 }
  0x77   : > { %298 = vst [vmem:[#allocation2 + $0x64] sm:$0xf] %v12064_v0  ;;  %299 = vst [vmem:[#allocation2 + $0x68] sm:$0x1] %v12064_v0  ;;  %10170 = vmatpush3.bf16.msra.mxu0 %v11288_v14  ;;  %v11301_v27 = vld [vmem:[#allocation9 + $0xf0] sm:$0xff]   ;;  %v11304_v30 = vld [vmem:[#allocation9 + $0x38] sm:$0xff]  }
  0x78   : > { %300 = vst [vmem:[#allocation2 + $0x6c] sm:$0xf] %v12064_v0  ;;  %301 = vst [vmem:[#allocation2 + $0x70] sm:$0xf] %v12064_v0  ;;  %10171 = vmatprep.subr.bf16.mxu0 %v11291_v17  ;;  %vm684_vm2 = vsmask.f32 7938 }
  0x79   : > { %302 = vst [vmem:[#allocation2 + $0x74] sm:$0x1] %v12064_v0  ;;  %303 = vst [vmem:[#allocation2 + $0x78] sm:$0xf] %v12064_v0  ;;  %10282 = vmatpush3.bf16.msra.mxu1 %v11290_v16  ;;  %v11302_v28 = vld [vmem:[#allocation9 + $0xb0] sm:$0xff]   ;;  %v11305_v31 = vld [vmem:[#allocation9 + $0xf8] sm:$0xff]  }
  0x7a   : > { %304 = vst [vmem:[#allocation2 + $0x7c] sm:$0xf] %v12064_v0  ;;  %305 = vst [vmem:[#allocation2 + $0x80] sm:$0x1] %v12064_v0  ;;  %10283 = vmatprep.subr.bf16.mxu1 %v11293_v19  ;;  %vm1120_vm3 = vsmask.f32 7424 }
  0x7b   : > { %306 = vst [vmem:[#allocation2 + $0x84] sm:$0xf] %v12064_v0  ;;  %307 = vst [vmem:[#allocation2 + $0x88] sm:$0xf] %v12064_v0  ;;  %10172 = vmatpush3.bf16.msra.mxu0 %v11292_v18  ;;  %v11306_v32 = vld [vmem:[#allocation2] sm:$0xff]   ;;  %v11308_v34 = vld [vmem:[#allocation9 + $0xb8] sm:$0xff]  }
  0x7c   : > { %308 = vst [vmem:[#allocation2 + $0x8c] sm:$0x1] %v12064_v0  ;;  %309 = vst [vmem:[#allocation2 + $0x90] sm:$0xf] %v12064_v0  ;;  %10173 = vmatprep.subr.bf16.mxu0 %v11295_v21  ;;  %v1122_v35 = vshrl.u32 %v11306_v32, 16  ;;  %v1124_v36 = vshll.u32 %v11306_v32, 16 }
  0x7d   : > { %310 = vst [vmem:[#allocation2 + $0x94] sm:$0xf] %v12064_v0  ;;  %311 = vst [vmem:[#allocation2 + $0x98] sm:$0x1] %v12064_v0  ;;  %10284 = vmatpush3.bf16.msra.mxu1 %v11294_v20  ;;  %vm683_vm4 = vcmask 1043456   ;;  %v11310_v38 = vld [vmem:[#allocation9 + $0x140] sm:$0xff]  }
  0x7e   : > { %312 = vst [vmem:[#allocation2 + $0x9c] sm:$0xf] %v12064_v0  ;;  %313 = vst [vmem:[#allocation2 + $0xa0] sm:$0xf] %v12064_v0  ;;  %10285 = vmatprep.subr.bf16.mxu1 %v11297_v23  ;;  %vm690_vm5 = vcmask 1040384   ;;  %v1126_v39 = vrot.slane %v1124_v36, 1 }
  0x7f   : > { %314 = vst [vmem:[#allocation2 + $0xa4] sm:$0x1] %v12064_v0  ;;  %315 = vst [vmem:[#allocation2 + $0xa8] sm:$0xf] %v12064_v0  ;;  %10174 = vmatpush3.bf16.msra.mxu0 %v11296_v22  ;;  %v327_v41 = vld [vmem:[%s12283_s9] sm:$0xf] }
  0x80   : > { %316 = vst [vmem:[#allocation2 + $0xac] sm:$0xf] %v12064_v0  ;;  %317 = vst [vmem:[#allocation2 + $0xb0] sm:$0x1] %v12064_v0  ;;  %10175 = vmatprep.subr.bf16.mxu0 %v11299_v25  ;;  %v328_v42 = vld [vmem:[%s12283_s9 + $0x4] sm:$0xf]  ;;  %v1127_v50 = vor.u32 %v1126_v39, %v1122_v35 }
  0x81   : > { %318 = vst [vmem:[#allocation2 + $0xb4] sm:$0xf] %v12064_v0  ;;  %319 = vst [vmem:[#allocation2 + $0xb8] sm:$0xf] %v12064_v0  ;;  %10286 = vmatpush3.bf16.msra.mxu1 %v11298_v24  ;;  %v11309_v44 = vld [vmem:[#allocation2] sm:$0xff]   ;;  %v363_v45 = vshrl.u32 %v327_v41, 16 }
  0x82   : > { %320 = vst [vmem:[#allocation2 + $0xbc] sm:$0x1] %v12064_v0  ;;  %321 = vst [vmem:[#allocation2 + $0xc0] sm:$0xf] %v12064_v0  ;;  %10287 = vmatprep.subr.bf16.mxu1 %v11301_v27  ;;  %v366_v46 = vshll.u32 %v327_v41, 16  ;;  %v371_v47 = vshrl.u32 %v328_v42, 16 }
  0x83   : > { %322 = vst [vmem:[#allocation2 + $0xc4] sm:$0xf] %v12064_v0  ;;  %323 = vst [vmem:[#allocation2 + $0xc8] sm:$0x1] %v12064_v0  ;;  %10176 = vmatpush3.bf16.msra.mxu0 %v11300_v26  ;;  %v374_v48 = vshll.u32 %v328_v42, 16  ;;  %v11312_v52 = vld [vmem:[#allocation9 + $0x100] sm:$0xff]  }
  0x84   : > { %324 = vst [vmem:[#allocation2 + $0xcc] sm:$0xf] %v12064_v0  ;;  %325 = vst [vmem:[#allocation2 + $0xd0] sm:$0xf] %v12064_v0  ;;  %10177 = vmatprep.subr.bf16.mxu0 %v11303_v29  ;;  %v686_v51 = vld [vmem:[#allocation2 + $0xc] sm:$0xf] }
  0x85   : > { %326 = vst [vmem:[#allocation2 + $0xd4] sm:$0x1] %v12064_v0  ;;  %4767 = vst [vmem:[#allocation4] sm:$0xf] %v12064_v0  ;;  %10288 = vmatpush3.bf16.msra.mxu1 %v11302_v28  ;;  %v365_v53 = vrot.slane %v363_v45, 7  ;;  %v373_v54 = vrot.slane %v371_v47, 7 }
  0x86   : > { %4768 = vst [vmem:[#allocation4 + $0x4] sm:$0xf] %v12064_v0  ;;  %4769 = vst [vmem:[#allocation4 + $0x8] sm:$0x1] %v12064_v0  ;;  %10289 = vmatprep.subr.bf16.mxu1 %v11305_v31  ;;  %v11313_v57 = vld [vmem:[#allocation2] sm:$0xfe]  }
  0x87   : > { %4770 = vst [vmem:[#allocation4 + $0xc] sm:$0xf] %v12064_v0  ;;  %4771 = vst [vmem:[#allocation4 + $0x10] sm:$0xf] %v12064_v0  ;;  %10178 = vmatpush3.bf16.msra.mxu0 %v11304_v30  ;;  %v692_v58 = vld [vmem:[#allocation2 + $0x14] sm:$0x1]  ;;  %v368_v59 = vor.u32 %v366_v46, %v365_v53  ;;  %v376_v61 = vor.u32 %v374_v48, %v373_v54 }
  0x88   : > { %4772 = vst [vmem:[#allocation4 + $0x14] sm:$0x1] %v12064_v0  ;;  %4773 = vst [vmem:[#allocation4 + $0x18] sm:$0xf] %v12064_v0  ;;  %10387 = vmatprep.subr.bf16.mxu0 %v11310_v38  ;;  %v369_v60 = vrot.slane %v365_v53, 4  ;;  %v378_v62 = vrot.slane %v373_v54, 4 }
  0x89   : > { %4774 = vst [vmem:[#allocation4 + $0x1c] sm:$0xf] %v12064_v0  ;;  %4775 = vst [vmem:[#allocation4 + $0x20] sm:$0x1] %v12064_v0  ;;  %10290 = vmatpush3.bf16.msra.mxu1 %v11308_v34  ;;  %vm1521_vm9 = vcmask 1046528   ;;  %v1522_v1 = vrot.slane %v11313_v57, 1 }
  0x8a   : > { %4776 = vst [vmem:[#allocation4 + $0x24] sm:$0xf] %v12064_v0  ;;  %4777 = vst [vmem:[#allocation4 + $0x28] sm:$0xf] %v12064_v0  ;;  %v329_v2 = vld [vmem:[%s12283_s9 + $0x8] sm:$0xf] }
  0x8b   : > { %4778 = vst [vmem:[#allocation4 + $0x2c] sm:$0x1] %v12064_v0  ;;  %4779 = vst [vmem:[#allocation4 + $0x30] sm:$0xf] %v12064_v0  ;;  %v330_v3 = vld [vmem:[%s12283_s9 + $0xc] sm:$0xf] }
  0x8c   : > { %4780 = vst [vmem:[#allocation4 + $0x34] sm:$0xf] %v12064_v0  ;;  %4781 = vst [vmem:[#allocation4 + $0x38] sm:$0x1] %v12064_v0  ;;  %v11326_v8 = vld [vmem:[#allocation9 + $0x108] sm:$0xff]   ;;  %v11338_v9 = vld [vmem:[#allocation9 + $0x150] sm:$0xff]  }
  0x8d   : > { %4782 = vst [vmem:[#allocation4 + $0x3c] sm:$0xf] %v12064_v0  ;;  %4783 = vst [vmem:[#allocation4 + $0x40] sm:$0xf] %v12064_v0  ;;  %v380_v10 = vshrl.u32 %v329_v2, 16  ;;  %v383_v11 = vshll.u32 %v329_v2, 16 }
  0x8e   : > { %4784 = vst [vmem:[#allocation4 + $0x44] sm:$0x1] %v12064_v0  ;;  %4785 = vst [vmem:[#allocation4 + $0x48] sm:$0xf] %v12064_v0  ;;  %v388_v12 = vshrl.u32 %v330_v3, 16  ;;  %v391_v13 = vshll.u32 %v330_v3, 16 }
  0x8f   : > { %4786 = vst [vmem:[#allocation4 + $0x4c] sm:$0xf] %v12064_v0  ;;  %4787 = vst [vmem:[#allocation4 + $0x50] sm:$0x1] %v12064_v0  ;;  %v695_v14 = vld [vmem:[#allocation2 + $0x18] sm:$0xf] }
  0x90   : > { %4788 = vst [vmem:[#allocation4 + $0x54] sm:$0xf] %v12064_v0  ;;  %4789 = vst [vmem:[#allocation4 + $0x58] sm:$0xf] %v12064_v0  ;;  %v331_v15 = vld [vmem:[%s12283_s9 + $0x10] sm:$0xf] }
  0x91   : > { %4790 = vst [vmem:[#allocation4 + $0x5c] sm:$0x1] %v12064_v0  ;;  %4791 = vst [vmem:[#allocation4 + $0x60] sm:$0xf] %v12064_v0  ;;  %v332_v16 = vld [vmem:[%s12283_s9 + $0x14] sm:$0xf] }
  0x92   : > { %4792 = vst [vmem:[#allocation4 + $0x64] sm:$0xf] %v12064_v0  ;;  %4793 = vst [vmem:[#allocation4 + $0x68] sm:$0x1] %v12064_v0  ;;  %v382_v17 = vrot.slane %v380_v10, 7  ;;  %v390_v18 = vrot.slane %v388_v12, 7 }
  0x93   : > { %4794 = vst [vmem:[#allocation4 + $0x6c] sm:$0xf] %v12064_v0  ;;  %4795 = vst [vmem:[#allocation4 + $0x70] sm:$0xf] %v12064_v0  ;;  %v699_v19 = vld [vmem:[#allocation2 + $0x20] sm:$0x1] }
  0x94   : > { %4796 = vst [vmem:[#allocation4 + $0x74] sm:$0x1] %v12064_v0  ;;  %4797 = vst [vmem:[#allocation4 + $0x78] sm:$0xf] %v12064_v0  ;;  %v397_v20 = vshrl.u32 %v331_v15, 16  ;;  %v400_v21 = vshll.u32 %v331_v15, 16  ;;  %v385_v24 = vor.u32 %v383_v11, %v382_v17  ;;  %v393_v26 = vor.u32 %v391_v13, %v390_v18 }
  0x95   : > { %4798 = vst [vmem:[#allocation4 + $0x7c] sm:$0xf] %v12064_v0  ;;  %4799 = vst [vmem:[#allocation4 + $0x80] sm:$0x1] %v12064_v0  ;;  %v405_v22 = vshrl.u32 %v332_v16, 16  ;;  %v408_v23 = vshll.u32 %v332_v16, 16 }
  0x96   : > { %4800 = vst [vmem:[#allocation4 + $0x84] sm:$0xf] %v12064_v0  ;;  %4801 = vst [vmem:[#allocation4 + $0x88] sm:$0xf] %v12064_v0  ;;  %v386_v25 = vrot.slane %v382_v17, 4  ;;  %v395_v27 = vrot.slane %v390_v18, 4 }
  0x97   : > { %4802 = vst [vmem:[#allocation4 + $0x8c] sm:$0x1] %v12064_v0  ;;  %4803 = vst [vmem:[#allocation4 + $0x90] sm:$0xf] %v12064_v0  ;;  %v333_v28 = vld [vmem:[%s12283_s9 + $0x18] sm:$0xf] }
  0x98   : > { %4804 = vst [vmem:[#allocation4 + $0x94] sm:$0xf] %v12064_v0  ;;  %4805 = vst [vmem:[#allocation4 + $0x98] sm:$0x1] %v12064_v0  ;;  %v399_v29 = vrot.slane %v397_v20, 7  ;;  %v407_v30 = vrot.slane %v405_v22, 7 }
  0x99   : > { %4806 = vst [vmem:[#allocation4 + $0x9c] sm:$0xf] %v12064_v0  ;;  %4807 = vst [vmem:[#allocation4 + $0xa0] sm:$0xf] %v12064_v0  ;;  %v334_v31 = vld [vmem:[%s12283_s9 + $0x1c] sm:$0xf] }
  0x9a   : > { %4808 = vst [vmem:[#allocation4 + $0xa4] sm:$0x1] %v12064_v0  ;;  %4809 = vst [vmem:[#allocation4 + $0xa8] sm:$0xf] %v12064_v0  ;;  %v414_v32 = vshrl.u32 %v333_v28, 16  ;;  %v422_v38 = vshrl.u32 %v334_v31, 16  ;;  %v402_v42 = vor.u32 %v400_v21, %v399_v29  ;;  %v410_v45 = vor.u32 %v408_v23, %v407_v30 }
  0x9b   : > { %4810 = vst [vmem:[#allocation4 + $0xac] sm:$0xf] %v12064_v0  ;;  %4811 = vst [vmem:[#allocation4 + $0xb0] sm:$0x1] %v12064_v0  ;;  %v11340_v39 = vld [vmem:[#allocation9 + $0x110] sm:$0xff]   ;;  %s9465_s30 = sshll.u32 %s12279_s14, 8 }
  0x9c   : > { %4812 = vst [vmem:[#allocation4 + $0xb4] sm:$0xf] %v12064_v0  ;;  %4813 = vst [vmem:[#allocation4 + $0xb8] sm:$0xf] %v12064_v0  ;;  %v706_v46 = vld [vmem:[#allocation2 + $0x2c] sm:$0x1] }
  0x9d   : > { %4814 = vst [vmem:[#allocation4 + $0xbc] sm:$0x1] %v12064_v0  ;;  %4815 = vst [vmem:[#allocation4 + $0xc0] sm:$0xf] %v12064_v0  ;;  %v709_v53 = vld [vmem:[#allocation2 + $0x30] sm:$0xf] }
  0x9e   : > { %4816 = vst [vmem:[#allocation4 + $0xc4] sm:$0xf] %v12064_v0  ;;  %4817 = vst [vmem:[#allocation4 + $0xc8] sm:$0x1] %v12064_v0  ;;  %s13416_s11 = scalar_lea.vmem [#allocation12], %s9465_s30  ;;  %s10162_s17 = sshll.u32 %s12119_s22, 12 }
  0x9f   : > { %4818 = vst [vmem:[#allocation4 + $0xcc] sm:$0xf] %v12064_v0  ;;  %4819 = vst [vmem:[#allocation4 + $0xd0] sm:$0xf] %v12064_v0  ;;  %s9361_s7 = sshll.u32 %s13416_s11, 4  ;;  %s9348_s22 = scalar_lea.sflag [#allocation8], %s12279_s14  ;;  %s13484_s7 = int_to_ptr.vmem [resolvable:$true] %s9361_s7 }
  0xa0   : > { %4820 = vst [vmem:[#allocation4 + $0xd4] sm:$0x1] %v12064_v0  ;;  %v11307_v33 = vld [vmem:[#allocation2 + $0x8] ss:$0 sps:$4 sm:$0x11]   ;;  %vm12405_vm6 = vmor %vm359_vm0, %vm360_vm1  ;;  %v11324_v0 = vld [vmem:[#allocation9 + $0x148] sm:$0xff]  }
  0xa1   : > { %v1129_v37 = vshll.u32 %v11307_v33, 16  ;;  %vm12411_vm7 = vmand %vm683_vm4, %vm684_vm2  ;;  %v11314_v63 = vld [vmem:[#allocation2 + $0x8] ss:$0 sps:$4 sm:$0x11]   ;;  %v377_v4 = vsel %vm12405_vm6, %v369_v60, %v376_v61  ;;  %v417_v33 = vshll.u32 %v333_v28, 16  ;;  %v394_v34 = vsel %vm12405_vm6, %v386_v25, %v393_v26  ;;  %s11987_s24 = scalar_lea.vmem %s13484_s7, 4096 }
  0xa2   : > { %vm12417_vm8 = vmand %vm690_vm5, %vm359_vm0  ;;  %v687_v5 = vsel %vm12411_vm7, %v368_v59, %v686_v51  ;;  %v1523_v6 = vrot.slane %v11314_v63, 1  ;;  %689 = vst [vmem:[#allocation2 + $0x10] sm:$0xf] %v377_v4  ;;  %v696_v35 = vsel %vm12411_vm7, %v385_v24, %v695_v14  ;;  %v424_v61 = vrot.slane %v422_v38, 7  ;;  %v713_v28 = vld [vmem:[#allocation2 + $0x38] sm:$0x1]  ;;  %p11988_p11 = scmp.ne.s32.totalorder %s13484_s7, %s11987_s24 }
  0xa3   : > { %v1131_v40 = vrot.slane %v1129_v37, 1  ;;  %v693_v7 = vsel %vm12417_vm8, %v378_v62, %v692_v58  ;;  %688 = vst [vmem:[#allocation2 + $0xc] sm:$0xf] %v687_v5  ;;  %v700_v36 = vsel %vm12417_vm8, %v395_v27, %v699_v19  ;;  %v702_v37 = vld [vmem:[#allocation2 + $0x24] sm:$0xf]  ;;  %v416_v58 = vrot.slane %v414_v32, 7 }
  0xa4   : > { %694 = vst [vmem:[#allocation2 + $0x14] sm:$0x1] %v693_v7  ;;  %v1524_v41 = vsel %vm1521_vm9, %v1522_v1, %v1523_v6  ;;  %697 = vst [vmem:[#allocation2 + $0x18] sm:$0xf] %v696_v35  ;;  %v703_v51 = vsel %vm12411_vm7, %v402_v42, %v702_v37  ;;  %v425_v62 = vshll.u32 %v334_v31, 16  ;;  %v429_v35 = vrot.slane %v424_v61, 4 }
  0xa5   : > { %v1132_v56 = vsel %vm1120_vm3, %v1127_v50, %v1131_v40  ;;  %698 = vst [vmem:[#allocation2 + $0x1c] sm:$0xf] %v394_v34  ;;  %701 = vst [vmem:[#allocation2 + $0x20] sm:$0x1] %v700_v36  ;;  %v419_v3 = vor.u32 %v417_v33, %v416_v58  ;;  %v420_v4 = vrot.slane %v416_v58, 4  ;;  %p13556_p0 = scmp.ne.s32.totalorder %s13545_s23, 0 }
  0xa6   : > { %3962 = vmatprep.mubr.bf16.mxu0 %v1132_v56  ;;  %704 = vst [vmem:[#allocation2 + $0x24] sm:$0xf] %v703_v51  ;;  %v427_v7 = vor.u32 %v425_v62, %v424_v61  ;;  %v335_v51 = vld [vmem:[%s12283_s9 + $0x20] sm:$0xf]  ;;  %v716_v62 = vld [vmem:[#allocation2 + $0x3c] sm:$0xf] }
  0xa7   : > { %3963 = vmatmul.mubr.bf16.vlgmr.msra.gmra.mrb[0].mxu0 %v11309_v44  ;;  %v403_v44 = vrot.slane %v399_v29, 4  ;;  %v710_v11 = vsel %vm12411_vm7, %v419_v3, %v709_v53  ;;  %v434_v58 = vshll.u32 %v335_v51, 16  ;;  %p11989_p2 = pnand %p11988_p11, %p13556_p0  ;;  %s12065_s26 = smov [#allocation12]  }
  0xa8   : > { %10388 = vmatpush3.bf16.msra.mxu0 %v11312_v52  ;;  %v412_v52 = vrot.slane %v407_v30, 4  ;;  %v428_v13 = vsel %vm12405_vm6, %v420_v4, %v427_v7  ;;  %711 = vst [vmem:[#allocation2 + $0x30] sm:$0xf] %v710_v11  ;;  %s11991_s15 = sshll.u32 %s12065_s26, 4  ;;  %s11992_s15 = int_to_ptr.vmem [resolvable:$false] %s11991_s15 }
  0xa9   : > { %10389 = vmatprep.subr.bf16.mxu0 %v11324_v0  ;;  %v411_v50 = vsel %vm12405_vm6, %v403_v44, %v410_v45  ;;  %712 = vst [vmem:[#allocation2 + $0x34] sm:$0xf] %v428_v13  ;;  %p11990_p3 = pneg %p11989_p2  ;;  %s11993_s16 = scalar_lea.vmem %s11992_s15, 8192 }
  0xaa   : > { %v11311_v40 = vld [vmem:[#allocation2 + $0xc] sm:$0xff]   ;;  %705 = vst [vmem:[#allocation2 + $0x28] sm:$0xf] %v411_v50  ;;  %v707_v60 = vsel %vm12417_vm8, %v412_v52, %v706_v46  ;;  %p11994_p7 = scmp.lt.s32.totalorder %s13484_s7, %s11992_s15  ;;  %p11995_p9 = scmp.lt.s32.totalorder %s11993_s16, %s11987_s24 }
  0xab   : > { %4123 = vmatprep.mubr.bf16.mxu1 %v11311_v40  ;;  %v11315_v47 = vld [vmem:[#allocation2 + $0xc] sm:$0xff]   ;;  %v11316_v48 = vld [vmem:[#allocation2 + $0x14] ss:$0 sps:$4 sm:$0x11]   ;;  %708 = vst [vmem:[#allocation2 + $0x2c] sm:$0x1] %v707_v60 }
  0xac   : > { %10390 = vmatpush3.bf16.msra.mxu0 %v11326_v8  ;;  %4124 = vmatmul.mubr.bf16.vlgmr.msra.gmra.mrb[0].mxu1 %v1524_v41  ;;  %v1134_v54 = vshrl.u32 %v11315_v47, 16  ;;  %v1136_v56 = vshll.u32 %v11315_v47, 16  ;;  %v1141_v57 = vshll.u32 %v11316_v48, 16  ;;  %v11319_v59 = vld [vmem:[#allocation2 + $0xc] sm:$0xfe]   ;;  %v11318_v5 = vld [vmem:[#allocation2 + $0x18] sm:$0xff]   ;;  %v714_v41 = vsel %vm12417_vm8, %v429_v35, %v713_v28  ;;  %p11996_p12 = por %p11995_p9, %p11994_p7 }
  0xad   : > { %10391 = vmatprep.subr.bf16.mxu0 %v11338_v9  ;;  %v11317_v1 = vld [vmem:[#allocation2 + $0xc] sm:$0xff]   ;;  %v11320_v2 = vld [vmem:[#allocation2 + $0x14] ss:$0 sps:$4 sm:$0x11]   ;;  %v1525_v6 = vrot.slane %v11319_v59, 1  ;;  %v11321_v10 = vld [vmem:[#allocation2 + $0x18] sm:$0xff]   ;;  %4131 = vmatprep.mubr.bf16.mxu1 %v11318_v5 }
  0xae   : > { %v1138_v63 = vrot.slane %v1136_v56, 1  ;;  %v1143_v0 = vrot.slane %v1141_v57, 1  ;;  %v1526_v9 = vrot.slane %v11320_v2, 1  ;;  %v11322_v12 = vld [vmem:[#allocation2 + $0x20] ss:$0 sps:$4 sm:$0x11]   ;;  %p11997_p1 = pnand %p11996_p12, %p11990_p3 }
  0xaf   : > { %v1146_v16 = vshrl.u32 %v11321_v10, 16  ;;  %v1148_v17 = vshll.u32 %v11321_v10, 16  ;;  %v1153_v18 = vshll.u32 %v11322_v12, 16  ;;  %v11327_v23 = vld [vmem:[#allocation2 + $0x18] sm:$0xfe]   ;;  %v431_v57 = vshrl.u32 %v335_v51, 16 }
  0xb0   : > { %10392 = vmatpush3.bf16.msra.mxu0 %v11340_v39  ;;  %v1139_v8 = vor.u32 %v1138_v63, %v1134_v54  ;;  %v1527_v15 = vsel %vm1521_vm9, %v1525_v6, %v1526_v9  ;;  %v11323_v25 = vld [vmem:[#allocation2 + $0x18] sm:$0xff]   ;;  %v11328_v26 = vld [vmem:[#allocation2 + $0x20] ss:$0 sps:$4 sm:$0x11]   ;;  %v1528_v29 = vrot.slane %v11327_v23, 1  ;;  %v11332_v38 = vld [vmem:[#allocation2 + $0x30] sm:$0xff]  }
  0xb1   : > { %v11325_v19 = vld [vmem:[#allocation2 + $0x24] sm:$0xff]   ;;  %v1150_v20 = vrot.slane %v1148_v17, 1  ;;  %v1155_v22 = vrot.slane %v1153_v18, 1  ;;  %v1529_v32 = vrot.slane %v11328_v26, 1  ;;  %715 = vst [vmem:[#allocation2 + $0x38] sm:$0x1] %v714_v41 }
  0xb2   : > { %v1144_v14 = vsel %vm1120_vm3, %v1139_v8, %v1143_v0  ;;  %v11329_v21 = vld [vmem:[#allocation2 + $0x24] sm:$0xff]   ;;  %v11330_v33 = vld [vmem:[#allocation2 + $0x2c] ss:$0 sps:$4 sm:$0x11]   ;;  %v11335_v46 = vld [vmem:[#allocation2 + $0x30] sm:$0xff]   ;;  %v433_v0 = vrot.slane %v431_v57, 7 }
  0xb3   : > { %3970 = vmatprep.mubr.bf16.mxu0 %v1144_v14  ;;  %v1151_v24 = vor.u32 %v1150_v20, %v1146_v16  ;;  %v1158_v27 = vshrl.u32 %v11329_v21, 16  ;;  %v1160_v30 = vshll.u32 %v11329_v21, 16  ;;  %v1530_v36 = vsel %vm1521_vm9, %v1528_v29, %v1529_v32  ;;  %v11333_v40 = vld [vmem:[#allocation2 + $0x24] sm:$0xfe]   ;;  %v336_v56 = vld [vmem:[%s12283_s9 + $0x24] sm:$0xf] }
  0xb4   : > { %4132 = vmatmul.mubr.bf16.gmra.mrb[4].mxu1 %v1527_v15  ;;  %3971 = vmatmul.mubr.bf16.gmra.mrb[4].mxu0 %v11317_v1  ;;  %v1165_v37 = vshll.u32 %v11330_v33, 16  ;;  %v11334_v44 = vld [vmem:[#allocation2 + $0x2c] ss:$0 sps:$4 sm:$0x11]   ;;  %v1531_v45 = vrot.slane %v11333_v40, 1  ;;  %v1172_v50 = vshll.u32 %v11335_v46, 16  ;;  %v436_v4 = vor.u32 %v434_v58, %v433_v0 }
  0xb5   : > { %4139 = vmatprep.mubr.bf16.mxu1 %v11325_v19  ;;  %v1156_v31 = vsel %vm1120_vm3, %v1151_v24, %v1155_v22  ;;  %v1162_v34 = vrot.slane %v1160_v30, 1  ;;  %v1532_v48 = vrot.slane %v11334_v44, 1  ;;  %v11331_v52 = vld [vmem:[#allocation2 + $0x24] sm:$0xff]   ;;  %v1170_v54 = vshrl.u32 %v11335_v46, 16  ;;  %v11366_v6 = vld [vmem:[#allocation9 + $0x160] sm:$0xff]   ;;  %v11380_v30 = vld [vmem:[#allocation9 + $0x168] sm:$0xff]  }
  0xb6   : > { %3978 = vmatprep.mubr.bf16.mxu0 %v1156_v31  ;;  %v1167_v42 = vrot.slane %v1165_v37, 1  ;;  %v1174_v59 = vrot.slane %v1172_v50, 1  ;;  %v439_v60 = vshrl.u32 %v336_v56, 16  ;;  %v442_v61 = vshll.u32 %v336_v56, 16  ;;  %v11352_v63 = vld [vmem:[#allocation9 + $0x158] sm:$0xff]   ;;  %v11368_v16 = vld [vmem:[#allocation9 + $0x120] sm:$0xff]  }
  0xb7   : > { %v1163_v39 = vor.u32 %v1162_v34, %v1158_v27  ;;  %v1533_v53 = vsel %vm1521_vm9, %v1531_v45, %v1532_v48  ;;  %v11354_v1 = vld [vmem:[#allocation9 + $0x118] sm:$0xff]   ;;  %10393 = vmatprep.subr.bf16.mxu0 %v11352_v63  ;;  %v437_v5 = vrot.slane %v433_v0, 4  ;;  %v11341_v11 = vld [vmem:[#allocation2 + $0x30] sm:$0xfe]   ;;  %v720_v12 = vld [vmem:[#allocation2 + $0x44] sm:$0x1]  ;;  %v717_v13 = vsel %vm12411_vm7, %v436_v4, %v716_v62 }
  0xb8   : > { %v11336_v2 = vld [vmem:[#allocation2 + $0x38] ss:$0 sps:$4 sm:$0x11]   ;;  %v441_v3 = vrot.slane %v439_v60, 7  ;;  %v1175_v7 = vor.u32 %v1174_v59, %v1170_v54  ;;  %10394 = vmatpush3.bf16.msra.mxu0 %v11354_v1  ;;  %718 = vst [vmem:[#allocation2 + $0x3c] sm:$0xf] %v717_v13 }
  0xb9   : > { %v1168_v47 = vsel %vm1120_vm3, %v1163_v39, %v1167_v42  ;;  %v1177_v8 = vshll.u32 %v11336_v2, 16  ;;  %v11342_v14 = vld [vmem:[#allocation2 + $0x38] ss:$0 sps:$4 sm:$0x11]   ;;  %10395 = vmatprep.subr.bf16.mxu0 %v11366_v6  ;;  %v1534_v19 = vrot.slane %v11341_v11, 1  ;;  %v11337_v22 = vld [vmem:[#allocation2 + $0x30] sm:$0xff]  }
  0xba   : > { %v444_v9 = vor.u32 %v442_v61, %v441_v3  ;;  %v446_v10 = vrot.slane %v441_v3, 4  ;;  %v337_v15 = vld [vmem:[%s12283_s9 + $0x28] sm:$0xf]  ;;  %v338_v21 = vld [vmem:[%s12283_s9 + $0x2c] sm:$0xf]  ;;  %v1535_v23 = vrot.slane %v11342_v14, 1 }
  0xbb   : > { %v1179_v17 = vrot.slane %v1177_v8, 1  ;;  %v448_v24 = vshrl.u32 %v337_v15, 16  ;;  %v456_v26 = vshrl.u32 %v338_v21, 16  ;;  %v459_v28 = vshll.u32 %v338_v21, 16  ;;  %v723_v29 = vld [vmem:[#allocation2 + $0x48] sm:$0xf] }
  0xbc   : > { %4140 = vmatmul.mubr.bf16.gmra.mrb[8].mxu1 %v1530_v36  ;;  %3979 = vmatmul.mubr.bf16.gmra.mrb[8].mxu0 %v11323_v25  ;;  %v445_v18 = vsel %vm12405_vm6, %v437_v5, %v444_v9  ;;  %v721_v20 = vsel %vm12417_vm8, %v446_v10, %v720_v12  ;;  %v451_v25 = vshll.u32 %v337_v15, 16  ;;  %v339_v33 = vld [vmem:[%s12283_s9 + $0x30] sm:$0xf]  ;;  %v340_v34 = vld [vmem:[%s12283_s9 + $0x34] sm:$0xf]  ;;  %v1536_v56 = vsel %vm1521_vm9, %v1534_v19, %v1535_v23 }
  0xbd   : > { %4147 = vmatprep.mubr.bf16.mxu1 %v11332_v38  ;;  %3986 = vmatprep.mubr.bf16.mxu0 %v1168_v47  ;;  %719 = vst [vmem:[#allocation2 + $0x40] sm:$0xf] %v445_v18  ;;  %722 = vst [vmem:[#allocation2 + $0x44] sm:$0x1] %v721_v20  ;;  %v1180_v27 = vsel %vm1120_vm3, %v1175_v7, %v1179_v17  ;;  %v450_v31 = vrot.slane %v448_v24, 7  ;;  %v458_v32 = vrot.slane %v456_v26, 7 }
  0xbe   : > { %10396 = vmatpush3.bf16.msra.mxu0 %v11368_v16  ;;  %v727_v35 = vld [vmem:[#allocation2 + $0x50] sm:$0x1]  ;;  %v465_v36 = vshrl.u32 %v339_v33, 16  ;;  %v468_v37 = vshll.u32 %v339_v33, 16  ;;  %v473_v38 = vshrl.u32 %v340_v34, 16  ;;  %v476_v39 = vshll.u32 %v340_v34, 16 }
  0xbf   : > { %10397 = vmatprep.subr.bf16.mxu0 %v11380_v30  ;;  %v453_v40 = vor.u32 %v451_v25, %v450_v31  ;;  %v454_v41 = vrot.slane %v450_v31, 4  ;;  %v461_v42 = vor.u32 %v459_v28, %v458_v32  ;;  %v463_v44 = vrot.slane %v458_v32, 4  ;;  %v730_v47 = vld [vmem:[#allocation2 + $0x54] sm:$0xf]  ;;  %v341_v48 = vld [vmem:[%s12283_s9 + $0x38] sm:$0xf] }
  0xc0   : > { %v467_v45 = vrot.slane %v465_v36, 7  ;;  %v475_v46 = vrot.slane %v473_v38, 7  ;;  %v482_v4 = vshrl.u32 %v341_v48, 16  ;;  %v342_v13 = vld [vmem:[%s12283_s9 + $0x3c] sm:$0xf]  ;;  %v485_v14 = vshll.u32 %v341_v48, 16 }
  0xc1   : > { %v462_v50 = vsel %vm12405_vm6, %v454_v41, %v461_v42  ;;  %v724_v51 = vsel %vm12411_vm7, %v453_v40, %v723_v29  ;;  %v737_v15 = vld [vmem:[#allocation2 + $0x60] sm:$0xf]  ;;  %v490_v24 = vshrl.u32 %v342_v13, 16  ;;  %v493_v25 = vshll.u32 %v342_v13, 16 }
  0xc2   : > { %725 = vst [vmem:[#allocation2 + $0x48] sm:$0xf] %v724_v51  ;;  %726 = vst [vmem:[#allocation2 + $0x4c] sm:$0xf] %v462_v50  ;;  %v470_v57 = vor.u32 %v468_v37, %v467_v45  ;;  %v471_v58 = vrot.slane %v467_v45, 4  ;;  %v478_v59 = vor.u32 %v476_v39, %v475_v46  ;;  %v480_v63 = vrot.slane %v475_v46, 4 }
  0xc3   : > { %v484_v11 = vrot.slane %v482_v4, 7  ;;  %v11382_v51 = vld [vmem:[#allocation9 + $0x128] sm:$0xff]  }
  0xc4   : > { %4148 = vmatmul.mubr.bf16.gmra.mrb[12].mxu1 %v1533_v53  ;;  %3987 = vmatmul.mubr.bf16.gmra.mrb[12].mxu0 %v11331_v52  ;;  %v728_v52 = vsel %vm12417_vm8, %v463_v44, %v727_v35  ;;  %v734_v53 = vld [vmem:[#allocation2 + $0x5c] sm:$0x1]  ;;  %v11344_v61 = vld [vmem:[#allocation2 + $0x44] ss:$0 sps:$4 sm:$0x11]   ;;  %v479_v62 = vsel %vm12405_vm6, %v471_v58, %v478_v59  ;;  %v731_v0 = vsel %vm12411_vm7, %v470_v57, %v730_v47  ;;  %v492_v47 = vrot.slane %v490_v24, 7 }
  0xc5   : > { %3994 = vmatprep.mubr.bf16.mxu0 %v1180_v27  ;;  %v11339_v54 = vld [vmem:[#allocation2 + $0x3c] sm:$0xff]   ;;  %729 = vst [vmem:[#allocation2 + $0x50] sm:$0x1] %v728_v52  ;;  %v1189_v3 = vshll.u32 %v11344_v61, 16  ;;  %732 = vst [vmem:[#allocation2 + $0x54] sm:$0xf] %v731_v0  ;;  %v735_v6 = vsel %vm12417_vm8, %v480_v63, %v734_v53  ;;  %v487_v19 = vor.u32 %v485_v14, %v484_v11  ;;  %10398 = vmatpush3.bf16.msra.mxu0 %v11382_v51 }
  0xc6   : > { %v11343_v60 = vld [vmem:[#allocation2 + $0x3c] sm:$0xff]   ;;  %4155 = vmatprep.mubr.bf16.mxu1 %v11339_v54  ;;  %733 = vst [vmem:[#allocation2 + $0x58] sm:$0xf] %v479_v62  ;;  %v11348_v10 = vld [vmem:[#allocation2 + $0x44] ss:$0 sps:$4 sm:$0x11]   ;;  %v495_v53 = vor.u32 %v493_v25, %v492_v47 }
  0xc7   : > { %v1182_v1 = vshrl.u32 %v11343_v60, 16  ;;  %v1184_v2 = vshll.u32 %v11343_v60, 16  ;;  %v11347_v5 = vld [vmem:[#allocation2 + $0x3c] sm:$0xfe]   ;;  %v1191_v8 = vrot.slane %v1189_v3, 1  ;;  %v1538_v18 = vrot.slane %v11348_v10, 1 }
  0xc8   : > { %v11345_v9 = vld [vmem:[#allocation2 + $0x3c] sm:$0xff]   ;;  %736 = vst [vmem:[#allocation2 + $0x5c] sm:$0x1] %v735_v6  ;;  %v1537_v12 = vrot.slane %v11347_v5, 1  ;;  %v738_v26 = vsel %vm12411_vm7, %v487_v19, %v737_v15  ;;  %v488_v44 = vrot.slane %v484_v11, 4  ;;  %v497_v54 = vrot.slane %v492_v47, 4 }
  0xc9   : > { %v1186_v7 = vrot.slane %v1184_v2, 1  ;;  %v11346_v17 = vld [vmem:[#allocation2 + $0x48] sm:$0xff]   ;;  %739 = vst [vmem:[#allocation2 + $0x60] sm:$0xf] %v738_v26  ;;  %v11394_v60 = vld [vmem:[#allocation9 + $0x170] sm:$0xff]   ;;  %v11399_v2 = vld [vmem:[#allocation9 + $0x1c0] sm:$0xff]  }
  0xca   : > { %v1539_v21 = vsel %vm1521_vm9, %v1537_v12, %v1538_v18  ;;  %v11351_v33 = vld [vmem:[#allocation2 + $0x48] sm:$0xff]   ;;  %v496_v62 = vsel %vm12405_vm6, %v488_v44, %v495_v53  ;;  %v11396_v0 = vld [vmem:[#allocation9 + $0x130] sm:$0xff]   ;;  %10399 = vmatprep.subr.bf16.mxu0 %v11394_v60  ;;  %v343_v5 = vld [vmem:[%s12283_s9 + $0x40] sm:$0xf]  ;;  %10499 = vmatprep.subr.bf16.mxu1 %v11399_v2 }
  0xcb   : > { %v1187_v16 = vor.u32 %v1186_v7, %v1182_v1  ;;  %v11355_v34 = vld [vmem:[#allocation2 + $0x48] sm:$0xfe]   ;;  %v741_v59 = vld [vmem:[#allocation2 + $0x68] sm:$0x1]  ;;  %740 = vst [vmem:[#allocation2 + $0x64] sm:$0xf] %v496_v62  ;;  %10400 = vmatpush3.bf16.msra.mxu0 %v11396_v0 }
  0xcc   : > { %3995 = vmatmul.mubr.bf16.gmra.mrb[16].mxu0 %v11337_v22  ;;  %4156 = vmatmul.mubr.bf16.gmra.mrb[16].mxu1 %v1536_v56  ;;  %v11349_v22 = vld [vmem:[#allocation2 + $0x48] sm:$0xff]   ;;  %v11350_v23 = vld [vmem:[#allocation2 + $0x50] ss:$0 sps:$4 sm:$0x11]   ;;  %v1540_v38 = vrot.slane %v11355_v34, 1  ;;  %v742_v63 = vsel %vm12417_vm8, %v497_v54, %v741_v59  ;;  %v499_v7 = vshrl.u32 %v343_v5, 16 }
  0xcd   : > { %v1192_v20 = vsel %vm1120_vm3, %v1187_v16, %v1191_v8  ;;  %4163 = vmatprep.mubr.bf16.mxu1 %v11346_v17  ;;  %v1194_v27 = vshrl.u32 %v11349_v22, 16  ;;  %v1196_v28 = vshll.u32 %v11349_v22, 16  ;;  %v1201_v29 = vshll.u32 %v11350_v23, 16  ;;  %v11353_v30 = vld [vmem:[#allocation2 + $0x54] sm:$0xff]   ;;  %743 = vst [vmem:[#allocation2 + $0x68] sm:$0x1] %v742_v63 }
  0xce   : > { %4002 = vmatprep.mubr.bf16.mxu0 %v1192_v20  ;;  %v11356_v35 = vld [vmem:[#allocation2 + $0x50] ss:$0 sps:$4 sm:$0x11]   ;;  %v11357_v36 = vld [vmem:[#allocation2 + $0x54] sm:$0xff]   ;;  %v502_v8 = vshll.u32 %v343_v5, 16  ;;  %v501_v13 = vrot.slane %v499_v7, 7 }
  0xcf   : > { %v1198_v31 = vrot.slane %v1196_v28, 1  ;;  %v1203_v32 = vrot.slane %v1201_v29, 1  ;;  %v11358_v39 = vld [vmem:[#allocation2 + $0x5c] ss:$0 sps:$4 sm:$0x11]   ;;  %v1541_v40 = vrot.slane %v11356_v35, 1 }
  0xd0   : > { %v1206_v41 = vshrl.u32 %v11357_v36, 16  ;;  %v1208_v42 = vshll.u32 %v11357_v36, 16  ;;  %v1213_v46 = vshll.u32 %v11358_v39, 16  ;;  %v11361_v56 = vld [vmem:[#allocation2 + $0x54] sm:$0xfe]   ;;  %v505_v22 = vrot.slane %v501_v13, 4 }
  0xd1   : > { %v1199_v37 = vor.u32 %v1198_v31, %v1194_v27  ;;  %v1542_v48 = vsel %vm1521_vm9, %v1540_v38, %v1541_v40  ;;  %v11362_v58 = vld [vmem:[#allocation2 + $0x5c] ss:$0 sps:$4 sm:$0x11]   ;;  %v11359_v61 = vld [vmem:[#allocation2 + $0x54] sm:$0xff]   ;;  %v1543_v3 = vrot.slane %v11361_v56, 1 }
  0xd2   : > { %v1210_v50 = vrot.slane %v1208_v42, 1  ;;  %v1215_v52 = vrot.slane %v1213_v46, 1  ;;  %v1544_v4 = vrot.slane %v11362_v58, 1  ;;  %v344_v6 = vld [vmem:[%s12283_s9 + $0x44] sm:$0xf]  ;;  %v11401_v12 = vld [vmem:[#allocation9 + $0x1c8] sm:$0xff]  }
  0xd3   : > { %v1204_v45 = vsel %vm1120_vm3, %v1199_v37, %v1203_v32  ;;  %v11400_v10 = vld [vmem:[#allocation9 + $0x180] sm:$0xff]   ;;  %v510_v11 = vshll.u32 %v344_v6, 16  ;;  %v744_v15 = vld [vmem:[#allocation2 + $0x6c] sm:$0xf]  ;;  %v345_v16 = vld [vmem:[%s12283_s9 + $0x48] sm:$0xf] }
  0xd4   : > { %4003 = vmatmul.mubr.bf16.gmra.mrb[20].mxu0 %v11345_v9  ;;  %4164 = vmatmul.mubr.bf16.gmra.mrb[20].mxu1 %v1539_v21  ;;  %v1211_v57 = vor.u32 %v1210_v50, %v1206_v41  ;;  %v507_v9 = vshrl.u32 %v344_v6, 16  ;;  %v748_v17 = vld [vmem:[#allocation2 + $0x74] sm:$0x1]  ;;  %v346_v18 = vld [vmem:[%s12283_s9 + $0x4c] sm:$0xf]  ;;  %v516_v19 = vshrl.u32 %v345_v16, 16  ;;  %v504_v21 = vor.u32 %v502_v8, %v501_v13 }
  0xd5   : > { %4171 = vmatprep.mubr.bf16.mxu1 %v11353_v30  ;;  %4010 = vmatprep.mubr.bf16.mxu0 %v1204_v45  ;;  %v519_v20 = vshll.u32 %v345_v16, 16  ;;  %v751_v25 = vld [vmem:[#allocation2 + $0x78] sm:$0xf]  ;;  %v11360_v26 = vld [vmem:[#allocation2 + $0x60] sm:$0xff]   ;;  %v1545_v27 = vsel %vm1521_vm9, %v1543_v3, %v1544_v4  ;;  %v524_v39 = vshrl.u32 %v346_v18, 16  ;;  %v527_v42 = vshll.u32 %v346_v18, 16 }
  0xd6   : > { %v1216_v1 = vsel %vm1120_vm3, %v1211_v57, %v1215_v52  ;;  %v509_v14 = vrot.slane %v507_v9, 7  ;;  %10500 = vmatpush3.bf16.msra.mxu1 %v11400_v10  ;;  %v518_v28 = vrot.slane %v516_v19, 7  ;;  %v11363_v29 = vld [vmem:[#allocation2 + $0x60] sm:$0xff]   ;;  %v11364_v30 = vld [vmem:[#allocation2 + $0x68] ss:$0 sps:$4 sm:$0x11]   ;;  %v745_v32 = vsel %vm12411_vm7, %v504_v21, %v744_v15 }
  0xd7   : > { %10501 = vmatprep.subr.bf16.mxu1 %v11401_v12  ;;  %746 = vst [vmem:[#allocation2 + $0x6c] sm:$0xf] %v745_v32  ;;  %v1218_v36 = vshrl.u32 %v11363_v29, 16  ;;  %v1220_v37 = vshll.u32 %v11363_v29, 16  ;;  %v1225_v38 = vshll.u32 %v11364_v30, 16  ;;  %v11404_v50 = vld [vmem:[#allocation9 + $0x188] sm:$0xff]  }
  0xd8   : > { %v512_v23 = vor.u32 %v510_v11, %v509_v14  ;;  %v514_v24 = vrot.slane %v509_v14, 4  ;;  %v521_v34 = vor.u32 %v519_v20, %v518_v28  ;;  %v522_v35 = vrot.slane %v518_v28, 4  ;;  %v11369_v40 = vld [vmem:[#allocation2 + $0x60] sm:$0xfe]   ;;  %v755_v45 = vld [vmem:[#allocation2 + $0x80] sm:$0x1] }
  0xd9   : > { %v11370_v41 = vld [vmem:[#allocation2 + $0x68] ss:$0 sps:$4 sm:$0x11]   ;;  %v1222_v46 = vrot.slane %v1220_v37, 1  ;;  %v1227_v47 = vrot.slane %v1225_v38, 1  ;;  %v1546_v51 = vrot.slane %v11369_v40, 1 }
  0xda   : > { %v513_v31 = vsel %vm12405_vm6, %v505_v22, %v512_v23  ;;  %v752_v44 = vsel %vm12411_vm7, %v521_v34, %v751_v25  ;;  %v1547_v52 = vrot.slane %v11370_v41, 1  ;;  %v347_v53 = vld [vmem:[%s12283_s9 + $0x50] sm:$0xf]  ;;  %v348_v54 = vld [vmem:[%s12283_s9 + $0x54] sm:$0xf]  ;;  %10502 = vmatpush3.bf16.msra.mxu1 %v11404_v50  ;;  %v11411_v37 = vld [vmem:[#allocation9 + $0x1d8] sm:$0xff]  }
  0xdb   : > { %747 = vst [vmem:[#allocation2 + $0x70] sm:$0xf] %v513_v31  ;;  %753 = vst [vmem:[#allocation2 + $0x78] sm:$0xf] %v752_v44  ;;  %v1223_v56 = vor.u32 %v1222_v46, %v1218_v36  ;;  %v11365_v57 = vld [vmem:[#allocation2 + $0x60] sm:$0xff]   ;;  %v533_v60 = vshrl.u32 %v347_v53, 16 }
  0xdc   : > { %4011 = vmatmul.mubr.bf16.gmra.mrb[24].mxu0 %v11351_v33  ;;  %4172 = vmatmul.mubr.bf16.gmra.mrb[24].mxu1 %v1542_v48  ;;  %v749_v33 = vsel %vm12417_vm8, %v514_v24, %v748_v17  ;;  %v526_v48 = vrot.slane %v524_v39, 7  ;;  %v536_v62 = vshll.u32 %v347_v53, 16  ;;  %v541_v63 = vshrl.u32 %v348_v54, 16  ;;  %v758_v7 = vld [vmem:[#allocation2 + $0x84] sm:$0xf] }
  0xdd   : > { %4018 = vmatprep.mubr.bf16.mxu0 %v1216_v1  ;;  %4179 = vmatprep.mubr.bf16.mxu1 %v11360_v26  ;;  %750 = vst [vmem:[#allocation2 + $0x74] sm:$0x1] %v749_v33  ;;  %v544_v0 = vshll.u32 %v348_v54, 16  ;;  %v11409_v1 = vld [vmem:[#allocation9 + $0x1d0] sm:$0xff]   ;;  %v1228_v2 = vsel %vm1120_vm3, %v1223_v56, %v1227_v47  ;;  %v535_v6 = vrot.slane %v533_v60, 7 }
  0xde   : > { %v529_v58 = vor.u32 %v527_v42, %v526_v48  ;;  %v531_v59 = vrot.slane %v526_v48, 4  ;;  %10503 = vmatprep.subr.bf16.mxu1 %v11409_v1  ;;  %v543_v15 = vrot.slane %v541_v63, 7  ;;  %v11410_v25 = vld [vmem:[#allocation9 + $0x190] sm:$0xff]   ;;  %v762_v39 = vld [vmem:[#allocation2 + $0x8c] sm:$0x1] }
  0xdf   : > { %v538_v10 = vor.u32 %v536_v62, %v535_v6  ;;  %v539_v11 = vrot.slane %v535_v6, 4  ;;  %10504 = vmatpush3.bf16.msra.mxu1 %v11410_v25  ;;  %v349_v48 = vld [vmem:[%s12283_s9 + $0x58] sm:$0xf]  ;;  %v350_v50 = vld [vmem:[%s12283_s9 + $0x5c] sm:$0xf] }
  0xe0   : > { %v530_v4 = vsel %vm12405_vm6, %v522_v35, %v529_v58  ;;  %v756_v5 = vsel %vm12417_vm8, %v531_v59, %v755_v45  ;;  %v546_v22 = vor.u32 %v544_v0, %v543_v15  ;;  %v548_v23 = vrot.slane %v543_v15, 4  ;;  %10505 = vmatprep.subr.bf16.mxu1 %v11411_v37  ;;  %v776_v37 = vld [vmem:[#allocation2 + $0xa4] sm:$0x1] }
  0xe1   : > { %754 = vst [vmem:[#allocation2 + $0x7c] sm:$0xf] %v530_v4  ;;  %757 = vst [vmem:[#allocation2 + $0x80] sm:$0x1] %v756_v5  ;;  %v759_v17 = vsel %vm12411_vm7, %v538_v10, %v758_v7  ;;  %v550_v56 = vshrl.u32 %v349_v48, 16  ;;  %v558_v59 = vshrl.u32 %v350_v50, 16 }
  0xe2   : > { %v11367_v3 = vld [vmem:[#allocation2 + $0x6c] sm:$0xff]   ;;  %760 = vst [vmem:[#allocation2 + $0x84] sm:$0xf] %v759_v17  ;;  %v547_v29 = vsel %vm12405_vm6, %v539_v11, %v546_v22  ;;  %v763_v42 = vsel %vm12417_vm8, %v548_v23, %v762_v39  ;;  %v561_v60 = vshll.u32 %v350_v50, 16  ;;  %v769_v4 = vld [vmem:[#allocation2 + $0x98] sm:$0x1] }
  0xe3   : > { %v11371_v8 = vld [vmem:[#allocation2 + $0x6c] sm:$0xff]   ;;  %761 = vst [vmem:[#allocation2 + $0x88] sm:$0xf] %v547_v29  ;;  %764 = vst [vmem:[#allocation2 + $0x8c] sm:$0x1] %v763_v42  ;;  %v552_v0 = vrot.slane %v550_v56, 7 }
  0xe4   : > { %4019 = vmatmul.mubr.bf16.gmra.mrb[28].mxu0 %v11359_v61  ;;  %4180 = vmatmul.mubr.bf16.gmra.mrb[28].mxu1 %v1545_v27  ;;  %v1548_v61 = vsel %vm1521_vm9, %v1546_v51, %v1547_v52  ;;  %v11372_v9 = vld [vmem:[#allocation2 + $0x74] ss:$0 sps:$4 sm:$0x11]   ;;  %v1230_v12 = vshrl.u32 %v11371_v8, 16  ;;  %v1232_v13 = vshll.u32 %v11371_v8, 16  ;;  %v11373_v20 = vld [vmem:[#allocation2 + $0x6c] sm:$0xff]  }
  0xe5   : > { %4026 = vmatprep.mubr.bf16.mxu0 %v1228_v2  ;;  %4187 = vmatprep.mubr.bf16.mxu1 %v11367_v3  ;;  %v1237_v14 = vshll.u32 %v11372_v9, 16  ;;  %v11375_v16 = vld [vmem:[#allocation2 + $0x6c] sm:$0xfe]   ;;  %v11376_v21 = vld [vmem:[#allocation2 + $0x74] ss:$0 sps:$4 sm:$0x11]  }
  0xe6   : > { %v1234_v18 = vrot.slane %v1232_v13, 1  ;;  %v1549_v24 = vrot.slane %v11375_v16, 1  ;;  %v1550_v28 = vrot.slane %v11376_v21, 1  ;;  %v11414_v2 = vld [vmem:[#allocation9 + $0x198] sm:$0xff]   ;;  %v560_v3 = vrot.slane %v558_v59, 7 }
  0xe7   : > { %v1239_v19 = vrot.slane %v1237_v14, 1  ;;  %v11416_v5 = vld [vmem:[#allocation9 + $0x178] sm:$0xff]   ;;  %10506 = vmatpush3.bf16.msra.mxu1 %v11414_v2  ;;  %v556_v9 = vrot.slane %v552_v0, 4  ;;  %v351_v21 = vld [vmem:[%s12283_s9 + $0x60] sm:$0xf] }
  0xe8   : > { %v1235_v26 = vor.u32 %v1234_v18, %v1230_v12  ;;  %v11374_v27 = vld [vmem:[#allocation2 + $0x78] sm:$0xff]   ;;  %v11378_v31 = vld [vmem:[#allocation2 + $0x80] ss:$0 sps:$4 sm:$0x11]   ;;  %v1551_v33 = vsel %vm1521_vm9, %v1549_v24, %v1550_v28  ;;  %v563_v10 = vor.u32 %v561_v60, %v560_v3  ;;  %v565_v11 = vrot.slane %v560_v3, 4  ;;  %10401 = vmatprep.subr.bf16.mxu0 %v11416_v5  ;;  %v11418_v12 = vld [vmem:[#allocation9 + $0x138] sm:$0xff]  }
  0xe9   : > { %v11377_v30 = vld [vmem:[#allocation2 + $0x78] sm:$0xff]   ;;  %v1249_v36 = vshll.u32 %v11378_v31, 16  ;;  %v11384_v44 = vld [vmem:[#allocation2 + $0x80] ss:$0 sps:$4 sm:$0x11]   ;;  %10402 = vmatpush3.bf16.msra.mxu0 %v11418_v12  ;;  %v567_v25 = vshrl.u32 %v351_v21, 16 }
  0xea   : > { %v1240_v32 = vsel %vm1120_vm3, %v1235_v26, %v1239_v19  ;;  %v1242_v34 = vshrl.u32 %v11377_v30, 16  ;;  %v1244_v35 = vshll.u32 %v11377_v30, 16  ;;  %v11383_v38 = vld [vmem:[#allocation2 + $0x78] sm:$0xfe]   ;;  %v11381_v51 = vld [vmem:[#allocation2 + $0x84] sm:$0xff]   ;;  %v1553_v52 = vrot.slane %v11384_v44, 1 }
  0xeb   : > { %v1251_v41 = vrot.slane %v1249_v36, 1  ;;  %v1552_v45 = vrot.slane %v11383_v38, 1  ;;  %v11379_v47 = vld [vmem:[#allocation2 + $0x78] sm:$0xff]   ;;  %v11385_v54 = vld [vmem:[#allocation2 + $0x84] sm:$0xff]   ;;  %v564_v18 = vsel %vm12405_vm6, %v556_v9, %v563_v10  ;;  %v352_v22 = vld [vmem:[%s12283_s9 + $0x64] sm:$0xf] }
  0xec   : > { %4027 = vmatmul.mubr.bf16.gmra.mrb[32].mxu0 %v11365_v57  ;;  %4188 = vmatmul.mubr.bf16.gmra.mrb[32].mxu1 %v1548_v61  ;;  %v1246_v40 = vrot.slane %v1244_v35, 1  ;;  %v553_v57 = vshll.u32 %v349_v48, 16  ;;  %v765_v61 = vld [vmem:[#allocation2 + $0x90] sm:$0xf]  ;;  %v1254_v62 = vshrl.u32 %v11385_v54, 16  ;;  %v1256_v63 = vshll.u32 %v11385_v54, 16 }
  0xed   : > { %4195 = vmatprep.mubr.bf16.mxu1 %v11374_v27  ;;  %4034 = vmatprep.mubr.bf16.mxu0 %v1240_v32  ;;  %v1554_v58 = vsel %vm1521_vm9, %v1552_v45, %v1553_v52  ;;  %v11389_v1 = vld [vmem:[#allocation2 + $0x84] sm:$0xfe]   ;;  %v11386_v6 = vld [vmem:[#allocation2 + $0x8c] ss:$0 sps:$4 sm:$0x11]   ;;  %v570_v26 = vshll.u32 %v351_v21, 16 }
  0xee   : > { %v1247_v46 = vor.u32 %v1246_v40, %v1242_v34  ;;  %v1258_v7 = vrot.slane %v1256_v63, 1  ;;  %v555_v8 = vor.u32 %v553_v57, %v552_v0  ;;  %v1261_v14 = vshll.u32 %v11386_v6, 16  ;;  %v11390_v16 = vld [vmem:[#allocation2 + $0x8c] ss:$0 sps:$4 sm:$0x11]   ;;  %v11387_v17 = vld [vmem:[#allocation2 + $0x84] sm:$0xff]  }
  0xef   : > { %v1555_v19 = vrot.slane %v11389_v1, 1  ;;  %768 = vst [vmem:[#allocation2 + $0x94] sm:$0xf] %v564_v18  ;;  %v1556_v24 = vrot.slane %v11390_v16, 1  ;;  %v575_v27 = vshrl.u32 %v352_v22, 16  ;;  %v578_v28 = vshll.u32 %v352_v22, 16 }
  0xf0   : > { %v1252_v53 = vsel %vm1120_vm3, %v1247_v46, %v1251_v41  ;;  %v1259_v13 = vor.u32 %v1258_v7, %v1254_v62  ;;  %v766_v15 = vsel %vm12411_vm7, %v555_v8, %v765_v61  ;;  %v1263_v23 = vrot.slane %v1261_v14, 1  ;;  %v772_v29 = vld [vmem:[#allocation2 + $0x9c] sm:$0xf]  ;;  %v11421_v32 = vld [vmem:[#allocation9 + $0x1e0] sm:$0xff]   ;;  %v11431_v54 = vld [vmem:[#allocation9 + $0x1f0] sm:$0xff]  }
  0xf1   : > { %767 = vst [vmem:[#allocation2 + $0x90] sm:$0xf] %v766_v15  ;;  %v569_v31 = vrot.slane %v567_v25, 7  ;;  %v11422_v34 = vld [vmem:[#allocation9 + $0x1a0] sm:$0xff]   ;;  %10507 = vmatprep.subr.bf16.mxu1 %v11421_v32  ;;  %v11423_v38 = vld [vmem:[#allocation9 + $0x1e8] sm:$0xff]   ;;  %v1557_v45 = vsel %vm1521_vm9, %v1555_v19, %v1556_v24  ;;  %v11433_v25 = vld [vmem:[#allocation9 + $0x1f8] sm:$0xff]  }
  0xf2   : > { %v1264_v30 = vsel %vm1120_vm3, %v1259_v13, %v1263_v23  ;;  %10508 = vmatpush3.bf16.msra.mxu1 %v11422_v34  ;;  %v11426_v41 = vld [vmem:[#allocation9 + $0x1a8] sm:$0xff]   ;;  %v779_v5 = vld [vmem:[#allocation2 + $0xa8] sm:$0xf]  ;;  %v12555_v32 = vld [vmem:[#allocation9 + $0x200] sm:$0xff]  }
  0xf3   : > { %v572_v35 = vor.u32 %v570_v26, %v569_v31  ;;  %v573_v36 = vrot.slane %v569_v31, 4  ;;  %10509 = vmatprep.subr.bf16.mxu1 %v11423_v38  ;;  %v353_v57 = vld [vmem:[%s12283_s9 + $0x68] sm:$0xf]  ;;  %v354_v0 = vld [vmem:[%s12283_s9 + $0x6c] sm:$0xf]  ;;  %11107 = vmatprep.subr.bf16.mxu0 %v12555_v32 }
  0xf4   : > { %4196 = vmatmul.mubr.bf16.gmra.mrb[36].mxu1 %v1551_v33  ;;  %4035 = vmatmul.mubr.bf16.gmra.mrb[36].mxu0 %v11373_v20  ;;  %v770_v20 = vsel %vm12417_vm8, %v565_v11, %v769_v4  ;;  %v577_v33 = vrot.slane %v575_v27, 7  ;;  %v584_v61 = vshrl.u32 %v353_v57, 16  ;;  %v587_v1 = vshll.u32 %v353_v57, 16  ;;  %v783_v34 = vld [vmem:[#allocation2 + $0xb0] sm:$0x1] }
  0xf5   : > { %4042 = vmatprep.mubr.bf16.mxu0 %v1252_v53  ;;  %4203 = vmatprep.mubr.bf16.mxu1 %v11381_v51  ;;  %771 = vst [vmem:[#allocation2 + $0x98] sm:$0x1] %v770_v20  ;;  %v773_v42 = vsel %vm12411_vm7, %v572_v35, %v772_v29  ;;  %v592_v7 = vshrl.u32 %v354_v0, 16  ;;  %v595_v18 = vshll.u32 %v354_v0, 16  ;;  %v11432_v20 = vld [vmem:[#allocation9 + $0x1b0] sm:$0xff]  }
  0xf6   : > { %v580_v39 = vor.u32 %v578_v28, %v577_v33  ;;  %v582_v40 = vrot.slane %v577_v33, 4  ;;  %774 = vst [vmem:[#allocation2 + $0x9c] sm:$0xf] %v773_v42  ;;  %10510 = vmatpush3.bf16.msra.mxu1 %v11426_v41  ;;  %v586_v4 = vrot.slane %v584_v61, 7  ;;  %v11436_v28 = vld [vmem:[#allocation9 + $0x1b8] sm:$0xff]  }
  0xf7   : > { %10511 = vmatprep.subr.bf16.mxu1 %v11431_v54  ;;  %v355_v38 = vld [vmem:[%s12283_s9 + $0x70] sm:$0xf] }
  0xf8   : > { %v11388_v44 = vld [vmem:[#allocation2 + $0x90] sm:$0xff]   ;;  %v581_v46 = vsel %vm12405_vm6, %v573_v36, %v580_v39  ;;  %v589_v12 = vor.u32 %v587_v1, %v586_v4  ;;  %v590_v13 = vrot.slane %v586_v4, 4  ;;  %v356_v39 = vld [vmem:[%s12283_s9 + $0x74] sm:$0xf]  ;;  %v604_v41 = vshll.u32 %v355_v38, 16 }
  0xf9   : > { %v11391_v48 = vld [vmem:[#allocation2 + $0x90] sm:$0xff]   ;;  %775 = vst [vmem:[#allocation2 + $0xa0] sm:$0xf] %v581_v46  ;;  %v609_v42 = vshrl.u32 %v356_v39, 16 }
  0xfa   : > { %v1266_v51 = vshrl.u32 %v11391_v48, 16  ;;  %v1268_v52 = vshll.u32 %v11391_v48, 16  ;;  %v11397_v56 = vld [vmem:[#allocation2 + $0x90] sm:$0xfe]   ;;  %v780_v19 = vsel %vm12411_vm7, %v589_v12, %v779_v5  ;;  %10512 = vmatpush3.bf16.msra.mxu1 %v11432_v20  ;;  %v11440_v20 = vld [vmem:[#allocation2 + $0x18] sm:$0xff]  }
  0xfb   : > { %v11393_v62 = vld [vmem:[#allocation2 + $0x90] sm:$0xff]   ;;  %v1558_v63 = vrot.slane %v11397_v56, 1  ;;  %781 = vst [vmem:[#allocation2 + $0xa8] sm:$0xf] %v780_v19  ;;  %10513 = vmatprep.subr.bf16.mxu1 %v11433_v25  ;;  %v793_v19 = vld [vmem:[#allocation2 + $0xc0] sm:$0xf] }
  0xfc   : > { %4204 = vmatmul.mubr.bf16.gmra.mrb[40].mxu1 %v1554_v58  ;;  %4043 = vmatmul.mubr.bf16.gmra.mrb[40].mxu0 %v11379_v47  ;;  %v777_v47 = vsel %vm12417_vm8, %v582_v40, %v776_v37  ;;  %v11392_v50 = vld [vmem:[#allocation2 + $0x98] ss:$0 sps:$4 sm:$0x11]   ;;  %v1270_v58 = vrot.slane %v1268_v52, 1  ;;  %v601_v40 = vshrl.u32 %v355_v38, 16 }
  0xfd   : > { %4050 = vmatprep.mubr.bf16.mxu0 %v1264_v30  ;;  %778 = vst [vmem:[#allocation2 + $0xa4] sm:$0x1] %v777_v47  ;;  %4211 = vmatprep.mubr.bf16.mxu1 %v11388_v44  ;;  %v1273_v53 = vshll.u32 %v11392_v50, 16  ;;  %v11398_v60 = vld [vmem:[#allocation2 + $0x98] ss:$0 sps:$4 sm:$0x11]  }
  0xfe   : > { %v1271_v2 = vor.u32 %v1270_v58, %v1266_v51  ;;  %v1559_v3 = vrot.slane %v11398_v60, 1  ;;  %10514 = vmatpush3.bf16.msra.mxu1 %v11436_v28  ;;  %v612_v44 = vshll.u32 %v356_v39, 16  ;;  %v603_v46 = vrot.slane %v601_v40, 7  ;;  %v12564_v58 = vld [vmem:[#allocation2 + $0xc] sm:$0xff]   ;;  %v11445_v40 = vld [vmem:[#allocation2 + $0x18] sm:$0xff]  }
  0xff   : > { %v1275_v59 = vrot.slane %v1273_v53, 1  ;;  %v611_v47 = vrot.slane %v609_v42, 7  ;;  %v1923_v12 = vshrl.u32 %v12564_v58, 16 }
 0x100   : > { %v11395_v6 = vld [vmem:[#allocation2 + $0x9c] sm:$0xff]   ;;  %v1560_v9 = vsel %vm1521_vm9, %v1558_v63, %v1559_v3  ;;  %v606_v52 = vor.u32 %v604_v41, %v603_v46  ;;  %v607_v53 = vrot.slane %v603_v46, 4 }
 0x101   : > { %v1276_v8 = vsel %vm1120_vm3, %v1271_v2, %v1275_v59  ;;  %v11402_v10 = vld [vmem:[#allocation2 + $0x9c] sm:$0xff]   ;;  %v614_v54 = vor.u32 %v612_v44, %v611_v47  ;;  %v616_v57 = vrot.slane %v611_v47, 4  ;;  %v2726_v47 = vshll.u32 %v11440_v20, 16 }
 0x102   : > { %v1278_v14 = vshrl.u32 %v11402_v10, 16  ;;  %v1280_v15 = vshll.u32 %v11402_v10, 16  ;;  %v11405_v23 = vld [vmem:[#allocation2 + $0x9c] sm:$0xff]   ;;  %v357_v10 = vld [vmem:[%s12283_s9 + $0x78] sm:$0xf] }
 0x103   : > { %v11407_v30 = vld [vmem:[#allocation2 + $0x9c] sm:$0xfe]   ;;  %v615_v61 = vsel %vm12405_vm6, %v607_v53, %v614_v54  ;;  %v1937_v53 = vshll.u32 %v11445_v40, 16 }
 0x104   : > { %4051 = vmatmul.mubr.bf16.gmra.mrb[44].mxu0 %v11387_v17  ;;  %4212 = vmatmul.mubr.bf16.gmra.mrb[44].mxu1 %v1557_v45  ;;  %v11403_v11 = vld [vmem:[#allocation2 + $0xa4] ss:$0 sps:$4 sm:$0x11]   ;;  %v594_v17 = vrot.slane %v592_v7, 7  ;;  %v1282_v21 = vrot.slane %v1280_v15, 1  ;;  %v1561_v36 = vrot.slane %v11407_v30, 1 }
 0x105   : > { %4058 = vmatprep.mubr.bf16.mxu0 %v1276_v8  ;;  %4219 = vmatprep.mubr.bf16.mxu1 %v11395_v6  ;;  %v1285_v16 = vshll.u32 %v11403_v11, 16  ;;  %v11408_v27 = vld [vmem:[#allocation2 + $0xa4] ss:$0 sps:$4 sm:$0x11]   ;;  %v786_v45 = vld [vmem:[#allocation2 + $0xb4] sm:$0xf] }
 0x106   : > { %v599_v24 = vrot.slane %v594_v17, 4  ;;  %v597_v26 = vor.u32 %v595_v18, %v594_v17  ;;  %v1283_v29 = vor.u32 %v1282_v21, %v1278_v14  ;;  %v1562_v37 = vrot.slane %v11408_v27, 1  ;;  %789 = vst [vmem:[#allocation2 + $0xb8] sm:$0xf] %v615_v61  ;;  %v790_v8 = vld [vmem:[#allocation2 + $0xbc] sm:$0x1] }
 0x107   : > { %v1287_v22 = vrot.slane %v1285_v16, 1  ;;  %v358_v11 = vld [vmem:[%s12283_s9 + $0x7c] sm:$0xf]  ;;  %v618_v15 = vshrl.u32 %v357_v10, 16  ;;  %v621_v16 = vshll.u32 %v357_v10, 16  ;;  %s13482_s9 = scalar_lea.hbm %s13536_s5, %s10162_s17 }
 0x108   : > { %v598_v31 = vsel %vm12405_vm6, %v590_v13, %v597_v26  ;;  %v784_v35 = vsel %vm12417_vm8, %v599_v24, %v783_v34  ;;  %v1563_v50 = vsel %vm1521_vm9, %v1561_v36, %v1562_v37  ;;  %v1925_v13 = vshll.u32 %v12564_v58, 16  ;;  %v11444_v10 = vld [vmem:[#allocation2 + $0x20] ss:$0 sps:$4 sm:$0x11]  }
 0x109   : > { %v1288_v33 = vsel %vm1120_vm3, %v1283_v29, %v1287_v22  ;;  %782 = vst [vmem:[#allocation2 + $0xac] sm:$0xf] %v598_v31  ;;  %785 = vst [vmem:[#allocation2 + $0xb0] sm:$0x1] %v784_v35  ;;  %v626_v17 = vshrl.u32 %v358_v11, 16  ;;  %v629_v18 = vshll.u32 %v358_v11, 16 }
 0x10a   : > { %v1927_v28 = vrot.slane %v1925_v13, 1 }
 0x10b   : > { %v12578_v25 = vrot.slane %v626_v17, 7  ;;  %v2326_v17 = vrot.slane %v11444_v10, 1 }
 0x10c   : > { %4059 = vmatmul.mubr.bf16.gmra.mrb[48].mxu0 %v11393_v62  ;;  %4220 = vmatmul.mubr.bf16.gmra.mrb[48].mxu1 %v1560_v9  ;;  %v787_v62 = vsel %vm12411_vm7, %v606_v52, %v786_v45  ;;  %v791_v9 = vsel %vm12417_vm8, %v616_v57, %v790_v8  ;;  %v11435_v52 = vld [vmem:[#allocation2 + $0x14] ss:$0 sps:$4 sm:$0x11]   ;;  %v11447_v57 = vld [vmem:[#allocation2 + $0x24] sm:$0xff]   ;;  %v11442_v8 = vld [vmem:[#allocation2 + $0x18] sm:$0xff]  }
 0x10d   : > { %4066 = vmatprep.mubr.bf16.mxu0 %v1288_v33  ;;  %788 = vst [vmem:[#allocation2 + $0xb4] sm:$0xf] %v787_v62  ;;  %792 = vst [vmem:[#allocation2 + $0xbc] sm:$0x1] %v791_v9  ;;  %v631_v31 = vor.u32 %v629_v18, %v12578_v25  ;;  %v2724_v33 = vshrl.u32 %v11440_v20, 16  ;;  %v2323_v58 = vrot.slane %v11435_v52, 1 }
 0x10e   : > { %v1939_v62 = vrot.slane %v1937_v53, 1  ;;  %v11443_v9 = vld [vmem:[#allocation2 + $0x18] sm:$0xfe]   ;;  %v2736_v11 = vshrl.u32 %v11447_v57, 16  ;;  %v11460_v52 = vld [vmem:[#allocation2 + $0x30] sm:$0xff]  }
 0x110   : > { %v11406_v48 = vld [vmem:[#allocation2 + $0xa8] sm:$0xff]   ;;  %v11413_v56 = vld [vmem:[#allocation2 + $0xb0] ss:$0 sps:$4 sm:$0x11]  }
 0x111   : > { %v11412_v51 = vld [vmem:[#allocation2 + $0xa8] sm:$0xff]   ;;  %4227 = vmatprep.mubr.bf16.mxu1 %v11406_v48  ;;  %v1297_v63 = vshll.u32 %v11413_v56, 16  ;;  %v11420_v1 = vld [vmem:[#allocation2 + $0xb0] ss:$0 sps:$4 sm:$0x11]  }
 0x112   : > { %v1290_v59 = vshrl.u32 %v11412_v51, 16  ;;  %v1292_v60 = vshll.u32 %v11412_v51, 16  ;;  %v11419_v0 = vld [vmem:[#allocation2 + $0xa8] sm:$0xfe]   ;;  %v1565_v6 = vrot.slane %v11420_v1, 1  ;;  %v1935_v51 = vshrl.u32 %v11445_v40, 16 }
 0x113   : > { %v1299_v3 = vrot.slane %v1297_v63, 1  ;;  %v11415_v4 = vld [vmem:[#allocation2 + $0xa8] sm:$0xff]   ;;  %v1564_v5 = vrot.slane %v11419_v0, 1  ;;  %v11438_v0 = vld [vmem:[#allocation2 + $0x14] ss:$0 sps:$4 sm:$0x11]  }
 0x114   : > { %4067 = vmatmul.mubr.bf16.gmra.mrb[52].mxu0 %v11405_v23  ;;  %4228 = vmatmul.mubr.bf16.gmra.mrb[52].mxu1 %v1563_v50  ;;  %v1294_v2 = vrot.slane %v1292_v60, 1  ;;  %v11417_v21 = vld [vmem:[#allocation2 + $0xb4] sm:$0xff]   ;;  %v620_v23 = vrot.slane %v618_v15, 7  ;;  %v11425_v36 = vld [vmem:[#allocation2 + $0xbc] ss:$0 sps:$4 sm:$0x11]  }
 0x115   : > { %v1566_v22 = vsel %vm1521_vm9, %v1564_v5, %v1565_v6  ;;  %v11424_v24 = vld [vmem:[#allocation2 + $0xb4] sm:$0xff]   ;;  %4235 = vmatprep.mubr.bf16.mxu1 %v11417_v21  ;;  %v11430_v39 = vld [vmem:[#allocation2 + $0xbc] ss:$0 sps:$4 sm:$0x11]   ;;  %v1309_v42 = vshll.u32 %v11425_v36, 16  ;;  %v2738_v1 = vshll.u32 %v11447_v57, 16 }
 0x116   : > { %v1295_v7 = vor.u32 %v1294_v2, %v1290_v59  ;;  %v623_v26 = vor.u32 %v621_v16, %v620_v23  ;;  %v624_v27 = vrot.slane %v620_v23, 4  ;;  %v1302_v29 = vshrl.u32 %v11424_v24, 16  ;;  %v11429_v35 = vld [vmem:[#allocation2 + $0xb4] sm:$0xfe]   ;;  %v11434_v50 = vld [vmem:[#allocation2 + $0xc] sm:$0xfe]  }
 0x117   : > { %v1304_v30 = vshll.u32 %v11424_v24, 16  ;;  %v11427_v44 = vld [vmem:[#allocation2 + $0xb4] sm:$0xff]   ;;  %v1567_v45 = vrot.slane %v11429_v35, 1  ;;  %v1568_v46 = vrot.slane %v11430_v39, 1  ;;  %v1311_v48 = vrot.slane %v1309_v42, 1 }
 0x118   : > { %v1300_v14 = vsel %vm1120_vm3, %v1295_v7, %v1299_v3  ;;  %v794_v34 = vsel %vm12411_vm7, %v623_v26, %v793_v19  ;;  %v632_v38 = vsel %vm12405_vm6, %v624_v27, %v631_v31  ;;  %v2322_v56 = vrot.slane %v11434_v50, 1  ;;  %v11452_v19 = vld [vmem:[#allocation2 + $0x24] sm:$0xff]   ;;  %v11448_v21 = vld [vmem:[#allocation2 + $0x2c] ss:$0 sps:$4 sm:$0x11]  }
 0x119   : > { %4074 = vmatprep.mubr.bf16.mxu0 %v1300_v14  ;;  %v1306_v37 = vrot.slane %v1304_v30, 1  ;;  %795 = vst [vmem:[#allocation2 + $0xc0] sm:$0xf] %v794_v34  ;;  %796 = vst [vmem:[#allocation2 + $0xc4] sm:$0xf] %v632_v38  ;;  %v2728_v59 = vrot.slane %v2726_v47, 1  ;;  %v1569_v61 = vsel %vm1521_vm9, %v1567_v45, %v1568_v46  ;;  %v1928_v2 = vor.u32 %v1927_v28, %v1923_v12 }
 0x11a   : > { %v2324_v63 = vsel %vm1521_vm9, %v2322_v56, %v2323_v58  ;;  %v1930_v3 = vshll.u32 %v11438_v0, 16  ;;  %v2740_v15 = vrot.slane %v2738_v1, 1  ;;  %v2325_v16 = vrot.slane %v11443_v9, 1  ;;  %v11446_v12 = vld [vmem:[#allocation2 + $0x20] ss:$0 sps:$4 sm:$0x11]  }
 0x11b   : > { %v1307_v41 = vor.u32 %v1306_v37, %v1302_v29  ;;  %v2729_v6 = vor.u32 %v2728_v59, %v2724_v33  ;;  %v1940_v23 = vor.u32 %v1939_v62, %v1935_v51  ;;  %v1942_v24 = vshll.u32 %v11446_v12, 16  ;;  %v11449_v31 = vld [vmem:[#allocation2 + $0x24] sm:$0xff]   ;;  %v11451_v35 = vld [vmem:[#allocation2 + $0x2c] ss:$0 sps:$4 sm:$0x11]   ;;  %v11462_v56 = vld [vmem:[#allocation2 + $0x3c] sm:$0xff]  }
 0x11c   : > { %4075 = vmatmul.mubr.bf16.gmra.mrb[56].mxu0 %v11415_v4  ;;  %4236 = vmatmul.mubr.bf16.gmra.mrb[56].mxu1 %v1566_v22  ;;  %v11441_v4 = vld [vmem:[#allocation2 + $0x20] ss:$0 sps:$4 sm:$0x11]   ;;  %v1932_v5 = vrot.slane %v1930_v3, 1  ;;  %v2327_v20 = vsel %vm1521_vm9, %v2325_v16, %v2326_v17  ;;  %v11454_v22 = vld [vmem:[#allocation9 + $0x208] sm:$0xff]   ;;  %v1947_v26 = vshrl.u32 %v11452_v19, 16  ;;  %v2741_v27 = vor.u32 %v2740_v15, %v2736_v11 }
 0x11d   : > { %v1312_v54 = vsel %vm1120_vm3, %v1307_v41, %v1311_v48  ;;  %v2731_v7 = vshll.u32 %v11441_v4, 16  ;;  %v2743_v28 = vshll.u32 %v11448_v21, 16  ;;  %v1949_v29 = vshll.u32 %v11452_v19, 16  ;;  %v11450_v33 = vld [vmem:[#allocation2 + $0x24] sm:$0xfe]   ;;  %v11464_v16 = vld [vmem:[#allocation2 + $0x3c] sm:$0xff]  }
 0x11e   : > { %4082 = vmatprep.mubr.bf16.mxu0 %v1312_v54  ;;  %v1933_v13 = vsel %vm1120_vm3, %v1928_v2, %v1932_v5  ;;  %v1944_v30 = vrot.slane %v1942_v24, 1  ;;  %v2328_v37 = vrot.slane %v11450_v33, 1  ;;  %v2329_v40 = vrot.slane %v11451_v35, 1  ;;  %v11453_v41 = vld [vmem:[#allocation2 + $0x2c] ss:$0 sps:$4 sm:$0x11]  }
 0x11f   : > { %v2733_v14 = vrot.slane %v2731_v7, 1  ;;  %v2745_v34 = vrot.slane %v2743_v28, 1  ;;  %v1951_v38 = vrot.slane %v1949_v29, 1  ;;  %v1954_v45 = vshll.u32 %v11453_v41, 16  ;;  %v11457_v54 = vld [vmem:[#allocation2 + $0x30] sm:$0xff]   ;;  %v11469_v17 = vld [vmem:[#allocation9 + $0x210] sm:$0xff]  }
 0x120   : > { %v11428_v60 = vld [vmem:[#allocation2 + $0xc0] sm:$0xff]   ;;  %v1945_v36 = vsel %vm1120_vm3, %v1940_v23, %v1944_v30  ;;  %v2330_v42 = vsel %vm1521_vm9, %v2328_v37, %v2329_v40  ;;  %v11456_v46 = vld [vmem:[#allocation2 + $0x38] ss:$0 sps:$4 sm:$0x11]   ;;  %v11458_v59 = vld [vmem:[#allocation2 + $0x30] sm:$0xfe]  }
 0x121   : > { %4243 = vmatprep.mubr.bf16.mxu1 %v11428_v60  ;;  %v2734_v18 = vsel %vm1120_vm3, %v2729_v6, %v2733_v14  ;;  %v2746_v39 = vsel %vm1120_vm3, %v2741_v27, %v2745_v34  ;;  %v1956_v50 = vrot.slane %v1954_v45, 1  ;;  %v2755_v51 = vshll.u32 %v11456_v46, 16  ;;  %v11459_v60 = vld [vmem:[#allocation2 + $0x38] ss:$0 sps:$4 sm:$0x11]   ;;  %v11470_v29 = vld [vmem:[#allocation2 + $0x48] sm:$0xff]  }
 0x122   : > { %v2331_v62 = vrot.slane %v11458_v59, 1  ;;  %v11461_v0 = vld [vmem:[#allocation2 + $0x38] ss:$0 sps:$4 sm:$0x11]   ;;  %v1959_v1 = vshrl.u32 %v11460_v52, 16  ;;  %v1961_v3 = vshll.u32 %v11460_v52, 16 }
 0x123   : > { %v2757_v58 = vrot.slane %v2755_v51, 1  ;;  %v2760_v4 = vshrl.u32 %v11462_v56, 16  ;;  %v1966_v6 = vshll.u32 %v11461_v0, 16  ;;  %v11463_v7 = vld [vmem:[#allocation2 + $0x44] ss:$0 sps:$4 sm:$0x11]  }
 0x124   : > { %4083 = vmatmul.mubr.bf16.gmra.mrb[60].mxu0 %v11427_v44  ;;  %4244 = vmatmul.mubr.bf16.gmra.mrb[60].mxu1 %v1569_v61  ;;  %v1952_v44 = vor.u32 %v1951_v38, %v1947_v26  ;;  %v2762_v9 = vshll.u32 %v11462_v56, 16  ;;  %v2767_v11 = vshll.u32 %v11463_v7, 16  ;;  %v11465_v12 = vld [vmem:[#allocation2 + $0x3c] sm:$0xfe]   ;;  %v2772_v35 = vshrl.u32 %v11470_v29, 16  ;;  %v11475_v37 = vld [vmem:[#allocation2 + $0x48] sm:$0xff]  }
 0x125   : > { %4284 = vmatprep.mubr.bf16.mxu0 %v2324_v63  ;;  %4445 = vmatprep.mubr.bf16.mxu1 %v2734_v18  ;;  %v2332_v63 = vrot.slane %v11459_v60, 1  ;;  %v1968_v10 = vrot.slane %v1966_v6, 1  ;;  %v11466_v19 = vld [vmem:[#allocation2 + $0x44] ss:$0 sps:$4 sm:$0x11]   ;;  %v11472_v41 = vld [vmem:[#allocation2 + $0x48] sm:$0xff]  }
 0x126   : > { %v1957_v57 = vsel %vm1120_vm3, %v1952_v44, %v1956_v50  ;;  %v2764_v15 = vrot.slane %v2762_v9, 1  ;;  %v2769_v18 = vrot.slane %v2767_v11, 1  ;;  %v2335_v23 = vrot.slane %v11466_v19, 1  ;;  %v11468_v24 = vld [vmem:[#allocation2 + $0x44] ss:$0 sps:$4 sm:$0x11]  }
 0x127   : > { %v2333_v5 = vsel %vm1521_vm9, %v2331_v62, %v2332_v63  ;;  %v11477_v44 = vld [vmem:[#allocation2 + $0x54] sm:$0xff]   ;;  %v11478_v60 = vld [vmem:[#allocation2 + $0x5c] ss:$0 sps:$4 sm:$0x11]  }
 0x128   : > { %v2765_v21 = vor.u32 %v2764_v15, %v2760_v4  ;;  %v2786_v62 = vshll.u32 %v11477_v44, 16  ;;  %v11480_v4 = vld [vmem:[#allocation2 + $0x54] sm:$0xfe]  }
 0x12a   : > { %v2770_v27 = vsel %vm1120_vm3, %v2765_v21, %v2769_v18  ;;  %v11486_v21 = vld [vmem:[#allocation2 + $0x68] ss:$0 sps:$4 sm:$0x11]  }
 0x12c   : > { %4285 = vmatmul.mubr.bf16.vlgmr.msra.gmra.mrb[64].mxu0 %v1933_v13  ;;  %4446 = vmatmul.mubr.bf16.vlgmr.msra.gmra.mrb[64].mxu1 %v11442_v8  ;;  %v1963_v8 = vrot.slane %v1961_v3, 1  ;;  %v11467_v13 = vld [vmem:[#allocation2 + $0x3c] sm:$0xff]   ;;  %v11479_v3 = vld [vmem:[#allocation2 + $0x54] sm:$0xff]  }
 0x12d   : > { %11108 = vmatpush3.bf16.msra.mxu0 %v12555_v32  ;;  %4292 = vmatprep.mubr.bf16.mxu0 %v2327_v20  ;;  %v11455_v32 = vld [vmem:[#allocation2 + $0x30] sm:$0xff]   ;;  %v1971_v26 = vshrl.u32 %v11467_v13, 16  ;;  %v1973_v28 = vshll.u32 %v11467_v13, 16 }
 0x12e   : > { %11109 = vmatprep.subr.bf16.mxu0 %v11454_v22  ;;  %4453 = vmatprep.mubr.bf16.mxu1 %v2746_v39  ;;  %v2748_v47 = vshrl.u32 %v11455_v32, 16  ;;  %v2750_v48 = vshll.u32 %v11455_v32, 16  ;;  %v1964_v14 = vor.u32 %v1963_v8, %v1959_v1  ;;  %v11471_v32 = vld [vmem:[#allocation2 + $0x50] ss:$0 sps:$4 sm:$0x11]   ;;  %v2791_v1 = vshll.u32 %v11478_v60, 16 }
 0x12f   : > { %v1975_v33 = vrot.slane %v1973_v28, 1  ;;  %v2779_v39 = vshll.u32 %v11471_v32, 16  ;;  %v11481_v8 = vld [vmem:[#allocation2 + $0x5c] ss:$0 sps:$4 sm:$0x11]   ;;  %v11490_v28 = vld [vmem:[#allocation2 + $0x60] sm:$0xff]  }
 0x130   : > { %v2752_v53 = vrot.slane %v2750_v48, 1  ;;  %v1969_v20 = vsel %vm1120_vm3, %v1964_v14, %v1968_v10  ;;  %v11474_v48 = vld [vmem:[#allocation2 + $0x50] ss:$0 sps:$4 sm:$0x11]   ;;  %v2793_v7 = vrot.slane %v2791_v1, 1  ;;  %v2340_v10 = vrot.slane %v11480_v4, 1 }
 0x131   : > { %11110 = vmatpush3.bf16.msra.mxu0 %v11454_v22  ;;  %v2334_v22 = vrot.slane %v11465_v12, 1  ;;  %v1976_v38 = vor.u32 %v1975_v33, %v1971_v26  ;;  %v2781_v46 = vrot.slane %v2779_v39, 1  ;;  %v2338_v52 = vrot.slane %v11474_v48, 1  ;;  %v11483_v14 = vld [vmem:[#allocation2 + $0x5c] ss:$0 sps:$4 sm:$0x11]  }
 0x132   : > { %v2753_v61 = vor.u32 %v2752_v53, %v2748_v47  ;;  %11111 = vmatprep.subr.bf16.mxu0 %v11469_v17  ;;  %v11473_v47 = vld [vmem:[#allocation2 + $0x48] sm:$0xfe]   ;;  %v11476_v53 = vld [vmem:[#allocation2 + $0x50] ss:$0 sps:$4 sm:$0x11]   ;;  %v2341_v13 = vrot.slane %v11481_v8, 1 }
 0x133   : > { %v2336_v30 = vsel %vm1521_vm9, %v2334_v22, %v2335_v23  ;;  %v2337_v51 = vrot.slane %v11473_v47, 1  ;;  %v1990_v59 = vshll.u32 %v11476_v53, 16  ;;  %v2002_v19 = vshll.u32 %v11483_v14, 16  ;;  %v11487_v32 = vld [vmem:[#allocation2 + $0x60] sm:$0xff]  }
 0x134   : > { %4293 = vmatmul.mubr.bf16.gmra.mrb[68].mxu0 %v1945_v36  ;;  %4454 = vmatmul.mubr.bf16.gmra.mrb[68].mxu1 %v11449_v31  ;;  %v2758_v2 = vsel %vm1120_vm3, %v2753_v61, %v2757_v58  ;;  %v1978_v31 = vshll.u32 %v11468_v24, 16  ;;  %v2774_v36 = vshll.u32 %v11470_v29, 16  ;;  %v2784_v61 = vshrl.u32 %v11477_v44, 16  ;;  %v11493_v47 = vld [vmem:[#allocation2 + $0x74] ss:$0 sps:$4 sm:$0x11]  }
 0x135   : > { %4300 = vmatprep.mubr.bf16.mxu0 %v2330_v42  ;;  %4461 = vmatprep.mubr.bf16.mxu1 %v2758_v2  ;;  %v1983_v42 = vshrl.u32 %v11475_v37, 16  ;;  %v1992_v0 = vrot.slane %v1990_v59, 1  ;;  %v2788_v2 = vrot.slane %v2786_v62, 1  ;;  %v2342_v18 = vsel %vm1521_vm9, %v2340_v10, %v2341_v13  ;;  %v11496_v62 = vld [vmem:[#allocation2 + $0x74] ss:$0 sps:$4 sm:$0x11]  }
 0x136   : > { %11112 = vmatpush3.bf16.msra.mxu0 %v11469_v17  ;;  %v1980_v34 = vrot.slane %v1978_v31, 1  ;;  %v2776_v40 = vrot.slane %v2774_v36, 1  ;;  %v2004_v23 = vrot.slane %v2002_v19, 1 }
 0x137   : > { %v2789_v9 = vor.u32 %v2788_v2, %v2784_v61  ;;  %v11494_v61 = vld [vmem:[#allocation2 + $0x6c] sm:$0xff]   ;;  %v2347_v2 = vrot.slane %v11496_v62, 1 }
 0x138   : > { %v1981_v45 = vsel %vm1120_vm3, %v1976_v38, %v1980_v34  ;;  %v2777_v50 = vor.u32 %v2776_v40, %v2772_v35  ;;  %v11489_v34 = vld [vmem:[#allocation2 + $0x68] ss:$0 sps:$4 sm:$0x11]   ;;  %v2007_v35 = vshrl.u32 %v11490_v28, 16 }
 0x139   : > { %v2794_v17 = vsel %vm1120_vm3, %v2789_v9, %v2793_v7  ;;  %v2344_v39 = vrot.slane %v11489_v34, 1  ;;  %v11491_v40 = vld [vmem:[#allocation2 + $0x68] ss:$0 sps:$4 sm:$0x11]   ;;  %v11500_v9 = vld [vmem:[#allocation2 + $0x78] sm:$0xff]  }
 0x13a   : > { %v2782_v56 = vsel %vm1120_vm3, %v2777_v50, %v2781_v46  ;;  %v2014_v46 = vshll.u32 %v11491_v40, 16  ;;  %v2820_v14 = vshrl.u32 %v11500_v9, 16 }
 0x13c   : > { %4301 = vmatmul.mubr.bf16.gmra.mrb[72].mxu0 %v1957_v57  ;;  %4462 = vmatmul.mubr.bf16.gmra.mrb[72].mxu1 %v11457_v54  ;;  %v1985_v54 = vshll.u32 %v11475_v37, 16  ;;  %v2339_v57 = vsel %vm1521_vm9, %v2337_v51, %v2338_v52  ;;  %v2009_v37 = vshll.u32 %v11490_v28, 16  ;;  %v11497_v52 = vld [vmem:[#allocation2 + $0x6c] sm:$0xff]   ;;  %v2016_v53 = vrot.slane %v2014_v46, 1 }
 0x13d   : > { %4308 = vmatprep.mubr.bf16.mxu0 %v2333_v5  ;;  %4469 = vmatprep.mubr.bf16.mxu1 %v2770_v27  ;;  %v11482_v5 = vld [vmem:[#allocation2 + $0x54] sm:$0xff]   ;;  %v2803_v27 = vshll.u32 %v11486_v21, 16  ;;  %v2021_v1 = vshll.u32 %v11497_v52, 16 }
 0x13e   : > { %v1987_v58 = vrot.slane %v1985_v54, 1  ;;  %v1995_v11 = vshrl.u32 %v11482_v5, 16  ;;  %v1997_v15 = vshll.u32 %v11482_v5, 16  ;;  %v2815_v54 = vshll.u32 %v11493_v47, 16  ;;  %v11503_v21 = vld [vmem:[#allocation2 + $0x78] sm:$0xfe]  }
 0x13f   : > { %v2805_v33 = vrot.slane %v2803_v27, 1  ;;  %v2023_v5 = vrot.slane %v2021_v1, 1  ;;  %v2349_v27 = vrot.slane %v11503_v21, 1 }
 0x140   : > { %v1988_v63 = vor.u32 %v1987_v58, %v1983_v42  ;;  %v1999_v12 = vrot.slane %v1997_v15, 1  ;;  %v11492_v42 = vld [vmem:[#allocation2 + $0x6c] sm:$0xff]   ;;  %v2019_v58 = vshrl.u32 %v11497_v52, 16  ;;  %v2817_v60 = vrot.slane %v2815_v54, 1 }
 0x141   : > { %v2808_v50 = vshrl.u32 %v11492_v42, 16  ;;  %v2810_v51 = vshll.u32 %v11492_v42, 16  ;;  %v2822_v15 = vshll.u32 %v11500_v9, 16  ;;  %v11512_v42 = vld [vmem:[#allocation2 + $0x84] sm:$0xff]   ;;  %v12622_v9 = vld [vmem:[%s13533_s2] ss:$0 sm:$0xff] }
 0x142   : > { %v1993_v6 = vsel %vm1120_vm3, %v1988_v63, %v1992_v0  ;;  %v2000_v22 = vor.u32 %v1999_v12, %v1995_v11  ;;  %v2024_v10 = vor.u32 %v2023_v5, %v2019_v58  ;;  %v11501_v11 = vld [vmem:[#allocation2 + $0x80] ss:$0 sps:$4 sm:$0x11]   ;;  %v11513_v52 = vld [vmem:[#allocation2 + $0x8c] ss:$0 sps:$4 sm:$0x11]  }
 0x143   : > { %v2824_v19 = vrot.slane %v2822_v15, 1  ;;  %v11514_v58 = vld [vmem:[#allocation9 + $0x228] sm:$0xff]  }
 0x144   : > { %4309 = vmatmul.mubr.bf16.gmra.mrb[76].mxu0 %v1969_v20  ;;  %4470 = vmatmul.mubr.bf16.gmra.mrb[76].mxu1 %v11464_v16  ;;  %v11484_v16 = vld [vmem:[#allocation9 + $0x218] sm:$0xff]   ;;  %v11485_v20 = vld [vmem:[#allocation2 + $0x60] sm:$0xff]   ;;  %v2005_v29 = vsel %vm1120_vm3, %v2000_v22, %v2004_v23 }
 0x145   : > { %4316 = vmatprep.mubr.bf16.mxu0 %v2336_v30  ;;  %4477 = vmatprep.mubr.bf16.mxu1 %v2782_v56  ;;  %v2796_v24 = vshrl.u32 %v11485_v20, 16  ;;  %v2798_v26 = vshll.u32 %v11485_v20, 16  ;;  %v11488_v30 = vld [vmem:[#allocation2 + $0x60] sm:$0xfe]   ;;  %v2812_v56 = vrot.slane %v2810_v51, 1  ;;  %v11502_v20 = vld [vmem:[#allocation2 + $0x78] sm:$0xff]  }
 0x146   : > { %11113 = vmatprep.subr.bf16.mxu0 %v11484_v16  ;;  %v2343_v36 = vrot.slane %v11488_v30, 1  ;;  %v11506_v30 = vld [vmem:[#allocation2 + $0x80] ss:$0 sps:$4 sm:$0x11]  }
 0x147   : > { %11114 = vmatpush3.bf16.msra.mxu0 %v11484_v16  ;;  %v2800_v31 = vrot.slane %v2798_v26, 1  ;;  %v2813_v63 = vor.u32 %v2812_v56, %v2808_v50  ;;  %v11505_v16 = vld [vmem:[#allocation2 + $0x78] sm:$0xff]   ;;  %v2825_v26 = vor.u32 %v2824_v19, %v2820_v14  ;;  %v2038_v34 = vshll.u32 %v11506_v30, 16  ;;  %v11511_v50 = vld [vmem:[#allocation2 + $0x8c] ss:$0 sps:$4 sm:$0x11]  }
 0x148   : > { %v2031_v22 = vshrl.u32 %v11505_v16, 16  ;;  %v2033_v28 = vshll.u32 %v11505_v16, 16  ;;  %v2353_v54 = vrot.slane %v11511_v50, 1  ;;  %v2043_v56 = vshrl.u32 %v11512_v42, 16 }
 0x149   : > { %v2801_v38 = vor.u32 %v2800_v31, %v2796_v24  ;;  %v2818_v4 = vsel %vm1120_vm3, %v2813_v63, %v2817_v60  ;;  %v11504_v24 = vld [vmem:[#allocation2 + $0x80] ss:$0 sps:$4 sm:$0x11]   ;;  %v11515_v60 = vld [vmem:[#allocation2 + $0x90] sm:$0xff]  }
 0x14a   : > { %v2844_v1 = vshrl.u32 %v11515_v60, 16 }
 0x14b   : > { %v2806_v44 = vsel %vm1120_vm3, %v2801_v38, %v2805_v33  ;;  %v2035_v33 = vrot.slane %v2033_v28, 1 }
 0x14c   : > { %4317 = vmatmul.mubr.bf16.gmra.mrb[80].mxu0 %v1981_v45  ;;  %4478 = vmatmul.mubr.bf16.gmra.mrb[80].mxu1 %v11472_v41  ;;  %v2011_v41 = vrot.slane %v2009_v37, 1  ;;  %v2345_v45 = vsel %vm1521_vm9, %v2343_v36, %v2344_v39  ;;  %v2040_v39 = vrot.slane %v2038_v34, 1 }
 0x14d   : > { %4324 = vmatprep.mubr.bf16.mxu0 %v2339_v57  ;;  %4485 = vmatprep.mubr.bf16.mxu1 %v2794_v17  ;;  %v11495_v57 = vld [vmem:[#allocation2 + $0x6c] sm:$0xfe]   ;;  %v2827_v17 = vshll.u32 %v11501_v11, 16  ;;  %v2036_v38 = vor.u32 %v2035_v33, %v2031_v22  ;;  %v11521_v33 = vld [vmem:[#allocation2 + $0x98] ss:$0 sps:$4 sm:$0x11]  }
 0x14e   : > { %v2012_v48 = vor.u32 %v2011_v41, %v2007_v35  ;;  %v2346_v0 = vrot.slane %v11495_v57, 1  ;;  %v11508_v35 = vld [vmem:[#allocation2 + $0x8c] ss:$0 sps:$4 sm:$0x11]   ;;  %v2045_v57 = vshll.u32 %v11512_v42, 16 }
 0x14f   : > { %v2829_v23 = vrot.slane %v2827_v17, 1  ;;  %v2839_v41 = vshll.u32 %v11508_v35, 16  ;;  %v2041_v46 = vsel %vm1120_vm3, %v2036_v38, %v2040_v39  ;;  %v11522_v38 = vld [vmem:[#allocation2 + $0x9c] sm:$0xff]   ;;  %v11523_v39 = vld [vmem:[#allocation2 + $0xa4] ss:$0 sps:$4 sm:$0x11]  }
 0x150   : > { %v2017_v59 = vsel %vm1120_vm3, %v2012_v48, %v2016_v53  ;;  %v2348_v7 = vsel %vm1521_vm9, %v2346_v0, %v2347_v2  ;;  %v2047_v62 = vrot.slane %v2045_v57, 1  ;;  %v11516_v0 = vld [vmem:[#allocation2 + $0x98] ss:$0 sps:$4 sm:$0x11]   ;;  %v2846_v2 = vshll.u32 %v11515_v60, 16 }
 0x151   : > { %v2830_v31 = vsel %vm1120_vm3, %v2825_v26, %v2829_v23  ;;  %v2841_v48 = vrot.slane %v2839_v41, 1  ;;  %v11519_v23 = vld [vmem:[#allocation2 + $0x98] ss:$0 sps:$4 sm:$0x11]  }
 0x154   : > { %4325 = vmatmul.mubr.bf16.gmra.mrb[84].mxu0 %v1993_v6  ;;  %4486 = vmatmul.mubr.bf16.gmra.mrb[84].mxu1 %v11479_v3  ;;  %v11498_v3 = vld [vmem:[#allocation2 + $0x74] ss:$0 sps:$4 sm:$0x11]  }
 0x155   : > { %4332 = vmatprep.mubr.bf16.mxu0 %v2342_v18  ;;  %4493 = vmatprep.mubr.bf16.mxu1 %v2806_v44  ;;  %v11499_v6 = vld [vmem:[#allocation9 + $0x220] sm:$0xff]   ;;  %v2026_v8 = vshll.u32 %v11498_v3, 16  ;;  %v11507_v18 = vld [vmem:[#allocation2 + $0x84] sm:$0xff]   ;;  %v2048_v3 = vor.u32 %v2047_v62, %v2043_v56 }
 0x156   : > { %11115 = vmatprep.subr.bf16.mxu0 %v11499_v6  ;;  %v2832_v36 = vshrl.u32 %v11507_v18, 16  ;;  %v2834_v37 = vshll.u32 %v11507_v18, 16  ;;  %v11509_v44 = vld [vmem:[#allocation2 + $0x84] sm:$0xff]  }
 0x157   : > { %v2028_v13 = vrot.slane %v2026_v8, 1  ;;  %11116 = vmatpush3.bf16.msra.mxu0 %v11499_v6  ;;  %v2848_v6 = vrot.slane %v2846_v2, 1  ;;  %v11517_v8 = vld [vmem:[#allocation2 + $0x90] sm:$0xff]   ;;  %v11526_v2 = vld [vmem:[#allocation2 + $0xa4] ss:$0 sps:$4 sm:$0x11]  }
 0x158   : > { %v2836_v40 = vrot.slane %v2834_v37, 1  ;;  %11117 = vmatprep.subr.bf16.mxu0 %v11514_v58  ;;  %v2062_v37 = vshll.u32 %v11521_v33, 16 }
 0x159   : > { %v2029_v12 = vsel %vm1120_vm3, %v2024_v10, %v2028_v13  ;;  %v2849_v18 = vor.u32 %v2848_v6, %v2844_v1  ;;  %v11525_v1 = vld [vmem:[#allocation2 + $0x9c] sm:$0xfe]  }
 0x15a   : > { %v2837_v47 = vor.u32 %v2836_v40, %v2832_v36 }
 0x15b   : > { %11118 = vmatpush3.bf16.msra.mxu0 %v11514_v58  ;;  %v11524_v58 = vld [vmem:[#allocation2 + $0x9c] sm:$0xff]  }
 0x15c   : > { %4333 = vmatmul.mubr.bf16.gmra.mrb[88].mxu0 %v2005_v29  ;;  %4494 = vmatmul.mubr.bf16.gmra.mrb[88].mxu1 %v11487_v32  ;;  %v2350_v29 = vrot.slane %v11504_v24, 1  ;;  %v2842_v53 = vsel %vm1120_vm3, %v2837_v47, %v2841_v48  ;;  %v2863_v47 = vshll.u32 %v11523_v39, 16 }
 0x15d   : > { %4340 = vmatprep.mubr.bf16.mxu0 %v2345_v45  ;;  %4501 = vmatprep.mubr.bf16.mxu1 %v2818_v4  ;;  %v11510_v45 = vld [vmem:[#allocation2 + $0x84] sm:$0xfe]  }
 0x15e   : > { %v2351_v32 = vsel %vm1521_vm9, %v2349_v27, %v2350_v29  ;;  %v2352_v51 = vrot.slane %v11510_v45, 1  ;;  %v11520_v29 = vld [vmem:[#allocation2 + $0x90] sm:$0xff]   ;;  %v2856_v45 = vshrl.u32 %v11522_v38, 16  ;;  %v2865_v57 = vrot.slane %v2863_v47, 1 }
 0x15f   : > { %v2055_v34 = vshrl.u32 %v11520_v29, 16  ;;  %v2057_v35 = vshll.u32 %v11520_v29, 16 }
 0x161   : > { %v2059_v41 = vrot.slane %v2057_v35, 1 }
 0x164   : > { %4341 = vmatmul.mubr.bf16.gmra.mrb[92].mxu0 %v2017_v59  ;;  %4502 = vmatmul.mubr.bf16.gmra.mrb[92].mxu1 %v11494_v61  ;;  %v2050_v59 = vshll.u32 %v11513_v52, 16  ;;  %v2354_v61 = vsel %vm1521_vm9, %v2352_v51, %v2353_v54  ;;  %v2060_v51 = vor.u32 %v2059_v41, %v2055_v34 }
 0x165   : > { %4348 = vmatprep.mubr.bf16.mxu0 %v2348_v7  ;;  %4509 = vmatprep.mubr.bf16.mxu1 %v2830_v31  ;;  %v2851_v7 = vshll.u32 %v11516_v0, 16  ;;  %v2356_v31 = vrot.slane %v11519_v23, 1 }
 0x166   : > { %v2052_v63 = vrot.slane %v2050_v59, 1 }
 0x168   : > { %v2053_v13 = vsel %vm1120_vm3, %v2048_v3, %v2052_v63 }
 0x16c   : > { %4349 = vmatmul.mubr.bf16.gmra.mrb[96].mxu0 %v2029_v12  ;;  %4510 = vmatmul.mubr.bf16.gmra.mrb[96].mxu1 %v11502_v20  ;;  %v2853_v12 = vrot.slane %v2851_v7, 1  ;;  %v11518_v20 = vld [vmem:[#allocation2 + $0x90] sm:$0xfe]   ;;  %v2358_v7 = vrot.slane %v11525_v1, 1 }
 0x16d   : > { %4356 = vmatprep.mubr.bf16.mxu0 %v2351_v32  ;;  %4517 = vmatprep.mubr.bf16.mxu1 %v2842_v53  ;;  %v2355_v27 = vrot.slane %v11518_v20, 1  ;;  %v11530_v20 = vld [vmem:[#allocation2 + $0xa8] sm:$0xff]  }
 0x16e   : > { %v2854_v26 = vsel %vm1120_vm3, %v2849_v18, %v2853_v12 }
 0x16f   : > { %v2357_v36 = vsel %vm1521_vm9, %v2355_v27, %v2356_v31  ;;  %v2870_v27 = vshll.u32 %v11530_v20, 16 }
 0x174   : > { %4357 = vmatmul.mubr.bf16.gmra.mrb[100].mxu0 %v2041_v46  ;;  %4518 = vmatmul.mubr.bf16.gmra.mrb[100].mxu1 %v11509_v44  ;;  %v2064_v44 = vrot.slane %v2062_v37, 1  ;;  %v2858_v46 = vshll.u32 %v11522_v38, 16  ;;  %v2872_v37 = vrot.slane %v2870_v27, 1  ;;  %v11532_v38 = vld [vmem:[#allocation2 + $0xa8] sm:$0xff]  }
 0x175   : > { %4364 = vmatprep.mubr.bf16.mxu0 %v2354_v61  ;;  %4525 = vmatprep.mubr.bf16.mxu1 %v2854_v26  ;;  %v2868_v26 = vshrl.u32 %v11530_v20, 16 }
 0x176   : > { %v2860_v56 = vrot.slane %v2858_v46, 1  ;;  %v2065_v62 = vsel %vm1120_vm3, %v2060_v51, %v2064_v44  ;;  %v11537_v44 = vld [vmem:[#allocation2 + $0xb4] sm:$0xff]  }
 0x17a   : > { %v10179_v4 = vpop.f32.mrb[0].mxu0 }
 0x17b   : > { %v10180_v10 = vpop.f32.mrb[1].mxu0 }
 0x17c   : > { %v10181_v14 = vadd.f32 %v10180_v10, %v10179_v4  ;;  %v10182_v15 = vpop.f32.mrb[2].mxu0  ;;  %4365 = vmatmul.mubr.bf16.gmra.mrb[104].mxu0 %v2053_v13  ;;  %4526 = vmatmul.mubr.bf16.gmra.mrb[104].mxu1 %v11517_v8  ;;  %v2861_v4 = vor.u32 %v2860_v56, %v2856_v45  ;;  %v2359_v8 = vrot.slane %v11526_v2, 1  ;;  %v11527_v10 = vld [vmem:[#allocation2 + $0x9c] sm:$0xff]  }
 0x17d   : > { %v10183_v19 = vpop.f32.mrb[3].mxu0  ;;  %4372 = vmatprep.mubr.bf16.mxu0 %v2357_v36  ;;  %v2067_v18 = vshrl.u32 %v11527_v10, 16  ;;  %v2069_v12 = vshll.u32 %v11527_v10, 16  ;;  %v11535_v36 = vld [vmem:[#allocation2 + $0xa8] sm:$0xff]  }
 0x17e   : > { %v3965_v21 = vadd.f32 %v10181_v14, %v12622_v9  ;;  %v10184_v22 = vadd.f32 %v10183_v19, %v10182_v15  ;;  %v2866_v14 = vsel %vm1120_vm3, %v2861_v4, %v2865_v57  ;;  %v11529_v15 = vld [vmem:[#allocation9 + $0x230] sm:$0xff]   ;;  %v2079_v56 = vshrl.u32 %v11535_v36, 16 }
 0x17f   : > { %v10291_v5 = vpop.f32.mrb[0].mxu1  ;;  %4533 = vmatprep.mubr.bf16.mxu1 %v2866_v14  ;;  %11119 = vmatprep.subr.bf16.mxu0 %v11529_v15 }
 0x180   : > { %v10292_v11 = vpop.f32.mrb[1].mxu1  ;;  %v3968_v30 = vadd.f32 %v10184_v22, %v12622_v9  ;;  %v2071_v22 = vrot.slane %v2069_v12, 1  ;;  %11120 = vmatpush3.bf16.msra.mxu0 %v11529_v15  ;;  %v11542_v12 = vld [vmem:[#allocation2 + $0xb4] sm:$0xff]  }
 0x181   : > { %v10293_v16 = vadd.f32 %v10292_v11, %v10291_v5  ;;  %v10294_v17 = vpop.f32.mrb[2].mxu1  ;;  %v11528_v11 = vld [vmem:[#allocation2 + $0xa4] ss:$0 sps:$4 sm:$0x11]  }
 0x182   : > { %v10295_v24 = vpop.f32.mrb[3].mxu1  ;;  %v2074_v19 = vshll.u32 %v11528_v11, 16 }
 0x183   : > { %v10296_v28 = vadd.f32 %v10295_v24, %v10294_v17  ;;  %v12628_v32 = vadd.f32 %v10293_v16, %v3965_v21  ;;  %v2360_v17 = vsel %vm1521_vm9, %v2358_v7, %v2359_v8  ;;  %v11531_v24 = vld [vmem:[#allocation2 + $0xb0] ss:$0 sps:$4 sm:$0x11]   ;;  %v2882_v7 = vshll.u32 %v11537_v44, 16 }
 0x184   : > { %4373 = vmatmul.mubr.bf16.gmra.mrb[108].mxu0 %v2065_v62  ;;  %4534 = vmatmul.mubr.bf16.gmra.mrb[108].mxu1 %v11524_v58  ;;  %v2076_v23 = vrot.slane %v2074_v19, 1  ;;  %v2875_v31 = vshll.u32 %v11531_v24, 16 }
 0x185   : > { %v12631_v40 = vadd.f32 %v10296_v28, %v3968_v30  ;;  %4380 = vmatprep.mubr.bf16.mxu0 %v2360_v17  ;;  %v2072_v30 = vor.u32 %v2071_v22, %v2067_v18  ;;  %v2884_v15 = vrot.slane %v2882_v7, 1  ;;  %v11539_v17 = vld [vmem:[#allocation2 + $0xb4] sm:$0xff]   ;;  %v11548_v7 = vld [vmem:[#allocation2 + $0xc0] sm:$0xfe]  }
 0x186   : > { %v2877_v46 = vrot.slane %v2875_v31, 1 }
 0x187   : > { %v10185_v42 = vpop.f32.mrb[4].mxu0  ;;  %v10297_v50 = vpop.f32.mrb[4].mxu1  ;;  %v2077_v45 = vsel %vm1120_vm3, %v2072_v30, %v2076_v23 }
 0x188   : > { %v10186_v48 = vpop.f32.mrb[5].mxu0  ;;  %v10298_v54 = vpop.f32.mrb[5].mxu1 }
 0x189   : > { %v10187_v52 = vadd.f32 %v10186_v48, %v10185_v42  ;;  %v10188_v53 = vpop.f32.mrb[6].mxu0  ;;  %v10299_v60 = vadd.f32 %v10298_v54, %v10297_v50  ;;  %v10300_v61 = vpop.f32.mrb[6].mxu1  ;;  %v11533_v50 = vld [vmem:[#allocation2 + $0xa8] sm:$0xfe]  }
 0x18a   : > { %v10189_v59 = vpop.f32.mrb[7].mxu0  ;;  %v10301_v3 = vpop.f32.mrb[7].mxu1  ;;  %v2361_v58 = vrot.slane %v11533_v50, 1 }
 0x18b   : > { %v3973_v63 = vadd.f32 %v10187_v52, %v12622_v9  ;;  %v10190_v0 = vadd.f32 %v10189_v59, %v10188_v53  ;;  %v10302_v5 = vadd.f32 %v10301_v3, %v10300_v61  ;;  %v2873_v52 = vor.u32 %v2872_v37, %v2868_v26  ;;  %v11534_v53 = vld [vmem:[#allocation2 + $0xb0] ss:$0 sps:$4 sm:$0x11]  }
 0x18c   : > { %4381 = vmatmul.mubr.bf16.gmra.mrb[112].mxu0 %v2077_v45  ;;  %v2081_v59 = vshll.u32 %v11535_v36, 16  ;;  %v2362_v62 = vrot.slane %v11534_v53, 1  ;;  %v11544_v45 = vld [vmem:[#allocation9 + $0x238] sm:$0xff]   ;;  %v11545_v53 = vld [vmem:[#allocation2 + $0xc0] sm:$0xff]  }
 0x18d   : > { %v3976_v6 = vadd.f32 %v10190_v0, %v12622_v9  ;;  %v12636_v13 = vadd.f32 %v10299_v60, %v3973_v63  ;;  %v2878_v61 = vsel %vm1120_vm3, %v2873_v52, %v2877_v46  ;;  %v11536_v63 = vld [vmem:[#allocation2 + $0xb0] ss:$0 sps:$4 sm:$0x11]   ;;  %v633_v0 = vrot.slane %v12578_v25, 4  ;;  %11121 = vmatprep.subr.bf16.mxu0 %v11544_v45 }
 0x18e   : > { %4541 = vmatprep.mubr.bf16.mxu1 %v2878_v61  ;;  %v2083_v1 = vrot.slane %v2081_v59, 1  ;;  %v2363_v3 = vsel %vm1521_vm9, %v2361_v58, %v2362_v62  ;;  %v2086_v4 = vshll.u32 %v11536_v63, 16  ;;  %11122 = vmatpush3.bf16.msra.mxu0 %v11544_v45  ;;  %v2894_v62 = vshll.u32 %v11545_v53, 16 }
 0x18f   : > { %v10191_v16 = vpop.f32.mrb[8].mxu0  ;;  %v12640_v21 = vadd.f32 %v10302_v5, %v3976_v6  ;;  %v10303_v29 = vpop.f32.mrb[8].mxu1  ;;  %4542 = vmatmul.mubr.bf16.gmra.mrb[112].mxu1 %v11532_v38  ;;  %v11538_v5 = vld [vmem:[#allocation2 + $0xbc] ss:$0 sps:$4 sm:$0x11]   ;;  %v2880_v6 = vshrl.u32 %v11537_v44, 16  ;;  %4388 = vmatprep.mubr.bf16.mxu0 %v2363_v3 }
 0x190   : > { %v10192_v28 = vpop.f32.mrb[9].mxu0  ;;  %v10304_v35 = vpop.f32.mrb[9].mxu1  ;;  %v2084_v8 = vor.u32 %v2083_v1, %v2079_v56  ;;  %v2088_v14 = vrot.slane %v2086_v4, 1  ;;  %v2091_v38 = vshrl.u32 %v11542_v12, 16  ;;  %v2093_v44 = vshll.u32 %v11542_v12, 16 }
 0x191   : > { %v10193_v33 = vadd.f32 %v10192_v28, %v10191_v16  ;;  %v10194_v34 = vpop.f32.mrb[10].mxu0  ;;  %v10305_v41 = vadd.f32 %v10304_v35, %v10303_v29  ;;  %v10306_v42 = vpop.f32.mrb[10].mxu1  ;;  %v2887_v16 = vshll.u32 %v11538_v5, 16  ;;  %v2885_v26 = vor.u32 %v2884_v15, %v2880_v6  ;;  %v11540_v29 = vld [vmem:[#allocation2 + $0xb4] sm:$0xfe]  }
 0x192   : > { %v10195_v39 = vpop.f32.mrb[11].mxu0  ;;  %v10307_v51 = vpop.f32.mrb[11].mxu1  ;;  %v2089_v24 = vsel %vm1120_vm3, %v2084_v8, %v2088_v14  ;;  %v2364_v36 = vrot.slane %v11540_v29, 1  ;;  %v2095_v50 = vrot.slane %v2093_v44, 1  ;;  %v2892_v8 = vshrl.u32 %v11545_v53, 16 }
 0x193   : > { %v3981_v47 = vadd.f32 %v10193_v33, %v12622_v9  ;;  %v10196_v48 = vadd.f32 %v10195_v39, %v10194_v34  ;;  %v10308_v54 = vadd.f32 %v10307_v51, %v10306_v42  ;;  %v2889_v27 = vrot.slane %v2887_v16, 1  ;;  %v11541_v33 = vld [vmem:[#allocation2 + $0xbc] ss:$0 sps:$4 sm:$0x11]   ;;  %v11550_v16 = vld [vmem:[#allocation2 + $0xc0] sm:$0xff]  }
 0x194   : > { %4389 = vmatmul.mubr.bf16.gmra.mrb[116].mxu0 %v2089_v24  ;;  %v11543_v42 = vld [vmem:[#allocation2 + $0xbc] ss:$0 sps:$4 sm:$0x11]  }
 0x195   : > { %v3984_v57 = vadd.f32 %v10196_v48, %v12622_v9  ;;  %v12645_v60 = vadd.f32 %v10305_v41, %v3981_v47  ;;  %v2890_v35 = vsel %vm1120_vm3, %v2885_v26, %v2889_v27  ;;  %v2365_v41 = vrot.slane %v11541_v33, 1  ;;  %v797_v47 = vld [vmem:[#allocation2 + $0xc8] sm:$0x1] }
 0x196   : > { %4549 = vmatprep.mubr.bf16.mxu1 %v2890_v35  ;;  %v2098_v51 = vshll.u32 %v11543_v42, 16  ;;  %v798_v52 = vsel %vm12417_vm8, %v633_v0, %v797_v47  ;;  %v11553_v35 = vld [vmem:[#allocation2 + $0xd4] ss:$0 sps:$4 sm:$0x11]  }
 0x197   : > { %v12649_v2 = vadd.f32 %v10308_v54, %v3984_v57  ;;  %v10197_v10 = vpop.f32.mrb[12].mxu0  ;;  %v10309_v11 = vpop.f32.mrb[12].mxu1  ;;  %4550 = vmatmul.mubr.bf16.gmra.mrb[116].mxu1 %v11539_v17  ;;  %v2366_v48 = vsel %vm1521_vm9, %v2364_v36, %v2365_v41  ;;  %799 = vst [vmem:[#allocation2 + $0xc8] sm:$0x1] %v798_v52  ;;  %v2096_v57 = vor.u32 %v2095_v50, %v2091_v38  ;;  %v2367_v17 = vrot.slane %v11548_v7, 1 }
 0x198   : > { %v10198_v25 = vpop.f32.mrb[13].mxu0  ;;  %v10310_v18 = vpop.f32.mrb[13].mxu1  ;;  %4396 = vmatprep.mubr.bf16.mxu0 %v2366_v48  ;;  %v2100_v58 = vrot.slane %v2098_v51, 1  ;;  %v2911_v48 = vshll.u32 %v11553_v35, 16 }
 0x199   : > { %v10199_v19 = vadd.f32 %v10198_v25, %v10197_v10  ;;  %v10200_v20 = vpop.f32.mrb[14].mxu0  ;;  %v10311_v22 = vadd.f32 %v10310_v18, %v10309_v11  ;;  %v10312_v23 = vpop.f32.mrb[14].mxu1  ;;  %v2896_v10 = vrot.slane %v2894_v62, 1  ;;  %v11552_v18 = vld [vmem:[#allocation2 + $0xcc] sm:$0xff]  }
 0x19a   : > { %v10201_v28 = vpop.f32.mrb[15].mxu0  ;;  %v10313_v34 = vpop.f32.mrb[15].mxu1  ;;  %v2101_v4 = vsel %vm1120_vm3, %v2096_v57, %v2100_v58  ;;  %v2906_v36 = vshll.u32 %v11552_v18, 16 }
 0x19b   : > { %v3989_v30 = vadd.f32 %v10199_v19, %v12622_v9  ;;  %v10202_v31 = vadd.f32 %v10201_v28, %v10200_v20  ;;  %v10314_v37 = vadd.f32 %v10313_v34, %v10312_v23  ;;  %v2103_v19 = vshrl.u32 %v11550_v16, 16 }
 0x19c   : > { %4397 = vmatmul.mubr.bf16.gmra.mrb[120].mxu0 %v2101_v4  ;;  %v2105_v20 = vshll.u32 %v11550_v16, 16  ;;  %v2904_v23 = vshrl.u32 %v11552_v18, 16  ;;  %v2897_v29 = vor.u32 %v2896_v10, %v2892_v8  ;;  %v2908_v47 = vrot.slane %v2906_v36, 1  ;;  %v11555_v4 = vld [vmem:[#allocation2 + $0x18] sm:$0xfe]  }
 0x19d   : > { %v3992_v39 = vadd.f32 %v10202_v31, %v12622_v9  ;;  %v12656_v46 = vadd.f32 %v10311_v22, %v3989_v30  ;;  %v11547_v31 = vld [vmem:[#allocation2 + $0xc0] sm:$0xff]  }
 0x19e   : > { %v11546_v22 = vld [vmem:[#allocation2 + $0xc8] ss:$0 sps:$4 sm:$0x11]   ;;  %v2107_v27 = vrot.slane %v2105_v20, 1  ;;  %v2909_v62 = vor.u32 %v2908_v47, %v2904_v23 }
 0x19f   : > { %v10203_v54 = vpop.f32.mrb[16].mxu0  ;;  %v12661_v56 = vadd.f32 %v10314_v37, %v3992_v39  ;;  %v10315_v61 = vpop.f32.mrb[16].mxu1  ;;  %v11549_v26 = vld [vmem:[#allocation2 + $0xc8] ss:$0 sps:$4 sm:$0x11]   ;;  %v2899_v30 = vshll.u32 %v11546_v22, 16 }
 0x1a0   : > { %v10204_v59 = vpop.f32.mrb[17].mxu0  ;;  %v10316_v3 = vpop.f32.mrb[17].mxu1  ;;  %v11551_v33 = vld [vmem:[#allocation2 + $0xc8] ss:$0 sps:$4 sm:$0x11]   ;;  %v2368_v34 = vrot.slane %v11549_v26, 1  ;;  %v2108_v39 = vor.u32 %v2107_v27, %v2103_v19 }
 0x1a1   : > { %v10205_v63 = vadd.f32 %v10204_v59, %v10203_v54  ;;  %v10206_v1 = vpop.f32.mrb[18].mxu0  ;;  %v10317_v6 = vadd.f32 %v10316_v3, %v10315_v61  ;;  %v10318_v0 = vpop.f32.mrb[18].mxu1  ;;  %v2901_v38 = vrot.slane %v2899_v30, 1  ;;  %v2110_v41 = vshll.u32 %v11551_v33, 16  ;;  %v11587_v61 = vld [vmem:[#allocation11 + $0x40] sm:$0xff]  }
 0x1a2   : > { %v10207_v5 = vpop.f32.mrb[19].mxu0  ;;  %v10319_v15 = vpop.f32.mrb[19].mxu1  ;;  %v2369_v45 = vsel %vm1521_vm9, %v2367_v17, %v2368_v34  ;;  %10635 = vmatprep.subr.bf16.mxu1 %v11587_v61  ;;  %v11554_v17 = vld [vmem:[#allocation2 + $0xcc] sm:$0xff]   ;;  %v11557_v18 = vld [vmem:[#allocation2 + $0x24] sm:$0xfe]  }
 0x1a3   : > { %v3997_v11 = vadd.f32 %v10205_v63, %v12622_v9  ;;  %v10208_v14 = vadd.f32 %v10207_v5, %v10206_v1  ;;  %v10320_v25 = vadd.f32 %v10319_v15, %v10318_v0  ;;  %v2902_v53 = vsel %vm1120_vm3, %v2897_v29, %v2901_v38  ;;  %4404 = vmatprep.mubr.bf16.mxu0 %v2369_v45  ;;  %v11556_v0 = vld [vmem:[#allocation2 + $0x20] ss:$0 sps:$4 sm:$0x11]   ;;  %v11560_v38 = vld [vmem:[#allocation2 + $0x38] ss:$0 sps:$4 sm:$0x11]  }
 0x1a4   : > { %v2112_v54 = vrot.slane %v2110_v41, 1  ;;  %4557 = vmatprep.mubr.bf16.mxu1 %v2902_v53  ;;  %v2913_v63 = vrot.slane %v2911_v48, 1  ;;  %v3126_v27 = vrot.slane %v11557_v18, 1  ;;  %v3130_v47 = vrot.slane %v11560_v38, 1 }
 0x1a5   : > { %v4000_v12 = vadd.f32 %v10208_v14, %v12622_v9  ;;  %v12666_v24 = vadd.f32 %v10317_v6, %v3997_v11  ;;  %4558 = vmatmul.mubr.bf16.gmra.mrb[120].mxu1 %v11547_v31  ;;  %v3123_v14 = vrot.slane %v11555_v4, 1 }
 0x1a6   : > { %v2113_v6 = vsel %vm1120_vm3, %v2108_v39, %v2112_v54  ;;  %v2914_v10 = vsel %vm1120_vm3, %v2909_v62, %v2913_v63  ;;  %v11588_v54 = vld [vmem:[#allocation11] sm:$0xff]  }
 0x1a7   : > { %v12668_v28 = vadd.f32 %v10320_v25, %v4000_v12  ;;  %v10209_v37 = vpop.f32.mrb[20].mxu0  ;;  %v10321_v44 = vpop.f32.mrb[20].mxu1  ;;  %4405 = vmatmul.mubr.bf16.gmra.mrb[124].mxu0 %v2113_v6  ;;  %4565 = vmatprep.mubr.bf16.mxu1 %v2914_v10  ;;  %v3124_v25 = vrot.slane %v11556_v0, 1  ;;  %v11558_v12 = vld [vmem:[#allocation2 + $0x2c] ss:$0 sps:$4 sm:$0x11]  }
 0x1a8   : > { %v10210_v42 = vpop.f32.mrb[21].mxu0  ;;  %v10322_v52 = vpop.f32.mrb[21].mxu1  ;;  %v3127_v29 = vrot.slane %v11558_v12, 1  ;;  %10636 = vmatpush3.bf16.msra.mxu1 %v11588_v54 }
 0x1a9   : > { %v10211_v50 = vadd.f32 %v10210_v42, %v10209_v37  ;;  %v10212_v51 = vpop.f32.mrb[22].mxu0  ;;  %v10323_v58 = vadd.f32 %v10322_v52, %v10321_v44  ;;  %v10324_v59 = vpop.f32.mrb[22].mxu1  ;;  %v3125_v26 = vsel %vm1521_vm9, %v3123_v14, %v3124_v25  ;;  %v11559_v37 = vld [vmem:[#allocation2 + $0x30] sm:$0xfe]  }
 0x1aa   : > { %v10213_v57 = vpop.f32.mrb[23].mxu0  ;;  %v10325_v5 = vpop.f32.mrb[23].mxu1  ;;  %11123 = vmatprep.mubr.bf16.mxu0 %v3125_v26  ;;  %v3128_v39 = vsel %vm1521_vm9, %v3126_v27, %v3127_v29  ;;  %v3129_v45 = vrot.slane %v11559_v37, 1 }
 0x1ab   : > { %v4005_v1 = vadd.f32 %v10211_v50, %v12622_v9  ;;  %v10214_v3 = vadd.f32 %v10213_v57, %v10212_v51  ;;  %v10326_v7 = vadd.f32 %v10325_v5, %v10324_v59  ;;  %v11561_v50 = vld [vmem:[#allocation2 + $0x3c] sm:$0xfe]   ;;  %v11562_v51 = vld [vmem:[#allocation2 + $0x44] ss:$0 sps:$4 sm:$0x11]  }
 0x1ac   : > { %v3132_v59 = vrot.slane %v11561_v50, 1  ;;  %v3133_v4 = vrot.slane %v11562_v51, 1  ;;  %v11568_v50 = vld [vmem:[#allocation2 + $0x68] ss:$0 sps:$4 sm:$0x11]  }
 0x1ad   : > { %v4008_v11 = vadd.f32 %v10214_v3, %v12622_v9  ;;  %v12676_v16 = vadd.f32 %v10323_v58, %v4005_v1  ;;  %4566 = vmatmul.mubr.bf16.gmra.mrb[124].mxu1 %v11554_v17  ;;  %v3131_v58 = vsel %vm1521_vm9, %v3129_v45, %v3130_v47  ;;  %v11589_v1 = vld [vmem:[#allocation11 + $0x48] sm:$0xff]   ;;  %v11564_v17 = vld [vmem:[#allocation2 + $0x50] ss:$0 sps:$4 sm:$0x11]  }
 0x1ae   : > { %10637 = vmatprep.subr.bf16.mxu1 %v11589_v1  ;;  %v3134_v27 = vsel %vm1521_vm9, %v3132_v59, %v3133_v4  ;;  %v3136_v29 = vrot.slane %v11564_v17, 1  ;;  %v3142_v59 = vrot.slane %v11568_v50, 1 }
 0x1af   : > { %v10215_v8 = vpop.f32.mrb[24].mxu0  ;;  %v10327_v22 = vpop.f32.mrb[24].mxu1  ;;  %v12678_v23 = vadd.f32 %v10326_v7, %v4008_v11  ;;  %11124 = vmatmul.mubr.bf16.vlgmr.msra.gmra.mrb[128].mxu0 %v3128_v39  ;;  %v11590_v7 = vld [vmem:[#allocation11 + $0x8] sm:$0xff]   ;;  %v11563_v11 = vld [vmem:[#allocation2 + $0x48] sm:$0xfe]  }
 0x1b0   : > { %v10216_v15 = vpop.f32.mrb[25].mxu0  ;;  %v10328_v33 = vpop.f32.mrb[25].mxu1  ;;  %11127 = vmatprep.mubr.bf16.mxu0 %v3131_v58  ;;  %10638 = vmatpush3.bf16.msra.mxu1 %v11590_v7 }
 0x1b1   : > { %v10217_v19 = vadd.f32 %v10216_v15, %v10215_v8  ;;  %v10218_v20 = vpop.f32.mrb[26].mxu0  ;;  %v10329_v35 = vadd.f32 %v10328_v33, %v10327_v22  ;;  %v10330_v36 = vpop.f32.mrb[26].mxu1 }
 0x1b2   : > { %v10219_v31 = vpop.f32.mrb[27].mxu0  ;;  %v10331_v41 = vpop.f32.mrb[27].mxu1 }
 0x1b3   : > { %v4013_v30 = vadd.f32 %v10217_v19, %v12622_v9  ;;  %v10220_v34 = vadd.f32 %v10219_v31, %v10218_v20  ;;  %v10332_v48 = vadd.f32 %v10331_v41, %v10330_v36  ;;  %v3135_v19 = vrot.slane %v11563_v11, 1  ;;  %v11566_v31 = vld [vmem:[#allocation2 + $0x5c] ss:$0 sps:$4 sm:$0x11]  }
 0x1b4   : > { %v3139_v39 = vrot.slane %v11566_v31, 1 }
 0x1b5   : > { %v4016_v44 = vadd.f32 %v10220_v34, %v12622_v9  ;;  %v12684_v57 = vadd.f32 %v10329_v35, %v4013_v30  ;;  %v11565_v30 = vld [vmem:[#allocation2 + $0x54] sm:$0xfe]   ;;  %v3137_v37 = vsel %vm1521_vm9, %v3135_v19, %v3136_v29  ;;  %v11572_v19 = vld [vmem:[#allocation2 + $0x80] ss:$0 sps:$4 sm:$0x11]  }
 0x1b6   : > { %v3138_v38 = vrot.slane %v11565_v30, 1 }
 0x1b7   : > { %v10221_v42 = vpop.f32.mrb[28].mxu0  ;;  %v10333_v53 = vpop.f32.mrb[28].mxu1  ;;  %v12687_v3 = vadd.f32 %v10332_v48, %v4016_v44  ;;  %11128 = vmatmul.mubr.bf16.gmra.mrb[132].mxu0 %v3134_v27  ;;  %v11567_v48 = vld [vmem:[#allocation2 + $0x60] sm:$0xfe]  }
 0x1b8   : > { %v10222_v52 = vpop.f32.mrb[29].mxu0  ;;  %v10334_v63 = vpop.f32.mrb[29].mxu1  ;;  %11131 = vmatprep.mubr.bf16.mxu0 %v3137_v37  ;;  %v3141_v58 = vrot.slane %v11567_v48, 1  ;;  %v3140_v11 = vsel %vm1521_vm9, %v3138_v38, %v3139_v39  ;;  %v3148_v37 = vrot.slane %v11572_v19, 1  ;;  %v11594_v19 = vld [vmem:[#allocation11 + $0x18] sm:$0xff]  }
 0x1b9   : > { %v10223_v61 = vadd.f32 %v10222_v52, %v10221_v42  ;;  %v10224_v62 = vpop.f32.mrb[30].mxu0  ;;  %v10335_v6 = vadd.f32 %v10334_v63, %v10333_v53  ;;  %v10336_v0 = vpop.f32.mrb[30].mxu1  ;;  %v11570_v63 = vld [vmem:[#allocation2 + $0x74] ss:$0 sps:$4 sm:$0x11]  }
 0x1ba   : > { %v10225_v5 = vpop.f32.mrb[31].mxu0  ;;  %v10337_v14 = vpop.f32.mrb[31].mxu1 }
 0x1bb   : > { %v4021_v8 = vadd.f32 %v10223_v61, %v12622_v9  ;;  %v10226_v10 = vadd.f32 %v10225_v5, %v10224_v62  ;;  %v10338_v25 = vadd.f32 %v10337_v14, %v10336_v0  ;;  %v11569_v62 = vld [vmem:[#allocation2 + $0x6c] sm:$0xfe]  }
 0x1bc   : > { %v3144_v30 = vrot.slane %v11569_v62, 1 }
 0x1bd   : > { %v4024_v12 = vadd.f32 %v10226_v10, %v12622_v9  ;;  %v12691_v26 = vadd.f32 %v10335_v6, %v4021_v8  ;;  %v11591_v6 = vld [vmem:[#allocation11 + $0x50] sm:$0xff]  }
 0x1be   : > { %v11592_v10 = vld [vmem:[#allocation11 + $0x10] sm:$0xff]   ;;  %10639 = vmatprep.subr.bf16.mxu1 %v11591_v6 }
 0x1bf   : > { %v10227_v15 = vpop.f32.mrb[32].mxu0  ;;  %v10339_v34 = vpop.f32.mrb[32].mxu1  ;;  %v12695_v36 = vadd.f32 %v10338_v25, %v4024_v12  ;;  %v11571_v12 = vld [vmem:[#allocation2 + $0x78] sm:$0xfe]   ;;  %10640 = vmatpush3.bf16.msra.mxu1 %v11592_v10  ;;  %11132 = vmatmul.mubr.bf16.gmra.mrb[136].mxu0 %v3140_v11 }
 0x1c0   : > { %v10228_v18 = vpop.f32.mrb[33].mxu0  ;;  %v10340_v42 = vpop.f32.mrb[33].mxu1 }
 0x1c1   : > { %v10229_v20 = vadd.f32 %v10228_v18, %v10227_v15  ;;  %v10230_v22 = vpop.f32.mrb[34].mxu0  ;;  %v10341_v45 = vadd.f32 %v10340_v42, %v10339_v34  ;;  %v10342_v47 = vpop.f32.mrb[34].mxu1  ;;  %v3143_v18 = vsel %vm1521_vm9, %v3141_v58, %v3142_v59  ;;  %v3145_v34 = vrot.slane %v11570_v63, 1  ;;  %v11573_v42 = vld [vmem:[#allocation2 + $0x84] sm:$0xfe]  }
 0x1c2   : > { %v10231_v35 = vpop.f32.mrb[35].mxu0  ;;  %v10343_v52 = vpop.f32.mrb[35].mxu1  ;;  %11135 = vmatprep.mubr.bf16.mxu0 %v3143_v18  ;;  %v11575_v58 = vld [vmem:[#allocation2 + $0x90] sm:$0xfe]  }
 0x1c3   : > { %v4029_v33 = vadd.f32 %v10229_v20, %v12622_v9  ;;  %v10232_v41 = vadd.f32 %v10231_v35, %v10230_v22  ;;  %v10344_v61 = vadd.f32 %v10343_v52, %v10342_v47  ;;  %v3147_v35 = vrot.slane %v11571_v12, 1 }
 0x1c5   : > { %v4032_v51 = vadd.f32 %v10232_v41, %v12622_v9  ;;  %v12699_v54 = vadd.f32 %v10341_v45, %v4029_v33  ;;  %v3149_v63 = vsel %vm1521_vm9, %v3147_v35, %v3148_v37 }
 0x1c7   : > { %v10233_v44 = vpop.f32.mrb[36].mxu0  ;;  %v10345_v5 = vpop.f32.mrb[36].mxu1  ;;  %v12701_v0 = vadd.f32 %v10344_v61, %v4032_v51  ;;  %v11574_v51 = vld [vmem:[#allocation2 + $0x8c] ss:$0 sps:$4 sm:$0x11]   ;;  %v3146_v61 = vsel %vm1521_vm9, %v3144_v30, %v3145_v34 }
 0x1c8   : > { %v10234_v53 = vpop.f32.mrb[37].mxu0  ;;  %v10346_v8 = vpop.f32.mrb[37].mxu1  ;;  %11136 = vmatmul.mubr.bf16.gmra.mrb[140].mxu0 %v3146_v61 }
 0x1c9   : > { %v10235_v1 = vadd.f32 %v10234_v53, %v10233_v44  ;;  %v10236_v4 = vpop.f32.mrb[38].mxu0  ;;  %v10347_v17 = vadd.f32 %v10346_v8, %v10345_v5  ;;  %v10348_v25 = vpop.f32.mrb[38].mxu1  ;;  %v11576_v5 = vld [vmem:[#allocation2 + $0x98] ss:$0 sps:$4 sm:$0x11]   ;;  %11139 = vmatprep.mubr.bf16.mxu0 %v3149_v63 }
 0x1ca   : > { %v10237_v7 = vpop.f32.mrb[39].mxu0  ;;  %v10349_v20 = vpop.f32.mrb[39].mxu1  ;;  %v12717_v8 = vld [vmem:[#allocation2 + $0x9c] sm:$0xfe]   ;;  %v3154_v30 = vrot.slane %v11576_v5, 1 }
 0x1cb   : > { %v4037_v14 = vadd.f32 %v10235_v1, %v12622_v9  ;;  %v10238_v15 = vadd.f32 %v10237_v7, %v10236_v4  ;;  %v10350_v29 = vadd.f32 %v10349_v20, %v10348_v25 }
 0x1cd   : > { %v4040_v22 = vadd.f32 %v10238_v15, %v12622_v9  ;;  %v12707_v27 = vadd.f32 %v10347_v17, %v4037_v14  ;;  %v11593_v14 = vld [vmem:[#allocation11 + $0x58] sm:$0xff]   ;;  %v3150_v15 = vrot.slane %v11573_v42, 1 }
 0x1ce   : > { %10641 = vmatprep.subr.bf16.mxu1 %v11593_v14 }
 0x1cf   : > { %v10239_v31 = vpop.f32.mrb[40].mxu0  ;;  %v10351_v33 = vpop.f32.mrb[40].mxu1  ;;  %v12709_v38 = vadd.f32 %v10350_v29, %v4040_v22  ;;  %v3153_v29 = vrot.slane %v11575_v58, 1  ;;  %10642 = vmatpush3.bf16.msra.mxu1 %v11594_v19 }
 0x1d0   : > { %v10240_v39 = vpop.f32.mrb[41].mxu0  ;;  %v10352_v41 = vpop.f32.mrb[41].mxu1 }
 0x1d1   : > { %v10241_v44 = vadd.f32 %v10240_v39, %v10239_v31  ;;  %v10242_v45 = vpop.f32.mrb[42].mxu0  ;;  %v10353_v47 = vadd.f32 %v10352_v41, %v10351_v33  ;;  %v10354_v48 = vpop.f32.mrb[42].mxu1  ;;  %v11578_v31 = vld [vmem:[#allocation2 + $0xa4] ss:$0 sps:$4 sm:$0x11]  }
 0x1d2   : > { %v10243_v50 = vpop.f32.mrb[43].mxu0  ;;  %v10355_v59 = vpop.f32.mrb[43].mxu1  ;;  %v12724_v33 = vld [vmem:[%s13533_s2] ss:$0 sm:$0xff] }
 0x1d3   : > { %v4045_v52 = vadd.f32 %v10241_v44, %v12622_v9  ;;  %v10244_v53 = vadd.f32 %v10243_v50, %v10242_v45  ;;  %v10356_v62 = vadd.f32 %v10355_v59, %v10354_v48  ;;  %v11579_v44 = vld [vmem:[#allocation2 + $0xa8] sm:$0xfe]   ;;  %v11580_v45 = vld [vmem:[#allocation2 + $0xb0] ss:$0 sps:$4 sm:$0x11]   ;;  %v3155_v59 = vsel %vm1521_vm9, %v3153_v29, %v3154_v30 }
 0x1d4   : > { %v3160_v19 = vrot.slane %v11580_v45, 1  ;;  %v11585_v45 = vld [vmem:[#allocation2 + $0xcc] sm:$0xfe]  }
 0x1d5   : > { %v4048_v1 = vadd.f32 %v10244_v53, %v12622_v9  ;;  %v12715_v4 = vadd.f32 %v10353_v47, %v4045_v52  ;;  %v3151_v9 = vrot.slane %v11574_v51, 1  ;;  %v3156_v51 = vrot.slane %v12717_v8, 1  ;;  %v11582_v52 = vld [vmem:[#allocation2 + $0xbc] ss:$0 sps:$4 sm:$0x11]  }
 0x1d6   : > { %v11584_v8 = vld [vmem:[#allocation2 + $0xc8] ss:$0 sps:$4 sm:$0x11]   ;;  %v3163_v30 = vrot.slane %v11582_v52, 1  ;;  %v11595_v52 = vld [vmem:[#allocation11 + $0x60] sm:$0xff]  }
 0x1d7   : > { %v10245_v6 = vpop.f32.mrb[44].mxu0  ;;  %v10357_v7 = vpop.f32.mrb[44].mxu1  ;;  %v12719_v17 = vadd.f32 %v10356_v62, %v4048_v1  ;;  %v3152_v50 = vsel %vm1521_vm9, %v3150_v15, %v3151_v9  ;;  %v11581_v62 = vld [vmem:[#allocation2 + $0xb4] sm:$0xfe]   ;;  %v11583_v15 = vld [vmem:[#allocation2 + $0xc0] sm:$0xfe]   ;;  %10643 = vmatprep.subr.bf16.mxu1 %v11595_v52 }
 0x1d8   : > { %v10246_v10 = vpop.f32.mrb[45].mxu0  ;;  %v10358_v11 = vpop.f32.mrb[45].mxu1  ;;  %11140 = vmatmul.mubr.bf16.gmra.mrb[144].mxu0 %v3152_v50  ;;  %v3162_v29 = vrot.slane %v11581_v62, 1  ;;  %v11596_v62 = vld [vmem:[#allocation11 + $0x20] sm:$0xff]  }
 0x1d9   : > { %v10247_v25 = vadd.f32 %v10246_v10, %v10245_v6  ;;  %v10248_v18 = vpop.f32.mrb[46].mxu0  ;;  %v10360_v12 = vpop.f32.mrb[46].mxu1  ;;  %v10359_v22 = vadd.f32 %v10358_v11, %v10357_v7  ;;  %v3157_v6 = vrot.slane %v11578_v31, 1  ;;  %11143 = vmatprep.mubr.bf16.mxu0 %v3155_v59  ;;  %10644 = vmatpush3.bf16.msra.mxu1 %v11596_v62 }
 0x1da   : > { %v10249_v20 = vpop.f32.mrb[47].mxu0  ;;  %v10361_v37 = vpop.f32.mrb[47].mxu1 }
 0x1db   : > { %v4053_v34 = vadd.f32 %v12724_v33, %v10247_v25  ;;  %v10250_v35 = vadd.f32 %v10249_v20, %v10248_v18  ;;  %v10362_v39 = vadd.f32 %v10361_v37, %v10360_v12  ;;  %v3159_v12 = vrot.slane %v11579_v44, 1 }
 0x1dd   : > { %v4056_v41 = vadd.f32 %v12724_v33, %v10250_v35  ;;  %v12728_v42 = vadd.f32 %v10359_v22, %v4053_v34  ;;  %v3165_v34 = vrot.slane %v11583_v15, 1  ;;  %v3161_v44 = vsel %vm1521_vm9, %v3159_v12, %v3160_v19 }
 0x1df   : > { %v10251_v47 = vpop.f32.mrb[48].mxu0  ;;  %v10363_v48 = vpop.f32.mrb[48].mxu1  ;;  %v12733_v61 = vadd.f32 %v10362_v39, %v4056_v41  ;;  %v3158_v41 = vsel %vm1521_vm9, %v3156_v51, %v3157_v6  ;;  %v3168_v51 = vrot.slane %v11585_v45, 1 }
 0x1e0   : > { %v10252_v53 = vpop.f32.mrb[49].mxu0  ;;  %v10364_v58 = vpop.f32.mrb[49].mxu1  ;;  %11144 = vmatmul.mubr.bf16.gmra.mrb[148].mxu0 %v3158_v41 }
 0x1e1   : > { %v10253_v63 = vadd.f32 %v10252_v53, %v10251_v47  ;;  %v10254_v1 = vpop.f32.mrb[50].mxu0  ;;  %v10366_v5 = vpop.f32.mrb[50].mxu1  ;;  %v10365_v10 = vadd.f32 %v10364_v58, %v10363_v48  ;;  %v3166_v47 = vrot.slane %v11584_v8, 1  ;;  %11147 = vmatprep.mubr.bf16.mxu0 %v3161_v44 }
 0x1e2   : > { %v10255_v7 = vpop.f32.mrb[51].mxu0  ;;  %v10367_v25 = vpop.f32.mrb[51].mxu1 }
 0x1e3   : > { %v4061_v11 = vadd.f32 %v12724_v33, %v10253_v63  ;;  %v10256_v14 = vadd.f32 %v10255_v7, %v10254_v1  ;;  %v10368_v18 = vadd.f32 %v10367_v25, %v10366_v5  ;;  %v11586_v63 = vld [vmem:[#allocation2 + $0xd4] ss:$0 sps:$4 sm:$0x11]   ;;  %v3167_v15 = vsel %vm1521_vm9, %v3165_v34, %v3166_v47 }
 0x1e4   : > { %v3169_v25 = vrot.slane %v11586_v63, 1 }
 0x1e5   : > { %v4064_v9 = vadd.f32 %v12724_v33, %v10256_v14  ;;  %v12737_v20 = vadd.f32 %v10365_v10, %v4061_v11  ;;  %v3164_v10 = vsel %vm1521_vm9, %v3162_v29, %v3163_v30 }
 0x1e7   : > { %v10257_v22 = vpop.f32.mrb[52].mxu0  ;;  %v12739_v35 = vadd.f32 %v10368_v18, %v4064_v9  ;;  %v10369_v58 = vpop.f32.mrb[52].mxu1 }
 0x1e8   : > { %v10258_v31 = vpop.f32.mrb[53].mxu0  ;;  %v10370_v59 = vpop.f32.mrb[53].mxu1  ;;  %11148 = vmatmul.mubr.bf16.gmra.mrb[152].mxu0 %v3164_v10 }
 0x1e9   : > { %v10259_v37 = vadd.f32 %v10258_v31, %v10257_v22  ;;  %v10260_v39 = vpop.f32.mrb[54].mxu0  ;;  %v10371_v5 = vadd.f32 %v10370_v59, %v10369_v58  ;;  %v10372_v7 = vpop.f32.mrb[54].mxu1  ;;  %11151 = vmatprep.mubr.bf16.mxu0 %v3167_v15  ;;  %v11598_v58 = vld [vmem:[#allocation11 + $0x28] sm:$0xff]  }
 0x1ea   : > { %v10261_v48 = vpop.f32.mrb[55].mxu0  ;;  %v10373_v6 = vpop.f32.mrb[55].mxu1 }
 0x1eb   : > { %v10262_v50 = vadd.f32 %v10261_v48, %v10260_v39  ;;  %v4069_v53 = vadd.f32 %v12724_v33, %v10259_v37  ;;  %v10374_v14 = vadd.f32 %v10373_v6, %v10372_v7  ;;  %v3170_v37 = vsel %vm1521_vm9, %v3168_v51, %v3169_v25 }
 0x1ed   : > { %v4072_v1 = vadd.f32 %v12724_v33, %v10262_v50  ;;  %v12746_v11 = vadd.f32 %v10371_v5, %v4069_v53  ;;  %v11597_v53 = vld [vmem:[#allocation11 + $0x68] sm:$0xff]  }
 0x1ee   : > { %10645 = vmatprep.subr.bf16.mxu1 %v11597_v53 }
 0x1ef   : > { %v12749_v8 = vadd.f32 %v10374_v14, %v4072_v1  ;;  %v10263_v18 = vpop.f32.mrb[56].mxu0  ;;  %v10375_v22 = vpop.f32.mrb[56].mxu1  ;;  %10646 = vmatpush3.bf16.msra.mxu1 %v11598_v58 }
 0x1f0   : > { %v10264_v12 = vpop.f32.mrb[57].mxu0  ;;  %v10376_v39 = vpop.f32.mrb[57].mxu1  ;;  %11152 = vmatmul.mubr.bf16.gmra.mrb[156].mxu0 %v3170_v37 }
 0x1f1   : > { %v10265_v19 = vadd.f32 %v10264_v12, %v10263_v18  ;;  %v10266_v9 = vpop.f32.mrb[58].mxu0  ;;  %v10377_v41 = vadd.f32 %v10376_v39, %v10375_v22  ;;  %v10378_v48 = vpop.f32.mrb[58].mxu1 }
 0x1f2   : > { %v10267_v31 = vpop.f32.mrb[59].mxu0  ;;  %v10379_v47 = vpop.f32.mrb[59].mxu1 }
 0x1f3   : > { %v4077_v29 = vadd.f32 %v12724_v33, %v10265_v19  ;;  %v10268_v30 = vadd.f32 %v10267_v31, %v10266_v9  ;;  %v10380_v45 = vadd.f32 %v10379_v47, %v10378_v48 }
 0x1f5   : > { %v4080_v34 = vadd.f32 %v12724_v33, %v10268_v30  ;;  %v12754_v44 = vadd.f32 %v10377_v41, %v4077_v29 }
 0x1f7   : > { %v12756_v50 = vadd.f32 %v10380_v45, %v4080_v34  ;;  %v10269_v52 = vpop.f32.mrb[60].mxu0  ;;  %v10381_v1 = vpop.f32.mrb[60].mxu1 }
 0x1f8   : > { %v10270_v59 = vpop.f32.mrb[61].mxu0  ;;  %v10382_v6 = vpop.f32.mrb[61].mxu1 }
 0x1f9   : > { %v10271_v62 = vadd.f32 %v10270_v59, %v10269_v52  ;;  %v10272_v63 = vpop.f32.mrb[62].mxu0  ;;  %v10383_v10 = vadd.f32 %v10382_v6, %v10381_v1  ;;  %v10384_v14 = vpop.f32.mrb[62].mxu1 }
 0x1fa   : > { %v10273_v5 = vpop.f32.mrb[63].mxu0  ;;  %v10385_v25 = vpop.f32.mrb[63].mxu1 }
 0x1fb   : > { %v4085_v7 = vadd.f32 %v12724_v33, %v10271_v62  ;;  %v10274_v51 = vadd.f32 %v10273_v5, %v10272_v63  ;;  %v10386_v12 = vadd.f32 %v10385_v25, %v10384_v14  ;;  %v11602_v14 = vld [vmem:[#allocation11 + $0x80] sm:$0xff]  }
 0x1fd   : > { %v4088_v15 = vadd.f32 %v12724_v33, %v10274_v51  ;;  %v12760_v18 = vadd.f32 %v10383_v10, %v4085_v7  ;;  %v11601_v51 = vld [vmem:[#allocation11 + $0xc0] sm:$0xff]  }
 0x1fe   : > { %10747 = vmatprep.subr.bf16.mxu0 %v11601_v51 }
 0x1ff   : > { %v10403_v19 = vpop.f32.mrb[64].mxu0  ;;  %v12762_v9 = vadd.f32 %v10386_v12, %v4088_v15  ;;  %v10515_v29 = vpop.f32.mrb[64].mxu1  ;;  %10748 = vmatpush3.bf16.msra.mxu0 %v11602_v14  ;;  %v11608_v14 = vld [vmem:[#allocation11 + $0x98] sm:$0xff]  }
 0x200   : > { %v10404_v22 = vpop.f32.mrb[65].mxu0  ;;  %v10516_v48 = vpop.f32.mrb[65].mxu1 }
 0x201   : > { %v10405_v31 = vadd.f32 %v10404_v22, %v10403_v19  ;;  %v10406_v37 = vpop.f32.mrb[66].mxu0  ;;  %v10517_v34 = vadd.f32 %v10516_v48, %v10515_v29  ;;  %v10518_v47 = vpop.f32.mrb[66].mxu1  ;;  %v11599_v19 = vld [vmem:[#allocation11 + $0x70] sm:$0xff]   ;;  %v11603_v29 = vld [vmem:[#allocation11 + $0xc8] sm:$0xff]  }
 0x202   : > { %v10407_v30 = vpop.f32.mrb[67].mxu0  ;;  %v10519_v45 = vpop.f32.mrb[67].mxu1  ;;  %v11600_v22 = vld [vmem:[#allocation11 + $0x30] sm:$0xff]   ;;  %10647 = vmatprep.subr.bf16.mxu1 %v11599_v19  ;;  %10749 = vmatprep.subr.bf16.mxu0 %v11603_v29  ;;  %v11611_v29 = vld [vmem:[#allocation11 + $0xe0] sm:$0xff]  }
 0x203   : > { %v4287_v39 = vadd.f32 %v10405_v31, %v12628_v32  ;;  %v10408_v41 = vadd.f32 %v10407_v30, %v10406_v37  ;;  %v10520_v53 = vadd.f32 %v10519_v45, %v10518_v47  ;;  %10648 = vmatpush3.bf16.msra.mxu1 %v11600_v22 }
 0x205   : > { %v4290_v33 = vadd.f32 %v10408_v41, %v12631_v40  ;;  %v12766_v58 = vadd.f32 %v10517_v34, %v4287_v39  ;;  %v11604_v39 = vld [vmem:[#allocation11 + $0x88] sm:$0xff]  }
 0x206   : > { %10750 = vmatpush3.bf16.msra.mxu0 %v11604_v39 }
 0x207   : > { %v10409_v52 = vpop.f32.mrb[68].mxu0  ;;  %v12768_v62 = vadd.f32 %v10520_v53, %v4290_v33  ;;  %v10521_v5 = vpop.f32.mrb[68].mxu1  ;;  %v11605_v33 = vld [vmem:[#allocation11 + $0xd0] sm:$0xff]  }
 0x208   : > { %v10410_v59 = vpop.f32.mrb[69].mxu0  ;;  %v10522_v10 = vpop.f32.mrb[69].mxu1  ;;  %10751 = vmatprep.subr.bf16.mxu0 %v11605_v33 }
 0x209   : > { %v10411_v63 = vadd.f32 %v10410_v59, %v10409_v52  ;;  %v10412_v1 = vpop.f32.mrb[70].mxu0  ;;  %v10523_v15 = vadd.f32 %v10522_v10, %v10521_v5  ;;  %v10524_v40 = vpop.f32.mrb[70].mxu1  ;;  %v11606_v59 = vld [vmem:[#allocation11 + $0x90] sm:$0xff]  }
 0x20a   : > { %v10413_v7 = vpop.f32.mrb[71].mxu0  ;;  %v10525_v12 = vpop.f32.mrb[71].mxu1  ;;  %10752 = vmatpush3.bf16.msra.mxu0 %v11606_v59  ;;  %v11617_v59 = vld [vmem:[#allocation4] sm:$0xff]  }
 0x20b   : > { %v4295_v32 = vadd.f32 %v10411_v63, %v12636_v13  ;;  %v10414_v6 = vadd.f32 %v10413_v7, %v10412_v1  ;;  %v10526_v31 = vadd.f32 %v10525_v12, %v10524_v40 }
 0x20d   : > { %v4298_v25 = vadd.f32 %v10414_v6, %v12640_v21  ;;  %v12772_v37 = vadd.f32 %v10523_v15, %v4295_v32  ;;  %v11607_v32 = vld [vmem:[#allocation11 + $0xd8] sm:$0xff]  }
 0x20e   : > { %10753 = vmatprep.subr.bf16.mxu0 %v11607_v32 }
 0x20f   : > { %v10415_v30 = vpop.f32.mrb[72].mxu0  ;;  %v12774_v41 = vadd.f32 %v10526_v31, %v4298_v25  ;;  %v10527_v21 = vpop.f32.mrb[72].mxu1  ;;  %10754 = vmatpush3.bf16.msra.mxu0 %v11608_v14  ;;  %v5673_v14 = vshll.u32 %v11617_v59, 16 }
 0x210   : > { %v10416_v13 = vpop.f32.mrb[73].mxu0  ;;  %v10528_v52 = vpop.f32.mrb[73].mxu1  ;;  %10755 = vmatprep.subr.bf16.mxu0 %v11611_v29  ;;  %v11616_v29 = vld [vmem:[#allocation11 + $0xb0] sm:$0xff]  }
 0x211   : > { %v10417_v48 = vadd.f32 %v10416_v13, %v10415_v30  ;;  %v10418_v34 = vpop.f32.mrb[74].mxu0  ;;  %v10529_v63 = vadd.f32 %v10528_v52, %v10527_v21  ;;  %v10530_v1 = vpop.f32.mrb[74].mxu1  ;;  %v11612_v13 = vld [vmem:[#allocation11 + $0xa0] sm:$0xff]  }
 0x212   : > { %v10419_v47 = vpop.f32.mrb[75].mxu0  ;;  %v10531_v7 = vpop.f32.mrb[75].mxu1 }
 0x213   : > { %v4303_v45 = vadd.f32 %v10417_v48, %v12645_v60  ;;  %v10420_v53 = vadd.f32 %v10419_v47, %v10418_v34  ;;  %v10532_v51 = vadd.f32 %v10531_v7, %v10530_v1  ;;  %10756 = vmatpush3.bf16.msra.mxu0 %v11612_v13  ;;  %v11618_v7 = vld [vmem:[#allocation4 + $0x8] ss:$0 sps:$4 sm:$0x11]  }
 0x215   : > { %v4306_v5 = vadd.f32 %v10420_v53, %v12649_v2  ;;  %v12778_v6 = vadd.f32 %v10529_v63, %v4303_v45  ;;  %v11613_v45 = vld [vmem:[#allocation11 + $0xe8] sm:$0xff]  }
 0x216   : > { %10757 = vmatprep.subr.bf16.mxu0 %v11613_v45  ;;  %v11619_v45 = vld [vmem:[#allocation11 + $0xf8] sm:$0xff]  }
 0x217   : > { %v10421_v10 = vpop.f32.mrb[76].mxu0  ;;  %v12780_v40 = vadd.f32 %v10532_v51, %v4306_v5  ;;  %v10533_v12 = vpop.f32.mrb[76].mxu1 }
 0x218   : > { %v10422_v15 = vpop.f32.mrb[77].mxu0  ;;  %v10534_v31 = vpop.f32.mrb[77].mxu1 }
 0x219   : > { %v10423_v60 = vadd.f32 %v10422_v15, %v10421_v10  ;;  %v10424_v25 = vpop.f32.mrb[78].mxu0  ;;  %v10535_v30 = vadd.f32 %v10534_v31, %v10533_v12  ;;  %v10536_v39 = vpop.f32.mrb[78].mxu1  ;;  %v11609_v10 = vld [vmem:[#allocation11 + $0x78] sm:$0xff]   ;;  %v5671_v12 = vshrl.u32 %v11617_v59, 16 }
 0x21a   : > { %v10425_v19 = vpop.f32.mrb[79].mxu0  ;;  %v10537_v34 = vpop.f32.mrb[79].mxu1  ;;  %10649 = vmatprep.subr.bf16.mxu1 %v11609_v10 }
 0x21b   : > { %v4311_v22 = vadd.f32 %v10423_v60, %v12656_v46  ;;  %v10426_v2 = vadd.f32 %v10425_v19, %v10424_v25  ;;  %v10538_v21 = vadd.f32 %v10537_v34, %v10536_v39  ;;  %v11614_v46 = vld [vmem:[#allocation11 + $0xa8] sm:$0xff]   ;;  %v11610_v60 = vld [vmem:[#allocation11 + $0x38] sm:$0xff]   ;;  %v11615_v25 = vld [vmem:[#allocation11 + $0xf0] sm:$0xff]   ;;  %v5678_v19 = vshll.u32 %v11618_v7, 16 }
 0x21c   : > { %10758 = vmatpush3.bf16.msra.mxu0 %v11614_v46  ;;  %10650 = vmatpush3.bf16.msra.mxu1 %v11610_v60 }
 0x21d   : > { %v4314_v48 = vadd.f32 %v10426_v2, %v12661_v56  ;;  %v12784_v47 = vadd.f32 %v10535_v30, %v4311_v22  ;;  %v5675_v30 = vrot.slane %v5673_v14, 1  ;;  %10759 = vmatprep.subr.bf16.mxu0 %v11615_v25 }
 0x21f   : > { %v10427_v33 = vpop.f32.mrb[80].mxu0  ;;  %v12786_v52 = vadd.f32 %v10538_v21, %v4314_v48  ;;  %v10539_v51 = vpop.f32.mrb[80].mxu1  ;;  %v5676_v21 = vor.u32 %v5675_v30, %v5671_v12 }
 0x220   : > { %v10428_v53 = vpop.f32.mrb[81].mxu0  ;;  %v10540_v15 = vpop.f32.mrb[81].mxu1  ;;  %10760 = vmatpush3.bf16.msra.mxu0 %v11616_v29 }
 0x221   : > { %v10429_v63 = vadd.f32 %v10428_v53, %v10427_v33  ;;  %v10430_v1 = vpop.f32.mrb[82].mxu0  ;;  %v10541_v2 = vadd.f32 %v10540_v15, %v10539_v51  ;;  %v10542_v31 = vpop.f32.mrb[82].mxu1  ;;  %v11620_v53 = vld [vmem:[#allocation4] sm:$0xff]   ;;  %10761 = vmatprep.subr.bf16.mxu0 %v11619_v45 }
 0x222   : > { %v10431_v5 = vpop.f32.mrb[83].mxu0  ;;  %v10543_v39 = vpop.f32.mrb[83].mxu1 }
 0x223   : > { %v4319_v56 = vadd.f32 %v10429_v63, %v12666_v24  ;;  %v10432_v32 = vadd.f32 %v10431_v5, %v10430_v1  ;;  %v5680_v24 = vrot.slane %v5678_v19, 1  ;;  %v10544_v13 = vadd.f32 %v10543_v39, %v10542_v31  ;;  %v11621_v1 = vld [vmem:[#allocation11 + $0xb8] sm:$0xff]  }
 0x224   : > { %10762 = vmatpush3.bf16.msra.mxu0 %v11621_v1 }
 0x225   : > { %v4322_v22 = vadd.f32 %v10432_v32, %v12668_v28  ;;  %v12790_v34 = vadd.f32 %v10541_v2, %v4319_v56  ;;  %v5681_v63 = vsel %vm1120_vm3, %v5676_v21, %v5680_v24 }
 0x226   : > { %8510 = vmatprep.mubr.bf16.mxu1 %v5681_v63 }
 0x227   : > { %v10433_v48 = vpop.f32.mrb[84].mxu0  ;;  %v12792_v59 = vadd.f32 %v10544_v13, %v4322_v22  ;;  %v10545_v51 = vpop.f32.mrb[84].mxu1  ;;  %8511 = vmatmul.mubr.bf16.vlgmr.msra.gmra.mrb[128].mxu1 %v11620_v53 }
 0x228   : > { %v10434_v33 = vpop.f32.mrb[85].mxu0  ;;  %v10546_v32 = vpop.f32.mrb[85].mxu1 }
 0x229   : > { %v10435_v46 = vadd.f32 %v10434_v33, %v10433_v48  ;;  %v10436_v28 = vpop.f32.mrb[86].mxu0  ;;  %v10547_v14 = vadd.f32 %v10546_v32, %v10545_v51  ;;  %v10548_v15 = vpop.f32.mrb[86].mxu1  ;;  %v11623_v51 = vld [vmem:[#allocation11 + $0x140] sm:$0xff]  }
 0x22a   : > { %v10437_v5 = vpop.f32.mrb[87].mxu0  ;;  %v10549_v60 = vpop.f32.mrb[87].mxu1  ;;  %10859 = vmatprep.subr.bf16.mxu1 %v11623_v51 }
 0x22b   : > { %v4327_v7 = vadd.f32 %v10435_v46, %v12676_v16  ;;  %v10438_v56 = vadd.f32 %v10437_v5, %v10436_v28  ;;  %v10550_v25 = vadd.f32 %v10549_v60, %v10548_v15 }
 0x22d   : > { %v4330_v10 = vadd.f32 %v10438_v56, %v12678_v23  ;;  %v12797_v19 = vadd.f32 %v10547_v14, %v4327_v7 }
 0x22f   : > { %v10439_v12 = vpop.f32.mrb[88].mxu0  ;;  %v12799_v29 = vadd.f32 %v10550_v25, %v4330_v10  ;;  %v10551_v24 = vpop.f32.mrb[88].mxu1 }
 0x230   : > { %v10440_v22 = vpop.f32.mrb[89].mxu0  ;;  %v10552_v23 = vpop.f32.mrb[89].mxu1 }
 0x231   : > { %v10441_v2 = vadd.f32 %v10440_v22, %v10439_v12  ;;  %v10442_v31 = vpop.f32.mrb[90].mxu0  ;;  %v10553_v48 = vadd.f32 %v10552_v23, %v10551_v24  ;;  %v10554_v21 = vpop.f32.mrb[90].mxu1 }
 0x232   : > { %v10443_v16 = vpop.f32.mrb[91].mxu0  ;;  %v10555_v33 = vpop.f32.mrb[91].mxu1 }
 0x233   : > { %v4335_v30 = vadd.f32 %v10441_v2, %v12684_v57  ;;  %v10444_v39 = vadd.f32 %v10443_v16, %v10442_v31  ;;  %v10556_v53 = vadd.f32 %v10555_v33, %v10554_v21  ;;  %v11626_v57 = vld [vmem:[#allocation11 + $0x100] sm:$0xff]  }
 0x234   : > { %10860 = vmatpush3.bf16.msra.mxu1 %v11626_v57 }
 0x235   : > { %v4338_v13 = vadd.f32 %v10444_v39, %v12687_v3  ;;  %v12803_v28 = vadd.f32 %v10553_v48, %v4335_v30 }
 0x237   : > { %v10445_v45 = vpop.f32.mrb[92].mxu0  ;;  %v12805_v7 = vadd.f32 %v10556_v53, %v4338_v13  ;;  %v10557_v3 = vpop.f32.mrb[92].mxu1 }
 0x238   : > { %v10446_v46 = vpop.f32.mrb[93].mxu0  ;;  %v10558_v14 = vpop.f32.mrb[93].mxu1 }
 0x239   : > { %v10447_v63 = vadd.f32 %v10446_v46, %v10445_v45  ;;  %v10448_v1 = vpop.f32.mrb[94].mxu0  ;;  %v10559_v15 = vadd.f32 %v10558_v14, %v10557_v3  ;;  %v10560_v60 = vpop.f32.mrb[94].mxu1 }
 0x23a   : > { %v10449_v5 = vpop.f32.mrb[95].mxu0  ;;  %v10561_v25 = vpop.f32.mrb[95].mxu1 }
 0x23b   : > { %v4343_v56 = vadd.f32 %v10447_v63, %v12691_v26  ;;  %v10450_v32 = vadd.f32 %v10449_v5, %v10448_v1  ;;  %v10562_v22 = vadd.f32 %v10561_v25, %v10560_v60 }
 0x23d   : > { %v4346_v10 = vadd.f32 %v10450_v32, %v12695_v36  ;;  %v12809_v31 = vadd.f32 %v10559_v15, %v4343_v56 }
 0x23f   : > { %v10451_v12 = vpop.f32.mrb[96].mxu0  ;;  %v12811_v24 = vadd.f32 %v10562_v22, %v4346_v10  ;;  %v10563_v23 = vpop.f32.mrb[96].mxu1 }
 0x240   : > { %v10452_v2 = vpop.f32.mrb[97].mxu0  ;;  %v10564_v48 = vpop.f32.mrb[97].mxu1 }
 0x241   : > { %v10453_v16 = vadd.f32 %v10452_v2, %v10451_v12  ;;  %v10454_v30 = vpop.f32.mrb[98].mxu0  ;;  %v10565_v21 = vadd.f32 %v10564_v48, %v10563_v23  ;;  %v10566_v33 = vpop.f32.mrb[98].mxu1 }
 0x242   : > { %v10455_v39 = vpop.f32.mrb[99].mxu0  ;;  %v10567_v45 = vpop.f32.mrb[99].mxu1 }
 0x243   : > { %v4351_v26 = vadd.f32 %v10453_v16, %v12699_v54  ;;  %v10456_v13 = vadd.f32 %v10455_v39, %v10454_v30  ;;  %v10568_v53 = vadd.f32 %v10567_v45, %v10566_v33 }
 0x245   : > { %v4354_v36 = vadd.f32 %v10456_v13, %v12701_v0  ;;  %v12815_v63 = vadd.f32 %v10565_v21, %v4351_v26  ;;  %v11637_v26 = vld [vmem:[#allocation11 + $0x148] sm:$0xff]  }
 0x246   : > { %v11642_v13 = vld [vmem:[#allocation11 + $0x108] sm:$0xff]   ;;  %10861 = vmatprep.subr.bf16.mxu1 %v11637_v26 }
 0x247   : > { %v10457_v46 = vpop.f32.mrb[100].mxu0  ;;  %v12817_v57 = vadd.f32 %v10568_v53, %v4354_v36  ;;  %v10569_v32 = vpop.f32.mrb[100].mxu1  ;;  %10862 = vmatpush3.bf16.msra.mxu1 %v11642_v13 }
 0x248   : > { %v10458_v1 = vpop.f32.mrb[101].mxu0  ;;  %v10570_v10 = vpop.f32.mrb[101].mxu1 }
 0x249   : > { %v10459_v5 = vadd.f32 %v10458_v1, %v10457_v46  ;;  %v10460_v51 = vpop.f32.mrb[102].mxu0  ;;  %v10571_v14 = vadd.f32 %v10570_v10, %v10569_v32  ;;  %v10572_v15 = vpop.f32.mrb[102].mxu1 }
 0x24a   : > { %v10461_v56 = vpop.f32.mrb[103].mxu0  ;;  %v10573_v60 = vpop.f32.mrb[103].mxu1 }
 0x24b   : > { %v4359_v54 = vadd.f32 %v10459_v5, %v12707_v27  ;;  %v10462_v3 = vadd.f32 %v10461_v56, %v10460_v51  ;;  %v10574_v25 = vadd.f32 %v10573_v60, %v10572_v15 }
 0x24d   : > { %v4362_v0 = vadd.f32 %v10462_v3, %v12709_v38  ;;  %v12821_v22 = vadd.f32 %v10571_v14, %v4359_v54 }
 0x24f   : > { %v10463_v12 = vpop.f32.mrb[104].mxu0  ;;  %v12823_v39 = vadd.f32 %v10574_v25, %v4362_v0  ;;  %v10575_v36 = vpop.f32.mrb[104].mxu1 }
 0x250   : > { %v10464_v2 = vpop.f32.mrb[105].mxu0  ;;  %v10576_v38 = vpop.f32.mrb[105].mxu1 }
 0x251   : > { %v10465_v16 = vadd.f32 %v10464_v2, %v10463_v12  ;;  %v10466_v30 = vpop.f32.mrb[106].mxu0  ;;  %v10577_v33 = vadd.f32 %v10576_v38, %v10575_v36  ;;  %v10578_v45 = vpop.f32.mrb[106].mxu1 }
 0x252   : > { %v10467_v27 = vpop.f32.mrb[107].mxu0  ;;  %v10579_v53 = vpop.f32.mrb[107].mxu1 }
 0x253   : > { %v4367_v23 = vadd.f32 %v10465_v16, %v12715_v4  ;;  %v10468_v48 = vadd.f32 %v10467_v27, %v10466_v30  ;;  %v10580_v46 = vadd.f32 %v10579_v53, %v10578_v45 }
 0x255   : > { %v4370_v21 = vadd.f32 %v10468_v48, %v12719_v17  ;;  %v12827_v1 = vadd.f32 %v10577_v33, %v4367_v23 }
 0x257   : > { %v12829_v5 = vadd.f32 %v10580_v46, %v4370_v21  ;;  %v10469_v51 = vpop.f32.mrb[108].mxu0  ;;  %v10581_v10 = vpop.f32.mrb[108].mxu1  ;;  %v11651_v21 = vld [vmem:[#allocation11 + $0x150] sm:$0xff]  }
 0x258   : > { %v10470_v56 = vpop.f32.mrb[109].mxu0  ;;  %v10582_v14 = vpop.f32.mrb[109].mxu1  ;;  %10863 = vmatprep.subr.bf16.mxu1 %v11651_v21 }
 0x259   : > { %v10471_v54 = vadd.f32 %v10470_v56, %v10469_v51  ;;  %v10472_v32 = vpop.f32.mrb[110].mxu0  ;;  %v10583_v15 = vadd.f32 %v10582_v14, %v10581_v10  ;;  %v10584_v60 = vpop.f32.mrb[110].mxu1 }
 0x25a   : > { %v10473_v4 = vpop.f32.mrb[111].mxu0  ;;  %v10585_v25 = vpop.f32.mrb[111].mxu1 }
 0x25b   : > { %v4375_v3 = vadd.f32 %v10471_v54, %v12728_v42  ;;  %v10474_v0 = vadd.f32 %v10473_v4, %v10472_v32  ;;  %v10586_v12 = vadd.f32 %v10585_v25, %v10584_v60  ;;  %v11665_v32 = vld [vmem:[#allocation11 + $0x158] sm:$0xff]  }
 0x25d   : > { %v4378_v17 = vadd.f32 %v10474_v0, %v12733_v61  ;;  %v12833_v2 = vadd.f32 %v10583_v15, %v4375_v3  ;;  %v11656_v61 = vld [vmem:[#allocation11 + $0x110] sm:$0xff]  }
 0x25e   : > { %10864 = vmatpush3.bf16.msra.mxu1 %v11656_v61 }
 0x25f   : > { %v10475_v16 = vpop.f32.mrb[112].mxu0  ;;  %v12835_v30 = vadd.f32 %v10586_v12, %v4378_v17  ;;  %10865 = vmatprep.subr.bf16.mxu1 %v11665_v32 }
 0x260   : > { %v10476_v26 = vpop.f32.mrb[113].mxu0 }
 0x261   : > { %v10477_v13 = vadd.f32 %v10476_v26, %v10475_v16  ;;  %v10478_v27 = vpop.f32.mrb[114].mxu0 }
 0x262   : > { %v10479_v23 = vpop.f32.mrb[115].mxu0  ;;  %v10587_v36 = vpop.f32.mrb[112].mxu1 }
 0x263   : > { %v4383_v42 = vadd.f32 %v10477_v13, %v12737_v20  ;;  %v10480_v48 = vadd.f32 %v10479_v23, %v10478_v27  ;;  %v10588_v38 = vpop.f32.mrb[113].mxu1  ;;  %v11670_v27 = vld [vmem:[#allocation11 + $0x118] sm:$0xff]  }
 0x264   : > { %v10589_v45 = vadd.f32 %v10588_v38, %v10587_v36  ;;  %v10590_v53 = vpop.f32.mrb[114].mxu1  ;;  %10866 = vmatpush3.bf16.msra.mxu1 %v11670_v27 }
 0x265   : > { %v4386_v33 = vadd.f32 %v10480_v48, %v12739_v35  ;;  %v10591_v46 = vpop.f32.mrb[115].mxu1 }
 0x266   : > { %v10592_v51 = vadd.f32 %v10591_v46, %v10590_v53  ;;  %v12839_v56 = vadd.f32 %v10589_v45, %v4383_v42  ;;  %v11678_v45 = vld [vmem:[#allocation11 + $0x1c0] sm:$0xff]  }
 0x267   : > { %v10481_v54 = vpop.f32.mrb[116].mxu0  ;;  %10971 = vmatprep.subr.bf16.mxu0 %v11678_v45 }
 0x268   : > { %v10482_v4 = vpop.f32.mrb[117].mxu0  ;;  %v12841_v3 = vadd.f32 %v10592_v51, %v4386_v33 }
 0x269   : > { %v10483_v20 = vadd.f32 %v10482_v4, %v10481_v54  ;;  %v10484_v10 = vpop.f32.mrb[118].mxu0 }
 0x26a   : > { %v10593_v0 = vpop.f32.mrb[116].mxu1  ;;  %v10485_v14 = vpop.f32.mrb[119].mxu0 }
 0x26b   : > { %v4391_v35 = vadd.f32 %v10483_v20, %v12746_v11  ;;  %v10486_v17 = vadd.f32 %v10485_v14, %v10484_v10  ;;  %v10594_v15 = vpop.f32.mrb[117].mxu1  ;;  %v11686_v14 = vld [vmem:[#allocation11 + $0x120] sm:$0xff]  }
 0x26c   : > { %v10595_v60 = vadd.f32 %v10594_v15, %v10593_v0  ;;  %v10596_v25 = vpop.f32.mrb[118].mxu1 }
 0x26d   : > { %v4394_v12 = vadd.f32 %v10486_v17, %v12749_v8  ;;  %v10597_v16 = vpop.f32.mrb[119].mxu1  ;;  %v11681_v8 = vld [vmem:[#allocation11 + $0x160] sm:$0xff]  }
 0x26e   : > { %v10598_v26 = vadd.f32 %v10597_v16, %v10596_v25  ;;  %v12845_v13 = vadd.f32 %v10595_v60, %v4391_v35  ;;  %10867 = vmatprep.subr.bf16.mxu1 %v11681_v8 }
 0x26f   : > { %v10487_v23 = vpop.f32.mrb[120].mxu0  ;;  %10868 = vmatpush3.bf16.msra.mxu1 %v11686_v14 }
 0x270   : > { %v12847_v42 = vadd.f32 %v10598_v26, %v4394_v12  ;;  %v10488_v36 = vpop.f32.mrb[121].mxu0 }
 0x271   : > { %v10489_v48 = vadd.f32 %v10488_v36, %v10487_v23  ;;  %v10490_v38 = vpop.f32.mrb[122].mxu0 }
 0x272   : > { %v10491_v21 = vpop.f32.mrb[123].mxu0 }
 0x273   : > { %v4399_v11 = vadd.f32 %v10489_v48, %v12754_v44  ;;  %v10492_v61 = vadd.f32 %v10491_v21, %v10490_v38 }
 0x275   : > { %v4402_v33 = vadd.f32 %v10492_v61, %v12756_v50  ;;  %v12859_v61 = vld [vmem:[#allocation4] sm:$0xfe]  }
 0x278   : > { %v10599_v53 = vpop.f32.mrb[120].mxu1 }
 0x279   : > { %v10600_v46 = vpop.f32.mrb[121].mxu1 }
 0x27a   : > { %v10493_v51 = vpop.f32.mrb[124].mxu0  ;;  %v10601_v54 = vadd.f32 %v10600_v46, %v10599_v53  ;;  %v10602_v32 = vpop.f32.mrb[122].mxu1  ;;  %v11697_v46 = vld [vmem:[#allocation11 + $0x168] sm:$0xff]  }
 0x27b   : > { %v10494_v4 = vpop.f32.mrb[125].mxu0  ;;  %v10603_v20 = vpop.f32.mrb[123].mxu1  ;;  %10869 = vmatprep.subr.bf16.mxu1 %v11697_v46 }
 0x27c   : > { %v10495_v10 = vadd.f32 %v10494_v4, %v10493_v51  ;;  %v10496_v0 = vpop.f32.mrb[126].mxu0  ;;  %v10604_v35 = vadd.f32 %v10603_v20, %v10602_v32  ;;  %v12851_v44 = vadd.f32 %v10601_v54, %v4399_v11 }
 0x27d   : > { %v10497_v17 = vpop.f32.mrb[127].mxu0 }
 0x27e   : > { %v4407_v50 = vadd.f32 %v10495_v10, %v12760_v18  ;;  %v10498_v15 = vadd.f32 %v10497_v17, %v10496_v0  ;;  %v12854_v60 = vadd.f32 %v10604_v35, %v4402_v33 }
 0x280   : > { %v4410_v25 = vadd.f32 %v10498_v15, %v12762_v9  ;;  %v10605_v12 = vpop.f32.mrb[124].mxu1  ;;  %v12862_v9 = vld [vmem:[#allocation4 + $0x8] ss:$0 sps:$4 sm:$0x11]  }
 0x281   : > { %v10606_v16 = vpop.f32.mrb[125].mxu1  ;;  %v6071_v14 = vrot.slane %v12862_v9, 1 }
 0x282   : > { %v11125_v26 = vpop.f32.mrb[128].mxu0  ;;  %v10607_v27 = vadd.f32 %v10606_v16, %v10605_v12  ;;  %v10608_v23 = vpop.f32.mrb[126].mxu1 }
 0x283   : > { %v4617_v36 = vadd.f32 %v11125_v26, %v12772_v37  ;;  %v4608_v48 = vpop.f32.mrb[129].mxu0  ;;  %v10609_v38 = vpop.f32.mrb[127].mxu1 }
 0x284   : > { %v4609_v21 = vadd.f32 %v4608_v48, %v12766_v58  ;;  %v11126_v11 = vpop.f32.mrb[130].mxu0  ;;  %v10610_v18 = vadd.f32 %v10609_v38, %v10608_v23  ;;  %v12864_v53 = vadd.f32 %v10607_v27, %v4407_v50 }
 0x285   : > { %v4737_v45 = vmax.f32 %v4617_v36, 0.0  ;;  %v4620_v33 = vadd.f32 %v11126_v11, %v12774_v41  ;;  %v4611_v8 = vpop.f32.mrb[131].mxu0  ;;  %v6070_v41 = vrot.slane %v12859_v61, 1 }
 0x286   : > { %v4735_v51 = vmax.f32 %v4609_v21, 0.0  ;;  %v4612_v37 = vadd.f32 %v4611_v8, %v12768_v62  ;;  %v12867_v4 = vadd.f32 %v10610_v18, %v4410_v25  ;;  %v5245_v62 = vld [vmem:[#allocation4 + $0x18] sm:$0xf]  ;;  %v11702_v18 = vld [vmem:[#allocation11 + $0x128] sm:$0xff]   ;;  %v5238_v8 = vld [vmem:[#allocation4 + $0xc] sm:$0xf] }
 0x287   : > { %v10132_v54 = vpack.c.bf16 %v4737_v45, %v4737_v45  ;;  %v4738_v32 = vmax.f32 %v4620_v33, 0.0  ;;  %10870 = vmatpush3.bf16.msra.mxu1 %v11702_v18 }
 0x288   : > { %v10130_v58 = vpack.c.bf16 %v4735_v51, %v4735_v51  ;;  %v4736_v20 = vmax.f32 %v4612_v37, 0.0 }
 0x289   : > { %v4935_v10 = vshrl.u32 %v10132_v54, 16  ;;  %v10133_v0 = vpack.c.bf16 %v4738_v32, %v4738_v32  ;;  %v4938_v35 = vshll.u32 %v10132_v54, 16 }
 0x28a   : > { %v4918_v17 = vshrl.u32 %v10130_v58, 16  ;;  %v4921_v50 = vshll.u32 %v10130_v58, 16  ;;  %v10131_v15 = vpack.c.bf16 %v4736_v20, %v4736_v20  ;;  %v11129_v12 = vpop.f32.mrb[132].mxu0  ;;  %v5249_v58 = vld [vmem:[#allocation4 + $0x20] sm:$0x1] }
 0x28b   : > { %v4937_v16 = vrot.slane %v4935_v10, 7  ;;  %v4943_v26 = vshrl.u32 %v10133_v0, 16  ;;  %v4946_v27 = vshll.u32 %v10133_v0, 16  ;;  %v4633_v25 = vadd.f32 %v11129_v12, %v12784_v47  ;;  %v4624_v23 = vpop.f32.mrb[133].mxu0 }
 0x28c   : > { %v4920_v36 = vrot.slane %v4918_v17, 7  ;;  %v4926_v48 = vshrl.u32 %v10131_v15, 16  ;;  %v4929_v38 = vshll.u32 %v10131_v15, 16  ;;  %v4625_v21 = vadd.f32 %v4624_v23, %v12778_v6  ;;  %v11130_v11 = vpop.f32.mrb[134].mxu0  ;;  %v5242_v6 = vld [vmem:[#allocation4 + $0x14] sm:$0x1] }
 0x28d   : > { %v4940_v45 = vor.u32 %v4938_v35, %v4937_v16  ;;  %v4941_v33 = vrot.slane %v4937_v16, 4  ;;  %v4945_v46 = vrot.slane %v4943_v26, 7  ;;  %v4741_v51 = vmax.f32 %v4633_v25, 0.0  ;;  %v4627_v37 = vpop.f32.mrb[135].mxu0 }
 0x28e   : > { %v4923_v54 = vor.u32 %v4921_v50, %v4920_v36  ;;  %v4924_v32 = vrot.slane %v4920_v36, 4  ;;  %v4928_v20 = vrot.slane %v4926_v48, 7  ;;  %v4739_v10 = vmax.f32 %v4625_v21, 0.0 }
 0x28f   : > { %v5246_v47 = vsel %vm12411_vm7, %v4940_v45, %v5245_v62  ;;  %v4948_v0 = vor.u32 %v4946_v27, %v4945_v46  ;;  %v4950_v17 = vrot.slane %v4945_v46, 4  ;;  %v10136_v15 = vpack.c.bf16 %v4741_v51, %v4741_v51  ;;  %v5259_v46 = vld [vmem:[#allocation4 + $0x30] sm:$0xf] }
 0x290   : > { %5247 = vst [vmem:[#allocation4 + $0x18] sm:$0xf] %v5246_v47  ;;  %v5239_v35 = vsel %vm12411_vm7, %v4923_v54, %v5238_v8  ;;  %v4931_v12 = vor.u32 %v4929_v38, %v4928_v20  ;;  %v4933_v16 = vrot.slane %v4928_v20, 4  ;;  %v10134_v26 = vpack.c.bf16 %v4739_v10, %v4739_v10 }
 0x291   : > { %5240 = vst [vmem:[#allocation4 + $0xc] sm:$0xf] %v5239_v35  ;;  %v4949_v50 = vsel %vm12405_vm6, %v4941_v33, %v4948_v0  ;;  %v5250_v25 = vsel %vm12417_vm8, %v4950_v17, %v5249_v58  ;;  %v4969_v23 = vshrl.u32 %v10136_v15, 16  ;;  %v4972_v36 = vshll.u32 %v10136_v15, 16 }
 0x292   : > { %5248 = vst [vmem:[#allocation4 + $0x1c] sm:$0xf] %v4949_v50  ;;  %5251 = vst [vmem:[#allocation4 + $0x20] sm:$0x1] %v5250_v25  ;;  %v4932_v62 = vsel %vm12405_vm6, %v4924_v32, %v4931_v12  ;;  %v5243_v27 = vsel %vm12417_vm8, %v4933_v16, %v5242_v6  ;;  %v4952_v48 = vshrl.u32 %v10134_v26, 16  ;;  %v11133_v38 = vpop.f32.mrb[136].mxu0  ;;  %v4636_v18 = vadd.f32 %v11130_v11, %v12786_v52 }
 0x293   : > { %5241 = vst [vmem:[#allocation4 + $0x10] sm:$0xf] %v4932_v62  ;;  %5244 = vst [vmem:[#allocation4 + $0x14] sm:$0x1] %v5243_v27  ;;  %v12885_v21 = vrot.slane %v4969_v23, 7  ;;  %v4628_v45 = vadd.f32 %v4627_v37, %v12780_v40  ;;  %v4649_v33 = vadd.f32 %v11133_v38, %v12797_v19  ;;  %v4640_v8 = vpop.f32.mrb[137].mxu0  ;;  %v6072_v20 = vsel %vm1521_vm9, %v6070_v41, %v6071_v14 }
 0x294   : > { %v12890_v51 = vrot.slane %v4952_v48, 7  ;;  %v4955_v54 = vshll.u32 %v10134_v26, 16  ;;  %v4641_v32 = vadd.f32 %v4640_v8, %v12790_v34  ;;  %v11134_v58 = vpop.f32.mrb[138].mxu0  ;;  %v5252_v11 = vld [vmem:[#allocation4 + $0x24] sm:$0xf]  ;;  %v4742_v19 = vmax.f32 %v4636_v18, 0.0 }
 0x295   : > { %v4974_v52 = vor.u32 %v4972_v36, %v12885_v21  ;;  %v4975_v40 = vrot.slane %v12885_v21, 4  ;;  %v4740_v37 = vmax.f32 %v4628_v45, 0.0  ;;  %v4643_v10 = vpop.f32.mrb[139].mxu0  ;;  %v4745_v34 = vmax.f32 %v4649_v33, 0.0  ;;  %v11713_v6 = vld [vmem:[#allocation11 + $0x170] sm:$0xff]   ;;  %v11679_v26 = vld [vmem:[#allocation11 + $0x180] sm:$0xff]  }
 0x296   : > { %v4957_v47 = vor.u32 %v4955_v54, %v12890_v51  ;;  %v4958_v0 = vrot.slane %v12890_v51, 4  ;;  %v4743_v17 = vmax.f32 %v4641_v32, 0.0  ;;  %v10137_v9 = vpack.c.bf16 %v4742_v19, %v4742_v19  ;;  %10871 = vmatprep.subr.bf16.mxu1 %v11713_v6  ;;  %v5263_v27 = vld [vmem:[#allocation4 + $0x38] sm:$0x1]  ;;  %v5256_v36 = vld [vmem:[#allocation4 + $0x2c] sm:$0x1] }
 0x297   : > { %v5260_v61 = vsel %vm12411_vm7, %v4974_v52, %v5259_v46  ;;  %v10135_v41 = vpack.c.bf16 %v4740_v37, %v4740_v37  ;;  %v4652_v14 = vadd.f32 %v11134_v58, %v12799_v29  ;;  %v10140_v35 = vpack.c.bf16 %v4745_v34, %v4745_v34  ;;  %v5273_v51 = vld [vmem:[#allocation4 + $0x48] sm:$0xf]  ;;  %v5266_v54 = vld [vmem:[#allocation4 + $0x3c] sm:$0xf]  ;;  %v11694_v52 = vld [vmem:[#allocation11 + $0x1c8] sm:$0xff]  }
 0x298   : > { %5261 = vst [vmem:[#allocation4 + $0x30] sm:$0xf] %v5260_v61  ;;  %v5253_v15 = vsel %vm12411_vm7, %v4957_v47, %v5252_v11  ;;  %v10138_v12 = vpack.c.bf16 %v4743_v17, %v4743_v17  ;;  %v4644_v16 = vadd.f32 %v4643_v10, %v12792_v59  ;;  %v4977_v50 = vshrl.u32 %v10137_v9, 16 }
 0x299   : > { %5254 = vst [vmem:[#allocation4 + $0x24] sm:$0xf] %v5253_v15  ;;  %v4980_v25 = vshll.u32 %v10137_v9, 16  ;;  %v4960_v23 = vshrl.u32 %v10135_v41, 16  ;;  %v4963_v62 = vshll.u32 %v10135_v41, 16  ;;  %v5003_v48 = vshrl.u32 %v10140_v35, 16 }
 0x29a   : > { %v5006_v38 = vshll.u32 %v10140_v35, 16  ;;  %v4986_v29 = vshrl.u32 %v10138_v12, 16  ;;  %v4989_v18 = vshll.u32 %v10138_v12, 16  ;;  %v11622_v33 = vld [vmem:[#allocation4 + $0xc] sm:$0xff]   ;;  %v4979_v8 = vrot.slane %v4977_v50, 7  ;;  %v11627_v34 = vld [vmem:[#allocation4 + $0x18] sm:$0xff]  }
 0x29b   : > { %v11137_v45 = vpop.f32.mrb[140].mxu0  ;;  %v4962_v46 = vrot.slane %v4960_v23, 7  ;;  %v4746_v59 = vmax.f32 %v4652_v14, 0.0  ;;  %v4744_v32 = vmax.f32 %v4644_v16, 0.0  ;;  %v12908_v11 = vrot.slane %v5003_v48, 7  ;;  %8671 = vmatprep.mubr.bf16.mxu0 %v11622_v33  ;;  %v11695_v14 = vld [vmem:[#allocation11 + $0x188] sm:$0xff]  }
 0x29c   : > { %v4656_v58 = vpop.f32.mrb[141].mxu0  ;;  %v12910_v19 = vrot.slane %v4986_v29, 7  ;;  %v4665_v37 = vadd.f32 %v11137_v45, %v12809_v31  ;;  %v4982_v17 = vor.u32 %v4980_v25, %v4979_v8  ;;  %v4984_v6 = vrot.slane %v4979_v8, 4  ;;  %8672 = vmatmul.mubr.bf16.vlgmr.msra.gmra.mrb[160].mxu0 %v6072_v20  ;;  %v11710_v25 = vld [vmem:[#allocation11 + $0x1d0] sm:$0xff]  }
 0x29d   : > { %v4657_v10 = vadd.f32 %v4656_v58, %v12803_v28  ;;  %v11138_v47 = vpop.f32.mrb[142].mxu0  ;;  %v4965_v61 = vor.u32 %v4963_v62, %v4962_v46  ;;  %v4967_v9 = vrot.slane %v4962_v46, 4  ;;  %v5008_v15 = vor.u32 %v5006_v38, %v12908_v11  ;;  %8679 = vmatprep.mubr.bf16.mxu0 %v11627_v34  ;;  %10972 = vmatpush3.bf16.msra.mxu0 %v11679_v26  ;;  %v11711_v62 = vld [vmem:[#allocation11 + $0x190] sm:$0xff]   ;;  %v5277_v46 = vld [vmem:[#allocation4 + $0x50] sm:$0x1] }
 0x29e   : > { %v4659_v41 = vpop.f32.mrb[143].mxu0  ;;  %v5009_v35 = vrot.slane %v12908_v11, 4  ;;  %v4991_v12 = vor.u32 %v4989_v18, %v12910_v19  ;;  %v4992_v31 = vrot.slane %v12910_v19, 4  ;;  %v4983_v28 = vsel %vm12405_vm6, %v4975_v40, %v4982_v17  ;;  %10973 = vmatprep.subr.bf16.mxu0 %v11694_v52  ;;  %v11718_v8 = vld [vmem:[#allocation11 + $0x130] sm:$0xff]  }
 0x29f   : > { %v5264_v16 = vsel %vm12417_vm8, %v4984_v6, %v5263_v27  ;;  %v4966_v20 = vsel %vm12405_vm6, %v4958_v0, %v4965_v61  ;;  %v5257_v50 = vsel %vm12417_vm8, %v4967_v9, %v5256_v36  ;;  %5262 = vst [vmem:[#allocation4 + $0x34] sm:$0xf] %v4983_v28  ;;  %v5274_v21 = vsel %vm12411_vm7, %v5008_v15, %v5273_v51 }
 0x2a0   : > { %5265 = vst [vmem:[#allocation4 + $0x38] sm:$0x1] %v5264_v16  ;;  %5255 = vst [vmem:[#allocation4 + $0x28] sm:$0xf] %v4966_v20  ;;  %v5267_v40 = vsel %vm12411_vm7, %v4991_v12, %v5266_v54  ;;  %v10141_v26 = vpack.c.bf16 %v4746_v59, %v4746_v59  ;;  %v10139_v23 = vpack.c.bf16 %v4744_v32, %v4744_v32  ;;  %v4749_v0 = vmax.f32 %v4665_v37, 0.0 }
 0x2a1   : > { %5258 = vst [vmem:[#allocation4 + $0x2c] sm:$0x1] %v5257_v50  ;;  %5275 = vst [vmem:[#allocation4 + $0x48] sm:$0xf] %v5274_v21  ;;  %v4747_v27 = vmax.f32 %v4657_v10, 0.0  ;;  %v4668_v36 = vadd.f32 %v11138_v47, %v12811_v24  ;;  %v4660_v48 = vadd.f32 %v4659_v41, %v12805_v7  ;;  %10974 = vmatpush3.bf16.msra.mxu0 %v11695_v14  ;;  %10872 = vmatpush3.bf16.msra.mxu1 %v11718_v8  ;;  %v11726_v41 = vld [vmem:[#allocation11 + $0x1d8] sm:$0xff]  }
 0x2a2   : > { %5268 = vst [vmem:[#allocation4 + $0x3c] sm:$0xf] %v5267_v40  ;;  %v5011_v38 = vshrl.u32 %v10141_v26, 16  ;;  %v5014_v29 = vshll.u32 %v10141_v26, 16  ;;  %v4994_v18 = vshrl.u32 %v10139_v23, 16  ;;  %v4997_v45 = vshll.u32 %v10139_v23, 16  ;;  %10975 = vmatprep.subr.bf16.mxu0 %v11710_v25 }
 0x2a3   : > { %v10144_v51 = vpack.c.bf16 %v4749_v0, %v4749_v0  ;;  %v10142_v54 = vpack.c.bf16 %v4747_v27, %v4747_v27  ;;  %v4750_v59 = vmax.f32 %v4668_v36, 0.0  ;;  %v4748_v32 = vmax.f32 %v4660_v48, 0.0  ;;  %v5270_v10 = vld [vmem:[#allocation4 + $0x44] sm:$0x1]  ;;  %v5287_v16 = vld [vmem:[#allocation4 + $0x60] sm:$0xf] }
 0x2a4   : > { %v5013_v52 = vrot.slane %v5011_v38, 7  ;;  %v4996_v37 = vrot.slane %v4994_v18, 7  ;;  %v5280_v20 = vld [vmem:[#allocation4 + $0x54] sm:$0xf]  ;;  %v12952_v27 = vld [vmem:[#allocation4 + $0xc] sm:$0xff]  }
 0x2a5   : > { %v5037_v34 = vshrl.u32 %v10144_v51, 16  ;;  %v5040_v17 = vshll.u32 %v10144_v51, 16  ;;  %v5020_v6 = vshrl.u32 %v10142_v54, 16  ;;  %v5023_v61 = vshll.u32 %v10142_v54, 16  ;;  %10976 = vmatpush3.bf16.msra.mxu0 %v11711_v62  ;;  %v11727_v50 = vld [vmem:[#allocation11 + $0x198] sm:$0xff]  }
 0x2a6   : > { %v5016_v14 = vor.u32 %v5014_v29, %v5013_v52  ;;  %v5018_v15 = vrot.slane %v5013_v52, 4  ;;  %v4999_v12 = vor.u32 %v4997_v45, %v4996_v37  ;;  %v5001_v28 = vrot.slane %v4996_v37, 4  ;;  %v12938_v40 = vld [vmem:[#allocation4 + $0x14] ss:$0 sps:$4 sm:$0x11]   ;;  %10977 = vmatprep.subr.bf16.mxu0 %v11726_v41 }
 0x2a7   : > { %v5022_v25 = vrot.slane %v5020_v6, 7  ;;  %v10143_v21 = vpack.c.bf16 %v4748_v32, %v4748_v32  ;;  %v5291_v8 = vld [vmem:[#allocation4 + $0x68] sm:$0x1]  ;;  %v5683_v37 = vshrl.u32 %v12952_v27, 16  ;;  %v5685_v6 = vshll.u32 %v12952_v27, 16 }
 0x2a8   : > { %v5017_v26 = vsel %vm12405_vm6, %v5009_v35, %v5016_v14  ;;  %v5278_v23 = vsel %vm12417_vm8, %v5018_v15, %v5277_v46  ;;  %v5000_v62 = vsel %vm12405_vm6, %v4992_v31, %v4999_v12  ;;  %v5271_v0 = vsel %vm12417_vm8, %v5001_v28, %v5270_v10  ;;  %v5284_v46 = vld [vmem:[#allocation4 + $0x5c] sm:$0x1] }
 0x2a9   : > { %5276 = vst [vmem:[#allocation4 + $0x4c] sm:$0xf] %v5017_v26  ;;  %5279 = vst [vmem:[#allocation4 + $0x50] sm:$0x1] %v5278_v23  ;;  %v5025_v35 = vor.u32 %v5023_v61, %v5022_v25  ;;  %v5026_v48 = vrot.slane %v5022_v25, 4  ;;  %v5028_v18 = vshrl.u32 %v10143_v21, 16  ;;  %10978 = vmatpush3.bf16.msra.mxu0 %v11727_v50 }
 0x2aa   : > { %5269 = vst [vmem:[#allocation4 + $0x40] sm:$0xf] %v5000_v62  ;;  %5272 = vst [vmem:[#allocation4 + $0x44] sm:$0x1] %v5271_v0  ;;  %v5031_v19 = vshll.u32 %v10143_v21, 16  ;;  %v5690_v61 = vshll.u32 %v12938_v40, 16 }
 0x2ab   : > { %v11141_v33 = vpop.f32.mrb[144].mxu0  ;;  %v11631_v12 = vld [vmem:[#allocation4 + $0x18] sm:$0xff]   ;;  %v5294_v40 = vld [vmem:[#allocation4 + $0x6c] sm:$0xf]  ;;  %v5687_v27 = vrot.slane %v5685_v6, 1 }
 0x2ac   : > { %v4672_v58 = vpop.f32.mrb[145].mxu0  ;;  %v4681_v24 = vadd.f32 %v11141_v33, %v12821_v22  ;;  %v5039_v22 = vrot.slane %v5037_v34, 7  ;;  %v5281_v33 = vsel %vm12411_vm7, %v5025_v35, %v5280_v20  ;;  %v11632_v20 = vld [vmem:[#allocation4 + $0x20] ss:$0 sps:$4 sm:$0x11]  }
 0x2ad   : > { %v4673_v7 = vadd.f32 %v4672_v58, %v12815_v63  ;;  %v11142_v47 = vpop.f32.mrb[146].mxu0  ;;  %v10145_v63 = vpack.c.bf16 %v4750_v59, %v4750_v59  ;;  %5282 = vst [vmem:[#allocation4 + $0x54] sm:$0xf] %v5281_v33  ;;  %v5030_v58 = vrot.slane %v5028_v18, 7  ;;  %v5301_v21 = vld [vmem:[#allocation4 + $0x78] sm:$0xf] }
 0x2ae   : > { %v12936_v9 = vpop.f32.mrb[147].mxu0  ;;  %v5042_v11 = vor.u32 %v5040_v17, %v5039_v22  ;;  %v5043_v36 = vrot.slane %v5039_v22, 4  ;;  %v4753_v51 = vmax.f32 %v4681_v24, 0.0  ;;  %v4684_v52 = vadd.f32 %v11142_v47, %v12823_v39  ;;  %v11633_v26 = vld [vmem:[#allocation4 + $0xc] sm:$0xfe]  }
 0x2af   : > { %v5045_v38 = vshrl.u32 %v10145_v63, 16  ;;  %v5048_v29 = vshll.u32 %v10145_v63, 16  ;;  %v4751_v54 = vmax.f32 %v4673_v7, 0.0  ;;  %v5033_v14 = vor.u32 %v5031_v19, %v5030_v58 }
 0x2b0   : > { %v5288_v31 = vsel %vm12411_vm7, %v5042_v11, %v5287_v16  ;;  %v10148_v34 = vpack.c.bf16 %v4753_v51, %v4753_v51  ;;  %v5035_v15 = vrot.slane %v5030_v58, 4  ;;  %v4754_v0 = vmax.f32 %v4684_v52, 0.0  ;;  %v11634_v11 = vld [vmem:[#allocation4 + $0x14] ss:$0 sps:$4 sm:$0x11]  }
 0x2b1   : > { %5289 = vst [vmem:[#allocation4 + $0x60] sm:$0xf] %v5288_v31  ;;  %v5047_v32 = vrot.slane %v5045_v38, 7  ;;  %v10146_v17 = vpack.c.bf16 %v4751_v54, %v4751_v54  ;;  %v5034_v25 = vsel %vm12405_vm6, %v5026_v48, %v5033_v14  ;;  %v4676_v35 = vadd.f32 %v12936_v9, %v12817_v57  ;;  %v13001_v14 = vld [vmem:[#allocation4 + $0x24] sm:$0xff]  }
 0x2b2   : > { %v5071_v28 = vshrl.u32 %v10148_v34, 16  ;;  %v5074_v16 = vshll.u32 %v10148_v34, 16  ;;  %v5285_v63 = vsel %vm12417_vm8, %v5035_v15, %v5284_v46  ;;  %5283 = vst [vmem:[#allocation4 + $0x58] sm:$0xf] %v5034_v25  ;;  %v5695_v48 = vshrl.u32 %v11631_v12, 16 }
 0x2b3   : > { %v12954_v45 = vpop.f32.mrb[148].mxu0  ;;  %v5050_v7 = vor.u32 %v5048_v29, %v5047_v32  ;;  %v5052_v41 = vrot.slane %v5047_v32, 4  ;;  %v5054_v39 = vshrl.u32 %v10146_v17, 16  ;;  %v5057_v47 = vshll.u32 %v10146_v17, 16  ;;  %5286 = vst [vmem:[#allocation4 + $0x5c] sm:$0x1] %v5285_v63 }
 0x2b4   : > { %v12960_v59 = vpop.f32.mrb[149].mxu0  ;;  %v12978_v23 = vrot.slane %v5071_v28, 7  ;;  %v5697_v38 = vshll.u32 %v11631_v12, 16  ;;  %v10149_v46 = vpack.c.bf16 %v4754_v0, %v4754_v0  ;;  %v5688_v51 = vor.u32 %v5687_v27, %v5683_v37  ;;  %v5298_v25 = vld [vmem:[#allocation4 + $0x74] sm:$0x1] }
 0x2b5   : > { %v12964_v10 = vpop.f32.mrb[150].mxu0  ;;  %v5051_v50 = vsel %vm12405_vm6, %v5043_v36, %v5050_v7  ;;  %v5292_v22 = vsel %vm12417_vm8, %v5052_v41, %v5291_v8  ;;  %v12980_v62 = vrot.slane %v5054_v39, 7  ;;  %v5692_v36 = vrot.slane %v5690_v61, 1  ;;  %v11630_v41 = vld [vmem:[#allocation4 + $0xc] sm:$0xff]  }
 0x2b6   : > { %v12968_v24 = vpop.f32.mrb[151].mxu0  ;;  %5290 = vst [vmem:[#allocation4 + $0x64] sm:$0xf] %v5051_v50  ;;  %5293 = vst [vmem:[#allocation4 + $0x68] sm:$0x1] %v5292_v22  ;;  %v5076_v18 = vor.u32 %v5074_v16, %v12978_v23  ;;  %v5077_v19 = vrot.slane %v12978_v23, 4  ;;  %v4697_v16 = vadd.f32 %v12954_v45, %v12833_v2  ;;  %v4689_v50 = vadd.f32 %v12960_v59, %v12827_v1 }
 0x2b7   : > { %v5059_v31 = vor.u32 %v5057_v47, %v12980_v62  ;;  %v5060_v33 = vrot.slane %v12980_v62, 4  ;;  %v4752_v54 = vmax.f32 %v4676_v35, 0.0  ;;  %v5699_v32 = vrot.slane %v5697_v38, 1  ;;  %v5305_v22 = vld [vmem:[#allocation4 + $0x80] sm:$0x1] }
 0x2b8   : > { %v5302_v57 = vsel %vm12411_vm7, %v5076_v18, %v5301_v21  ;;  %v5702_v52 = vshll.u32 %v11632_v20, 16  ;;  %v6073_v34 = vrot.slane %v11633_v26, 1  ;;  %v5079_v6 = vshrl.u32 %v10149_v46, 16 }
 0x2b9   : > { %v5295_v9 = vsel %vm12411_vm7, %v5059_v31, %v5294_v40  ;;  %5303 = vst [vmem:[#allocation4 + $0x78] sm:$0xf] %v5302_v57  ;;  %v5082_v61 = vshll.u32 %v10149_v46, 16  ;;  %v5693_v37 = vsel %vm1120_vm3, %v5688_v51, %v5692_v36  ;;  %v10147_v7 = vpack.c.bf16 %v4752_v54, %v4752_v54  ;;  %v11635_v40 = vld [vmem:[#allocation4 + $0x24] sm:$0xff]   ;;  %v11663_v43 = vld [vmem:[#allocation4 + $0x54] sm:$0xff]  }
 0x2ba   : > { %5296 = vst [vmem:[#allocation4 + $0x6c] sm:$0xf] %v5295_v9  ;;  %8518 = vmatprep.mubr.bf16.mxu1 %v5693_v37  ;;  %v5700_v15 = vor.u32 %v5699_v32, %v5695_v48  ;;  %v5704_v12 = vrot.slane %v5702_v52, 1  ;;  %v6074_v28 = vrot.slane %v11634_v11, 1  ;;  %v5081_v39 = vrot.slane %v5079_v6, 7 }
 0x2bb   : > { %v12984_v29 = vpop.f32.mrb[152].mxu0  ;;  %v5062_v47 = vshrl.u32 %v10147_v7, 16  ;;  %v5065_v20 = vshll.u32 %v10147_v7, 16  ;;  %8519 = vmatmul.mubr.bf16.gmra.mrb[132].mxu1 %v11630_v41  ;;  %v4757_v26 = vmax.f32 %v4697_v16, 0.0  ;;  %v4700_v23 = vadd.f32 %v12964_v10, %v12835_v30  ;;  %v5315_v52 = vld [vmem:[#allocation4 + $0x90] sm:$0xf] }
 0x2bc   : > { %v12990_v8 = vpop.f32.mrb[153].mxu0  ;;  %v5705_v63 = vsel %vm1120_vm3, %v5700_v15, %v5704_v12  ;;  %v6075_v21 = vsel %vm1521_vm9, %v6073_v34, %v6074_v28  ;;  %v5084_v0 = vor.u32 %v5082_v61, %v5081_v39  ;;  %v5086_v2 = vrot.slane %v5081_v39, 4  ;;  %v11639_v11 = vld [vmem:[#allocation4 + $0x2c] ss:$0 sps:$4 sm:$0x11]  }
 0x2bd   : > { %v12992_v58 = vpop.f32.mrb[154].mxu0  ;;  %v5064_v45 = vrot.slane %v5062_v47, 7  ;;  %8526 = vmatprep.mubr.bf16.mxu1 %v5705_v63  ;;  %8680 = vmatmul.mubr.bf16.gmra.mrb[164].mxu0 %v6075_v21  ;;  %v4755_v27 = vmax.f32 %v4689_v50, 0.0  ;;  %v10152_v1 = vpack.c.bf16 %v4757_v26, %v4757_v26  ;;  %v4758_v59 = vmax.f32 %v4700_v23, 0.0  ;;  %v11640_v61 = vld [vmem:[#allocation4 + $0x18] sm:$0xfe]  }
 0x2be   : > { %v12998_v17 = vpop.f32.mrb[155].mxu0  ;;  %8687 = vmatprep.mubr.bf16.mxu0 %v11635_v40  ;;  %v4692_v35 = vadd.f32 %v12968_v24, %v12829_v5  ;;  %v5707_v48 = vshrl.u32 %v13001_v14, 16  ;;  %v5085_v30 = vsel %vm12405_vm6, %v5077_v19, %v5084_v0  ;;  %v5306_v10 = vsel %vm12417_vm8, %v5086_v2, %v5305_v22  ;;  %v11636_v24 = vld [vmem:[#allocation4 + $0x18] sm:$0xff]   ;;  %v5308_v12 = vld [vmem:[#allocation4 + $0x84] sm:$0xf] }
 0x2bf   : > { %v5067_v18 = vor.u32 %v5065_v20, %v5064_v45  ;;  %v5069_v31 = vrot.slane %v5064_v45, 4  ;;  %5304 = vst [vmem:[#allocation4 + $0x7c] sm:$0xf] %v5085_v30  ;;  %5307 = vst [vmem:[#allocation4 + $0x80] sm:$0x1] %v5306_v10  ;;  %v5105_v51 = vshrl.u32 %v10152_v1, 16  ;;  %v10150_v32 = vpack.c.bf16 %v4755_v27, %v4755_v27 }
 0x2c0   : > { %v5108_v54 = vshll.u32 %v10152_v1, 16  ;;  %v10153_v5 = vpack.c.bf16 %v4758_v59, %v4758_v59  ;;  %v4756_v34 = vmax.f32 %v4692_v35, 0.0  ;;  %v5709_v6 = vshll.u32 %v13001_v14, 16  ;;  %v11641_v39 = vld [vmem:[#allocation4 + $0x20] ss:$0 sps:$4 sm:$0x11]  }
 0x2c1   : > { %v5068_v19 = vsel %vm12405_vm6, %v5060_v33, %v5067_v18  ;;  %v5299_v9 = vsel %vm12417_vm8, %v5069_v31, %v5298_v25  ;;  %v5107_v37 = vrot.slane %v5105_v51, 7  ;;  %v5088_v7 = vshrl.u32 %v10150_v32, 16  ;;  %v5319_v2 = vld [vmem:[#allocation4 + $0x98] sm:$0x1]  ;;  %v5312_v45 = vld [vmem:[#allocation4 + $0x8c] sm:$0x1] }
 0x2c2   : > { %5297 = vst [vmem:[#allocation4 + $0x70] sm:$0xf] %v5068_v19  ;;  %5300 = vst [vmem:[#allocation4 + $0x74] sm:$0x1] %v5299_v9  ;;  %v5091_v41 = vshll.u32 %v10150_v32, 16  ;;  %v5113_v15 = vshrl.u32 %v10153_v5, 16  ;;  %v10151_v62 = vpack.c.bf16 %v4756_v34, %v4756_v34  ;;  %v4705_v19 = vadd.f32 %v12990_v8, %v12839_v56 }
 0x2c3   : > { %v13011_v36 = vpop.f32.mrb[156].mxu0  ;;  %v5116_v28 = vshll.u32 %v10153_v5, 16  ;;  %8527 = vmatmul.mubr.bf16.gmra.mrb[136].mxu1 %v11636_v24  ;;  %v5711_v16 = vrot.slane %v5709_v6, 1  ;;  %v5714_v33 = vshll.u32 %v11639_v11, 16  ;;  %v5110_v47 = vor.u32 %v5108_v54, %v5107_v37  ;;  %v11645_v35 = vld [vmem:[#allocation4 + $0x30] sm:$0xff]   ;;  %v11644_v9 = vld [vmem:[#allocation4 + $0x24] sm:$0xff]  }
 0x2c4   : > { %v13016_v38 = vpop.f32.mrb[157].mxu0  ;;  %v5111_v20 = vrot.slane %v5107_v37, 4  ;;  %v5090_v50 = vrot.slane %v5088_v7, 7  ;;  %v5115_v22 = vrot.slane %v5113_v15, 7  ;;  %v5096_v25 = vshrl.u32 %v10151_v62, 16  ;;  %v11643_v34 = vld [vmem:[#allocation4 + $0x30] sm:$0xff]  }
 0x2c5   : > { %v13022_v46 = vpop.f32.mrb[158].mxu0  ;;  %v5099_v14 = vshll.u32 %v10151_v62, 16  ;;  %v5712_v63 = vor.u32 %v5711_v16, %v5707_v48  ;;  %v5716_v21 = vrot.slane %v5714_v33, 1  ;;  %v5316_v40 = vsel %vm12411_vm7, %v5110_v47, %v5315_v52  ;;  %v11646_v30 = vld [vmem:[#allocation4 + $0x38] ss:$0 sps:$4 sm:$0x11]  }
 0x2c6   : > { %v13024_v57 = vpop.f32.mrb[159].mxu0  ;;  %v5093_v26 = vor.u32 %v5091_v41, %v5090_v50  ;;  %v5094_v23 = vrot.slane %v5090_v50, 4  ;;  %v5118_v0 = vor.u32 %v5116_v28, %v5115_v22  ;;  %5317 = vst [vmem:[#allocation4 + $0x90] sm:$0xf] %v5316_v40  ;;  %v5120_v27 = vrot.slane %v5115_v22, 4 }
 0x2c7   : > { %v5098_v11 = vrot.slane %v5096_v25, 7  ;;  %v5717_v1 = vsel %vm1120_vm3, %v5712_v63, %v5716_v21  ;;  %v6076_v59 = vrot.slane %v11640_v61, 1  ;;  %v11647_v10 = vld [vmem:[#allocation4 + $0x24] sm:$0xfe]   ;;  %v6077_v51 = vrot.slane %v11641_v39, 1 }
 0x2c8   : > { %v11648_v18 = vld [vmem:[#allocation4 + $0x2c] ss:$0 sps:$4 sm:$0x11]   ;;  %v5309_v48 = vsel %vm12411_vm7, %v5093_v26, %v5308_v12  ;;  %v5119_v31 = vsel %vm12405_vm6, %v5111_v20, %v5118_v0  ;;  %8534 = vmatprep.mubr.bf16.mxu1 %v5717_v1  ;;  %v4713_v54 = vadd.f32 %v12984_v29, %v12845_v13  ;;  %v5320_v32 = vsel %vm12417_vm8, %v5120_v27, %v5319_v2  ;;  %v5329_v39 = vld [vmem:[#allocation4 + $0xa8] sm:$0xf] }
 0x2c9   : > { %5310 = vst [vmem:[#allocation4 + $0x84] sm:$0xf] %v5309_v48  ;;  %5318 = vst [vmem:[#allocation4 + $0x94] sm:$0xf] %v5119_v31  ;;  %v5101_v5 = vor.u32 %v5099_v14, %v5098_v11  ;;  %v5103_v24 = vrot.slane %v5098_v11, 4  ;;  %v6078_v52 = vsel %vm1521_vm9, %v6076_v59, %v6077_v51  ;;  %v4716_v61 = vadd.f32 %v12992_v58, %v12847_v42 }
 0x2ca   : > { %5321 = vst [vmem:[#allocation4 + $0x98] sm:$0x1] %v5320_v32  ;;  %v4761_v6 = vmax.f32 %v4713_v54, 0.0  ;;  %v4708_v13 = vadd.f32 %v12998_v17, %v12841_v3  ;;  %8688 = vmatmul.mubr.bf16.gmra.mrb[168].mxu0 %v6078_v52  ;;  %v4759_v56 = vmax.f32 %v4705_v19, 0.0  ;;  %v5719_v8 = vshrl.u32 %v11645_v35, 16  ;;  %v11650_v54 = vld [vmem:[#allocation4 + $0x30] sm:$0xff]  }
 0x2cb   : > { %v5102_v29 = vsel %vm12405_vm6, %v5094_v23, %v5101_v5  ;;  %v5313_v37 = vsel %vm12417_vm8, %v5103_v24, %v5312_v45  ;;  %8535 = vmatmul.mubr.bf16.gmra.mrb[140].mxu1 %v11644_v9  ;;  %8695 = vmatprep.mubr.bf16.mxu0 %v11643_v34  ;;  %v4762_v41 = vmax.f32 %v4716_v61, 0.0  ;;  %v5721_v42 = vshll.u32 %v11645_v35, 16  ;;  %v5322_v26 = vld [vmem:[#allocation4 + $0x9c] sm:$0xf]  ;;  %v5333_v23 = vld [vmem:[#allocation4 + $0xb0] sm:$0x1] }
 0x2cc   : > { %5311 = vst [vmem:[#allocation4 + $0x88] sm:$0xf] %v5102_v29  ;;  %5314 = vst [vmem:[#allocation4 + $0x8c] sm:$0x1] %v5313_v37  ;;  %v10156_v7 = vpack.c.bf16 %v4761_v6, %v4761_v6  ;;  %v4760_v15 = vmax.f32 %v4708_v13, 0.0  ;;  %v10154_v58 = vpack.c.bf16 %v4759_v56, %v4759_v56  ;;  %v5726_v12 = vshll.u32 %v11646_v30, 16 }
 0x2cd   : > { %v6079_v3 = vrot.slane %v11647_v10, 1  ;;  %v6080_v17 = vrot.slane %v11648_v18, 1  ;;  %v10157_v16 = vpack.c.bf16 %v4762_v41, %v4762_v41  ;;  %v5723_v50 = vrot.slane %v5721_v42, 1  ;;  %v5326_v35 = vld [vmem:[#allocation4 + $0xa4] sm:$0x1]  ;;  %v11649_v30 = vld [vmem:[#allocation4 + $0x3c] sm:$0xff]  }
 0x2ce   : > { %v5139_v28 = vshrl.u32 %v10156_v7, 16  ;;  %v5142_v62 = vshll.u32 %v10156_v7, 16  ;;  %v10155_v33 = vpack.c.bf16 %v4760_v15, %v4760_v15  ;;  %v5122_v47 = vshrl.u32 %v10154_v58, 16  ;;  %v11653_v10 = vld [vmem:[#allocation4 + $0x44] ss:$0 sps:$4 sm:$0x11]  }
 0x2cf   : > { %v5125_v20 = vshll.u32 %v10154_v58, 16  ;;  %v5728_v22 = vrot.slane %v5726_v12, 1  ;;  %v5147_v14 = vshrl.u32 %v10157_v16, 16  ;;  %v5150_v63 = vshll.u32 %v10157_v16, 16  ;;  %v11652_v9 = vld [vmem:[#allocation4 + $0x3c] sm:$0xff]  }
 0x2d0   : > { %v5141_v25 = vrot.slane %v5139_v28, 7  ;;  %v5130_v21 = vshrl.u32 %v10155_v33, 16  ;;  %v5124_v40 = vrot.slane %v5122_v47, 7  ;;  %v5133_v0 = vshll.u32 %v10155_v33, 16 }
 0x2d1   : > { %v5724_v2 = vor.u32 %v5723_v50, %v5719_v8  ;;  %v6081_v45 = vsel %vm1521_vm9, %v6079_v3, %v6080_v17  ;;  %v5149_v1 = vrot.slane %v5147_v14, 7  ;;  %v4729_v51 = vadd.f32 %v13011_v36, %v12864_v53  ;;  %v11654_v53 = vld [vmem:[#allocation4 + $0x30] sm:$0xfe]   ;;  %v11655_v7 = vld [vmem:[#allocation4 + $0x38] ss:$0 sps:$4 sm:$0x11]  }
 0x2d2   : > { %v5144_v27 = vor.u32 %v5142_v62, %v5141_v25  ;;  %v5145_v11 = vrot.slane %v5141_v25, 4  ;;  %v5132_v59 = vrot.slane %v5130_v21, 7  ;;  %v5127_v18 = vor.u32 %v5125_v20, %v5124_v40  ;;  %8696 = vmatmul.mubr.bf16.gmra.mrb[172].mxu0 %v6081_v45  ;;  %v5343_v17 = vld [vmem:[#allocation4 + $0xc0] sm:$0xf]  ;;  %v11657_v21 = vld [vmem:[#allocation4 + $0x48] sm:$0xff]  }
 0x2d3   : > { %v5128_v48 = vrot.slane %v5124_v40, 4  ;;  %v5729_v31 = vsel %vm1120_vm3, %v5724_v2, %v5728_v22  ;;  %v5152_v5 = vor.u32 %v5150_v63, %v5149_v1  ;;  %v5154_v24 = vrot.slane %v5149_v1, 4  ;;  %8703 = vmatprep.mubr.bf16.mxu0 %v11649_v30  ;;  %v11659_v40 = vld [vmem:[#allocation4 + $0x48] sm:$0xff]   ;;  %v11662_v1 = vld [vmem:[#allocation4 + $0x44] ss:$0 sps:$4 sm:$0x11]  }
 0x2d4   : > { %v5330_v32 = vsel %vm12411_vm7, %v5144_v27, %v5329_v39  ;;  %v5135_v19 = vor.u32 %v5133_v0, %v5132_v59  ;;  %8542 = vmatprep.mubr.bf16.mxu1 %v5729_v31  ;;  %v5323_v52 = vsel %vm12411_vm7, %v5127_v18, %v5322_v26  ;;  %v5137_v34 = vrot.slane %v5132_v59, 4  ;;  %v11661_v26 = vld [vmem:[#allocation4 + $0x3c] sm:$0xfe]   ;;  %v5347_v45 = vld [vmem:[#allocation4 + $0xc8] sm:$0x1] }
 0x2d5   : > { %5331 = vst [vmem:[#allocation4 + $0xa8] sm:$0xf] %v5330_v32  ;;  %v4765_v6 = vmax.f32 %v4729_v51, 0.0  ;;  %v4721_v61 = vadd.f32 %v13016_v38, %v12851_v44  ;;  %8543 = vmatmul.mubr.bf16.gmra.mrb[144].mxu1 %v11650_v54  ;;  %5324 = vst [vmem:[#allocation4 + $0x9c] sm:$0xf] %v5323_v52  ;;  %v5153_v36 = vsel %vm12405_vm6, %v5145_v11, %v5152_v5  ;;  %v5731_v15 = vshrl.u32 %v11652_v9, 16 }
 0x2d6   : > { %v5334_v13 = vsel %vm12417_vm8, %v5154_v24, %v5333_v23  ;;  %v5136_v29 = vsel %vm12405_vm6, %v5128_v48, %v5135_v19  ;;  %v4732_v37 = vadd.f32 %v13022_v46, %v12867_v4  ;;  %5332 = vst [vmem:[#allocation4 + $0xac] sm:$0xf] %v5153_v36  ;;  %v5327_v44 = vsel %vm12417_vm8, %v5137_v34, %v5326_v35  ;;  %v11658_v11 = vld [vmem:[#allocation4 + $0x3c] sm:$0xff]   ;;  %v11666_v52 = vld [vmem:[#allocation4 + $0x54] sm:$0xff]  }
 0x2d7   : > { %5335 = vst [vmem:[#allocation4 + $0xb0] sm:$0x1] %v5334_v13  ;;  %5325 = vst [vmem:[#allocation4 + $0xa0] sm:$0xf] %v5136_v29  ;;  %v10160_v38 = vpack.c.bf16 %v4765_v6, %v4765_v6  ;;  %v4763_v56 = vmax.f32 %v4721_v61, 0.0  ;;  %v4724_v8 = vadd.f32 %v13024_v57, %v12854_v60  ;;  %v5733_v42 = vshll.u32 %v11652_v9, 16 }
 0x2d8   : > { %5328 = vst [vmem:[#allocation4 + $0xa4] sm:$0x1] %v5327_v44  ;;  %v4766_v41 = vmax.f32 %v4732_v37, 0.0  ;;  %v5738_v58 = vshll.u32 %v11653_v10, 16  ;;  %v6082_v33 = vrot.slane %v11654_v53, 1  ;;  %v6083_v63 = vrot.slane %v11655_v7, 1 }
 0x2d9   : > { %v5173_v12 = vshrl.u32 %v10160_v38, 16  ;;  %v5176_v3 = vshll.u32 %v10160_v38, 16  ;;  %v10158_v4 = vpack.c.bf16 %v4763_v56, %v4763_v56  ;;  %v4764_v46 = vmax.f32 %v4724_v8, 0.0  ;;  %v11660_v60 = vld [vmem:[#allocation4 + $0x50] ss:$0 sps:$4 sm:$0x11]  }
 0x2da   : > { %v10161_v28 = vpack.c.bf16 %v4766_v41, %v4766_v41  ;;  %v5735_v62 = vrot.slane %v5733_v42, 1  ;;  %v5740_v16 = vrot.slane %v5738_v58, 1  ;;  %v5336_v57 = vld [vmem:[#allocation4 + $0xb4] sm:$0xf]  ;;  %v5340_v30 = vld [vmem:[#allocation4 + $0xbc] sm:$0x1]  ;;  %v6084_v18 = vsel %vm1521_vm9, %v6082_v33, %v6083_v63 }
 0x2db   : > { %v5175_v39 = vrot.slane %v5173_v12, 7  ;;  %v5156_v47 = vshrl.u32 %v10158_v4, 16  ;;  %v5159_v20 = vshll.u32 %v10158_v4, 16  ;;  %v10159_v50 = vpack.c.bf16 %v4764_v46, %v4764_v46  ;;  %8704 = vmatmul.mubr.bf16.gmra.mrb[176].mxu0 %v6084_v18  ;;  %v11667_v32 = vld [vmem:[#allocation4 + $0x5c] ss:$0 sps:$4 sm:$0x11]  }
 0x2dc   : > { %v5181_v22 = vshrl.u32 %v10161_v28, 16  ;;  %v5184_v25 = vshll.u32 %v10161_v28, 16  ;;  %v5736_v14 = vor.u32 %v5735_v62, %v5731_v15  ;;  %8711 = vmatprep.mubr.bf16.mxu0 %v11657_v21  ;;  %v5743_v19 = vshrl.u32 %v11659_v40, 16  ;;  %v11673_v44 = vld [vmem:[#allocation4 + $0x60] sm:$0xff]   ;;  %v11668_v8 = vld [vmem:[#allocation4 + $0x48] sm:$0xfe]  }
 0x2dd   : > { %v5178_v23 = vor.u32 %v5176_v3, %v5175_v39  ;;  %v5179_v0 = vrot.slane %v5175_v39, 4  ;;  %v5158_v2 = vrot.slane %v5156_v47, 7  ;;  %v5164_v27 = vshrl.u32 %v10159_v50, 16  ;;  %v11669_v58 = vld [vmem:[#allocation4 + $0x50] ss:$0 sps:$4 sm:$0x11]  }
 0x2de   : > { %v5183_v59 = vrot.slane %v5181_v22, 7  ;;  %v5167_v35 = vshll.u32 %v10159_v50, 16  ;;  %v5741_v10 = vsel %vm1120_vm3, %v5736_v14, %v5740_v16  ;;  %v5745_v9 = vshll.u32 %v11659_v40, 16  ;;  %v11674_v3 = vld [vmem:[#allocation4 + $0x68] ss:$0 sps:$4 sm:$0x11]  }
 0x2df   : > { %v5344_v48 = vsel %vm12411_vm7, %v5178_v23, %v5343_v17  ;;  %v5161_v31 = vor.u32 %v5159_v20, %v5158_v2  ;;  %v5162_v51 = vrot.slane %v5158_v2, 4  ;;  %v5166_v54 = vrot.slane %v5164_v27, 7  ;;  %8550 = vmatprep.mubr.bf16.mxu1 %v5741_v10  ;;  %v11664_v17 = vld [vmem:[#allocation4 + $0x48] sm:$0xff]   ;;  %v11729_v62 = vld [vmem:[#allocation11 + $0x178] sm:$0xff]   ;;  %v11671_v21 = vld [vmem:[#allocation4 + $0x60] sm:$0xff]  }
 0x2e0   : > { %5345 = vst [vmem:[#allocation4 + $0xc0] sm:$0xf] %v5344_v48  ;;  %v5186_v5 = vor.u32 %v5184_v25, %v5183_v59  ;;  %v5188_v24 = vrot.slane %v5183_v59, 4  ;;  %8551 = vmatmul.mubr.bf16.gmra.mrb[148].mxu1 %v11658_v11  ;;  %v5750_v53 = vshll.u32 %v11660_v60, 16  ;;  %v5747_v29 = vrot.slane %v5745_v9, 1  ;;  %v11682_v47 = vld [vmem:[#allocation4 + $0x6c] sm:$0xff]   ;;  %10873 = vmatprep.subr.bf16.mxu1 %v11729_v62 }
 0x2e1   : > { %v5337_v34 = vsel %vm12411_vm7, %v5161_v31, %v5336_v57  ;;  %v5169_v6 = vor.u32 %v5167_v35, %v5166_v54  ;;  %v5171_v61 = vrot.slane %v5166_v54, 4  ;;  %v6085_v37 = vrot.slane %v11661_v26, 1  ;;  %v11734_v60 = vld [vmem:[#allocation11 + $0x138] sm:$0xff]   ;;  %v11676_v63 = vld [vmem:[#allocation4 + $0x5c] ss:$0 sps:$4 sm:$0x11]  }
 0x2e2   : > { %5338 = vst [vmem:[#allocation4 + $0xb4] sm:$0xf] %v5337_v34  ;;  %v5187_v36 = vsel %vm12405_vm6, %v5179_v0, %v5186_v5  ;;  %v5348_v13 = vsel %vm12417_vm8, %v5188_v24, %v5347_v45  ;;  %v6086_v56 = vrot.slane %v11662_v1, 1  ;;  %v5748_v7 = vor.u32 %v5747_v29, %v5743_v19  ;;  %v11675_v14 = vld [vmem:[#allocation4 + $0x54] sm:$0xfe]   ;;  %10874 = vmatpush3.bf16.msra.mxu1 %v11734_v60  ;;  %v11677_v54 = vld [vmem:[#allocation4 + $0x6c] sm:$0xff]  }
 0x2e3   : > { %5346 = vst [vmem:[#allocation4 + $0xc4] sm:$0xf] %v5187_v36  ;;  %5349 = vst [vmem:[#allocation4 + $0xc8] sm:$0x1] %v5348_v13  ;;  %v5170_v38 = vsel %vm12405_vm6, %v5162_v51, %v5169_v6  ;;  %v5341_v49 = vsel %vm12417_vm8, %v5171_v61, %v5340_v30  ;;  %v5752_v41 = vrot.slane %v5750_v53, 1  ;;  %v5757_v15 = vshll.u32 %v11666_v52, 16 }
 0x2e4   : > { %5339 = vst [vmem:[#allocation4 + $0xb8] sm:$0xf] %v5170_v38  ;;  %5342 = vst [vmem:[#allocation4 + $0xbc] sm:$0x1] %v5341_v49  ;;  %v5762_v42 = vshll.u32 %v11667_v32, 16  ;;  %v5755_v12 = vshrl.u32 %v11666_v52, 16  ;;  %v6087_v46 = vsel %vm1521_vm9, %v6085_v37, %v6086_v56 }
 0x2e5   : > { %v5753_v4 = vsel %vm1120_vm3, %v5748_v7, %v5752_v41  ;;  %v5759_v28 = vrot.slane %v5757_v15, 1  ;;  %v5769_v55 = vshll.u32 %v11673_v44, 16  ;;  %8712 = vmatmul.mubr.bf16.gmra.mrb[180].mxu0 %v6087_v46  ;;  %v6088_v20 = vrot.slane %v11668_v8, 1  ;;  %v11683_v26 = vld [vmem:[#allocation4 + $0x74] ss:$0 sps:$4 sm:$0x11]  }
 0x2e6   : > { %8558 = vmatprep.mubr.bf16.mxu1 %v5753_v4  ;;  %8719 = vmatprep.mubr.bf16.mxu0 %v11663_v43  ;;  %v5764_v33 = vrot.slane %v5762_v42, 1  ;;  %v5774_v50 = vshll.u32 %v11674_v3, 16  ;;  %v6089_v22 = vrot.slane %v11669_v58, 1  ;;  %v5767_v25 = vshrl.u32 %v11673_v44, 16  ;;  %v11672_v0 = vld [vmem:[#allocation4 + $0x54] sm:$0xff]   ;;  %v11680_v24 = vld [vmem:[#allocation4 + $0x60] sm:$0xff]  }
 0x2e7   : > { %v5760_v16 = vor.u32 %v5759_v28, %v5755_v12  ;;  %v5771_v39 = vrot.slane %v5769_v55, 1  ;;  %v5781_v23 = vshll.u32 %v11682_v47, 16  ;;  %v11689_v27 = vld [vmem:[#allocation4 + $0x78] sm:$0xff]   ;;  %v6091_v59 = vrot.slane %v11675_v14, 1  ;;  %v11684_v51 = vld [vmem:[#allocation4 + $0x60] sm:$0xfe]  }
 0x2e8   : > { %8559 = vmatmul.mubr.bf16.gmra.mrb[152].mxu1 %v11664_v17  ;;  %v5776_v2 = vrot.slane %v5774_v50, 1  ;;  %v6090_v45 = vsel %vm1521_vm9, %v6088_v20, %v6089_v22  ;;  %v6092_v35 = vrot.slane %v11676_v63, 1  ;;  %v5779_v30 = vshrl.u32 %v11682_v47, 16  ;;  %v11685_v18 = vld [vmem:[#allocation4 + $0x68] ss:$0 sps:$4 sm:$0x11]  }
 0x2e9   : > { %v5765_v57 = vsel %vm1120_vm3, %v5760_v16, %v5764_v33  ;;  %v5772_v40 = vor.u32 %v5771_v39, %v5767_v25  ;;  %v5783_v1 = vrot.slane %v5781_v23, 1  ;;  %v5786_v10 = vshll.u32 %v11683_v26, 16  ;;  %v11690_v32 = vld [vmem:[#allocation4 + $0x80] ss:$0 sps:$4 sm:$0x11]   ;;  %v11698_v52 = vld [vmem:[#allocation4 + $0x84] sm:$0xff]  }
 0x2ea   : > { %8566 = vmatprep.mubr.bf16.mxu1 %v5765_v57  ;;  %v5793_v48 = vshll.u32 %v11689_v27, 16  ;;  %v6093_v5 = vsel %vm1521_vm9, %v6091_v59, %v6092_v35  ;;  %v6094_v6 = vrot.slane %v11684_v51, 1  ;;  %v6095_v61 = vrot.slane %v11685_v18, 1  ;;  %v11691_v37 = vld [vmem:[#allocation4 + $0x6c] sm:$0xfe]   ;;  %v11687_v38 = vld [vmem:[#allocation4 + $0x78] sm:$0xff]  }
 0x2eb   : > { %v5777_v11 = vsel %vm1120_vm3, %v5772_v40, %v5776_v2  ;;  %v5784_v31 = vor.u32 %v5783_v1, %v5779_v30  ;;  %v5788_v19 = vrot.slane %v5786_v10, 1  ;;  %v5791_v53 = vshrl.u32 %v11689_v27, 16  ;;  %v11692_v44 = vld [vmem:[#allocation4 + $0x74] ss:$0 sps:$4 sm:$0x11]   ;;  %v11688_v8 = vld [vmem:[#allocation4 + $0x6c] sm:$0xff]  }
 0x2ec   : > { %v5795_v9 = vrot.slane %v5793_v48, 1  ;;  %v5798_v36 = vshll.u32 %v11690_v32, 16  ;;  %v5805_v13 = vshll.u32 %v11698_v52, 16  ;;  %v11699_v49 = vld [vmem:[#allocation4 + $0x8c] ss:$0 sps:$4 sm:$0x11]   ;;  %v6096_v56 = vsel %vm1521_vm9, %v6094_v6, %v6095_v61 }
 0x2ed   : > { %8720 = vmatmul.mubr.bf16.gmra.mrb[184].mxu0 %v6090_v45  ;;  %v5789_v34 = vsel %vm1120_vm3, %v5784_v31, %v5788_v19  ;;  %v11705_v15 = vld [vmem:[#allocation4 + $0x90] sm:$0xff]   ;;  %v6097_v58 = vrot.slane %v11691_v37, 1  ;;  %v5803_v12 = vshrl.u32 %v11698_v52, 16  ;;  %v6098_v3 = vrot.slane %v11692_v44, 1  ;;  %v11693_v46 = vld [vmem:[#allocation4 + $0x84] sm:$0xff]   ;;  %v11696_v43 = vld [vmem:[#allocation4 + $0x78] sm:$0xff]  }
 0x2ee   : > { %8727 = vmatprep.mubr.bf16.mxu0 %v11671_v21  ;;  %v5796_v29 = vor.u32 %v5795_v9, %v5791_v53  ;;  %v5800_v7 = vrot.slane %v5798_v36, 1  ;;  %v5807_v41 = vrot.slane %v5805_v13, 1  ;;  %v5810_v4 = vshll.u32 %v11699_v49, 16  ;;  %v11701_v28 = vld [vmem:[#allocation4 + $0x80] ss:$0 sps:$4 sm:$0x11]  }
 0x2ef   : > { %v5817_v55 = vshll.u32 %v11705_v15, 16  ;;  %v11700_v62 = vld [vmem:[#allocation4 + $0x78] sm:$0xfe]   ;;  %v6099_v16 = vsel %vm1521_vm9, %v6097_v58, %v6098_v3  ;;  %v11706_v39 = vld [vmem:[#allocation4 + $0x98] ss:$0 sps:$4 sm:$0x11]  }
 0x2f0   : > { %8567 = vmatmul.mubr.bf16.gmra.mrb[156].mxu1 %v11672_v0  ;;  %v5801_v42 = vsel %vm1120_vm3, %v5796_v29, %v5800_v7  ;;  %v5808_v17 = vor.u32 %v5807_v41, %v5803_v12  ;;  %v5812_v33 = vrot.slane %v5810_v4, 1  ;;  %v11714_v50 = vld [vmem:[#allocation4 + $0x9c] sm:$0xff]   ;;  %v6100_v60 = vrot.slane %v11700_v62, 1  ;;  %v11707_v14 = vld [vmem:[#allocation4 + $0x84] sm:$0xfe]   ;;  %v11703_v63 = vld [vmem:[#allocation4 + $0x90] sm:$0xff]  }
 0x2f1   : > { %8574 = vmatprep.mubr.bf16.mxu1 %v5777_v11  ;;  %v5819_v20 = vrot.slane %v5817_v55, 1  ;;  %v6101_v57 = vrot.slane %v11701_v28, 1  ;;  %v5815_v22 = vshrl.u32 %v11705_v15, 16  ;;  %v5822_v25 = vshll.u32 %v11706_v39, 16  ;;  %v11704_v21 = vld [vmem:[#allocation4 + $0x84] sm:$0xff]   ;;  %v11735_v0 = vld [vmem:[#allocation11 + $0x1e0] sm:$0xff]  }
 0x2f2   : > { %v5813_v47 = vsel %vm1120_vm3, %v5808_v17, %v5812_v33  ;;  %v11715_v26 = vld [vmem:[#allocation4 + $0xa4] ss:$0 sps:$4 sm:$0x11]   ;;  %v5829_v23 = vshll.u32 %v11714_v50, 16  ;;  %v11721_v11 = vld [vmem:[#allocation4 + $0xa8] sm:$0xff]   ;;  %10979 = vmatprep.subr.bf16.mxu0 %v11735_v0  ;;  %v5827_v59 = vshrl.u32 %v11714_v50, 16 }
 0x2f3   : > { %v5820_v40 = vor.u32 %v5819_v20, %v5815_v22  ;;  %v6102_v2 = vsel %vm1521_vm9, %v6100_v60, %v6101_v57  ;;  %v5824_v45 = vrot.slane %v5822_v25, 1  ;;  %v11708_v27 = vld [vmem:[#allocation4 + $0x8c] ss:$0 sps:$4 sm:$0x11]   ;;  %v11737_v30 = vld [vmem:[#allocation11 + $0x1a0] sm:$0xff]   ;;  %v11738_v10 = vld [vmem:[#allocation11 + $0x1e8] sm:$0xff]  }
 0x2f4   : > { %v5831_v35 = vrot.slane %v5829_v23, 1  ;;  %v6103_v18 = vrot.slane %v11707_v14, 1  ;;  %v5834_v48 = vshll.u32 %v11715_v26, 16  ;;  %v6104_v31 = vrot.slane %v11708_v27, 1  ;;  %10980 = vmatpush3.bf16.msra.mxu0 %v11737_v30  ;;  %v11739_v51 = vld [vmem:[#allocation11 + $0x1a8] sm:$0xff]   ;;  %v11712_v32 = vld [vmem:[#allocation4 + $0x90] sm:$0xff]  }
 0x2f5   : > { %8728 = vmatmul.mubr.bf16.gmra.mrb[188].mxu0 %v6093_v5  ;;  %v5825_v1 = vsel %vm1120_vm3, %v5820_v40, %v5824_v45  ;;  %10981 = vmatprep.subr.bf16.mxu0 %v11738_v10  ;;  %v5841_v19 = vshll.u32 %v11721_v11, 16  ;;  %v11745_v9 = vld [vmem:[#allocation11 + $0x1f0] sm:$0xff]   ;;  %v11722_v61 = vld [vmem:[#allocation4 + $0xb0] ss:$0 sps:$4 sm:$0x11]   ;;  %v11730_v29 = vld [vmem:[#allocation4 + $0xb4] sm:$0xff]  }
 0x2f6   : > { %8735 = vmatprep.mubr.bf16.mxu0 %v11677_v54  ;;  %v11709_v54 = vld [vmem:[#allocation4 + $0x9c] sm:$0xff]   ;;  %v5832_v5 = vor.u32 %v5831_v35, %v5827_v59  ;;  %v5836_v52 = vrot.slane %v5834_v48, 1  ;;  %v6105_v6 = vsel %vm1521_vm9, %v6103_v18, %v6104_v31  ;;  %v11746_v53 = vld [vmem:[#allocation11 + $0x1b0] sm:$0xff]   ;;  %v11749_v37 = vld [vmem:[#allocation11 + $0x1f8] sm:$0xff]   ;;  %v5839_v49 = vshrl.u32 %v11721_v11, 16 }
 0x2f7   : > { %v5843_v13 = vrot.slane %v5841_v19, 1  ;;  %v13106_v7 = vld [vmem:[#allocation11 + $0x200] sm:$0xff]   ;;  %v11719_v15 = vld [vmem:[#allocation4 + $0xa8] sm:$0xff]   ;;  %v5853_v12 = vshll.u32 %v11730_v29, 16  ;;  %v5851_v33 = vshrl.u32 %v11730_v29, 16  ;;  %v11736_v59 = vld [vmem:[#allocation4 + $0xc0] sm:$0xff]  }
 0x2f8   : > { %8575 = vmatmul.mubr.bf16.gmra.mrb[160].mxu1 %v11680_v24  ;;  %v11716_v24 = vld [vmem:[#allocation4 + $0x90] sm:$0xfe]   ;;  %10982 = vmatpush3.bf16.msra.mxu0 %v11739_v51  ;;  %v5837_v36 = vsel %vm1120_vm3, %v5832_v5, %v5836_v52  ;;  %v11723_v58 = vld [vmem:[#allocation4 + $0x9c] sm:$0xfe]   ;;  %v11728_v20 = vld [vmem:[#allocation4 + $0xa8] sm:$0xff]  }
 0x2f9   : > { %8582 = vmatprep.mubr.bf16.mxu1 %v5789_v34  ;;  %v11717_v34 = vld [vmem:[#allocation4 + $0x98] ss:$0 sps:$4 sm:$0x11]   ;;  %10983 = vmatprep.subr.bf16.mxu0 %v11745_v9  ;;  %v6106_v44 = vrot.slane %v11716_v24, 1  ;;  %v5855_v55 = vrot.slane %v5853_v12, 1  ;;  %v6109_v62 = vrot.slane %v11723_v58, 1 }
 0x2fa   : > { %v13108_v41 = vpop.f32.mrb[128].mxu1  ;;  %v11724_v3 = vld [vmem:[#allocation4 + $0xa4] ss:$0 sps:$4 sm:$0x11]   ;;  %11155 = vmatprep.subr.bf16.mxu1 %v13106_v7  ;;  %v11732_v60 = vld [vmem:[#allocation4 + $0xa8] sm:$0xfe]  }
 0x2fb   : > { %v11731_v4 = vld [vmem:[#allocation4 + $0xbc] ss:$0 sps:$4 sm:$0x11]   ;;  %v5856_v50 = vor.u32 %v5855_v55, %v5851_v33  ;;  %v11725_v57 = vld [vmem:[#allocation4 + $0xb4] sm:$0xff]   ;;  %v11751_v25 = vld [vmem:[#allocation4 + $0xc] sm:$0xff]   ;;  %v6112_v0 = vrot.slane %v11732_v60, 1 }
 0x2fc   : > { %10984 = vmatpush3.bf16.msra.mxu0 %v11746_v53  ;;  %v5858_v39 = vshll.u32 %v11731_v4, 16  ;;  %v11733_v22 = vld [vmem:[#allocation4 + $0xb0] ss:$0 sps:$4 sm:$0x11]   ;;  %v11741_v11 = vld [vmem:[#allocation4 + $0xb4] sm:$0xfe]  }
 0x2fd   : > { %8736 = vmatmul.mubr.bf16.gmra.mrb[192].mxu0 %v6096_v56  ;;  %v5846_v56 = vshll.u32 %v11722_v61, 16  ;;  %10985 = vmatprep.subr.bf16.mxu0 %v11749_v37  ;;  %v11743_v40 = vld [vmem:[#allocation4 + $0xc] sm:$0xfe]   ;;  %v11748_v23 = vld [vmem:[#allocation4 + $0x20] ss:$0 sps:$4 sm:$0x11]  }
 0x2fe   : > { %8743 = vmatprep.mubr.bf16.mxu0 %v11687_v38  ;;  %v6107_v38 = vrot.slane %v11717_v34, 1  ;;  %v6113_v45 = vrot.slane %v11733_v22, 1  ;;  %v11752_v27 = vld [vmem:[#allocation4 + $0x14] ss:$0 sps:$4 sm:$0x11]   ;;  %v6870_v35 = vrot.slane %v11743_v40, 1 }
 0x2ff   : > { %v5848_v17 = vrot.slane %v5846_v56, 1  ;;  %v11740_v10 = vld [vmem:[#allocation4 + $0xb4] sm:$0xff]   ;;  %v11742_v18 = vld [vmem:[#allocation4 + $0xbc] ss:$0 sps:$4 sm:$0x11]   ;;  %v7279_v31 = vshll.u32 %v11748_v23, 16 }
 0x300   : > { %8583 = vmatmul.mubr.bf16.gmra.mrb[164].mxu1 %v11688_v8  ;;  %v11750_v8 = vld [vmem:[#allocation11 + $0x1b8] sm:$0xff]   ;;  %v6114_v51 = vsel %vm1521_vm9, %v6112_v0, %v6113_v45  ;;  %v11755_v5 = vld [vmem:[#allocation4 + $0x20] ss:$0 sps:$4 sm:$0x11]   ;;  %v11757_v24 = vld [vmem:[#allocation4 + $0x24] sm:$0xff]   ;;  %v6115_v61 = vrot.slane %v11741_v11, 1 }
 0x301   : > { %8590 = vmatprep.mubr.bf16.mxu1 %v5801_v42  ;;  %v5844_v42 = vor.u32 %v5843_v13, %v5839_v49  ;;  %10986 = vmatpush3.bf16.msra.mxu0 %v11750_v8  ;;  %v11759_v9 = vld [vmem:[#allocation4 + $0x18] sm:$0xff]   ;;  %v6471_v53 = vshrl.u32 %v11751_v25, 16  ;;  %v7281_v13 = vrot.slane %v7279_v31, 1  ;;  %v7286_v37 = vshll.u32 %v11757_v24, 16  ;;  %v11761_v58 = vld [vmem:[#allocation4 + $0x24] sm:$0xfe]  }
 0x302   : > { %v11760_v49 = vld [vmem:[#allocation4 + $0x20] ss:$0 sps:$4 sm:$0x11]   ;;  %v6485_v56 = vshll.u32 %v11759_v9, 16  ;;  %v11766_v4 = vld [vmem:[#allocation4 + $0x24] sm:$0xff]  }
 0x303   : > { %v5849_v28 = vsel %vm1120_vm3, %v5844_v42, %v5848_v17  ;;  %v11762_v12 = vld [vmem:[#allocation4 + $0x2c] ss:$0 sps:$4 sm:$0x11]   ;;  %v11768_v17 = vld [vmem:[#allocation11 + $0x208] sm:$0xff]   ;;  %v6495_v11 = vshrl.u32 %v11766_v4, 16 }
 0x304   : > { %v11765_v33 = vld [vmem:[#allocation4 + $0x38] ss:$0 sps:$4 sm:$0x11]   ;;  %v6877_v40 = vrot.slane %v11762_v12, 1  ;;  %v11772_v0 = vld [vmem:[#allocation4 + $0x3c] sm:$0xff]  }
 0x305   : > { %8744 = vmatmul.mubr.bf16.gmra.mrb[196].mxu0 %v6099_v16  ;;  %v6110_v16 = vrot.slane %v11724_v3, 1  ;;  %v11764_v3 = vld [vmem:[#allocation4 + $0x30] sm:$0xff]  }
 0x306   : > { %8751 = vmatprep.mubr.bf16.mxu0 %v11693_v46  ;;  %v6108_v46 = vsel %vm1521_vm9, %v6106_v44, %v6107_v38  ;;  %v7298_v60 = vshll.u32 %v11764_v3, 16  ;;  %v7296_v23 = vshrl.u32 %v11764_v3, 16 }
 0x307   : > { %v6111_v14 = vsel %vm1521_vm9, %v6109_v62, %v6110_v16  ;;  %v6487_v62 = vrot.slane %v6485_v56, 1  ;;  %v6490_v16 = vshll.u32 %v11760_v49, 16  ;;  %v11781_v49 = vld [vmem:[#allocation4 + $0x3c] sm:$0xff]  }
 0x308   : > { %8591 = vmatmul.mubr.bf16.gmra.mrb[168].mxu1 %v11696_v43  ;;  %v11720_v43 = vld [vmem:[#allocation4 + $0x9c] sm:$0xff]   ;;  %v7300_v45 = vrot.slane %v7298_v60, 1  ;;  %v11784_v60 = vld [vmem:[#allocation4 + $0x48] sm:$0xfe]  }
 0x309   : > { %8598 = vmatprep.mubr.bf16.mxu1 %v5813_v47  ;;  %v11747_v47 = vld [vmem:[#allocation4 + $0x18] sm:$0xff]  }
 0x30a   : > { %v7272_v34 = vshrl.u32 %v11747_v47, 16 }
 0x30d   : > { %8752 = vmatmul.mubr.bf16.gmra.mrb[200].mxu0 %v6102_v2  ;;  %v7274_v2 = vshll.u32 %v11747_v47, 16  ;;  %v7284_v47 = vshrl.u32 %v11757_v24, 16  ;;  %v11763_v24 = vld [vmem:[#allocation4 + $0x24] sm:$0xff]  }
 0x30e   : > { %8759 = vmatprep.mubr.bf16.mxu0 %v11703_v63  ;;  %v5860_v63 = vrot.slane %v5858_v39, 1 }
 0x30f   : > { %v7276_v48 = vrot.slane %v7274_v2, 1  ;;  %v11756_v2 = vld [vmem:[#allocation4 + $0x18] sm:$0xff]  }
 0x310   : > { %8599 = vmatmul.mubr.bf16.gmra.mrb[172].mxu1 %v11704_v21  ;;  %v11744_v21 = vld [vmem:[#allocation4 + $0x14] ss:$0 sps:$4 sm:$0x11]   ;;  %v5861_v26 = vsel %vm1120_vm3, %v5856_v50, %v5860_v63  ;;  %v6483_v50 = vshrl.u32 %v11759_v9, 16  ;;  %v6492_v63 = vrot.slane %v6490_v16, 1 }
 0x311   : > { %8606 = vmatprep.mubr.bf16.mxu1 %v5825_v1  ;;  %v6473_v1 = vshll.u32 %v11751_v25, 16  ;;  %v6871_v30 = vrot.slane %v11744_v21, 1  ;;  %v7277_v44 = vor.u32 %v7276_v48, %v7272_v34  ;;  %v6497_v25 = vshll.u32 %v11766_v4, 16  ;;  %v11769_v48 = vld [vmem:[#allocation4 + $0x30] sm:$0xfe]  }
 0x312   : > { %v6876_v21 = vrot.slane %v11761_v58, 1  ;;  %v6879_v34 = vrot.slane %v11769_v48, 1 }
 0x313   : > { %v6475_v19 = vrot.slane %v6473_v1, 1  ;;  %v6872_v52 = vsel %vm1521_vm9, %v6870_v35, %v6871_v30  ;;  %v11773_v35 = vld [vmem:[#allocation4 + $0x44] ss:$0 sps:$4 sm:$0x11]   ;;  %v11774_v30 = vld [vmem:[#allocation4 + $0x30] sm:$0xff]  }
 0x314   : > { %v6878_v31 = vsel %vm1521_vm9, %v6876_v21, %v6877_v40  ;;  %v6507_v3 = vshrl.u32 %v11774_v30, 16 }
 0x315   : > { %8760 = vmatmul.mubr.bf16.gmra.mrb[204].mxu0 %v6105_v6  ;;  %v11758_v6 = vld [vmem:[#allocation4 + $0x2c] ss:$0 sps:$4 sm:$0x11]   ;;  %v6476_v38 = vor.u32 %v6475_v19, %v6471_v53  ;;  %v7301_v19 = vor.u32 %v7300_v45, %v7296_v23  ;;  %v7308_v53 = vshrl.u32 %v11772_v0, 16 }
 0x316   : > { %8767 = vmatprep.mubr.bf16.mxu0 %v11709_v54  ;;  %v6478_v54 = vshll.u32 %v11752_v27, 16  ;;  %v7291_v42 = vshll.u32 %v11758_v6, 16  ;;  %v7303_v27 = vshll.u32 %v11765_v33, 16  ;;  %v11779_v6 = vld [vmem:[#allocation4 + $0x48] sm:$0xff]  }
 0x317   : > { %v7320_v33 = vshrl.u32 %v11779_v6, 16 }
 0x318   : > { %8607 = vmatmul.mubr.bf16.gmra.mrb[176].mxu1 %v11712_v32  ;;  %v11754_v32 = vld [vmem:[#allocation4 + $0x18] sm:$0xfe]   ;;  %v6480_v29 = vrot.slane %v6478_v54, 1  ;;  %v7293_v22 = vrot.slane %v7291_v42, 1  ;;  %v7322_v42 = vshll.u32 %v11779_v6, 16 }
 0x319   : > { %8614 = vmatprep.mubr.bf16.mxu1 %v5837_v36  ;;  %v6116_v36 = vrot.slane %v11742_v18, 1  ;;  %v6873_v8 = vrot.slane %v11754_v32, 1  ;;  %v11775_v54 = vld [vmem:[#allocation4 + $0x38] ss:$0 sps:$4 sm:$0x11]   ;;  %v7305_v32 = vrot.slane %v7303_v27, 1 }
 0x31a   : > { %v6481_v55 = vsel %vm1120_vm3, %v6476_v38, %v6480_v29  ;;  %v6514_v29 = vshll.u32 %v11775_v54, 16  ;;  %v11790_v27 = vld [vmem:[#allocation4 + $0x50] ss:$0 sps:$4 sm:$0x11]  }
 0x31b   : > { %v7306_v56 = vsel %vm1120_vm3, %v7301_v19, %v7305_v32  ;;  %v6538_v54 = vshll.u32 %v11790_v27, 16  ;;  %v11791_v32 = vld [vmem:[#allocation4 + $0x54] sm:$0xfe]   ;;  %v11795_v19 = vld [vmem:[#allocation4 + $0x68] ss:$0 sps:$4 sm:$0x11]  }
 0x31c   : > { %v6516_v4 = vrot.slane %v6514_v29, 1  ;;  %v11797_v29 = vld [vmem:[#allocation4 + $0x5c] ss:$0 sps:$4 sm:$0x11]  }
 0x31d   : > { %8768 = vmatmul.mubr.bf16.gmra.mrb[208].mxu0 %v6108_v46  ;;  %v6117_v46 = vsel %vm1521_vm9, %v6115_v61, %v6116_v36  ;;  %v11807_v27 = vld [vmem:[#allocation4 + $0x74] ss:$0 sps:$4 sm:$0x11]  }
 0x31e   : > { %8775 = vmatprep.mubr.bf16.mxu0 %v11719_v15  ;;  %v6874_v15 = vrot.slane %v11755_v5, 1  ;;  %v6509_v5 = vshll.u32 %v11774_v30, 16 }
 0x320   : > { %8615 = vmatmul.mubr.bf16.gmra.mrb[180].mxu1 %v11720_v43  ;;  %v7288_v43 = vrot.slane %v7286_v37, 1  ;;  %v6875_v39 = vsel %vm1521_vm9, %v6873_v8, %v6874_v15  ;;  %v11776_v37 = vld [vmem:[#allocation4 + $0x3c] sm:$0xfe]   ;;  %v6511_v38 = vrot.slane %v6509_v5, 1 }
 0x321   : > { %8622 = vmatprep.mubr.bf16.mxu1 %v5849_v28  ;;  %v7282_v28 = vsel %vm1120_vm3, %v7277_v44, %v7281_v13  ;;  %v7315_v13 = vshll.u32 %v11773_v35, 16  ;;  %v11777_v44 = vld [vmem:[#allocation4 + $0x44] ss:$0 sps:$4 sm:$0x11]   ;;  %v11778_v35 = vld [vmem:[#allocation4 + $0x3c] sm:$0xff]  }
 0x322   : > { %v11780_v15 = vld [vmem:[#allocation4 + $0x50] ss:$0 sps:$4 sm:$0x11]   ;;  %v6883_v16 = vrot.slane %v11777_v44, 1  ;;  %v6888_v44 = vrot.slane %v11791_v32, 1 }
 0x323   : > { %v7317_v12 = vrot.slane %v7315_v13, 1  ;;  %v11792_v5 = vld [vmem:[#allocation4 + $0x5c] ss:$0 sps:$4 sm:$0x11]   ;;  %v6540_v13 = vrot.slane %v6538_v54, 1 }
 0x325   : > { %8776 = vmatmul.mubr.bf16.gmra.mrb[212].mxu0 %v6111_v14  ;;  %v6488_v14 = vor.u32 %v6487_v62, %v6483_v50  ;;  %v11771_v62 = vld [vmem:[#allocation4 + $0x30] sm:$0xff]  }
 0x326   : > { %8783 = vmatprep.mubr.bf16.mxu0 %v11725_v57  ;;  %v7289_v57 = vor.u32 %v7288_v43, %v7284_v47  ;;  %v7327_v47 = vshll.u32 %v11780_v15, 16  ;;  %v11798_v50 = vld [vmem:[#allocation11 + $0x218] sm:$0xff]  }
 0x327   : > { %v6493_v18 = vsel %vm1120_vm3, %v6488_v14, %v6492_v63  ;;  %v11788_v14 = vld [vmem:[#allocation4 + $0x5c] ss:$0 sps:$4 sm:$0x11]  }
 0x328   : > { %8623 = vmatmul.mubr.bf16.gmra.mrb[184].mxu1 %v11728_v20  ;;  %v11767_v20 = vld [vmem:[#allocation4 + $0x2c] ss:$0 sps:$4 sm:$0x11]  }
 0x329   : > { %8630 = vmatprep.mubr.bf16.mxu1 %v5861_v26  ;;  %v11783_v26 = vld [vmem:[#allocation11 + $0x210] sm:$0xff]   ;;  %v6502_v1 = vshll.u32 %v11767_v20, 16  ;;  %v11787_v20 = vld [vmem:[#allocation4 + $0x54] sm:$0xff]  }
 0x32a   : > { %v7334_v40 = vshll.u32 %v11787_v20, 16 }
 0x32d   : > { %8784 = vmatmul.mubr.bf16.gmra.mrb[216].mxu0 %v6114_v51  ;;  %v7310_v51 = vshll.u32 %v11772_v0, 16  ;;  %v7329_v0 = vrot.slane %v7327_v47, 1  ;;  %v11805_v47 = vld [vmem:[#allocation4 + $0x68] ss:$0 sps:$4 sm:$0x11]  }
 0x32e   : > { %8791 = vmatprep.mubr.bf16.mxu0 %v11736_v59  ;;  %v11770_v59 = vld [vmem:[#allocation4 + $0x38] ss:$0 sps:$4 sm:$0x11]  }
 0x32f   : > { %v6880_v61 = vrot.slane %v11770_v59, 1  ;;  %v7312_v36 = vrot.slane %v7310_v51, 1  ;;  %v7339_v59 = vshll.u32 %v11788_v14, 16  ;;  %v11796_v51 = vld [vmem:[#allocation4 + $0x54] sm:$0xff]  }
 0x330   : > { %8631 = vmatmul.mubr.bf16.gmra.mrb[188].mxu1 %v11740_v10  ;;  %v7294_v10 = vsel %vm1120_vm3, %v7289_v57, %v7293_v22  ;;  %v11785_v22 = vld [vmem:[#allocation4 + $0x50] ss:$0 sps:$4 sm:$0x11]  }
 0x331   : > { %8832 = vmatprep.mubr.bf16.mxu1 %v6872_v52  ;;  %v6504_v52 = vrot.slane %v6502_v1, 1  ;;  %v6881_v58 = vsel %vm1521_vm9, %v6879_v34, %v6880_v61  ;;  %v7313_v43 = vor.u32 %v7312_v36, %v7308_v53  ;;  %v6886_v30 = vrot.slane %v11785_v22, 1  ;;  %v10652_v22 = vpop.f32.mrb[129].mxu1 }
 0x332   : > { %v6545_v36 = vshll.u32 %v11796_v51, 16 }
 0x333   : > { %v7318_v63 = vsel %vm1120_vm3, %v7313_v43, %v7317_v12  ;;  %v6550_v43 = vshll.u32 %v11797_v29, 16  ;;  %v11818_v29 = vld [vmem:[#allocation4 + $0x8c] ss:$0 sps:$4 sm:$0x11]  }
 0x334   : > { %v6547_v12 = vrot.slane %v6545_v36, 1  ;;  %v11815_v36 = vld [vmem:[#allocation4 + $0x80] ss:$0 sps:$4 sm:$0x11]  }
 0x335   : > { %8792 = vmatmul.mubr.bf16.gmra.mrb[220].mxu0 %v6117_v46  ;;  %v11782_v46 = vld [vmem:[#allocation4 + $0x44] ss:$0 sps:$4 sm:$0x11]   ;;  %v6552_v14 = vrot.slane %v6550_v43, 1 }
 0x336   : > { %8993 = vmatprep.mubr.bf16.mxu0 %v7282_v28  ;;  %v6882_v28 = vrot.slane %v11776_v37, 1  ;;  %v6526_v57 = vshll.u32 %v11782_v46, 16  ;;  %v11804_v46 = vld [vmem:[#allocation4 + $0x60] sm:$0xff]  }
 0x338   : > { %8833 = vmatmul.mubr.bf16.vlgmr.msra.gmra.mrb[192].mxu1 %v6481_v55  ;;  %v6521_v55 = vshll.u32 %v11781_v49, 16  ;;  %v6884_v23 = vsel %vm1521_vm9, %v6882_v28, %v6883_v16  ;;  %v6528_v45 = vrot.slane %v6526_v57, 1 }
 0x339   : > { %8840 = vmatprep.mubr.bf16.mxu1 %v6875_v39  ;;  %11156 = vmatpush3.bf16.msra.mxu1 %v13106_v7  ;;  %v6499_v7 = vrot.slane %v6497_v25, 1  ;;  %v7324_v39 = vrot.slane %v7322_v42, 1  ;;  %v7351_v42 = vshll.u32 %v11795_v19, 16  ;;  %v6895_v19 = vrot.slane %v11807_v27, 1 }
 0x33a   : > { %11157 = vmatprep.subr.bf16.mxu1 %v11768_v17  ;;  %v6523_v25 = vrot.slane %v6521_v55, 1 }
 0x33b   : > { %v6500_v9 = vor.u32 %v6499_v7, %v6495_v11  ;;  %v7325_v11 = vor.u32 %v7324_v39, %v7320_v33  ;;  %v6885_v7 = vrot.slane %v11784_v60, 1  ;;  %v6543_v33 = vshrl.u32 %v11796_v51, 16 }
 0x33c   : > { %v7353_v60 = vrot.slane %v7351_v42, 1 }
 0x33d   : > { %11158 = vmatpush3.bf16.msra.mxu1 %v11768_v17  ;;  %8994 = vmatmul.mubr.bf16.vlgmr.msra.gmra.mrb[224].mxu0 %v11756_v2  ;;  %v6505_v8 = vsel %vm1120_vm3, %v6500_v9, %v6504_v52  ;;  %v6512_v17 = vor.u32 %v6511_v38, %v6507_v3  ;;  %v6519_v2 = vshrl.u32 %v11781_v49, 16  ;;  %v7330_v9 = vsel %vm1120_vm3, %v7325_v11, %v7329_v0  ;;  %v11786_v49 = vld [vmem:[#allocation4 + $0x48] sm:$0xff]  }
 0x33e   : > { %11159 = vmatprep.subr.bf16.mxu1 %v11783_v26  ;;  %9001 = vmatprep.mubr.bf16.mxu0 %v7294_v10  ;;  %v7332_v10 = vshrl.u32 %v11787_v20, 16  ;;  %v6887_v61 = vsel %vm1521_vm9, %v6885_v7, %v6886_v30  ;;  %v6889_v38 = vrot.slane %v11792_v5, 1  ;;  %v11802_v3 = vld [vmem:[#allocation4 + $0x6c] sm:$0xff]   ;;  %v6557_v20 = vshll.u32 %v11804_v46, 16  ;;  %v11801_v5 = vld [vmem:[#allocation4 + $0x60] sm:$0xff]  }
 0x33f   : > { %v6517_v21 = vsel %vm1120_vm3, %v6512_v17, %v6516_v4  ;;  %v6524_v1 = vor.u32 %v6523_v25, %v6519_v2  ;;  %v11800_v4 = vld [vmem:[#allocation4 + $0x68] ss:$0 sps:$4 sm:$0x11]   ;;  %v11803_v17 = vld [vmem:[#allocation4 + $0x74] ss:$0 sps:$4 sm:$0x11]   ;;  %v6548_v57 = vor.u32 %v6547_v12, %v6543_v33 }
 0x340   : > { %8841 = vmatmul.mubr.bf16.gmra.mrb[196].mxu1 %v6493_v18  ;;  %v7336_v18 = vrot.slane %v7334_v40, 1  ;;  %v6890_v16 = vsel %vm1521_vm9, %v6888_v44, %v6889_v38  ;;  %v7358_v39 = vshll.u32 %v11802_v3, 16  ;;  %v11793_v25 = vld [vmem:[#allocation4 + $0x54] sm:$0xff]   ;;  %v7363_v0 = vshll.u32 %v11803_v17, 16  ;;  %v11811_v30 = vld [vmem:[#allocation4 + $0x6c] sm:$0xff]  }
 0x341   : > { %8848 = vmatprep.mubr.bf16.mxu1 %v6878_v31  ;;  %11160 = vmatpush3.bf16.msra.mxu1 %v11783_v26  ;;  %v11789_v26 = vld [vmem:[#allocation4 + $0x48] sm:$0xff]   ;;  %v11794_v31 = vld [vmem:[#allocation4 + $0x60] sm:$0xff]   ;;  %v6529_v52 = vsel %vm1120_vm3, %v6524_v1, %v6528_v45  ;;  %v11809_v40 = vld [vmem:[#allocation4 + $0x78] sm:$0xff]   ;;  %v6559_v2 = vrot.slane %v6557_v20, 1  ;;  %v6562_v11 = vshll.u32 %v11805_v47, 16  ;;  %v6898_v33 = vrot.slane %v11815_v36, 1 }
 0x342   : > { %11161 = vmatprep.subr.bf16.mxu1 %v11798_v50  ;;  %v6533_v48 = vshll.u32 %v11789_v26, 16  ;;  %v7346_v6 = vshll.u32 %v11794_v31, 16  ;;  %v6531_v53 = vshrl.u32 %v11789_v26, 16  ;;  %v7337_v37 = vor.u32 %v7336_v18, %v7332_v10  ;;  %v11806_v45 = vld [vmem:[#allocation4 + $0x6c] sm:$0xfe]  }
 0x343   : > { %v10653_v26 = vadd.f32 %v10652_v22, %v13108_v41  ;;  %v11810_v1 = vld [vmem:[#allocation4 + $0x80] ss:$0 sps:$4 sm:$0x11]   ;;  %v7356_v18 = vshrl.u32 %v11802_v3, 16  ;;  %v6555_v41 = vshrl.u32 %v11804_v46, 16  ;;  %v7365_v51 = vrot.slane %v7363_v0, 1 }
 0x344   : > { %v6535_v34 = vrot.slane %v6533_v48, 1  ;;  %v7348_v15 = vrot.slane %v7346_v6, 1  ;;  %v11812_v48 = vld [vmem:[#allocation4 + $0x74] ss:$0 sps:$4 sm:$0x11]   ;;  %v6564_v32 = vrot.slane %v6562_v11, 1 }
 0x345   : > { %9002 = vmatmul.mubr.bf16.gmra.mrb[228].mxu0 %v11763_v24  ;;  %11162 = vmatpush3.bf16.msra.mxu1 %v11798_v50  ;;  %v7341_v24 = vrot.slane %v7339_v59, 1  ;;  %v6553_v59 = vsel %vm1120_vm3, %v6548_v57, %v6552_v14  ;;  %v6560_v54 = vor.u32 %v6559_v2, %v6555_v41  ;;  %v7375_v6 = vshll.u32 %v11810_v1, 16  ;;  %v13150_v12 = vld [vmem:[%s13535_s4] ss:$0 sm:$0xff]  ;;  %v11824_v22 = vld [vmem:[#allocation4 + $0x90] sm:$0xff]  }
 0x346   : > { %9009 = vmatprep.mubr.bf16.mxu0 %v7306_v56  ;;  %v6536_v56 = vor.u32 %v6535_v34, %v6531_v53  ;;  %v13141_v34 = vld [vmem:[#allocation4 + $0x84] sm:$0xff]   ;;  %v6574_v53 = vshll.u32 %v11812_v48, 16  ;;  %v11822_v14 = vld [vmem:[#allocation4 + $0x8c] ss:$0 sps:$4 sm:$0x11]  }
 0x347   : > { %v7342_v28 = vsel %vm1120_vm3, %v7337_v37, %v7341_v24  ;;  %v6894_v24 = vrot.slane %v11806_v45, 1  ;;  %v11819_v37 = vld [vmem:[#allocation4 + $0x78] sm:$0xff]   ;;  %v6565_v38 = vsel %vm1120_vm3, %v6560_v54, %v6564_v32  ;;  %v7382_v42 = vshll.u32 %v13141_v34, 16  ;;  %v11821_v57 = vld [vmem:[#allocation4 + $0x84] sm:$0xfe]  }
 0x348   : > { %8849 = vmatmul.mubr.bf16.gmra.mrb[200].mxu1 %v6505_v8  ;;  %v7344_v8 = vshrl.u32 %v11794_v31, 16  ;;  %v6541_v55 = vsel %vm1120_vm3, %v6536_v56, %v6540_v13  ;;  %v11814_v13 = vld [vmem:[#allocation4 + $0x78] sm:$0xfe]   ;;  %v10654_v56 = vpop.f32.mrb[130].mxu1  ;;  %v7377_v3 = vrot.slane %v7375_v6, 1  ;;  %v6576_v43 = vrot.slane %v6574_v53, 1 }
 0x349   : > { %8856 = vmatprep.mubr.bf16.mxu1 %v6881_v58  ;;  %v11813_v58 = vld [vmem:[#allocation11 + $0x220] sm:$0xff]   ;;  %v6897_v17 = vrot.slane %v11814_v13, 1 }
 0x34a   : > { %11163 = vmatprep.subr.bf16.mxu1 %v11813_v58  ;;  %v7349_v50 = vor.u32 %v7348_v15, %v7344_v8  ;;  %v6896_v8 = vsel %vm1521_vm9, %v6894_v24, %v6895_v19  ;;  %v7368_v15 = vshrl.u32 %v11809_v40, 16  ;;  %v11825_v45 = vld [vmem:[#allocation4 + $0x98] ss:$0 sps:$4 sm:$0x11]   ;;  %v6901_v19 = vrot.slane %v11822_v14, 1  ;;  %v11832_v53 = vld [vmem:[#allocation4 + $0x9c] sm:$0xff]  }
 0x34b   : > { %11164 = vmatpush3.bf16.msra.mxu1 %v11813_v58  ;;  %v11820_v58 = vld [vmem:[#allocation4 + $0x80] ss:$0 sps:$4 sm:$0x11]   ;;  %v11816_v24 = vld [vmem:[#allocation4 + $0x78] sm:$0xff]  }
 0x34c   : > { %v7354_v7 = vsel %vm1120_vm3, %v7349_v50, %v7353_v60  ;;  %v7384_v50 = vrot.slane %v7382_v42, 1  ;;  %v7387_v60 = vshll.u32 %v11818_v29, 16  ;;  %v6586_v2 = vshll.u32 %v11820_v58, 16  ;;  %v11830_v13 = vld [vmem:[#allocation4 + $0x98] ss:$0 sps:$4 sm:$0x11]  }
 0x34d   : > { %9010 = vmatmul.mubr.bf16.gmra.mrb[232].mxu0 %v11771_v62  ;;  %v11799_v62 = vld [vmem:[#allocation4 + $0x60] sm:$0xfe]   ;;  %v11843_v29 = vld [vmem:[#allocation11 + $0x230] sm:$0xff]   ;;  %v11835_v42 = vld [vmem:[#allocation4 + $0x98] ss:$0 sps:$4 sm:$0x11]  }
 0x34e   : > { %9017 = vmatprep.mubr.bf16.mxu0 %v7318_v63  ;;  %v6891_v63 = vrot.slane %v11799_v62, 1  ;;  %v11808_v62 = vld [vmem:[#allocation4 + $0x6c] sm:$0xff]   ;;  %v7389_v41 = vrot.slane %v7387_v60, 1  ;;  %v6588_v32 = vrot.slane %v6586_v2, 1  ;;  %v11841_v60 = vld [vmem:[#allocation4 + $0x9c] sm:$0xff]  }
 0x350   : > { %8857 = vmatmul.mubr.bf16.gmra.mrb[204].mxu1 %v6517_v21  ;;  %v6892_v21 = vrot.slane %v11800_v4, 1  ;;  %v6567_v4 = vshrl.u32 %v11811_v30, 16 }
 0x351   : > { %8864 = vmatprep.mubr.bf16.mxu1 %v6884_v23  ;;  %v7360_v23 = vrot.slane %v7358_v39, 1  ;;  %v8513_v39 = vadd.f32 %v10653_v26, %v13150_v12 }
 0x352   : > { %v6893_v10 = vsel %vm1521_vm9, %v6891_v63, %v6892_v21  ;;  %v11826_v63 = vld [vmem:[#allocation4 + $0x84] sm:$0xff]  }
 0x353   : > { %v7361_v31 = vor.u32 %v7360_v23, %v7356_v18  ;;  %v11827_v18 = vld [vmem:[#allocation4 + $0x8c] ss:$0 sps:$4 sm:$0x11]   ;;  %v6593_v48 = vshll.u32 %v11826_v63, 16  ;;  %v6591_v6 = vshrl.u32 %v11826_v63, 16 }
 0x354   : > { %v6598_v36 = vshll.u32 %v11827_v18, 16  ;;  %v11837_v63 = vld [vmem:[#allocation4 + $0xa4] ss:$0 sps:$4 sm:$0x11]   ;;  %v6615_v18 = vshrl.u32 %v11841_v60, 16 }
 0x355   : > { %9018 = vmatmul.mubr.bf16.gmra.mrb[236].mxu0 %v11778_v35  ;;  %v7370_v35 = vshll.u32 %v11809_v40, 16  ;;  %v7366_v44 = vsel %vm1120_vm3, %v7361_v31, %v7365_v51 }
 0x356   : > { %9025 = vmatprep.mubr.bf16.mxu0 %v7330_v9 }
 0x357   : > { %v7372_v9 = vrot.slane %v7370_v35, 1  ;;  %v7380_v35 = vshrl.u32 %v13141_v34, 16  ;;  %v6595_v34 = vrot.slane %v6593_v48, 1 }
 0x358   : > { %8865 = vmatmul.mubr.bf16.gmra.mrb[208].mxu1 %v6529_v52  ;;  %v6569_v52 = vshll.u32 %v11811_v30, 16  ;;  %v6579_v30 = vshrl.u32 %v11819_v37, 16 }
 0x359   : > { %8872 = vmatprep.mubr.bf16.mxu1 %v6887_v61  ;;  %v11828_v61 = vld [vmem:[#allocation11 + $0x228] sm:$0xff]   ;;  %v7373_v46 = vor.u32 %v7372_v9, %v7368_v15  ;;  %v7385_v51 = vor.u32 %v7384_v50, %v7380_v35  ;;  %v7392_v9 = vshrl.u32 %v11824_v22, 16  ;;  %v7406_v15 = vshll.u32 %v11832_v53, 16  ;;  %v11840_v50 = vld [vmem:[#allocation4 + $0xb0] ss:$0 sps:$4 sm:$0x11]  }
 0x35a   : > { %11165 = vmatprep.subr.bf16.mxu1 %v11828_v61  ;;  %v7423_v2 = vshll.u32 %v11840_v50, 16 }
 0x35b   : > { %11166 = vmatpush3.bf16.msra.mxu1 %v11828_v61  ;;  %v7378_v23 = vsel %vm1120_vm3, %v7373_v46, %v7377_v3  ;;  %v6600_v3 = vrot.slane %v6598_v36, 1 }
 0x35c   : > { %11167 = vmatprep.subr.bf16.mxu1 %v11843_v29  ;;  %v7425_v48 = vrot.slane %v7423_v2, 1 }
 0x35d   : > { %9026 = vmatmul.mubr.bf16.gmra.mrb[240].mxu0 %v11786_v49  ;;  %v6571_v49 = vrot.slane %v6569_v52, 1  ;;  %v7399_v52 = vshll.u32 %v11825_v45, 16  ;;  %v6617_v45 = vshll.u32 %v11841_v60, 16 }
 0x35e   : > { %9033 = vmatprep.mubr.bf16.mxu0 %v7342_v28  ;;  %v6581_v28 = vshll.u32 %v11819_v37, 16  ;;  %v11829_v37 = vld [vmem:[#allocation4 + $0x90] sm:$0xfe]  }
 0x35f   : > { %v7401_v58 = vrot.slane %v7399_v52, 1  ;;  %11168 = vmatpush3.bf16.msra.mxu1 %v11843_v29  ;;  %v6903_v46 = vrot.slane %v11829_v37, 1 }
 0x360   : > { %8873 = vmatmul.mubr.bf16.gmra.mrb[212].mxu1 %v6541_v55  ;;  %v10655_v55 = vpop.f32.mrb[131].mxu1  ;;  %v6583_v0 = vrot.slane %v6581_v28, 1  ;;  %v6596_v28 = vor.u32 %v6595_v34, %v6591_v6 }
 0x361   : > { %8880 = vmatprep.mubr.bf16.mxu1 %v6890_v16  ;;  %v6572_v16 = vor.u32 %v6571_v49, %v6567_v4  ;;  %v10656_v47 = vadd.f32 %v10655_v55, %v10654_v56  ;;  %v11833_v49 = vld [vmem:[#allocation4 + $0xa4] ss:$0 sps:$4 sm:$0x11]   ;;  %v11834_v56 = vld [vmem:[#allocation4 + $0x90] sm:$0xff]   ;;  %v7404_v55 = vshrl.u32 %v11832_v53, 16 }
 0x362   : > { %v6584_v54 = vor.u32 %v6583_v0, %v6579_v30  ;;  %v11842_v0 = vld [vmem:[#allocation4 + $0xa4] ss:$0 sps:$4 sm:$0x11]   ;;  %v6907_v30 = vrot.slane %v11837_v63, 1  ;;  %v13190_v63 = vld [vmem:[#allocation4 + $0xb4] sm:$0xff]  }
 0x363   : > { %v6577_v26 = vsel %vm1120_vm3, %v6572_v16, %v6576_v43  ;;  %v8516_v11 = vadd.f32 %v10656_v47, %v13150_v12  ;;  %v6904_v43 = vrot.slane %v11830_v13, 1  ;;  %v6605_v16 = vshll.u32 %v11834_v56, 16  ;;  %v11848_v53 = vld [vmem:[#allocation4 + $0xbc] ss:$0 sps:$4 sm:$0x11]  }
 0x364   : > { %v6610_v47 = vshll.u32 %v11835_v42, 16  ;;  %v7435_v50 = vshll.u32 %v11848_v53, 16 }
 0x365   : > { %9034 = vmatmul.mubr.bf16.gmra.mrb[244].mxu0 %v11793_v25  ;;  %v6607_v14 = vrot.slane %v6605_v16, 1 }
 0x366   : > { %9041 = vmatprep.mubr.bf16.mxu0 %v7354_v7 }
 0x368   : > { %8881 = vmatmul.mubr.bf16.gmra.mrb[216].mxu1 %v6553_v59  ;;  %v6899_v59 = vsel %vm1521_vm9, %v6897_v17, %v6898_v33  ;;  %v11823_v17 = vld [vmem:[#allocation4 + $0x84] sm:$0xff]  }
 0x369   : > { %8888 = vmatprep.mubr.bf16.mxu1 %v6893_v10  ;;  %v7394_v10 = vshll.u32 %v11824_v22, 16  ;;  %v13165_v33 = vld [vmem:[#allocation4 + $0xa8] sm:$0xff]   ;;  %v6601_v22 = vsel %vm1120_vm3, %v6596_v28, %v6600_v3 }
 0x36b   : > { %v7396_v61 = vrot.slane %v7394_v10, 1 }
 0x36d   : > { %9042 = vmatmul.mubr.bf16.gmra.mrb[248].mxu0 %v11801_v5  ;;  %v6900_v5 = vrot.slane %v11821_v57, 1  ;;  %v7397_v4 = vor.u32 %v7396_v61, %v7392_v9  ;;  %v11845_v9 = vld [vmem:[#allocation4 + $0xb0] ss:$0 sps:$4 sm:$0x11]  }
 0x36e   : > { %9049 = vmatprep.mubr.bf16.mxu0 %v7366_v44  ;;  %v7390_v44 = vsel %vm1120_vm3, %v7385_v51, %v7389_v41  ;;  %v13172_v41 = vld [vmem:[#allocation4 + $0xb4] sm:$0xff]   ;;  %v6619_v51 = vrot.slane %v6617_v45, 1 }
 0x36f   : > { %v10763_v20 = vpop.f32.mrb[160].mxu0  ;;  %v7402_v57 = vsel %vm1120_vm3, %v7397_v4, %v7401_v58  ;;  %v7428_v37 = vshrl.u32 %v13172_v41, 16 }
 0x370   : > { %8889 = vmatmul.mubr.bf16.gmra.mrb[220].mxu1 %v6565_v38  ;;  %v10764_v25 = vpop.f32.mrb[161].mxu0  ;;  %v6589_v38 = vsel %vm1120_vm3, %v6584_v54, %v6588_v32  ;;  %v11844_v54 = vld [vmem:[#allocation4 + $0xa8] sm:$0xfe]  }
 0x371   : > { %8896 = vmatprep.mubr.bf16.mxu1 %v6896_v8  ;;  %v10765_v21 = vadd.f32 %v10764_v25, %v10763_v20  ;;  %v10766_v40 = vpop.f32.mrb[162].mxu0  ;;  %v6902_v8 = vsel %vm1521_vm9, %v6900_v5, %v6901_v19  ;;  %v11836_v20 = vld [vmem:[#allocation4 + $0x9c] sm:$0xfe]   ;;  %v13174_v32 = vld [vmem:[#allocation4 + $0xa8] sm:$0xff]   ;;  %v11858_v5 = vld [vmem:[#allocation11 + $0x238] sm:$0xff]   ;;  %v6622_v19 = vshll.u32 %v11842_v0, 16 }
 0x372   : > { %v10767_v27 = vpop.f32.mrb[163].mxu0  ;;  %v6906_v35 = vrot.slane %v11836_v20, 1  ;;  %11169 = vmatprep.subr.bf16.mxu1 %v11858_v5  ;;  %v6909_v28 = vrot.slane %v11844_v54, 1  ;;  %v11852_v0 = vld [vmem:[#allocation4 + $0xbc] ss:$0 sps:$4 sm:$0x11]  }
 0x373   : > { %v13156_v1 = vadd.f32 %v10765_v21, %v8513_v39  ;;  %v10768_v7 = vadd.f32 %v10767_v27, %v10766_v40  ;;  %v7408_v39 = vrot.slane %v7406_v15, 1  ;;  %v7418_v21 = vshll.u32 %v13165_v33, 16  ;;  %11170 = vmatpush3.bf16.msra.mxu1 %v11858_v5 }
 0x374   : > { %v6905_v40 = vsel %vm1521_vm9, %v6903_v46, %v6904_v43  ;;  %v6908_v34 = vsel %vm1521_vm9, %v6906_v35, %v6907_v30  ;;  %v6624_v4 = vrot.slane %v6622_v19, 1  ;;  %v11855_v35 = vld [vmem:[#allocation4 + $0xc8] ss:$0 sps:$4 sm:$0x11]   ;;  %v7437_v30 = vrot.slane %v7435_v50, 1 }
 0x375   : > { %9050 = vmatmul.mubr.bf16.gmra.mrb[252].mxu0 %v11808_v62  ;;  %v13160_v31 = vadd.f32 %v10768_v7, %v8516_v11  ;;  %v7411_v62 = vshll.u32 %v11833_v49, 16  ;;  %v7409_v27 = vor.u32 %v7408_v39, %v7404_v55  ;;  %v7416_v11 = vshrl.u32 %v13165_v33, 16  ;;  %v11831_v7 = vld [vmem:[#allocation4 + $0x90] sm:$0xff]   ;;  %v11838_v55 = vld [vmem:[#allocation4 + $0x9c] sm:$0xff]  }
 0x376   : > { %9057 = vmatprep.mubr.bf16.mxu0 %v7378_v23  ;;  %v6603_v23 = vshrl.u32 %v11834_v56, 16  ;;  %v7420_v10 = vrot.slane %v7418_v21, 1  ;;  %v11850_v56 = vld [vmem:[#allocation4 + $0xb0] ss:$0 sps:$4 sm:$0x11]   ;;  %v6910_v39 = vrot.slane %v11845_v9, 1 }
 0x377   : > { %v7413_v25 = vrot.slane %v7411_v62, 1  ;;  %v6913_v5 = vrot.slane %v11852_v0, 1  ;;  %v11857_v9 = vld [vmem:[#allocation4 + $0xbc] ss:$0 sps:$4 sm:$0x11]  }
 0x378   : > { %8897 = vmatmul.mubr.bf16.gmra.mrb[224].mxu1 %v6577_v26  ;;  %v6612_v26 = vrot.slane %v6610_v47, 1  ;;  %v7421_v46 = vor.u32 %v7420_v10, %v7416_v11  ;;  %v13186_v47 = vld [vmem:[#allocation4 + $0xc0] sm:$0xff]   ;;  %v6911_v2 = vsel %vm1521_vm9, %v6909_v28, %v6910_v39  ;;  %v6646_v28 = vshll.u32 %v11857_v9, 16 }
 0x379   : > { %8904 = vmatprep.mubr.bf16.mxu1 %v6899_v59  ;;  %v6608_v59 = vor.u32 %v6607_v14, %v6603_v23  ;;  %v7414_v52 = vsel %vm1120_vm3, %v7409_v27, %v7413_v25  ;;  %v11851_v14 = vld [vmem:[#allocation4 + $0xb4] sm:$0xfe]   ;;  %v7442_v11 = vshll.u32 %v13186_v47, 16 }
 0x37a   : > { %v7426_v21 = vsel %vm1120_vm3, %v7421_v46, %v7425_v48  ;;  %v11846_v48 = vld [vmem:[#allocation4 + $0xa8] sm:$0xff]   ;;  %v6912_v54 = vrot.slane %v11851_v14, 1  ;;  %v6639_v46 = vshrl.u32 %v13190_v63, 16 }
 0x37b   : > { %v6613_v6 = vsel %vm1120_vm3, %v6608_v59, %v6612_v26  ;;  %v6627_v26 = vshrl.u32 %v13174_v32, 16  ;;  %v7444_v19 = vrot.slane %v7442_v11, 1 }
 0x37d   : > { %9058 = vmatmul.mubr.bf16.gmra.mrb[0].mxu0 %v11816_v24 }
 0x37e   : > { %9065 = vmatprep.mubr.bf16.mxu0 %v7390_v44  ;;  %v7430_v44 = vshll.u32 %v13172_v41, 16  ;;  %v6641_v41 = vshll.u32 %v13190_v63, 16  ;;  %v11863_v63 = vld [vmem:[#allocation4 + $0xc8] ss:$0 sps:$4 sm:$0x11]  }
 0x380   : > { %8905 = vmatmul.mubr.bf16.gmra.mrb[228].mxu1 %v6589_v38  ;;  %v7432_v20 = vrot.slane %v7430_v44, 1 }
 0x381   : > { %8912 = vmatprep.mubr.bf16.mxu1 %v6902_v8  ;;  %v6629_v8 = vshll.u32 %v13174_v32, 16  ;;  %v7447_v32 = vshll.u32 %v11855_v35, 16  ;;  %v11866_v35 = vld [vmem:[#allocation4 + $0x18] sm:$0xfe]  }
 0x383   : > { %v6631_v60 = vrot.slane %v6629_v8, 1  ;;  %v11865_v8 = vld [vmem:[#allocation4 + $0xd4] ss:$0 sps:$4 sm:$0x11]   ;;  %v7449_v50 = vrot.slane %v7447_v32, 1 }
 0x385   : > { %9066 = vmatmul.mubr.bf16.gmra.mrb[4].mxu0 %v11823_v17  ;;  %v6620_v17 = vor.u32 %v6619_v51, %v6615_v18  ;;  %v6632_v18 = vor.u32 %v6631_v60, %v6627_v26 }
 0x386   : > { %9073 = vmatprep.mubr.bf16.mxu0 %v7402_v57  ;;  %v6634_v57 = vshll.u32 %v11850_v56, 16  ;;  %v11862_v56 = vld [vmem:[#allocation4 + $0xc0] sm:$0xff]  }
 0x388   : > { %8913 = vmatmul.mubr.bf16.gmra.mrb[232].mxu1 %v6601_v22  ;;  %v6636_v51 = vrot.slane %v6634_v57, 1 }
 0x389   : > { %8920 = vmatprep.mubr.bf16.mxu1 %v6905_v40  ;;  %v6625_v40 = vsel %vm1120_vm3, %v6620_v17, %v6624_v4 }
 0x38a   : > { %v6637_v44 = vsel %vm1120_vm3, %v6632_v18, %v6636_v51  ;;  %v6651_v51 = vshrl.u32 %v11862_v56, 16 }
 0x38d   : > { %9074 = vmatmul.mubr.bf16.gmra.mrb[8].mxu0 %v11831_v7  ;;  %v7433_v7 = vor.u32 %v7432_v20, %v7428_v37  ;;  %v11853_v20 = vld [vmem:[#allocation4 + $0xb4] sm:$0xff]  }
 0x38e   : > { %v10657_v24 = vpop.f32.mrb[132].mxu1  ;;  %9081 = vmatprep.mubr.bf16.mxu0 %v7414_v52  ;;  %v11859_v52 = vld [vmem:[#allocation4 + $0xc0] sm:$0xfe]  }
 0x38f   : > { %v10658_v61 = vpop.f32.mrb[133].mxu1  ;;  %v6915_v57 = vrot.slane %v11859_v52, 1 }
 0x390   : > { %8921 = vmatmul.mubr.bf16.gmra.mrb[236].mxu1 %v6613_v6  ;;  %v10659_v36 = vadd.f32 %v10658_v61, %v10657_v24  ;;  %v10769_v13 = vpop.f32.mrb[164].mxu0  ;;  %v10660_v29 = vpop.f32.mrb[134].mxu1  ;;  %v7440_v24 = vshrl.u32 %v13186_v47, 16  ;;  %v13199_v6 = vld [vmem:[#allocation4 + $0xcc] sm:$0xff]  }
 0x391   : > { %8928 = vmatprep.mubr.bf16.mxu1 %v6908_v34  ;;  %v10770_v38 = vpop.f32.mrb[165].mxu0  ;;  %v10661_v49 = vpop.f32.mrb[135].mxu1 }
 0x392   : > { %v8521_v15 = vadd.f32 %v10659_v36, %v13150_v12  ;;  %v10771_v42 = vadd.f32 %v10770_v38, %v10769_v13  ;;  %v10662_v58 = vadd.f32 %v10661_v49, %v10660_v29  ;;  %v10772_v3 = vpop.f32.mrb[166].mxu0  ;;  %v6643_v36 = vrot.slane %v6641_v41, 1  ;;  %v11860_v13 = vld [vmem:[#allocation4 + $0xc8] ss:$0 sps:$4 sm:$0x11]  }
 0x393   : > { %v10773_v43 = vpop.f32.mrb[167].mxu0  ;;  %v7438_v29 = vsel %vm1120_vm3, %v7433_v7, %v7437_v30  ;;  %v6914_v38 = vsel %vm1521_vm9, %v6912_v54, %v6913_v5  ;;  %v7445_v39 = vor.u32 %v7444_v19, %v7440_v24  ;;  %v11867_v54 = vld [vmem:[#allocation4 + $0x20] ss:$0 sps:$4 sm:$0x11]   ;;  %v6658_v19 = vshll.u32 %v11863_v63, 16 }
 0x394   : > { %v13183_v62 = vadd.f32 %v10771_v42, %v8521_v15  ;;  %v8524_v16 = vadd.f32 %v10662_v58, %v13150_v12  ;;  %v10774_v33 = vadd.f32 %v10773_v43, %v10772_v3  ;;  %v6644_v60 = vor.u32 %v6643_v36, %v6639_v46 }
 0x395   : > { %9082 = vmatmul.mubr.bf16.gmra.mrb[12].mxu0 %v11838_v55  ;;  %v7454_v55 = vshll.u32 %v13199_v6, 16  ;;  %v7450_v26 = vsel %vm1120_vm3, %v7445_v39, %v7449_v50 }
 0x396   : > { %v13188_v22 = vadd.f32 %v10774_v33, %v8524_v16  ;;  %v10663_v25 = vpop.f32.mrb[136].mxu1  ;;  %9089 = vmatprep.mubr.bf16.mxu0 %v7426_v21  ;;  %v6916_v21 = vrot.slane %v11860_v13, 1 }
 0x397   : > { %v10664_v23 = vpop.f32.mrb[137].mxu1  ;;  %v7456_v0 = vrot.slane %v7454_v55, 1 }
 0x398   : > { %8929 = vmatmul.mubr.bf16.gmra.mrb[240].mxu1 %v6625_v40  ;;  %v10665_v45 = vadd.f32 %v10664_v23, %v10663_v25  ;;  %v10666_v27 = vpop.f32.mrb[138].mxu1  ;;  %v6653_v25 = vshll.u32 %v11862_v56, 16  ;;  %v6648_v40 = vrot.slane %v6646_v28, 1  ;;  %v7452_v23 = vshrl.u32 %v13199_v6, 16  ;;  %v11868_v28 = vld [vmem:[#allocation4 + $0xcc] sm:$0xff]  }
 0x399   : > { %8936 = vmatprep.mubr.bf16.mxu1 %v6911_v2  ;;  %v10667_v59 = vpop.f32.mrb[139].mxu1  ;;  %v7459_v2 = vshll.u32 %v11865_v8, 16  ;;  %v6917_v41 = vsel %vm1521_vm9, %v6915_v57, %v6916_v21  ;;  %v11870_v8 = vld [vmem:[#allocation4 + $0x2c] ss:$0 sps:$4 sm:$0x11]  }
 0x39a   : > { %v10668_v10 = vadd.f32 %v10667_v59, %v10666_v27  ;;  %v8529_v61 = vadd.f32 %v10665_v45, %v13150_v12  ;;  %v6649_v7 = vsel %vm1120_vm3, %v6644_v60, %v6648_v40  ;;  %v6655_v59 = vrot.slane %v6653_v25, 1 }
 0x39b   : > { %v7457_v9 = vor.u32 %v7456_v0, %v7452_v23  ;;  %v7461_v32 = vrot.slane %v7459_v2, 1  ;;  %v7675_v39 = vrot.slane %v11870_v8, 1  ;;  %v11873_v23 = vld [vmem:[#allocation4 + $0x3c] sm:$0xfe]  }
 0x39c   : > { %v8532_v42 = vadd.f32 %v10668_v10, %v13150_v12  ;;  %v6656_v36 = vor.u32 %v6655_v59, %v6651_v51  ;;  %v7680_v51 = vrot.slane %v11873_v23, 1  ;;  %v11880_v8 = vld [vmem:[#allocation4 + $0x68] ss:$0 sps:$4 sm:$0x11]  }
 0x39d   : > { %v10775_v53 = vpop.f32.mrb[168].mxu0  ;;  %9090 = vmatmul.mubr.bf16.gmra.mrb[16].mxu0 %v11846_v48  ;;  %v7462_v56 = vsel %vm1120_vm3, %v7457_v9, %v7461_v32 }
 0x39e   : > { %v10669_v34 = vpop.f32.mrb[140].mxu1  ;;  %v10776_v37 = vpop.f32.mrb[169].mxu0  ;;  %9097 = vmatprep.mubr.bf16.mxu0 %v7438_v29 }
 0x39f   : > { %v10670_v49 = vpop.f32.mrb[141].mxu1  ;;  %v10777_v15 = vadd.f32 %v10776_v37, %v10775_v53  ;;  %v10778_v58 = vpop.f32.mrb[170].mxu0  ;;  %v7671_v37 = vrot.slane %v11866_v35, 1 }
 0x3a0   : > { %8937 = vmatmul.mubr.bf16.gmra.mrb[244].mxu1 %v6637_v44  ;;  %v10671_v3 = vadd.f32 %v10670_v49, %v10669_v34  ;;  %v10672_v4 = vpop.f32.mrb[142].mxu1  ;;  %v10779_v43 = vpop.f32.mrb[171].mxu0  ;;  %v7672_v44 = vrot.slane %v11867_v54, 1  ;;  %v6660_v49 = vrot.slane %v6658_v19, 1 }
 0x3a1   : > { %8944 = vmatprep.mubr.bf16.mxu1 %v6914_v38  ;;  %v10673_v17 = vpop.f32.mrb[143].mxu1  ;;  %v13208_v16 = vadd.f32 %v10777_v15, %v8529_v61  ;;  %v10780_v33 = vadd.f32 %v10779_v43, %v10778_v58  ;;  %v11861_v38 = vld [vmem:[#allocation4 + $0xc0] sm:$0xff]   ;;  %v11871_v58 = vld [vmem:[#allocation4 + $0x30] sm:$0xfe]  }
 0x3a2   : > { %v10674_v47 = vadd.f32 %v10673_v17, %v10672_v4  ;;  %v8537_v45 = vadd.f32 %v10671_v3, %v13150_v12  ;;  %v6661_v15 = vsel %vm1120_vm3, %v6656_v36, %v6660_v49  ;;  %v7673_v3 = vsel %vm1521_vm9, %v7671_v37, %v7672_v44  ;;  %v11872_v4 = vld [vmem:[#allocation4 + $0x38] ss:$0 sps:$4 sm:$0x11]  }
 0x3a3   : > { %v13210_v14 = vadd.f32 %v10780_v33, %v8532_v42  ;;  %v11869_v42 = vld [vmem:[#allocation4 + $0x24] sm:$0xfe]   ;;  %v7677_v57 = vrot.slane %v11871_v58, 1  ;;  %v7678_v25 = vrot.slane %v11872_v4, 1  ;;  %v11877_v36 = vld [vmem:[#allocation4 + $0x54] sm:$0xfe]  }
 0x3a4   : > { %v8540_v10 = vadd.f32 %v10674_v47, %v13150_v12  ;;  %v7674_v33 = vrot.slane %v11869_v42, 1  ;;  %v11879_v58 = vld [vmem:[#allocation4 + $0x60] sm:$0xfe]  }
 0x3a5   : > { %v10781_v27 = vpop.f32.mrb[172].mxu0  ;;  %9098 = vmatmul.mubr.bf16.gmra.mrb[20].mxu0 %v11853_v20  ;;  %v7679_v35 = vsel %vm1521_vm9, %v7677_v57, %v7678_v25 }
 0x3a6   : > { %v10782_v11 = vpop.f32.mrb[173].mxu0  ;;  %9105 = vmatprep.mubr.bf16.mxu0 %v7450_v26  ;;  %v11875_v26 = vld [vmem:[#allocation4 + $0x48] sm:$0xfe]  }
 0x3a7   : > { %v10783_v30 = vadd.f32 %v10782_v11, %v10781_v27  ;;  %v10784_v18 = vpop.f32.mrb[174].mxu0  ;;  %v11874_v27 = vld [vmem:[#allocation4 + $0x44] ss:$0 sps:$4 sm:$0x11]   ;;  %v7683_v32 = vrot.slane %v11875_v26, 1 }
 0x3a8   : > { %8945 = vmatmul.mubr.bf16.gmra.mrb[248].mxu1 %v6649_v7  ;;  %v10675_v48 = vpop.f32.mrb[144].mxu1  ;;  %v10785_v5 = vpop.f32.mrb[175].mxu0  ;;  %v7676_v7 = vsel %vm1521_vm9, %v7674_v33, %v7675_v39  ;;  %v7681_v54 = vrot.slane %v11874_v27, 1  ;;  %v11882_v27 = vld [vmem:[#allocation4 + $0x74] ss:$0 sps:$4 sm:$0x11]  }
 0x3a9   : > { %8952 = vmatprep.mubr.bf16.mxu1 %v6917_v41  ;;  %v10676_v24 = vpop.f32.mrb[145].mxu1  ;;  %v13218_v52 = vadd.f32 %v10783_v30, %v8537_v45  ;;  %v10786_v6 = vadd.f32 %v10785_v5, %v10784_v18  ;;  %v11876_v30 = vld [vmem:[#allocation4 + $0x50] ss:$0 sps:$4 sm:$0x11]  }
 0x3aa   : > { %v10677_v61 = vadd.f32 %v10676_v24, %v10675_v48  ;;  %v10678_v53 = vpop.f32.mrb[146].mxu1 }
 0x3ab   : > { %v10679_v34 = vpop.f32.mrb[147].mxu1  ;;  %v13220_v13 = vadd.f32 %v10786_v6, %v8540_v10  ;;  %v7684_v6 = vrot.slane %v11876_v30, 1 }
 0x3ac   : > { %v10680_v29 = vadd.f32 %v10679_v34, %v10678_v53  ;;  %v8545_v46 = vadd.f32 %v10677_v61, %v13150_v12 }
 0x3ad   : > { %9106 = vmatmul.mubr.bf16.gmra.mrb[24].mxu0 %v11861_v38  ;;  %v11878_v38 = vld [vmem:[#allocation4 + $0x5c] ss:$0 sps:$4 sm:$0x11]   ;;  %v7685_v42 = vsel %vm1521_vm9, %v7683_v32, %v7684_v6 }
 0x3ae   : > { %9113 = vmatprep.mubr.bf16.mxu0 %v7462_v56  ;;  %v10787_v43 = vpop.f32.mrb[176].mxu0  ;;  %v8548_v20 = vadd.f32 %v10680_v29, %v13150_v12  ;;  %v7682_v56 = vsel %vm1521_vm9, %v7680_v51, %v7681_v54  ;;  %v7693_v51 = vrot.slane %v11882_v27, 1 }
 0x3af   : > { %v10788_v17 = vpop.f32.mrb[177].mxu0 }
 0x3b0   : > { %8953 = vmatmul.mubr.bf16.gmra.mrb[252].mxu1 %v6661_v15  ;;  %v10789_v47 = vadd.f32 %v10788_v17, %v10787_v43  ;;  %v10790_v50 = vpop.f32.mrb[178].mxu0  ;;  %v7686_v17 = vrot.slane %v11877_v36, 1 }
 0x3b1   : > { %11171 = vmatprep.mubr.bf16.mxu1 %v7673_v3  ;;  %v10791_v21 = vpop.f32.mrb[179].mxu0 }
 0x3b2   : > { %v13227_v0 = vadd.f32 %v10789_v47, %v8545_v46  ;;  %v10792_v2 = vadd.f32 %v10791_v21, %v10790_v50  ;;  %v7690_v50 = vrot.slane %v11880_v8, 1 }
 0x3b3   : > { %v10681_v55 = vpop.f32.mrb[148].mxu1 }
 0x3b4   : > { %v10682_v60 = vpop.f32.mrb[149].mxu1  ;;  %v13230_v59 = vadd.f32 %v10792_v2, %v8548_v20  ;;  %v7689_v20 = vrot.slane %v11879_v58, 1  ;;  %v11887_v58 = vld [vmem:[#allocation4 + $0x90] sm:$0xfe]  }
 0x3b5   : > { %v10683_v63 = vadd.f32 %v10682_v60, %v10681_v55  ;;  %v10684_v40 = vpop.f32.mrb[150].mxu1  ;;  %9114 = vmatmul.mubr.bf16.gmra.mrb[28].mxu0 %v11868_v28  ;;  %v7687_v28 = vrot.slane %v11878_v38, 1 }
 0x3b6   : > { %v10685_v45 = vpop.f32.mrb[151].mxu1 }
 0x3b7   : > { %v10686_v11 = vadd.f32 %v10685_v45, %v10684_v40  ;;  %v8553_v10 = vadd.f32 %v10683_v63, %v13150_v12  ;;  %v7688_v2 = vsel %vm1521_vm9, %v7686_v17, %v7687_v28  ;;  %v11881_v45 = vld [vmem:[#allocation4 + $0x6c] sm:$0xfe]  }
 0x3b8   : > { %11172 = vmatmul.mubr.bf16.vlgmr.msra.gmra.mrb[0].mxu1 %v7676_v7  ;;  %v10793_v18 = vpop.f32.mrb[180].mxu0  ;;  %v11883_v7 = vld [vmem:[#allocation4 + $0x78] sm:$0xfe]  }
 0x3b9   : > { %11175 = vmatprep.mubr.bf16.mxu1 %v7679_v35  ;;  %v10794_v41 = vpop.f32.mrb[181].mxu0  ;;  %v8556_v24 = vadd.f32 %v10686_v11, %v13150_v12  ;;  %v7691_v11 = vsel %vm1521_vm9, %v7689_v20, %v7690_v50  ;;  %v11884_v35 = vld [vmem:[#allocation4 + $0x80] ss:$0 sps:$4 sm:$0x11]   ;;  %v7701_v50 = vrot.slane %v11887_v58, 1 }
 0x3ba   : > { %v10795_v5 = vadd.f32 %v10794_v41, %v10793_v18  ;;  %v10796_v19 = vpop.f32.mrb[182].mxu0  ;;  %v7696_v32 = vrot.slane %v11884_v35, 1 }
 0x3bb   : > { %v10687_v48 = vpop.f32.mrb[152].mxu1  ;;  %v10797_v61 = vpop.f32.mrb[183].mxu0 }
 0x3bc   : > { %v10688_v9 = vpop.f32.mrb[153].mxu1  ;;  %v13235_v29 = vadd.f32 %v10795_v5, %v8553_v10  ;;  %v10798_v37 = vadd.f32 %v10797_v61, %v10796_v19 }
 0x3bd   : > { %v10689_v53 = vadd.f32 %v10688_v9, %v10687_v48  ;;  %v10690_v34 = vpop.f32.mrb[154].mxu1  ;;  %v7692_v48 = vrot.slane %v11881_v45, 1  ;;  %v7695_v9 = vrot.slane %v11883_v7, 1  ;;  %v11890_v7 = vld [vmem:[#allocation4 + $0xa4] ss:$0 sps:$4 sm:$0x11]  }
 0x3be   : > { %v10691_v44 = vpop.f32.mrb[155].mxu1  ;;  %v13238_v15 = vadd.f32 %v10798_v37, %v8556_v24 }
 0x3bf   : > { %v10692_v49 = vadd.f32 %v10691_v44, %v10690_v34  ;;  %v8561_v3 = vadd.f32 %v10689_v53, %v13150_v12  ;;  %v7694_v38 = vsel %vm1521_vm9, %v7692_v48, %v7693_v51 }
 0x3c0   : > { %11176 = vmatmul.mubr.bf16.gmra.mrb[4].mxu1 %v7682_v56  ;;  %v10799_v4 = vpop.f32.mrb[184].mxu0  ;;  %v11886_v56 = vld [vmem:[#allocation4 + $0x8c] ss:$0 sps:$4 sm:$0x11]  }
 0x3c1   : > { %11179 = vmatprep.mubr.bf16.mxu1 %v7685_v42  ;;  %v10800_v46 = vpop.f32.mrb[185].mxu0  ;;  %v8564_v33 = vadd.f32 %v10692_v49, %v13150_v12  ;;  %v11885_v49 = vld [vmem:[#allocation4 + $0x84] sm:$0xfe]   ;;  %v7697_v42 = vsel %vm1521_vm9, %v7695_v9, %v7696_v32 }
 0x3c2   : > { %v10801_v55 = vadd.f32 %v10800_v46, %v10799_v4  ;;  %v10802_v39 = vpop.f32.mrb[186].mxu0  ;;  %v7698_v28 = vrot.slane %v11885_v49, 1 }
 0x3c3   : > { %v10693_v43 = vpop.f32.mrb[156].mxu1  ;;  %v10803_v60 = vpop.f32.mrb[187].mxu0 }
 0x3c4   : > { %v10694_v47 = vpop.f32.mrb[157].mxu1  ;;  %v13243_v21 = vadd.f32 %v10801_v55, %v8561_v3  ;;  %v10804_v63 = vadd.f32 %v10803_v60, %v10802_v39  ;;  %v11888_v3 = vld [vmem:[#allocation4 + $0x98] ss:$0 sps:$4 sm:$0x11]   ;;  %v7699_v55 = vrot.slane %v11886_v56, 1 }
 0x3c5   : > { %v10695_v57 = vadd.f32 %v10694_v47, %v10693_v43  ;;  %v10696_v25 = vpop.f32.mrb[158].mxu1  ;;  %v7702_v60 = vrot.slane %v11888_v3, 1  ;;  %v11893_v3 = vld [vmem:[#allocation4 + $0xb4] sm:$0xfe]  }
 0x3c6   : > { %v10697_v40 = vpop.f32.mrb[159].mxu1  ;;  %v13246_v26 = vadd.f32 %v10804_v63, %v8564_v33  ;;  %v7700_v27 = vsel %vm1521_vm9, %v7698_v28, %v7699_v55  ;;  %v11896_v28 = vld [vmem:[#allocation4 + $0xc8] ss:$0 sps:$4 sm:$0x11]  }
 0x3c7   : > { %v10698_v23 = vadd.f32 %v10697_v40, %v10696_v25  ;;  %v8569_v30 = vadd.f32 %v10695_v57, %v13150_v12 }
 0x3c8   : > { %11180 = vmatmul.mubr.bf16.gmra.mrb[8].mxu1 %v7688_v2  ;;  %v10805_v10 = vpop.f32.mrb[188].mxu0 }
 0x3c9   : > { %11183 = vmatprep.mubr.bf16.mxu1 %v7691_v11  ;;  %v10806_v18 = vpop.f32.mrb[189].mxu0  ;;  %v8572_v5 = vadd.f32 %v10698_v23, %v13150_v12  ;;  %v11889_v11 = vld [vmem:[#allocation4 + $0x9c] sm:$0xfe]  }
 0x3ca   : > { %v10807_v54 = vadd.f32 %v10806_v18, %v10805_v10  ;;  %v10808_v24 = vpop.f32.mrb[190].mxu0  ;;  %v11892_v10 = vld [vmem:[#allocation4 + $0xb0] ss:$0 sps:$4 sm:$0x11]   ;;  %v13268_v18 = vld [vmem:[%s13535_s4] ss:$0 sm:$0xff] }
 0x3cb   : > { %v10699_v41 = vpop.f32.mrb[160].mxu1  ;;  %v10809_v6 = vpop.f32.mrb[191].mxu0 }
 0x3cc   : > { %v10700_v19 = vpop.f32.mrb[161].mxu1  ;;  %v13251_v34 = vadd.f32 %v10807_v54, %v8569_v30  ;;  %v10810_v36 = vadd.f32 %v10809_v6, %v10808_v24  ;;  %v11891_v30 = vld [vmem:[#allocation4 + $0xa8] sm:$0xfe]   ;;  %v7705_v24 = vrot.slane %v11890_v7, 1 }
 0x3cd   : > { %v10701_v61 = vadd.f32 %v10700_v19, %v10699_v41  ;;  %v10702_v53 = vpop.f32.mrb[162].mxu1 }
 0x3ce   : > { %v10703_v37 = vpop.f32.mrb[163].mxu1  ;;  %v13254_v8 = vadd.f32 %v10810_v36, %v8572_v5  ;;  %v7704_v5 = vrot.slane %v11889_v11, 1 }
 0x3cf   : > { %v10704_v44 = vadd.f32 %v10703_v37, %v10702_v53  ;;  %v8577_v4 = vadd.f32 %v10701_v61, %v13150_v12  ;;  %v7707_v61 = vrot.slane %v11891_v30, 1  ;;  %v7708_v53 = vrot.slane %v11892_v10, 1 }
 0x3d0   : > { %11184 = vmatmul.mubr.bf16.gmra.mrb[12].mxu1 %v7694_v38  ;;  %v10811_v46 = vpop.f32.mrb[192].mxu0  ;;  %v7706_v58 = vsel %vm1521_vm9, %v7704_v5, %v7705_v24 }
 0x3d1   : > { %11187 = vmatprep.mubr.bf16.mxu1 %v7697_v42  ;;  %v10812_v43 = vpop.f32.mrb[193].mxu0  ;;  %v8580_v39 = vadd.f32 %v10704_v44, %v13150_v12  ;;  %v7703_v12 = vsel %vm1521_vm9, %v7701_v50, %v7702_v60 }
 0x3d2   : > { %v10813_v33 = vadd.f32 %v10812_v43, %v10811_v46  ;;  %v10814_v47 = vpop.f32.mrb[194].mxu0  ;;  %v7709_v43 = vsel %vm1521_vm9, %v7707_v61, %v7708_v53 }
 0x3d3   : > { %v10705_v17 = vpop.f32.mrb[164].mxu1  ;;  %v10815_v57 = vpop.f32.mrb[195].mxu0 }
 0x3d4   : > { %v10706_v20 = vpop.f32.mrb[165].mxu1  ;;  %v13259_v40 = vadd.f32 %v10813_v33, %v8577_v4  ;;  %v10816_v23 = vadd.f32 %v10815_v57, %v10814_v47  ;;  %v11894_v4 = vld [vmem:[#allocation4 + $0xbc] ss:$0 sps:$4 sm:$0x11]  }
 0x3d5   : > { %v10707_v25 = vadd.f32 %v10706_v20, %v10705_v17  ;;  %v10708_v63 = vpop.f32.mrb[166].mxu1  ;;  %v11895_v17 = vld [vmem:[#allocation4 + $0xc0] sm:$0xfe]   ;;  %v7710_v20 = vrot.slane %v11893_v3, 1  ;;  %v7711_v50 = vrot.slane %v11894_v4, 1 }
 0x3d6   : > { %v10709_v2 = vpop.f32.mrb[167].mxu1  ;;  %v13262_v35 = vadd.f32 %v10816_v23, %v8580_v39  ;;  %v7713_v23 = vrot.slane %v11895_v17, 1 }
 0x3d7   : > { %v10710_v45 = vadd.f32 %v10709_v2, %v10708_v63  ;;  %v8585_v41 = vadd.f32 %v13268_v18, %v10707_v25  ;;  %v7714_v2 = vrot.slane %v11896_v28, 1 }
 0x3d8   : > { %11188 = vmatmul.mubr.bf16.gmra.mrb[16].mxu1 %v7700_v27  ;;  %v10817_v48 = vpop.f32.mrb[196].mxu0 }
 0x3d9   : > { %11191 = vmatprep.mubr.bf16.mxu1 %v7703_v12  ;;  %v10818_v51 = vpop.f32.mrb[197].mxu0  ;;  %v8588_v9 = vadd.f32 %v13268_v18, %v10710_v45  ;;  %v11897_v45 = vld [vmem:[#allocation4 + $0xcc] sm:$0xfe]   ;;  %v11898_v12 = vld [vmem:[#allocation4 + $0xd4] ss:$0 sps:$4 sm:$0x11]   ;;  %v7715_v5 = vsel %vm1521_vm9, %v7713_v23, %v7714_v2 }
 0x3da   : > { %v10819_v19 = vadd.f32 %v10818_v51, %v10817_v48  ;;  %v10820_v32 = vpop.f32.mrb[198].mxu0  ;;  %v7712_v51 = vsel %vm1521_vm9, %v7710_v20, %v7711_v50  ;;  %v7716_v24 = vrot.slane %v11897_v45, 1 }
 0x3db   : > { %v10711_v54 = vpop.f32.mrb[168].mxu1  ;;  %v10821_v36 = vpop.f32.mrb[199].mxu0 }
 0x3dc   : > { %v10712_v6 = vpop.f32.mrb[169].mxu1  ;;  %v13272_v38 = vadd.f32 %v10819_v19, %v8585_v41  ;;  %v10822_v49 = vadd.f32 %v10821_v36, %v10820_v32  ;;  %v7717_v19 = vrot.slane %v11898_v12, 1 }
 0x3dd   : > { %v10713_v37 = vadd.f32 %v10712_v6, %v10711_v54  ;;  %v10714_v44 = vpop.f32.mrb[170].mxu1 }
 0x3de   : > { %v10715_v56 = vpop.f32.mrb[171].mxu1  ;;  %v13275_v46 = vadd.f32 %v10822_v49, %v8588_v9 }
 0x3df   : > { %v10716_v42 = vadd.f32 %v10715_v56, %v10714_v44  ;;  %v8593_v55 = vadd.f32 %v13268_v18, %v10713_v37 }
 0x3e0   : > { %11192 = vmatmul.mubr.bf16.gmra.mrb[20].mxu1 %v7706_v58  ;;  %v10823_v33 = vpop.f32.mrb[200].mxu0  ;;  %v7718_v58 = vsel %vm1521_vm9, %v7716_v24, %v7717_v19 }
 0x3e1   : > { %11195 = vmatprep.mubr.bf16.mxu1 %v7709_v43  ;;  %v10824_v39 = vpop.f32.mrb[201].mxu0  ;;  %v8596_v57 = vadd.f32 %v13268_v18, %v10716_v42 }
 0x3e2   : > { %v10825_v60 = vadd.f32 %v10824_v39, %v10823_v33  ;;  %v10826_v25 = vpop.f32.mrb[202].mxu0 }
 0x3e3   : > { %v10717_v47 = vpop.f32.mrb[172].mxu1  ;;  %v10827_v27 = vpop.f32.mrb[203].mxu0 }
 0x3e4   : > { %v10718_v63 = vpop.f32.mrb[173].mxu1  ;;  %v13280_v30 = vadd.f32 %v10825_v60, %v8593_v55  ;;  %v10828_v10 = vadd.f32 %v10827_v27, %v10826_v25 }
 0x3e5   : > { %v10719_v11 = vadd.f32 %v10718_v63, %v10717_v47  ;;  %v10720_v7 = vpop.f32.mrb[174].mxu1 }
 0x3e6   : > { %v10721_v41 = vpop.f32.mrb[175].mxu1  ;;  %v13283_v54 = vadd.f32 %v10828_v10, %v8596_v57 }
 0x3e7   : > { %v10722_v48 = vadd.f32 %v10721_v41, %v10720_v7  ;;  %v8601_v9 = vadd.f32 %v13268_v18, %v10719_v11 }
 0x3e8   : > { %11196 = vmatmul.mubr.bf16.gmra.mrb[24].mxu1 %v7712_v51  ;;  %v10829_v32 = vpop.f32.mrb[204].mxu0 }
 0x3e9   : > { %11199 = vmatprep.mubr.bf16.mxu1 %v7715_v5  ;;  %v10830_v6 = vpop.f32.mrb[205].mxu0  ;;  %v8604_v36 = vadd.f32 %v13268_v18, %v10722_v48 }
 0x3ea   : > { %v10831_v53 = vadd.f32 %v10830_v6, %v10829_v32  ;;  %v10832_v37 = vpop.f32.mrb[206].mxu0 }
 0x3eb   : > { %v10723_v61 = vpop.f32.mrb[176].mxu1  ;;  %v10833_v49 = vpop.f32.mrb[207].mxu0 }
 0x3ec   : > { %v10724_v44 = vpop.f32.mrb[177].mxu1  ;;  %v13289_v3 = vadd.f32 %v10831_v53, %v8601_v9  ;;  %v10834_v4 = vadd.f32 %v10833_v49, %v10832_v37 }
 0x3ed   : > { %v10725_v56 = vadd.f32 %v10724_v44, %v10723_v61  ;;  %v10726_v42 = vpop.f32.mrb[178].mxu1 }
 0x3ee   : > { %v10727_v43 = vpop.f32.mrb[179].mxu1  ;;  %v13291_v28 = vadd.f32 %v10834_v4, %v8604_v36 }
 0x3ef   : > { %v10728_v17 = vadd.f32 %v10727_v43, %v10726_v42  ;;  %v8609_v55 = vadd.f32 %v13268_v18, %v10725_v56 }
 0x3f0   : > { %11200 = vmatmul.mubr.bf16.gmra.mrb[28].mxu1 %v7718_v58  ;;  %v10835_v33 = vpop.f32.mrb[208].mxu0 }
 0x3f1   : > { %v10836_v39 = vpop.f32.mrb[209].mxu0  ;;  %v8612_v50 = vadd.f32 %v13268_v18, %v10728_v17 }
 0x3f2   : > { %v10837_v20 = vadd.f32 %v10836_v39, %v10835_v33  ;;  %v10838_v60 = vpop.f32.mrb[210].mxu0 }
 0x3f3   : > { %v10729_v47 = vpop.f32.mrb[180].mxu1  ;;  %v10839_v25 = vpop.f32.mrb[211].mxu0 }
 0x3f4   : > { %v10730_v57 = vpop.f32.mrb[181].mxu1  ;;  %v13295_v2 = vadd.f32 %v10837_v20, %v8609_v55  ;;  %v10840_v45 = vadd.f32 %v10839_v25, %v10838_v60 }
 0x3f5   : > { %v10731_v63 = vadd.f32 %v10730_v57, %v10729_v47  ;;  %v10732_v23 = vpop.f32.mrb[182].mxu1 }
 0x3f6   : > { %v10733_v27 = vpop.f32.mrb[183].mxu1  ;;  %v13297_v7 = vadd.f32 %v10840_v45, %v8612_v50 }
 0x3f7   : > { %v10734_v11 = vadd.f32 %v10733_v27, %v10732_v23  ;;  %v8617_v12 = vadd.f32 %v13268_v18, %v10731_v63 }
 0x3f8   : > { %v10841_v10 = vpop.f32.mrb[212].mxu0 }
 0x3f9   : > { %v10842_v41 = vpop.f32.mrb[213].mxu0  ;;  %v8620_v5 = vadd.f32 %v13268_v18, %v10734_v11 }
 0x3fa   : > { %v10843_v51 = vadd.f32 %v10842_v41, %v10841_v10  ;;  %v10844_v24 = vpop.f32.mrb[214].mxu0 }
 0x3fb   : > { %v10735_v48 = vpop.f32.mrb[184].mxu1  ;;  %v10845_v9 = vpop.f32.mrb[215].mxu0 }
 0x3fc   : > { %v10736_v19 = vpop.f32.mrb[185].mxu1  ;;  %v13301_v61 = vadd.f32 %v10843_v51, %v8617_v12  ;;  %v10846_v53 = vadd.f32 %v10845_v9, %v10844_v24 }
 0x3fd   : > { %v10737_v32 = vadd.f32 %v10736_v19, %v10735_v48  ;;  %v10738_v6 = vpop.f32.mrb[186].mxu1 }
 0x3fe   : > { %v10739_v36 = vpop.f32.mrb[187].mxu1  ;;  %v13303_v44 = vadd.f32 %v10846_v53, %v8620_v5 }
 0x3ff   : > { %v10740_v37 = vadd.f32 %v10739_v36, %v10738_v6  ;;  %v8625_v49 = vadd.f32 %v13268_v18, %v10737_v32 }
 0x400   : > { %v10847_v56 = vpop.f32.mrb[216].mxu0 }
 0x401   : > { %v10848_v42 = vpop.f32.mrb[217].mxu0  ;;  %v8628_v43 = vadd.f32 %v13268_v18, %v10740_v37 }
 0x402   : > { %v10849_v4 = vadd.f32 %v10848_v42, %v10847_v56  ;;  %v10850_v17 = vpop.f32.mrb[218].mxu0 }
 0x403   : > { %v10741_v58 = vpop.f32.mrb[188].mxu1  ;;  %v10851_v33 = vpop.f32.mrb[219].mxu0 }
 0x404   : > { %v10742_v55 = vpop.f32.mrb[189].mxu1  ;;  %v13307_v20 = vadd.f32 %v10849_v4, %v8625_v49  ;;  %v10852_v50 = vadd.f32 %v10851_v33, %v10850_v17 }
 0x405   : > { %v10743_v39 = vadd.f32 %v10742_v55, %v10741_v58  ;;  %v10744_v47 = vpop.f32.mrb[190].mxu1 }
 0x406   : > { %v10745_v60 = vpop.f32.mrb[191].mxu1  ;;  %v13309_v25 = vadd.f32 %v10852_v50, %v8628_v43 }
 0x407   : > { %v10746_v57 = vadd.f32 %v10745_v60, %v10744_v47  ;;  %v8633_v63 = vadd.f32 %v13268_v18, %v10743_v39 }
 0x408   : > { %v10853_v23 = vpop.f32.mrb[220].mxu0 }
 0x409   : > { %v10854_v45 = vpop.f32.mrb[221].mxu0  ;;  %v8636_v12 = vadd.f32 %v13268_v18, %v10746_v57 }
 0x40a   : > { %v10855_v11 = vadd.f32 %v10854_v45, %v10853_v23  ;;  %v10856_v10 = vpop.f32.mrb[222].mxu0 }
 0x40b   : > { %v10875_v27 = vpop.f32.mrb[192].mxu1  ;;  %v10857_v48 = vpop.f32.mrb[223].mxu0 }
 0x40c   : > { %v10876_v41 = vpop.f32.mrb[193].mxu1  ;;  %v13313_v24 = vadd.f32 %v10855_v11, %v8633_v63  ;;  %v10858_v19 = vadd.f32 %v10857_v48, %v10856_v10 }
 0x40d   : > { %v10877_v51 = vadd.f32 %v10876_v41, %v10875_v27  ;;  %v10878_v5 = vpop.f32.mrb[194].mxu1 }
 0x40e   : > { %v10879_v9 = vpop.f32.mrb[195].mxu1  ;;  %v13316_v53 = vadd.f32 %v10858_v19, %v8636_v12 }
 0x40f   : > { %v8835_v32 = vadd.f32 %v10877_v51, %v13156_v1  ;;  %v10880_v6 = vadd.f32 %v10879_v9, %v10878_v5 }
 0x410   : > { %v10987_v37 = vpop.f32.mrb[224].mxu0 }
 0x411   : > { %v8838_v36 = vadd.f32 %v10880_v6, %v13160_v31  ;;  %v10988_v49 = vpop.f32.mrb[225].mxu0 }
 0x412   : > { %v10989_v18 = vadd.f32 %v10988_v49, %v10987_v37  ;;  %v10990_v42 = vpop.f32.mrb[226].mxu0 }
 0x413   : > { %v10881_v56 = vpop.f32.mrb[196].mxu1  ;;  %v10991_v4 = vpop.f32.mrb[227].mxu0 }
 0x414   : > { %v10882_v58 = vpop.f32.mrb[197].mxu1  ;;  %v10992_v55 = vadd.f32 %v10991_v4, %v10990_v42  ;;  %v13319_v39 = vadd.f32 %v10989_v18, %v8835_v32 }
 0x415   : > { %v10883_v43 = vadd.f32 %v10882_v58, %v10881_v56  ;;  %v10884_v17 = vpop.f32.mrb[198].mxu1 }
 0x416   : > { %v10885_v33 = vpop.f32.mrb[199].mxu1  ;;  %v13322_v50 = vadd.f32 %v10992_v55, %v8838_v36 }
 0x417   : > { %v8843_v1 = vadd.f32 %v10883_v43, %v13183_v62  ;;  %v10886_v47 = vadd.f32 %v10885_v33, %v10884_v17 }
 0x418   : > { %v10993_v60 = vpop.f32.mrb[228].mxu0 }
 0x419   : > { %v8846_v31 = vadd.f32 %v10886_v47, %v13188_v22  ;;  %v10994_v57 = vpop.f32.mrb[229].mxu0 }
 0x41a   : > { %v10995_v23 = vadd.f32 %v10994_v57, %v10993_v60  ;;  %v10996_v45 = vpop.f32.mrb[230].mxu0 }
 0x41b   : > { %v10887_v63 = vpop.f32.mrb[200].mxu1  ;;  %v10997_v11 = vpop.f32.mrb[231].mxu0 }
 0x41c   : > { %v10888_v27 = vpop.f32.mrb[201].mxu1  ;;  %v10998_v41 = vadd.f32 %v10997_v11, %v10996_v45  ;;  %v13325_v51 = vadd.f32 %v10995_v23, %v8843_v1 }
 0x41d   : > { %v10889_v12 = vadd.f32 %v10888_v27, %v10887_v63  ;;  %v10890_v10 = vpop.f32.mrb[202].mxu1 }
 0x41e   : > { %v10891_v48 = vpop.f32.mrb[203].mxu1  ;;  %v13328_v19 = vadd.f32 %v10998_v41, %v8846_v31 }
 0x41f   : > { %v8851_v62 = vadd.f32 %v10889_v12, %v13208_v16  ;;  %v10892_v5 = vadd.f32 %v10891_v48, %v10890_v10 }
 0x420   : > { %v10999_v9 = vpop.f32.mrb[232].mxu0 }
 0x421   : > { %v8854_v22 = vadd.f32 %v10892_v5, %v13210_v14  ;;  %v11000_v32 = vpop.f32.mrb[233].mxu0 }
 0x422   : > { %v11001_v36 = vadd.f32 %v11000_v32, %v10999_v9  ;;  %v11002_v37 = vpop.f32.mrb[234].mxu0 }
 0x423   : > { %v10893_v6 = vpop.f32.mrb[204].mxu1  ;;  %v11003_v56 = vpop.f32.mrb[235].mxu0 }
 0x424   : > { %v10894_v49 = vpop.f32.mrb[205].mxu1  ;;  %v11004_v58 = vadd.f32 %v11003_v56, %v11002_v37  ;;  %v13331_v43 = vadd.f32 %v11001_v36, %v8851_v62 }
 0x425   : > { %v10895_v18 = vadd.f32 %v10894_v49, %v10893_v6  ;;  %v10896_v42 = vpop.f32.mrb[206].mxu1 }
 0x426   : > { %v10897_v4 = vpop.f32.mrb[207].mxu1  ;;  %v13334_v55 = vadd.f32 %v11004_v58, %v8854_v22 }
 0x427   : > { %v8859_v16 = vadd.f32 %v10895_v18, %v13218_v52  ;;  %v10898_v17 = vadd.f32 %v10897_v4, %v10896_v42 }
 0x428   : > { %v11005_v33 = vpop.f32.mrb[236].mxu0 }
 0x429   : > { %v8862_v14 = vadd.f32 %v10898_v17, %v13220_v13  ;;  %v11006_v1 = vpop.f32.mrb[237].mxu0 }
 0x42a   : > { %v11007_v31 = vadd.f32 %v11006_v1, %v11005_v33  ;;  %v11008_v60 = vpop.f32.mrb[238].mxu0 }
 0x42b   : > { %v10899_v47 = vpop.f32.mrb[208].mxu1  ;;  %v11009_v63 = vpop.f32.mrb[239].mxu0 }
 0x42c   : > { %v10900_v57 = vpop.f32.mrb[209].mxu1  ;;  %v11010_v27 = vadd.f32 %v11009_v63, %v11008_v60  ;;  %v13337_v12 = vadd.f32 %v11007_v31, %v8859_v16 }
 0x42d   : > { %v10901_v23 = vadd.f32 %v10900_v57, %v10899_v47  ;;  %v10902_v45 = vpop.f32.mrb[210].mxu1 }
 0x42e   : > { %v10903_v11 = vpop.f32.mrb[211].mxu1  ;;  %v13340_v41 = vadd.f32 %v11010_v27, %v8862_v14 }
 0x42f   : > { %v8867_v52 = vadd.f32 %v10901_v23, %v13227_v0  ;;  %v10904_v10 = vadd.f32 %v10903_v11, %v10902_v45 }
 0x430   : > { %v11011_v48 = vpop.f32.mrb[240].mxu0 }
 0x431   : > { %v8870_v13 = vadd.f32 %v10904_v10, %v13230_v59  ;;  %v11012_v62 = vpop.f32.mrb[241].mxu0 }
 0x432   : > { %v11013_v22 = vadd.f32 %v11012_v62, %v11011_v48  ;;  %v11014_v9 = vpop.f32.mrb[242].mxu0 }
 0x433   : > { %v10905_v5 = vpop.f32.mrb[212].mxu1  ;;  %v11015_v6 = vpop.f32.mrb[243].mxu0 }
 0x434   : > { %v10906_v32 = vpop.f32.mrb[213].mxu1  ;;  %v11016_v49 = vadd.f32 %v11015_v6, %v11014_v9  ;;  %v13343_v18 = vadd.f32 %v11013_v22, %v8867_v52 }
 0x435   : > { %v10907_v36 = vadd.f32 %v10906_v32, %v10905_v5  ;;  %v10908_v37 = vpop.f32.mrb[214].mxu1 }
 0x436   : > { %v10909_v56 = vpop.f32.mrb[215].mxu1  ;;  %v13346_v58 = vadd.f32 %v11016_v49, %v8870_v13 }
 0x437   : > { %v8875_v0 = vadd.f32 %v10907_v36, %v13235_v29  ;;  %v10910_v42 = vadd.f32 %v10909_v56, %v10908_v37 }
 0x438   : > { %v11017_v4 = vpop.f32.mrb[244].mxu0 }
 0x439   : > { %v8878_v59 = vadd.f32 %v10910_v42, %v13238_v15  ;;  %v11018_v16 = vpop.f32.mrb[245].mxu0 }
 0x43a   : > { %v11019_v14 = vadd.f32 %v11018_v16, %v11017_v4  ;;  %v11020_v33 = vpop.f32.mrb[246].mxu0 }
 0x43b   : > { %v10911_v17 = vpop.f32.mrb[216].mxu1  ;;  %v11021_v47 = vpop.f32.mrb[247].mxu0 }
 0x43c   : > { %v10912_v1 = vpop.f32.mrb[217].mxu1  ;;  %v11022_v57 = vadd.f32 %v11021_v47, %v11020_v33  ;;  %v13349_v23 = vadd.f32 %v11019_v14, %v8875_v0 }
 0x43d   : > { %v10913_v31 = vadd.f32 %v10912_v1, %v10911_v17  ;;  %v10914_v60 = vpop.f32.mrb[218].mxu1 }
 0x43e   : > { %v10915_v63 = vpop.f32.mrb[219].mxu1  ;;  %v13352_v27 = vadd.f32 %v11022_v57, %v8878_v59 }
 0x43f   : > { %v8883_v29 = vadd.f32 %v10913_v31, %v13243_v21  ;;  %v10916_v45 = vadd.f32 %v10915_v63, %v10914_v60 }
 0x440   : > { %v11023_v11 = vpop.f32.mrb[248].mxu0 }
 0x441   : > { %v8886_v15 = vadd.f32 %v10916_v45, %v13246_v26  ;;  %v11024_v52 = vpop.f32.mrb[249].mxu0 }
 0x442   : > { %v11025_v13 = vadd.f32 %v11024_v52, %v11023_v11  ;;  %v11026_v48 = vpop.f32.mrb[250].mxu0 }
 0x443   : > { %v10917_v10 = vpop.f32.mrb[220].mxu1  ;;  %v11027_v5 = vpop.f32.mrb[251].mxu0 }
 0x444   : > { %v10918_v62 = vpop.f32.mrb[221].mxu1  ;;  %v11028_v32 = vadd.f32 %v11027_v5, %v11026_v48  ;;  %v13355_v36 = vadd.f32 %v11025_v13, %v8883_v29 }
 0x445   : > { %v10919_v22 = vadd.f32 %v10918_v62, %v10917_v10  ;;  %v10920_v9 = vpop.f32.mrb[222].mxu1 }
 0x446   : > { %v10921_v6 = vpop.f32.mrb[223].mxu1  ;;  %v13358_v49 = vadd.f32 %v11028_v32, %v8886_v15 }
 0x447   : > { %v8891_v21 = vadd.f32 %v10919_v22, %v13251_v34  ;;  %v10922_v37 = vadd.f32 %v10921_v6, %v10920_v9 }
 0x448   : > { %v11029_v56 = vpop.f32.mrb[252].mxu0 }
 0x449   : > { %v8894_v26 = vadd.f32 %v10922_v37, %v13254_v8  ;;  %v11030_v0 = vpop.f32.mrb[253].mxu0 }
 0x44a   : > { %v11031_v59 = vadd.f32 %v11030_v0, %v11029_v56  ;;  %v11032_v4 = vpop.f32.mrb[254].mxu0 }
 0x44b   : > { %v10923_v42 = vpop.f32.mrb[224].mxu1  ;;  %v11033_v17 = vpop.f32.mrb[255].mxu0 }
 0x44c   : > { %v10924_v16 = vpop.f32.mrb[225].mxu1  ;;  %v11034_v1 = vadd.f32 %v11033_v17, %v11032_v4  ;;  %v13361_v31 = vadd.f32 %v11031_v59, %v8891_v21 }
 0x44d   : > { %v10925_v14 = vadd.f32 %v10924_v16, %v10923_v42  ;;  %v10926_v33 = vpop.f32.mrb[226].mxu1 }
 0x44e   : > { %v10927_v47 = vpop.f32.mrb[227].mxu1  ;;  %v13364_v57 = vadd.f32 %v11034_v1, %v8894_v26 }
 0x44f   : > { %v8899_v34 = vadd.f32 %v10925_v14, %v13259_v40  ;;  %v10928_v60 = vadd.f32 %v10927_v47, %v10926_v33 }
 0x450   : > { %v11035_v63 = vpop.f32.mrb[0].mxu0 }
 0x451   : > { %v8902_v8 = vadd.f32 %v10928_v60, %v13262_v35  ;;  %v11036_v29 = vpop.f32.mrb[1].mxu0 }
 0x452   : > { %v11037_v15 = vadd.f32 %v11036_v29, %v11035_v63  ;;  %v11038_v11 = vpop.f32.mrb[2].mxu0 }
 0x453   : > { %v10929_v45 = vpop.f32.mrb[228].mxu1  ;;  %v11039_v10 = vpop.f32.mrb[3].mxu0 }
 0x454   : > { %v10930_v52 = vpop.f32.mrb[229].mxu1  ;;  %v11040_v62 = vadd.f32 %v11039_v10, %v11038_v11  ;;  %v13367_v22 = vadd.f32 %v11037_v15, %v8899_v34 }
 0x455   : > { %v10931_v13 = vadd.f32 %v10930_v52, %v10929_v45  ;;  %v10932_v48 = vpop.f32.mrb[230].mxu1 }
 0x456   : > { %v10933_v5 = vpop.f32.mrb[231].mxu1  ;;  %v13370_v32 = vadd.f32 %v11040_v62, %v8902_v8 }
 0x457   : > { %v8907_v40 = vadd.f32 %v10931_v13, %v13272_v38  ;;  %v10934_v9 = vadd.f32 %v10933_v5, %v10932_v48 }
 0x458   : > { %v11041_v6 = vpop.f32.mrb[4].mxu0 }
 0x459   : > { %v8910_v35 = vadd.f32 %v10934_v9, %v13275_v46  ;;  %v11042_v21 = vpop.f32.mrb[5].mxu0 }
 0x45a   : > { %v11043_v26 = vadd.f32 %v11042_v21, %v11041_v6  ;;  %v11044_v56 = vpop.f32.mrb[6].mxu0 }
 0x45b   : > { %v10935_v37 = vpop.f32.mrb[232].mxu1  ;;  %v11045_v42 = vpop.f32.mrb[7].mxu0 }
 0x45c   : > { %v10936_v0 = vpop.f32.mrb[233].mxu1  ;;  %v11046_v16 = vadd.f32 %v11045_v42, %v11044_v56  ;;  %v13373_v14 = vadd.f32 %v11043_v26, %v8907_v40 }
 0x45d   : > { %v10937_v59 = vadd.f32 %v10936_v0, %v10935_v37  ;;  %v10938_v4 = vpop.f32.mrb[234].mxu1 }
 0x45e   : > { %v10939_v17 = vpop.f32.mrb[235].mxu1  ;;  %v13376_v1 = vadd.f32 %v11046_v16, %v8910_v35 }
 0x45f   : > { %v8915_v38 = vadd.f32 %v10937_v59, %v13280_v30  ;;  %v10940_v33 = vadd.f32 %v10939_v17, %v10938_v4 }
 0x460   : > { %v11047_v47 = vpop.f32.mrb[8].mxu0 }
 0x461   : > { %v8918_v46 = vadd.f32 %v10940_v33, %v13283_v54  ;;  %v11048_v34 = vpop.f32.mrb[9].mxu0 }
 0x462   : > { %v11049_v8 = vadd.f32 %v11048_v34, %v11047_v47  ;;  %v11050_v63 = vpop.f32.mrb[10].mxu0 }
 0x463   : > { %v10941_v60 = vpop.f32.mrb[236].mxu1  ;;  %v11051_v45 = vpop.f32.mrb[11].mxu0 }
 0x464   : > { %v10942_v29 = vpop.f32.mrb[237].mxu1  ;;  %v11052_v52 = vadd.f32 %v11051_v45, %v11050_v63  ;;  %v13379_v13 = vadd.f32 %v11049_v8, %v8915_v38 }
 0x465   : > { %v10943_v15 = vadd.f32 %v10942_v29, %v10941_v60  ;;  %v10944_v11 = vpop.f32.mrb[238].mxu1 }
 0x466   : > { %v10945_v10 = vpop.f32.mrb[239].mxu1  ;;  %v13382_v62 = vadd.f32 %v11052_v52, %v8918_v46 }
 0x467   : > { %v8923_v30 = vadd.f32 %v10943_v15, %v13289_v3  ;;  %v10946_v48 = vadd.f32 %v10945_v10, %v10944_v11 }
 0x468   : > { %v11053_v5 = vpop.f32.mrb[12].mxu0 }
 0x469   : > { %v8926_v54 = vadd.f32 %v10946_v48, %v13291_v28  ;;  %v11054_v40 = vpop.f32.mrb[13].mxu0 }
 0x46a   : > { %v11055_v35 = vadd.f32 %v11054_v40, %v11053_v5  ;;  %v11056_v6 = vpop.f32.mrb[14].mxu0 }
 0x46b   : > { %v10947_v9 = vpop.f32.mrb[240].mxu1  ;;  %v11057_v37 = vpop.f32.mrb[15].mxu0 }
 0x46c   : > { %v10948_v21 = vpop.f32.mrb[241].mxu1  ;;  %v11058_v0 = vadd.f32 %v11057_v37, %v11056_v6  ;;  %v13385_v59 = vadd.f32 %v11055_v35, %v8923_v30 }
 0x46d   : > { %v10949_v26 = vadd.f32 %v10948_v21, %v10947_v9  ;;  %v10950_v56 = vpop.f32.mrb[242].mxu1 }
 0x46e   : > { %v10951_v42 = vpop.f32.mrb[243].mxu1  ;;  %v13388_v16 = vadd.f32 %v11058_v0, %v8926_v54 }
 0x46f   : > { %v8931_v3 = vadd.f32 %v10949_v26, %v13295_v2  ;;  %v10952_v4 = vadd.f32 %v10951_v42, %v10950_v56 }
 0x470   : > { %v11059_v17 = vpop.f32.mrb[16].mxu0 }
 0x471   : > { %v8934_v28 = vadd.f32 %v10952_v4, %v13297_v7  ;;  %v11060_v38 = vpop.f32.mrb[17].mxu0 }
 0x472   : > { %v11061_v46 = vadd.f32 %v11060_v38, %v11059_v17  ;;  %v11062_v47 = vpop.f32.mrb[18].mxu0 }
 0x473   : > { %v10953_v33 = vpop.f32.mrb[244].mxu1  ;;  %v11063_v60 = vpop.f32.mrb[19].mxu0 }
 0x474   : > { %v10954_v34 = vpop.f32.mrb[245].mxu1  ;;  %v11064_v29 = vadd.f32 %v11063_v60, %v11062_v47  ;;  %v13391_v15 = vadd.f32 %v11061_v46, %v8931_v3 }
 0x475   : > { %v10955_v8 = vadd.f32 %v10954_v34, %v10953_v33  ;;  %v10956_v63 = vpop.f32.mrb[246].mxu1 }
 0x476   : > { %v10957_v45 = vpop.f32.mrb[247].mxu1  ;;  %v13394_v52 = vadd.f32 %v11064_v29, %v8934_v28 }
 0x477   : > { %v8939_v2 = vadd.f32 %v10955_v8, %v13301_v61  ;;  %v10958_v11 = vadd.f32 %v10957_v45, %v10956_v63 }
 0x478   : > { %v11065_v10 = vpop.f32.mrb[20].mxu0 }
 0x479   : > { %v8942_v7 = vadd.f32 %v10958_v11, %v13303_v44  ;;  %v11066_v30 = vpop.f32.mrb[21].mxu0 }
 0x47a   : > { %v11067_v54 = vadd.f32 %v11066_v30, %v11065_v10  ;;  %v11068_v5 = vpop.f32.mrb[22].mxu0 }
 0x47b   : > { %v10959_v48 = vpop.f32.mrb[248].mxu1  ;;  %v11069_v9 = vpop.f32.mrb[23].mxu0 }
 0x47c   : > { %v10960_v40 = vpop.f32.mrb[249].mxu1  ;;  %v11070_v21 = vadd.f32 %v11069_v9, %v11068_v5  ;;  %v13397_v26 = vadd.f32 %v11067_v54, %v8939_v2 }
 0x47d   : > { %v10961_v35 = vadd.f32 %v10960_v40, %v10959_v48  ;;  %v10962_v6 = vpop.f32.mrb[250].mxu1 }
 0x47e   : > { %v10963_v37 = vpop.f32.mrb[251].mxu1  ;;  %v13400_v0 = vadd.f32 %v11070_v21, %v8942_v7 }
 0x47f   : > { %v8947_v61 = vadd.f32 %v10961_v35, %v13307_v20  ;;  %v10964_v56 = vadd.f32 %v10963_v37, %v10962_v6 }
 0x480   : > { %v11071_v42 = vpop.f32.mrb[24].mxu0 }
 0x481   : > { %v8950_v44 = vadd.f32 %v10964_v56, %v13309_v25  ;;  %v11072_v3 = vpop.f32.mrb[25].mxu0 }
 0x482   : > { %v11073_v28 = vadd.f32 %v11072_v3, %v11071_v42  ;;  %v11074_v17 = vpop.f32.mrb[26].mxu0 }
 0x483   : > { %v10965_v4 = vpop.f32.mrb[252].mxu1  ;;  %v11075_v33 = vpop.f32.mrb[27].mxu0 }
 0x484   : > { %v10966_v38 = vpop.f32.mrb[253].mxu1  ;;  %v11076_v34 = vadd.f32 %v11075_v33, %v11074_v17  ;;  %v13403_v8 = vadd.f32 %v11073_v28, %v8947_v61 }
 0x485   : > { %v10967_v46 = vadd.f32 %v10966_v38, %v10965_v4  ;;  %v10968_v47 = vpop.f32.mrb[254].mxu1 }
 0x486   : > { %v10969_v60 = vpop.f32.mrb[255].mxu1  ;;  %v13406_v29 = vadd.f32 %v11076_v34, %v8950_v44 }
 0x487   : > { %v8955_v20 = vadd.f32 %v10967_v46, %v13313_v24  ;;  %v10970_v63 = vadd.f32 %v10969_v60, %v10968_v47 }
 0x488   : > { %v11077_v45 = vpop.f32.mrb[28].mxu0 }
 0x489   : > { %v8958_v25 = vadd.f32 %v10970_v63, %v13316_v53  ;;  %v11078_v2 = vpop.f32.mrb[29].mxu0 }
 0x48a   : > { %v11079_v7 = vadd.f32 %v11078_v2, %v11077_v45  ;;  %v11080_v10 = vpop.f32.mrb[30].mxu0 }
 0x48b   : > { %v11173_v11 = vpop.f32.mrb[0].mxu1  ;;  %v11081_v54 = vpop.f32.mrb[31].mxu0 }
 0x48c   : > { %v9165_v30 = vadd.f32 %v11173_v11, %v13325_v51  ;;  %v9156_v48 = vpop.f32.mrb[1].mxu1  ;;  %v11082_v9 = vadd.f32 %v11081_v54, %v11080_v10  ;;  %v13413_v21 = vadd.f32 %v11079_v7, %v8955_v20 }
 0x48d   : > { %v9157_v5 = vadd.f32 %v9156_v48, %v13319_v39  ;;  %v11174_v40 = vpop.f32.mrb[2].mxu1 }
 0x48e   : > { %v9285_v24 = vmax.f32 %v9165_v30, 0.0  ;;  %v9168_v35 = vadd.f32 %v11174_v40, %v13328_v19  ;;  %v9159_v6 = vpop.f32.mrb[3].mxu1  ;;  %v13419_v39 = vadd.f32 %v11082_v9, %v8958_v25 }
 0x48f   : > { %v9283_v53 = vmax.f32 %v9157_v5, 0.0  ;;  %v9160_v37 = vadd.f32 %v9159_v6, %v13322_v50 }
 0x490   : > { %9317 = vst [vmem:[%s13416_s11 + $0x10] sm:$0xff] %v9285_v24  ;;  %v9286_v51 = vmax.f32 %v9168_v35, 0.0 }
 0x491   : > { %9315 = vst [vmem:[%s13416_s11] sm:$0xff] %v9283_v53  ;;  %v9284_v19 = vmax.f32 %v9160_v37, 0.0 }
 0x492   : > { %9318 = vst [vmem:[%s13416_s11 + $0x18] sm:$0xff] %v9286_v51 }
 0x493   : > { %9316 = vst [vmem:[%s13416_s11 + $0x8] sm:$0xff] %v9284_v19  ;;  %v11177_v61 = vpop.f32.mrb[4].mxu1 }
 0x494   : > { %v9181_v50 = vadd.f32 %v11177_v61, %v13337_v12  ;;  %v9172_v56 = vpop.f32.mrb[5].mxu1 }
 0x495   : > { %v9173_v44 = vadd.f32 %v9172_v56, %v13331_v43  ;;  %v11178_v42 = vpop.f32.mrb[6].mxu1 }
 0x496   : > { %v9289_v3 = vmax.f32 %v9181_v50, 0.0  ;;  %v9184_v4 = vadd.f32 %v11178_v42, %v13340_v41  ;;  %v9175_v28 = vpop.f32.mrb[7].mxu1 }
 0x497   : > { %v9287_v17 = vmax.f32 %v9173_v44, 0.0  ;;  %v9176_v38 = vadd.f32 %v9175_v28, %v13334_v55 }
 0x498   : > { %9321 = vst [vmem:[%s13416_s11 + $0x30] sm:$0xff] %v9289_v3  ;;  %v9290_v33 = vmax.f32 %v9184_v4, 0.0 }
 0x499   : > { %9319 = vst [vmem:[%s13416_s11 + $0x20] sm:$0xff] %v9287_v17  ;;  %v9288_v46 = vmax.f32 %v9176_v38, 0.0 }
 0x49a   : > { %9322 = vst [vmem:[%s13416_s11 + $0x38] sm:$0xff] %v9290_v33 }
 0x49b   : > { %9320 = vst [vmem:[%s13416_s11 + $0x28] sm:$0xff] %v9288_v46  ;;  %v11181_v12 = vpop.f32.mrb[8].mxu1 }
 0x49c   : > { %v9197_v43 = vadd.f32 %v11181_v12, %v13349_v23  ;;  %v9188_v47 = vpop.f32.mrb[9].mxu1 }
 0x49d   : > { %v9189_v41 = vadd.f32 %v9188_v47, %v13343_v18  ;;  %v11182_v34 = vpop.f32.mrb[10].mxu1 }
 0x49e   : > { %v9293_v60 = vmax.f32 %v9197_v43, 0.0  ;;  %v9200_v55 = vadd.f32 %v11182_v34, %v13352_v27  ;;  %v9191_v20 = vpop.f32.mrb[11].mxu1 }
 0x49f   : > { %v9291_v63 = vmax.f32 %v9189_v41, 0.0  ;;  %v9192_v25 = vadd.f32 %v9191_v20, %v13346_v58 }
 0x4a0   : > { %9325 = vst [vmem:[%s13416_s11 + $0x50] sm:$0xff] %v9293_v60  ;;  %v9294_v45 = vmax.f32 %v9200_v55, 0.0 }
 0x4a1   : > { %9323 = vst [vmem:[%s13416_s11 + $0x40] sm:$0xff] %v9291_v63  ;;  %v9292_v2 = vmax.f32 %v9192_v25, 0.0 }
 0x4a2   : > { %9326 = vst [vmem:[%s13416_s11 + $0x58] sm:$0xff] %v9294_v45 }
 0x4a3   : > { %9324 = vst [vmem:[%s13416_s11 + $0x48] sm:$0xff] %v9292_v2  ;;  %v11185_v23 = vpop.f32.mrb[12].mxu1 }
 0x4a4   : > { %v9213_v18 = vadd.f32 %v11185_v23, %v13361_v31  ;;  %v9204_v11 = vpop.f32.mrb[13].mxu1 }
 0x4a5   : > { %v9205_v27 = vadd.f32 %v9204_v11, %v13355_v36  ;;  %v11186_v7 = vpop.f32.mrb[14].mxu1 }
 0x4a6   : > { %v9297_v10 = vmax.f32 %v9213_v18, 0.0  ;;  %v9216_v58 = vadd.f32 %v11186_v7, %v13364_v57  ;;  %v9207_v30 = vpop.f32.mrb[15].mxu1 }
 0x4a7   : > { %v9295_v48 = vmax.f32 %v9205_v27, 0.0  ;;  %v9208_v54 = vadd.f32 %v9207_v30, %v13358_v49 }
 0x4a8   : > { %9329 = vst [vmem:[%s13416_s11 + $0x70] sm:$0xff] %v9297_v10  ;;  %v9298_v5 = vmax.f32 %v9216_v58, 0.0 }
 0x4a9   : > { %9327 = vst [vmem:[%s13416_s11 + $0x60] sm:$0xff] %v9295_v48  ;;  %v9296_v40 = vmax.f32 %v9208_v54, 0.0 }
 0x4aa   : > { %9330 = vst [vmem:[%s13416_s11 + $0x78] sm:$0xff] %v9298_v5 }
 0x4ab   : > { %9328 = vst [vmem:[%s13416_s11 + $0x68] sm:$0xff] %v9296_v40  ;;  %v11189_v31 = vpop.f32.mrb[16].mxu1 }
 0x4ac   : > { %v9229_v36 = vadd.f32 %v11189_v31, %v13373_v14  ;;  %v9220_v9 = vpop.f32.mrb[17].mxu1 }
 0x4ad   : > { %v9221_v57 = vadd.f32 %v9220_v9, %v13367_v22  ;;  %v11190_v24 = vpop.f32.mrb[18].mxu1 }
 0x4ae   : > { %v9301_v35 = vmax.f32 %v9229_v36, 0.0  ;;  %v9232_v49 = vadd.f32 %v11190_v24, %v13376_v1  ;;  %v9223_v6 = vpop.f32.mrb[19].mxu1 }
 0x4af   : > { %v9299_v53 = vmax.f32 %v9221_v57, 0.0  ;;  %v9224_v37 = vadd.f32 %v9223_v6, %v13370_v32 }
 0x4b0   : > { %9333 = vst [vmem:[%s13416_s11 + $0x90] sm:$0xff] %v9301_v35  ;;  %v9302_v51 = vmax.f32 %v9232_v49, 0.0 }
 0x4b1   : > { %9331 = vst [vmem:[%s13416_s11 + $0x80] sm:$0xff] %v9299_v53  ;;  %v9300_v19 = vmax.f32 %v9224_v37, 0.0 }
 0x4b2   : > { %9334 = vst [vmem:[%s13416_s11 + $0x98] sm:$0xff] %v9302_v51 }
 0x4b3   : > { %9332 = vst [vmem:[%s13416_s11 + $0x88] sm:$0xff] %v9300_v19  ;;  %v11193_v14 = vpop.f32.mrb[20].mxu1 }
 0x4b4   : > { %v9245_v22 = vadd.f32 %v11193_v14, %v13385_v59  ;;  %v9236_v61 = vpop.f32.mrb[21].mxu1 }
 0x4b5   : > { %v9237_v1 = vadd.f32 %v9236_v61, %v13379_v13  ;;  %v11194_v50 = vpop.f32.mrb[22].mxu1 }
 0x4b6   : > { %v9305_v56 = vmax.f32 %v9245_v22, 0.0  ;;  %v9248_v32 = vadd.f32 %v11194_v50, %v13388_v16  ;;  %v9239_v44 = vpop.f32.mrb[23].mxu1 }
 0x4b7   : > { %v9303_v42 = vmax.f32 %v9237_v1, 0.0  ;;  %v9240_v3 = vadd.f32 %v9239_v44, %v13382_v62 }
 0x4b8   : > { %9337 = vst [vmem:[%s13416_s11 + $0xb0] sm:$0xff] %v9305_v56  ;;  %v9306_v4 = vmax.f32 %v9248_v32, 0.0 }
 0x4b9   : > { %9335 = vst [vmem:[%s13416_s11 + $0xa0] sm:$0xff] %v9303_v42  ;;  %v9304_v28 = vmax.f32 %v9240_v3, 0.0 }
 0x4ba   : > { %9338 = vst [vmem:[%s13416_s11 + $0xb8] sm:$0xff] %v9306_v4 }
 0x4bb   : > { %9336 = vst [vmem:[%s13416_s11 + $0xa8] sm:$0xff] %v9304_v28  ;;  %v11197_v59 = vpop.f32.mrb[24].mxu1 }
 0x4bc   : > { %v9261_v13 = vadd.f32 %v11197_v59, %v13397_v26  ;;  %v9252_v17 = vpop.f32.mrb[25].mxu1 }
 0x4bd   : > { %v9253_v16 = vadd.f32 %v9252_v17, %v13391_v15  ;;  %v11198_v38 = vpop.f32.mrb[26].mxu1 }
 0x4be   : > { %v9309_v33 = vmax.f32 %v9261_v13, 0.0  ;;  %v9264_v62 = vadd.f32 %v11198_v38, %v13400_v0  ;;  %v9255_v46 = vpop.f32.mrb[27].mxu1 }
 0x4bf   : > { %v9307_v12 = vmax.f32 %v9253_v16, 0.0  ;;  %v9256_v43 = vadd.f32 %v9255_v46, %v13394_v52 }
 0x4c0   : > { %9341 = vst [vmem:[%s13416_s11 + $0xd0] sm:$0xff] %v9309_v33  ;;  %v9310_v47 = vmax.f32 %v9264_v62, 0.0 }
 0x4c1   : > { %9339 = vst [vmem:[%s13416_s11 + $0xc0] sm:$0xff] %v9307_v12  ;;  %v9308_v41 = vmax.f32 %v9256_v43, 0.0 }
 0x4c2   : > { %9342 = vst [vmem:[%s13416_s11 + $0xd8] sm:$0xff] %v9310_v47 }
 0x4c3   : > { %9340 = vst [vmem:[%s13416_s11 + $0xc8] sm:$0xff] %v9308_v41  ;;  %v11201_v26 = vpop.f32.mrb[28].mxu1 }
 0x4c4   : > { %v9277_v15 = vadd.f32 %v11201_v26, %v13413_v21  ;;  %v9268_v34 = vpop.f32.mrb[29].mxu1 }
 0x4c5   : > { %v9269_v0 = vadd.f32 %v9268_v34, %v13403_v8  ;;  %v11202_v60 = vpop.f32.mrb[30].mxu1 }
 0x4c6   : > { %v9313_v52 = vmax.f32 %v9277_v15, 0.0  ;;  %v9280_v55 = vadd.f32 %v11202_v60, %v13419_v39  ;;  %v9271_v20 = vpop.f32.mrb[31].mxu1 }
 0x4c7   : > { %v9311_v63 = vmax.f32 %v9269_v0, 0.0  ;;  %v9272_v25 = vadd.f32 %v9271_v20, %v13406_v29 }
 0x4c8   : > { %9345 = vst [vmem:[%s13416_s11 + $0xf0] sm:$0xff] %v9313_v52  ;;  %v9314_v45 = vmax.f32 %v9280_v55, 0.0 }
 0x4c9   : > { %9343 = vst [vmem:[%s13416_s11 + $0xe0] sm:$0xff] %v9311_v63  ;;  %v9312_v8 = vmax.f32 %v9272_v25, 0.0 }
 0x4ca   : > { %9346 = vst [vmem:[%s13416_s11 + $0xf8] sm:$0xff] %v9314_v45 }
 0x4cb   : > { %9344 = vst [vmem:[%s13416_s11 + $0xe8] sm:$0xff] %v9312_v8 }
 0x4cc   : > { %12000 = shalt.err (!%p11997_p1)
}
 0x4cd   : > { %s12001_s10 = scalar_lea.hbm %s13482_s9, 4096  ;;  %s12005_s13 = scalar_lea.hbm %s13536_s5, 8192 }
 0x4ce   : > { %p12002_p13 = scmp.ne.s32.totalorder %s13482_s9, %s12001_s10  ;;  %p12006_p4 = scmp.lt.u32.totalorder %s13482_s9, %s13536_s5 }
 0x4cf   : > { %p12007_p5 = scmp.lt.u32.totalorder %s12005_s13, %s12001_s10  ;;  %p12009_p11 = scmp.lt.u32.totalorder %s12001_s10, %s13482_s9 }
 0x4d0   : > { %p12003_p6 = pnand %p12002_p13, %p13556_p0 }
 0x4d1   : > { %p12008_p8 = por %p12007_p5, %p12006_p4 }
 0x4d2   : > { %p12004_p10 = pneg %p12003_p6 }
 0x4d3   : > { %p12010_p2 = por %p12009_p11, %p12008_p8 }
 0x4d5   : > { %p12011_p3 = pnand %p12010_p2, %p12004_p10 }
 0x4d7   : > { %12014 = shalt.err (!%p12011_p3)
}
 0x4d8   : > { %s12066_s17 = smov 128   ;;  %s12067_s6 = smov 8  }
 0x4d9   : > { %11213 = dma.vmem_to_hbm [thread:$0]  (%p13556_p0), %s13484_s7, 4096, %s13482_s9, %s9348_s22, %s12066_s17, %s12066_s17, %s12067_s6  }
 0x4da PF: > { %s9376_s8 = sand.u32 1, %s12045_s18   ;;  %p13557_p7 = scmp.ne.s32.totalorder %s13541_s25, 0 }
 0x4db   : > { %p13558_p9 = scmp.ge.s32.totalorder %s12057_s21, 2  ;;  %s9377_s24 = scalar_lea.sflag [#allocation8], %s9376_s8 }
 0x4dd   : > { %p11227_p12 = pnand %p13558_p9, %p13557_p7 }
 0x4df   : > { %12040 = dma.done.wait (!%p11227_p12), %s9377_s24, 4096  }
 0x4e0   : > { %12042 = vsyncadd (!%p11227_p12), %s9377_s24, 4294963200  ;;  %p19_p1 = scmp.ge.s32.totalorder %s12214_s29, 4   ;;  %s13559_s18 = smov %s12049_s19 }
 0x4e1   : > { %s13560_s19 = smov %s12053_s20  ;;  %s13561_s20 = smov %s12230_s27 }
 0x4e2   : > { %s13562_s21 = smov %s12214_s29  ;;  %21 = sbr.rel (!%p19_p1) target bundleno = 6 (0x6), region = 97 }
 0x4e9   :  { %9382 = vsyncpa [#allocation7], 1 }
 0x4ea   :  { %9384 = vsyncpa [#allocation7 + $0x1], 1 }
 0x4eb   :  { %9385 = vsyncpa [#allocation10], 1 }
 0x4ec   :  { %9386 = vsyncpa [#allocation8], 1 }
 0x4ed   :  { %9388 = vsyncpa [#allocation8 + $0x1], 1 }

</bundles_post_ra>
